<compile_context>
chip_gen: v5e
topology: v5e:2x2
jax: 0.10.0
libtpu: 0.0.40
codegen_flags: <defaults>
</compile_context>

<pallas_src>
import math

import jax
import jax.numpy as jnp
import numpy as np
from jax.experimental import pallas as pl
from jax.experimental.pallas import tpu as pltpu

RELU_MAX = 20.0                                   # module ReLU = Hardtanh(0, 20)
_TAPS = tuple((dy, dx) for dy in range(3) for dx in range(3))   # 3x3 tap order


# ---------------------------------------------------------------------------
# Eval-mode BatchNorm folding
# ---------------------------------------------------------------------------
def bn_fold(gamma, beta, mean, var, eps=1e-5):
    scale = gamma / jnp.sqrt(var + eps)
    bias = beta - mean * scale
    return scale, bias


def _pick_block_batch(n, hw, target_m=256):
    """Largest divisor of n such that nb*hw roughly reaches target_m."""
    want = max(1, -(-target_m // hw))             # ceil(target_m / hw)
    nb = 1
    for d in range(1, n + 1):
        if n % d == 0 and d <= want:
            nb = d
    return nb


# ---------------------------------------------------------------------------
# Fused Pallas kernel (NB batch samples per grid step)
# ---------------------------------------------------------------------------
def _make_block_kernel(scale_groups, has_shortcut, NB, Ho, Wo, Cin, out_ch,
                       wp, stride, mm_dtype):
    M = NB * Ho * Wo
    sc_off = out_ch if has_shortcut else 0        # shortcut cols come first

    def kernel(x_ref, wfused_ref, b1_ref, wconv_ref, bconv_ref, w3_ref,
               bfin_ref, o_ref, c1_ref, pad_ref, col_ref, spcat_ref):
        # ---- input block; 1x1-conv stride folded in as a VMEM subsample ----
        if stride == 1:
            xs = x_ref[...]                       # (NB, Ho, Wo, Cin)
        else:
            # TODO(synk): for large maps fold the stride into the index_map.
            xs = x_ref[...][:, ::stride, ::stride, :]
        x2d = xs.reshape(M, Cin)

        # ---- fused conv1(+bn1) & shortcut-projection(+bn_sc) matmul --------
        # wfused columns: [ shortcut(out_ch) | group0(wp) | group1(wp) ... ]
        c1_ref[...] = jnp.dot(x2d.astype(mm_dtype), wfused_ref[...],
                              preferred_element_type=jnp.float32)

        # Zero the padded 3x3 plane once per grid step (halo is never written
        # afterwards; interior is fully overwritten every group).  See module
        # comment for why this is not guarded by program_id(0)==0.
        pad_ref[...] = jnp.zeros(pad_ref.shape, jnp.float32)

        # ---- Res2 hierarchy of 3x3 convs ------------------------------------
        sp = None
        for i in range(scale_groups):
            g0 = sc_off + i * wp
            chunk = c1_ref[:, g0:g0 + wp] + b1_ref[i:i + 1, :]
            chunk = jnp.clip(chunk, 0.0, RELU_MAX)        # conv1+bn1+relu
            sp = chunk if i == 0 else sp + chunk          # hierarchical add

            # Stage sp into the zero-padded plane; interior write is
            # sublane-tile aligned (rows [1,Ho+1), cols [8, 8+Wo)).
            pad_ref[:, 1:Ho + 1, 8:8 + Wo, :] = sp.reshape(NB, Ho, Wo, wp)

            # im2col: 9 shifted taps -> one (M, 9*wp) MXU operand.
            for t, (dy, dx) in enumerate(_TAPS):
                patch = pad_ref[:, dy:dy + Ho, 7 + dx:7 + dx + Wo, :]
                col_ref[:, t * wp:(t + 1) * wp] = (
                    patch.reshape(M, wp).astype(mm_dtype))

            conv = jnp.dot(col_ref[...], wconv_ref[i],    # K = 9*wp
                           preferred_element_type=jnp.float32)
            sp = jnp.clip(conv + bconv_ref[i:i + 1, :], 0.0, RELU_MAX)

            # Stash for the single conv3 matmul (implicit channel concat).
            spcat_ref[:, i * wp:(i + 1) * wp] = sp.astype(mm_dtype)

        # ---- conv3(+bn3) over the concat, one matmul with K = scale*wp -----
        acc = jnp.dot(spcat_ref[...], w3_ref[...],
                      preferred_element_type=jnp.float32)

        if has_shortcut:
            res = c1_ref[:, 0:out_ch]                     # projection (f32)
        else:
            res = x_ref[...].reshape(M, Cin)              # identity shortcut

        y = jnp.clip(acc + res + bfin_ref[...], 0.0, RELU_MAX)
        o_ref[...] = y.reshape(NB, Ho, Wo, out_ch).astype(o_ref.dtype)

    return kernel


# ---------------------------------------------------------------------------
# Module forward (NHWC in / NHWC out): one fused pallas_call
# ---------------------------------------------------------------------------
def eres2netv2_block_forward(x_nhwc, params, *, stride, width, scale_groups,
                             mm_dtype=jnp.bfloat16, target_m=256):
    N, H, W, Cin = x_nhwc.shape
    Ho = (H - 1) // stride + 1
    Wo = (W - 1) // stride + 1
    out_ch = params["w3"].shape[1]
    has_sc = params["w_sc"] is not None
    if not has_sc:
        assert stride == 1 and Cin == out_ch, \
            "identity shortcut requires stride==1 and in_planes==expansion*planes"

    wp = ((width + 7) // 8) * 8                   # 26 -> 32: aligned offsets
    mid_p = scale_groups * wp
    f32 = jnp.float32

    # ---- fold eval-mode BN into conv weights; keep per-channel biases ------
    s1, b1 = bn_fold(*params["bn1"])
    w1f = params["w1"] * s1[None, :]
    s3, b3 = bn_fold(*params["bn3"])
    w3f = params["w3"] * s3[None, :]
    bias_fin = b3
    if has_sc:
        ssc, bsc = bn_fold(*params["bn_sc"])
        wscf = params["w_sc"] * ssc[None, :]
        bias_fin = b3 + bsc                       # both biases add before relu

    # ---- pack padded weights (trace-time; weights are tiny) ----------------
    w1p = jnp.zeros((Cin, mid_p), f32)
    b1p = jnp.zeros((scale_groups, wp), f32)
    wconvp = jnp.zeros((scale_groups, 9 * wp, wp), f32)
    bconvp = jnp.zeros((scale_groups, wp), f32)
    w3p = jnp.zeros((mid_p, out_ch), f32)
    for i in range(scale_groups):
        w1p = w1p.at[:, i * wp:i * wp + width].set(
            w1f[:, i * width:(i + 1) * width])
        b1p = b1p.at[i, :width].set(b1[i * width:(i + 1) * width])
        si, bi = bn_fold(*params["bns"][i])
        wc = params["convs"][i] * si[None, None, None, :]     # (3,3,width,width)
        for t, (dy, dx) in enumerate(_TAPS):
            wconvp = wconvp.at[i, t * wp:t * wp + width, :width].set(wc[dy, dx])
        bconvp = bconvp.at[i, :width].set(bi)
        w3p = w3p.at[i * wp:i * wp + width, :].set(
            w3f[i * width:(i + 1) * width, :])

    # Shortcut first so its in-kernel slice [0:out_ch] is lane-block aligned.
    wfused = jnp.concatenate([wscf, w1p], axis=1) if has_sc else w1p
    wfused = wfused.astype(mm_dtype)
    wconvp = wconvp.astype(mm_dtype)
    w3p = w3p.astype(mm_dtype)
    bias_fin = bias_fin.reshape(1, out_ch)

    NB = _pick_block_batch(N, Ho * Wo, target_m)  # samples per grid step
    M = NB * Ho * Wo
    NF = wfused.shape[1]

    kernel = _make_block_kernel(scale_groups, has_sc, NB, Ho, Wo, Cin, out_ch,
                                wp, stride, mm_dtype)

    const2 = lambda n: (0, 0)
    const3 = lambda n: (0, 0, 0)
    # TODO(synk): the weight/bias specs are grid-invariant; mark them
    # pipeline_mode=pl.Buffered(1) once that API is relied upon (here the
    # weights are <100 KiB, negligible even for v7x's 64 MiB VMEM).
    y = pl.pallas_call(
        kernel,
        out_shape=jax.ShapeDtypeStruct((N, Ho, Wo, out_ch), x_nhwc.dtype),
        grid_spec=pltpu.PrefetchScalarGridSpec(
            num_scalar_prefetch=0,
            grid=(N // NB,),
            in_specs=[
                pl.BlockSpec((NB, H, W, Cin), lambda n: (n, 0, 0, 0)),
                pl.BlockSpec((Cin, NF), const2),
                pl.BlockSpec((scale_groups, wp), const2),
                pl.BlockSpec((scale_groups, 9 * wp, wp), const3),
                pl.BlockSpec((scale_groups, wp), const2),
                pl.BlockSpec((mid_p, out_ch), const2),
                pl.BlockSpec((1, out_ch), const2),
            ],
            out_specs=pl.BlockSpec((NB, Ho, Wo, out_ch), lambda n: (n, 0, 0, 0)),
            scratch_shapes=[
                pltpu.VMEM((M, NF), jnp.float32),                  # conv1 | shortcut
                pltpu.VMEM((NB, Ho + 2, Wo + 16, wp), jnp.float32),  # padded plane
                pltpu.VMEM((M, 9 * wp), mm_dtype),                 # im2col operand
                pltpu.VMEM((M, mid_p), mm_dtype),                  # concat for conv3
            ],
        ),
        compiler_params=pltpu.CompilerParams(
            dimension_semantics=("parallel",),
        ),
    )(x_nhwc, wfused, b1p, wconvp, bconvp, w3p, bias_fin)
    return y


# ---------------------------------------------------------------------------
# Pure-JAX reference (NHWC) for correctness checks
# ---------------------------------------------------------------------------
def ref_forward(x, params, *, stride, width, scale_groups):
    HI = jax.lax.Precision.HIGHEST
    relu = lambda y: jnp.clip(y, 0.0, RELU_MAX)

    def bn(y, p):
        s, b = bn_fold(*p)
        return y * s + b

    xs = x[:, ::stride, ::stride, :]
    out = relu(bn(jnp.einsum('nhwc,cd->nhwd', xs, params["w1"], precision=HI),
                  params["bn1"]))
    sps = []
    sp = None
    for i in range(scale_groups):
        chunk = out[..., i * width:(i + 1) * width]
        sp = chunk if i == 0 else sp + chunk
        Hh, Ww = sp.shape[1], sp.shape[2]
        xp = jnp.pad(sp, ((0, 0), (1, 1), (1, 1), (0, 0)))
        conv = jnp.zeros(sp.shape[:3] + (width,), jnp.float32)
        for dy in range(3):
            for dx in range(3):
                conv = conv + jnp.einsum('nhwc,cd->nhwd',
                                         xp[:, dy:dy + Hh, dx:dx + Ww, :],
                                         params["convs"][i][dy, dx], precision=HI)
        sp = relu(bn(conv, params["bns"][i]))
        sps.append(sp)
    cat = jnp.concatenate(sps, axis=-1)
    y = bn(jnp.einsum('nhwc,cd->nhwd', cat, params["w3"], precision=HI),
           params["bn3"])
    if params["w_sc"] is not None:
        res = bn(jnp.einsum('nhwc,cd->nhwd', xs, params["w_sc"], precision=HI),
                 params["bn_sc"])
    else:
        res = xs
    return relu(y + res)


# ---------------------------------------------------------------------------
# Deterministic parameter init (shapes from BasicBlockERes2NetV2.__init__)
# ---------------------------------------------------------------------------
def init_params(key, in_planes, planes, baseWidth=26, scale=2, expansion=2,
                stride=1):
    width = int(math.floor(planes * (baseWidth / 64.0)))
    mid = width * scale
    out_ch = planes * expansion
    keys = jax.random.split(key, 16)

    def w(k, shape):
        return 0.1 * jax.random.normal(k, shape, jnp.float32)

    def bn(k, c):
        kg, kb, km, kv = jax.random.split(k, 4)
        gamma = 1.0 + 0.1 * jax.random.normal(kg, (c,), jnp.float32)
        beta = 0.1 * jax.random.normal(kb, (c,), jnp.float32)
        mean = 0.1 * jax.random.normal(km, (c,), jnp.float32)
        var = 0.5 + 0.1 * jnp.abs(jax.random.normal(kv, (c,), jnp.float32))
        return (gamma, beta, mean, var)

    params = {
        "w1": w(keys[0], (in_planes, mid)),                        # conv1: 1x1
        "bn1": bn(keys[1], mid),
        "convs": [w(keys[2 + i], (3, 3, width, width)) for i in range(scale)],
        "bns": [bn(keys[4 + i], width) for i in range(scale)],
        "w3": w(keys[6], (mid, out_ch)),                           # conv3: 1x1
        "bn3": bn(keys[7], out_ch),
    }
    if stride != 1 or in_planes != out_ch:
        params["w_sc"] = w(keys[8], (in_planes, out_ch))           # shortcut 1x1
        params["bn_sc"] = bn(keys[9], out_ch)
    else:
        params["w_sc"] = None
        params["bn_sc"] = None
    return params, width


if __name__ == "__main__":
    key = jax.random.PRNGKey(0)
    k1, k2, k3, k4 = jax.random.split(key, 4)

    N, H, W = 8, 8, 8                            # NHWC activations
    planes, stride, baseWidth, scale, expansion = 64, 1, 26, 2, 2
    out_ch = planes * expansion

    # ---- Config A: projection shortcut, f32 MXU operands (strict check) ----
    in_planes_a = 64
    xa = jax.random.normal(k1, (N, H, W, in_planes_a), jnp.float32)
    params_a, width_a = init_params(k2, in_planes_a, planes, baseWidth, scale,
                                    expansion, stride)
    out_a = eres2netv2_block_forward(xa, params_a, stride=stride, width=width_a,
                                     scale_groups=scale, mm_dtype=jnp.float32)
    out_a = jax.block_until_ready(out_a)
    assert out_a.shape == (N, H, W, out_ch), out_a.shape
    ref_a = ref_forward(xa, params_a, stride=stride, width=width_a,
                        scale_groups=scale)
    np.testing.assert_allclose(np.asarray(out_a), np.asarray(ref_a),
                               atol=5e-2, rtol=5e-2)

    # ---- Config B: identity shortcut, default bf16 MXU operands ------------
    # (looser tolerance: bf16 operands vs the f32 reference; accumulation f32)
    in_planes_b = 128
    xb = jax.random.normal(k3, (N, H, W, in_planes_b), jnp.float32)
    params_b, width_b = init_params(k4, in_planes_b, planes, baseWidth, scale,
                                    expansion, stride)
    out_b = eres2netv2_block_forward(xb, params_b, stride=stride, width=width_b,
                                     scale_groups=scale)
    out_b = jax.block_until_ready(out_b)
    assert out_b.shape == (N, H, W, out_ch), out_b.shape
    ref_b = ref_forward(xb, params_b, stride=stride, width=width_b,
                        scale_groups=scale)
    np.testing.assert_allclose(np.asarray(out_b), np.asarray(ref_b),
                               atol=2e-1, rtol=1e-1)

    print("KERNEL_OK")
</pallas_src>

<mosaic_0001>
module attributes {stable_mosaic.version = 11 : i64} {
  func.func @kernel(%arg0: i32, %arg1: memref<4x8x8x64xf32, #tpu.memory_space<vmem>>, %arg2: memref<64x192xf32, #tpu.memory_space<vmem>>, %arg3: memref<2x32xf32, #tpu.memory_space<vmem>>, %arg4: memref<2x288x32xf32, #tpu.memory_space<vmem>>, %arg5: memref<2x32xf32, #tpu.memory_space<vmem>>, %arg6: memref<64x128xf32, #tpu.memory_space<vmem>>, %arg7: memref<1x128xf32, #tpu.memory_space<vmem>>, %arg8: memref<4x8x8x128xf32, #tpu.memory_space<vmem>>, %arg9: memref<256x192xf32, #tpu.memory_space<vmem>>, %arg10: memref<4x10x24x32xf32, #tpu.memory_space<vmem>>, %arg11: memref<256x288xf32, #tpu.memory_space<vmem>>, %arg12: memref<256x64xf32, #tpu.memory_space<vmem>>) attributes {dimension_semantics = [#tpu.dimension_semantics<parallel>], iteration_bounds = array<i64: 2>, scalar_prefetch = 0 : i64, scratch_operands = 4 : i64, tpu.core_type = #tpu.core_type<tc>, window_params = [{transform_indices = @transform_0, window_bounds = array<i64: 4, 8, 8, 64>}, {pipeline_mode = #tpu.pipeline_mode<synchronous>, transform_indices = @transform_1, window_bounds = array<i64: 64, 192>}, {pipeline_mode = #tpu.pipeline_mode<synchronous>, transform_indices = @transform_2, window_bounds = array<i64: 2, 32>}, {pipeline_mode = #tpu.pipeline_mode<synchronous>, transform_indices = @transform_3, window_bounds = array<i64: 2, 288, 32>}, {pipeline_mode = #tpu.pipeline_mode<synchronous>, transform_indices = @transform_4, window_bounds = array<i64: 2, 32>}, {pipeline_mode = #tpu.pipeline_mode<synchronous>, transform_indices = @transform_5, window_bounds = array<i64: 64, 128>}, {pipeline_mode = #tpu.pipeline_mode<synchronous>, transform_indices = @transform_6, window_bounds = array<i64: 1, 128>}, {transform_indices = @transform_7, window_bounds = array<i64: 4, 8, 8, 128>}]} {
    %c0 = arith.constant 0 : index
    %c0_0 = arith.constant 0 : index
    %c0_1 = arith.constant 0 : index
    %c0_2 = arith.constant 0 : index
    %0 = vector.load %arg1[%c0, %c0_0, %c0_1, %c0_2] : memref<4x8x8x64xf32, #tpu.memory_space<vmem>>, vector<4x8x8x64xf32>
    %1 = vector.shape_cast %0 : vector<4x8x8x64xf32> to vector<256x64xf32>
    %c0_3 = arith.constant 0 : index
    %c0_4 = arith.constant 0 : index
    %2 = vector.load %arg2[%c0_3, %c0_4] : memref<64x192xf32, #tpu.memory_space<vmem>>, vector<64x192xf32>
    %cst = arith.constant dense<0.000000e+00> : vector<256x192xf32>
    %3 = tpu.matmul %1, %2, %cst {dimension_numbers = #tpu.dot_dimension_numbers<[1], [0], [0], [1], [0, 0, 1, 1], [], []>} : vector<256x64xf32>, vector<64x192xf32>, vector<256x192xf32> -> vector<256x192xf32>
    %c0_5 = arith.constant 0 : index
    %c0_6 = arith.constant 0 : index
    %4 = vector.load %arg9[%c0_5, %c0_6] : memref<256x192xf32, #tpu.memory_space<vmem>>, vector<256x192xf32>
    tpu.vector_store %arg9[%c0_5, %c0_6], %3 {strides = array<i32>} : memref<256x192xf32, #tpu.memory_space<vmem>>, vector<256x192xf32>,
    %cst_7 = arith.constant 0.000000e+00 : f32
    %5 = vector.broadcast %cst_7 : f32 to vector<4x10x24x32xf32>
    %c0_8 = arith.constant 0 : index
    %c0_9 = arith.constant 0 : index
    %c0_10 = arith.constant 0 : index
    %c0_11 = arith.constant 0 : index
    %6 = vector.load %arg10[%c0_8, %c0_9, %c0_10, %c0_11] : memref<4x10x24x32xf32, #tpu.memory_space<vmem>>, vector<4x10x24x32xf32>
    tpu.vector_store %arg10[%c0_8, %c0_9, %c0_10, %c0_11], %5 {strides = array<i32>} : memref<4x10x24x32xf32, #tpu.memory_space<vmem>>, vector<4x10x24x32xf32>,
    %c0_12 = arith.constant 0 : index
    %c128 = arith.constant 128 : index
    %7 = vector.load %arg9[%c0_12, %c128] : memref<256x192xf32, #tpu.memory_space<vmem>>, vector<256x32xf32>
    %c0_13 = arith.constant 0 : index
    %c0_14 = arith.constant 0 : index
    %8 = vector.load %arg3[%c0_13, %c0_14] : memref<2x32xf32, #tpu.memory_space<vmem>>, vector<1x32xf32>
    %9 = vector.broadcast %8 : vector<1x32xf32> to vector<256x32xf32>
    %10 = arith.addf %7, %9 : vector<256x32xf32>
    %cst_15 = arith.constant 0.000000e+00 : f32
    %cst_16 = arith.constant 2.000000e+01 : f32
    %11 = vector.broadcast %cst_15 : f32 to vector<256x32xf32>
    %12 = arith.maximumf %11, %10 : vector<256x32xf32>
    %13 = vector.broadcast %cst_16 : f32 to vector<256x32xf32>
    %14 = arith.minimumf %13, %12 : vector<256x32xf32>
    %15 = vector.shape_cast %14 : vector<256x32xf32> to vector<4x8x8x32xf32>
    %c0_17 = arith.constant 0 : index
    %c1 = arith.constant 1 : index
    %c8 = arith.constant 8 : index
    %c0_18 = arith.constant 0 : index
    %16 = vector.load %arg10[%c0_17, %c1, %c8, %c0_18] : memref<4x10x24x32xf32, #tpu.memory_space<vmem>>, vector<4x8x8x32xf32>
    tpu.vector_store %arg10[%c0_17, %c1, %c8, %c0_18], %15 {strides = array<i32>} : memref<4x10x24x32xf32, #tpu.memory_space<vmem>>, vector<4x8x8x32xf32>,
    %c0_19 = arith.constant 0 : index
    %c0_20 = arith.constant 0 : index
    %c7 = arith.constant 7 : index
    %c0_21 = arith.constant 0 : index
    %17 = vector.load %arg10[%c0_19, %c0_20, %c7, %c0_21] : memref<4x10x24x32xf32, #tpu.memory_space<vmem>>, vector<4x8x8x32xf32>
    %18 = vector.shape_cast %17 : vector<4x8x8x32xf32> to vector<256x32xf32>
    %c0_22 = arith.constant 0 : index
    %c0_23 = arith.constant 0 : index
    %19 = vector.load %arg11[%c0_22, %c0_23] : memref<256x288xf32, #tpu.memory_space<vmem>>, vector<256x32xf32>
    tpu.vector_store %arg11[%c0_22, %c0_23], %18 {strides = array<i32>} : memref<256x288xf32, #tpu.memory_space<vmem>>, vector<256x32xf32>,
    %c0_24 = arith.constant 0 : index
    %c0_25 = arith.constant 0 : index
    %c8_26 = arith.constant 8 : index
    %c0_27 = arith.constant 0 : index
    %20 = vector.load %arg10[%c0_24, %c0_25, %c8_26, %c0_27] : memref<4x10x24x32xf32, #tpu.memory_space<vmem>>, vector<4x8x8x32xf32>
    %21 = vector.shape_cast %20 : vector<4x8x8x32xf32> to vector<256x32xf32>
    %c0_28 = arith.constant 0 : index
    %c32 = arith.constant 32 : index
    %22 = vector.load %arg11[%c0_28, %c32] : memref<256x288xf32, #tpu.memory_space<vmem>>, vector<256x32xf32>
    tpu.vector_store %arg11[%c0_28, %c32], %21 {strides = array<i32>} : memref<256x288xf32, #tpu.memory_space<vmem>>, vector<256x32xf32>,
    %c0_29 = arith.constant 0 : index
    %c0_30 = arith.constant 0 : index
    %c9 = arith.constant 9 : index
    %c0_31 = arith.constant 0 : index
    %23 = vector.load %arg10[%c0_29, %c0_30, %c9, %c0_31] : memref<4x10x24x32xf32, #tpu.memory_space<vmem>>, vector<4x8x8x32xf32>
    %24 = vector.shape_cast %23 : vector<4x8x8x32xf32> to vector<256x32xf32>
    %c0_32 = arith.constant 0 : index
    %c64 = arith.constant 64 : index
    %25 = vector.load %arg11[%c0_32, %c64] : memref<256x288xf32, #tpu.memory_space<vmem>>, vector<256x32xf32>
    tpu.vector_store %arg11[%c0_32, %c64], %24 {strides = array<i32>} : memref<256x288xf32, #tpu.memory_space<vmem>>, vector<256x32xf32>,
    %c0_33 = arith.constant 0 : index
    %c1_34 = arith.constant 1 : index
    %c7_35 = arith.constant 7 : index
    %c0_36 = arith.constant 0 : index
    %26 = vector.load %arg10[%c0_33, %c1_34, %c7_35, %c0_36] : memref<4x10x24x32xf32, #tpu.memory_space<vmem>>, vector<4x8x8x32xf32>
    %27 = vector.shape_cast %26 : vector<4x8x8x32xf32> to vector<256x32xf32>
    %c0_37 = arith.constant 0 : index
    %c96 = arith.constant 96 : index
    %28 = vector.load %arg11[%c0_37, %c96] : memref<256x288xf32, #tpu.memory_space<vmem>>, vector<256x32xf32>
    tpu.vector_store %arg11[%c0_37, %c96], %27 {strides = array<i32>} : memref<256x288xf32, #tpu.memory_space<vmem>>, vector<256x32xf32>,
    %c0_38 = arith.constant 0 : index
    %c1_39 = arith.constant 1 : index
    %c8_40 = arith.constant 8 : index
    %c0_41 = arith.constant 0 : index
    %29 = vector.load %arg10[%c0_38, %c1_39, %c8_40, %c0_41] : memref<4x10x24x32xf32, #tpu.memory_space<vmem>>, vector<4x8x8x32xf32>
    %30 = vector.shape_cast %29 : vector<4x8x8x32xf32> to vector<256x32xf32>
    %c0_42 = arith.constant 0 : index
    %c128_43 = arith.constant 128 : index
    %31 = vector.load %arg11[%c0_42, %c128_43] : memref<256x288xf32, #tpu.memory_space<vmem>>, vector<256x32xf32>
    tpu.vector_store %arg11[%c0_42, %c128_43], %30 {strides = array<i32>} : memref<256x288xf32, #tpu.memory_space<vmem>>, vector<256x32xf32>,
    %c0_44 = arith.constant 0 : index
    %c1_45 = arith.constant 1 : index
    %c9_46 = arith.constant 9 : index
    %c0_47 = arith.constant 0 : index
    %32 = vector.load %arg10[%c0_44, %c1_45, %c9_46, %c0_47] : memref<4x10x24x32xf32, #tpu.memory_space<vmem>>, vector<4x8x8x32xf32>
    %33 = vector.shape_cast %32 : vector<4x8x8x32xf32> to vector<256x32xf32>
    %c0_48 = arith.constant 0 : index
    %c160 = arith.constant 160 : index
    %34 = vector.load %arg11[%c0_48, %c160] : memref<256x288xf32, #tpu.memory_space<vmem>>, vector<256x32xf32>
    tpu.vector_store %arg11[%c0_48, %c160], %33 {strides = array<i32>} : memref<256x288xf32, #tpu.memory_space<vmem>>, vector<256x32xf32>,
    %c0_49 = arith.constant 0 : index
    %c2 = arith.constant 2 : index
    %c7_50 = arith.constant 7 : index
    %c0_51 = arith.constant 0 : index
    %35 = vector.load %arg10[%c0_49, %c2, %c7_50, %c0_51] : memref<4x10x24x32xf32, #tpu.memory_space<vmem>>, vector<4x8x8x32xf32>
    %36 = vector.shape_cast %35 : vector<4x8x8x32xf32> to vector<256x32xf32>
    %c0_52 = arith.constant 0 : index
    %c192 = arith.constant 192 : index
    %37 = vector.load %arg11[%c0_52, %c192] : memref<256x288xf32, #tpu.memory_space<vmem>>, vector<256x32xf32>
    tpu.vector_store %arg11[%c0_52, %c192], %36 {strides = array<i32>} : memref<256x288xf32, #tpu.memory_space<vmem>>, vector<256x32xf32>,
    %c0_53 = arith.constant 0 : index
    %c2_54 = arith.constant 2 : index
    %c8_55 = arith.constant 8 : index
    %c0_56 = arith.constant 0 : index
    %38 = vector.load %arg10[%c0_53, %c2_54, %c8_55, %c0_56] : memref<4x10x24x32xf32, #tpu.memory_space<vmem>>, vector<4x8x8x32xf32>
    %39 = vector.shape_cast %38 : vector<4x8x8x32xf32> to vector<256x32xf32>
    %c0_57 = arith.constant 0 : index
    %c224 = arith.constant 224 : index
    %40 = vector.load %arg11[%c0_57, %c224] : memref<256x288xf32, #tpu.memory_space<vmem>>, vector<256x32xf32>
    tpu.vector_store %arg11[%c0_57, %c224], %39 {strides = array<i32>} : memref<256x288xf32, #tpu.memory_space<vmem>>, vector<256x32xf32>,
    %c0_58 = arith.constant 0 : index
    %c2_59 = arith.constant 2 : index
    %c9_60 = arith.constant 9 : index
    %c0_61 = arith.constant 0 : index
    %41 = vector.load %arg10[%c0_58, %c2_59, %c9_60, %c0_61] : memref<4x10x24x32xf32, #tpu.memory_space<vmem>>, vector<4x8x8x32xf32>
    %42 = vector.shape_cast %41 : vector<4x8x8x32xf32> to vector<256x32xf32>
    %c0_62 = arith.constant 0 : index
    %c256 = arith.constant 256 : index
    %43 = vector.load %arg11[%c0_62, %c256] : memref<256x288xf32, #tpu.memory_space<vmem>>, vector<256x32xf32>
    tpu.vector_store %arg11[%c0_62, %c256], %42 {strides = array<i32>} : memref<256x288xf32, #tpu.memory_space<vmem>>, vector<256x32xf32>,
    %c0_63 = arith.constant 0 : index
    %c0_64 = arith.constant 0 : index
    %44 = vector.load %arg11[%c0_63, %c0_64] : memref<256x288xf32, #tpu.memory_space<vmem>>, vector<256x288xf32>
    %c0_65 = arith.constant 0 : index
    %c0_66 = arith.constant 0 : index
    %c0_67 = arith.constant 0 : index
    %45 = vector.load %arg4[%c0_65, %c0_66, %c0_67] : memref<2x288x32xf32, #tpu.memory_space<vmem>>, vector<1x288x32xf32>
    %46 = vector.shape_cast %45 : vector<1x288x32xf32> to vector<288x32xf32>
    %cst_68 = arith.constant dense<0.000000e+00> : vector<256x32xf32>
    %47 = tpu.matmul %44, %46, %cst_68 {dimension_numbers = #tpu.dot_dimension_numbers<[1], [0], [0], [1], [0, 0, 1, 1], [], []>} : vector<256x288xf32>, vector<288x32xf32>, vector<256x32xf32> -> vector<256x32xf32>
    %c0_69 = arith.constant 0 : index
    %c0_70 = arith.constant 0 : index
    %48 = vector.load %arg5[%c0_69, %c0_70] : memref<2x32xf32, #tpu.memory_space<vmem>>, vector<1x32xf32>
    %49 = vector.broadcast %48 : vector<1x32xf32> to vector<256x32xf32>
    %50 = arith.addf %47, %49 : vector<256x32xf32>
    %cst_71 = arith.constant 0.000000e+00 : f32
    %cst_72 = arith.constant 2.000000e+01 : f32
    %51 = vector.broadcast %cst_71 : f32 to vector<256x32xf32>
    %52 = arith.maximumf %51, %50 : vector<256x32xf32>
    %53 = vector.broadcast %cst_72 : f32 to vector<256x32xf32>
    %54 = arith.minimumf %53, %52 : vector<256x32xf32>
    %c0_73 = arith.constant 0 : index
    %c0_74 = arith.constant 0 : index
    %55 = vector.load %arg12[%c0_73, %c0_74] : memref<256x64xf32, #tpu.memory_space<vmem>>, vector<256x32xf32>
    tpu.vector_store %arg12[%c0_73, %c0_74], %54 {strides = array<i32>} : memref<256x64xf32, #tpu.memory_space<vmem>>, vector<256x32xf32>,
    %c0_75 = arith.constant 0 : index
    %c160_76 = arith.constant 160 : index
    %56 = vector.load %arg9[%c0_75, %c160_76] : memref<256x192xf32, #tpu.memory_space<vmem>>, vector<256x32xf32>
    %c1_77 = arith.constant 1 : index
    %c0_78 = arith.constant 0 : index
    %57 = vector.load %arg3[%c1_77, %c0_78] : memref<2x32xf32, #tpu.memory_space<vmem>>, vector<1x32xf32>
    %58 = vector.broadcast %57 : vector<1x32xf32> to vector<256x32xf32>
    %59 = arith.addf %56, %58 : vector<256x32xf32>
    %cst_79 = arith.constant 0.000000e+00 : f32
    %cst_80 = arith.constant 2.000000e+01 : f32
    %60 = vector.broadcast %cst_79 : f32 to vector<256x32xf32>
    %61 = arith.maximumf %60, %59 : vector<256x32xf32>
    %62 = vector.broadcast %cst_80 : f32 to vector<256x32xf32>
    %63 = arith.minimumf %62, %61 : vector<256x32xf32>
    %64 = arith.addf %54, %63 : vector<256x32xf32>
    %65 = vector.shape_cast %64 : vector<256x32xf32> to vector<4x8x8x32xf32>
    %c0_81 = arith.constant 0 : index
    %c1_82 = arith.constant 1 : index
    %c8_83 = arith.constant 8 : index
    %c0_84 = arith.constant 0 : index
    %66 = vector.load %arg10[%c0_81, %c1_82, %c8_83, %c0_84] : memref<4x10x24x32xf32, #tpu.memory_space<vmem>>, vector<4x8x8x32xf32>
    tpu.vector_store %arg10[%c0_81, %c1_82, %c8_83, %c0_84], %65 {strides = array<i32>} : memref<4x10x24x32xf32, #tpu.memory_space<vmem>>, vector<4x8x8x32xf32>,
    %c0_85 = arith.constant 0 : index
    %c0_86 = arith.constant 0 : index
    %c7_87 = arith.constant 7 : index
    %c0_88 = arith.constant 0 : index
    %67 = vector.load %arg10[%c0_85, %c0_86, %c7_87, %c0_88] : memref<4x10x24x32xf32, #tpu.memory_space<vmem>>, vector<4x8x8x32xf32>
    %68 = vector.shape_cast %67 : vector<4x8x8x32xf32> to vector<256x32xf32>
    %c0_89 = arith.constant 0 : index
    %c0_90 = arith.constant 0 : index
    %69 = vector.load %arg11[%c0_89, %c0_90] : memref<256x288xf32, #tpu.memory_space<vmem>>, vector<256x32xf32>
    tpu.vector_store %arg11[%c0_89, %c0_90], %68 {strides = array<i32>} : memref<256x288xf32, #tpu.memory_space<vmem>>, vector<256x32xf32>,
    %c0_91 = arith.constant 0 : index
    %c0_92 = arith.constant 0 : index
    %c8_93 = arith.constant 8 : index
    %c0_94 = arith.constant 0 : index
    %70 = vector.load %arg10[%c0_91, %c0_92, %c8_93, %c0_94] : memref<4x10x24x32xf32, #tpu.memory_space<vmem>>, vector<4x8x8x32xf32>
    %71 = vector.shape_cast %70 : vector<4x8x8x32xf32> to vector<256x32xf32>
    %c0_95 = arith.constant 0 : index
    %c32_96 = arith.constant 32 : index
    %72 = vector.load %arg11[%c0_95, %c32_96] : memref<256x288xf32, #tpu.memory_space<vmem>>, vector<256x32xf32>
    tpu.vector_store %arg11[%c0_95, %c32_96], %71 {strides = array<i32>} : memref<256x288xf32, #tpu.memory_space<vmem>>, vector<256x32xf32>,
    %c0_97 = arith.constant 0 : index
    %c0_98 = arith.constant 0 : index
    %c9_99 = arith.constant 9 : index
    %c0_100 = arith.constant 0 : index
    %73 = vector.load %arg10[%c0_97, %c0_98, %c9_99, %c0_100] : memref<4x10x24x32xf32, #tpu.memory_space<vmem>>, vector<4x8x8x32xf32>
    %74 = vector.shape_cast %73 : vector<4x8x8x32xf32> to vector<256x32xf32>
    %c0_101 = arith.constant 0 : index
    %c64_102 = arith.constant 64 : index
    %75 = vector.load %arg11[%c0_101, %c64_102] : memref<256x288xf32, #tpu.memory_space<vmem>>, vector<256x32xf32>
    tpu.vector_store %arg11[%c0_101, %c64_102], %74 {strides = array<i32>} : memref<256x288xf32, #tpu.memory_space<vmem>>, vector<256x32xf32>,
    %c0_103 = arith.constant 0 : index
    %c1_104 = arith.constant 1 : index
    %c7_105 = arith.constant 7 : index
    %c0_106 = arith.constant 0 : index
    %76 = vector.load %arg10[%c0_103, %c1_104, %c7_105, %c0_106] : memref<4x10x24x32xf32, #tpu.memory_space<vmem>>, vector<4x8x8x32xf32>
    %77 = vector.shape_cast %76 : vector<4x8x8x32xf32> to vector<256x32xf32>
    %c0_107 = arith.constant 0 : index
    %c96_108 = arith.constant 96 : index
    %78 = vector.load %arg11[%c0_107, %c96_108] : memref<256x288xf32, #tpu.memory_space<vmem>>, vector<256x32xf32>
    tpu.vector_store %arg11[%c0_107, %c96_108], %77 {strides = array<i32>} : memref<256x288xf32, #tpu.memory_space<vmem>>, vector<256x32xf32>,
    %c0_109 = arith.constant 0 : index
    %c1_110 = arith.constant 1 : index
    %c8_111 = arith.constant 8 : index
    %c0_112 = arith.constant 0 : index
    %79 = vector.load %arg10[%c0_109, %c1_110, %c8_111, %c0_112] : memref<4x10x24x32xf32, #tpu.memory_space<vmem>>, vector<4x8x8x32xf32>
    %80 = vector.shape_cast %79 : vector<4x8x8x32xf32> to vector<256x32xf32>
    %c0_113 = arith.constant 0 : index
    %c128_114 = arith.constant 128 : index
    %81 = vector.load %arg11[%c0_113, %c128_114] : memref<256x288xf32, #tpu.memory_space<vmem>>, vector<256x32xf32>
    tpu.vector_store %arg11[%c0_113, %c128_114], %80 {strides = array<i32>} : memref<256x288xf32, #tpu.memory_space<vmem>>, vector<256x32xf32>,
    %c0_115 = arith.constant 0 : index
    %c1_116 = arith.constant 1 : index
    %c9_117 = arith.constant 9 : index
    %c0_118 = arith.constant 0 : index
    %82 = vector.load %arg10[%c0_115, %c1_116, %c9_117, %c0_118] : memref<4x10x24x32xf32, #tpu.memory_space<vmem>>, vector<4x8x8x32xf32>
    %83 = vector.shape_cast %82 : vector<4x8x8x32xf32> to vector<256x32xf32>
    %c0_119 = arith.constant 0 : index
    %c160_120 = arith.constant 160 : index
    %84 = vector.load %arg11[%c0_119, %c160_120] : memref<256x288xf32, #tpu.memory_space<vmem>>, vector<256x32xf32>
    tpu.vector_store %arg11[%c0_119, %c160_120], %83 {strides = array<i32>} : memref<256x288xf32, #tpu.memory_space<vmem>>, vector<256x32xf32>,
    %c0_121 = arith.constant 0 : index
    %c2_122 = arith.constant 2 : index
    %c7_123 = arith.constant 7 : index
    %c0_124 = arith.constant 0 : index
    %85 = vector.load %arg10[%c0_121, %c2_122, %c7_123, %c0_124] : memref<4x10x24x32xf32, #tpu.memory_space<vmem>>, vector<4x8x8x32xf32>
    %86 = vector.shape_cast %85 : vector<4x8x8x32xf32> to vector<256x32xf32>
    %c0_125 = arith.constant 0 : index
    %c192_126 = arith.constant 192 : index
    %87 = vector.load %arg11[%c0_125, %c192_126] : memref<256x288xf32, #tpu.memory_space<vmem>>, vector<256x32xf32>
    tpu.vector_store %arg11[%c0_125, %c192_126], %86 {strides = array<i32>} : memref<256x288xf32, #tpu.memory_space<vmem>>, vector<256x32xf32>,
    %c0_127 = arith.constant 0 : index
    %c2_128 = arith.constant 2 : index
    %c8_129 = arith.constant 8 : index
    %c0_130 = arith.constant 0 : index
    %88 = vector.load %arg10[%c0_127, %c2_128, %c8_129, %c0_130] : memref<4x10x24x32xf32, #tpu.memory_space<vmem>>, vector<4x8x8x32xf32>
    %89 = vector.shape_cast %88 : vector<4x8x8x32xf32> to vector<256x32xf32>
    %c0_131 = arith.constant 0 : index
    %c224_132 = arith.constant 224 : index
    %90 = vector.load %arg11[%c0_131, %c224_132] : memref<256x288xf32, #tpu.memory_space<vmem>>, vector<256x32xf32>
    tpu.vector_store %arg11[%c0_131, %c224_132], %89 {strides = array<i32>} : memref<256x288xf32, #tpu.memory_space<vmem>>, vector<256x32xf32>,
    %c0_133 = arith.constant 0 : index
    %c2_134 = arith.constant 2 : index
    %c9_135 = arith.constant 9 : index
    %c0_136 = arith.constant 0 : index
    %91 = vector.load %arg10[%c0_133, %c2_134, %c9_135, %c0_136] : memref<4x10x24x32xf32, #tpu.memory_space<vmem>>, vector<4x8x8x32xf32>
    %92 = vector.shape_cast %91 : vector<4x8x8x32xf32> to vector<256x32xf32>
    %c0_137 = arith.constant 0 : index
    %c256_138 = arith.constant 256 : index
    %93 = vector.load %arg11[%c0_137, %c256_138] : memref<256x288xf32, #tpu.memory_space<vmem>>, vector<256x32xf32>
    tpu.vector_store %arg11[%c0_137, %c256_138], %92 {strides = array<i32>} : memref<256x288xf32, #tpu.memory_space<vmem>>, vector<256x32xf32>,
    %c0_139 = arith.constant 0 : index
    %c0_140 = arith.constant 0 : index
    %94 = vector.load %arg11[%c0_139, %c0_140] : memref<256x288xf32, #tpu.memory_space<vmem>>, vector<256x288xf32>
    %c1_141 = arith.constant 1 : index
    %c0_142 = arith.constant 0 : index
    %c0_143 = arith.constant 0 : index
    %95 = vector.load %arg4[%c1_141, %c0_142, %c0_143] : memref<2x288x32xf32, #tpu.memory_space<vmem>>, vector<1x288x32xf32>
    %96 = vector.shape_cast %95 : vector<1x288x32xf32> to vector<288x32xf32>
    %cst_144 = arith.constant dense<0.000000e+00> : vector<256x32xf32>
    %97 = tpu.matmul %94, %96, %cst_144 {dimension_numbers = #tpu.dot_dimension_numbers<[1], [0], [0], [1], [0, 0, 1, 1], [], []>} : vector<256x288xf32>, vector<288x32xf32>, vector<256x32xf32> -> vector<256x32xf32>
    %c1_145 = arith.constant 1 : index
    %c0_146 = arith.constant 0 : index
    %98 = vector.load %arg5[%c1_145, %c0_146] : memref<2x32xf32, #tpu.memory_space<vmem>>, vector<1x32xf32>
    %99 = vector.broadcast %98 : vector<1x32xf32> to vector<256x32xf32>
    %100 = arith.addf %97, %99 : vector<256x32xf32>
    %cst_147 = arith.constant 0.000000e+00 : f32
    %cst_148 = arith.constant 2.000000e+01 : f32
    %101 = vector.broadcast %cst_147 : f32 to vector<256x32xf32>
    %102 = arith.maximumf %101, %100 : vector<256x32xf32>
    %103 = vector.broadcast %cst_148 : f32 to vector<256x32xf32>
    %104 = arith.minimumf %103, %102 : vector<256x32xf32>
    %c0_149 = arith.constant 0 : index
    %c32_150 = arith.constant 32 : index
    %105 = vector.load %arg12[%c0_149, %c32_150] : memref<256x64xf32, #tpu.memory_space<vmem>>, vector<256x32xf32>
    tpu.vector_store %arg12[%c0_149, %c32_150], %104 {strides = array<i32>} : memref<256x64xf32, #tpu.memory_space<vmem>>, vector<256x32xf32>,
    %c0_151 = arith.constant 0 : index
    %c0_152 = arith.constant 0 : index
    %106 = vector.load %arg12[%c0_151, %c0_152] : memref<256x64xf32, #tpu.memory_space<vmem>>, vector<256x64xf32>
    %c0_153 = arith.constant 0 : index
    %c0_154 = arith.constant 0 : index
    %107 = vector.load %arg6[%c0_153, %c0_154] : memref<64x128xf32, #tpu.memory_space<vmem>>, vector<64x128xf32>
    %cst_155 = arith.constant dense<0.000000e+00> : vector<256x128xf32>
    %108 = tpu.matmul %106, %107, %cst_155 {dimension_numbers = #tpu.dot_dimension_numbers<[1], [0], [0], [1], [0, 0, 1, 1], [], []>} : vector<256x64xf32>, vector<64x128xf32>, vector<256x128xf32> -> vector<256x128xf32>
    %c0_156 = arith.constant 0 : index
    %c0_157 = arith.constant 0 : index
    %109 = vector.load %arg9[%c0_156, %c0_157] : memref<256x192xf32, #tpu.memory_space<vmem>>, vector<256x128xf32>
    %110 = arith.addf %108, %109 : vector<256x128xf32>
    %c0_158 = arith.constant 0 : index
    %c0_159 = arith.constant 0 : index
    %111 = vector.load %arg7[%c0_158, %c0_159] : memref<1x128xf32, #tpu.memory_space<vmem>>, vector<1x128xf32>
    %112 = vector.broadcast %111 : vector<1x128xf32> to vector<256x128xf32>
    %113 = arith.addf %110, %112 : vector<256x128xf32>
    %cst_160 = arith.constant 0.000000e+00 : f32
    %cst_161 = arith.constant 2.000000e+01 : f32
    %114 = vector.broadcast %cst_160 : f32 to vector<256x128xf32>
    %115 = arith.maximumf %114, %113 : vector<256x128xf32>
    %116 = vector.broadcast %cst_161 : f32 to vector<256x128xf32>
    %117 = arith.minimumf %116, %115 : vector<256x128xf32>
    %118 = vector.shape_cast %117 : vector<256x128xf32> to vector<4x8x8x128xf32>
    %c0_162 = arith.constant 0 : index
    %c0_163 = arith.constant 0 : index
    %c0_164 = arith.constant 0 : index
    %c0_165 = arith.constant 0 : index
    %119 = vector.load %arg8[%c0_162, %c0_163, %c0_164, %c0_165] : memref<4x8x8x128xf32, #tpu.memory_space<vmem>>, vector<4x8x8x128xf32>
    tpu.vector_store %arg8[%c0_162, %c0_163, %c0_164, %c0_165], %118 {strides = array<i32>} : memref<4x8x8x128xf32, #tpu.memory_space<vmem>>, vector<4x8x8x128xf32>,
    return
  }
  func.func @transform_0(%arg0: i32) -> (i32, i32, i32, i32) {
    %c0_i32 = arith.constant 0 : i32
    %c0_i32_0 = arith.constant 0 : i32
    %c0_i32_1 = arith.constant 0 : i32
    %c0_i32_2 = arith.constant 0 : i32
    return %arg0, %c0_i32, %c0_i32_0, %c0_i32_1 : i32, i32, i32, i32
  }
  func.func @transform_1(%arg0: i32) -> (i32, i32) {
    %c0_i32 = arith.constant 0 : i32
    %c0_i32_0 = arith.constant 0 : i32
    %c0_i32_1 = arith.constant 0 : i32
    return %c0_i32, %c0_i32_0 : i32, i32
  }
  func.func @transform_2(%arg0: i32) -> (i32, i32) {
    %c0_i32 = arith.constant 0 : i32
    %c0_i32_0 = arith.constant 0 : i32
    %c0_i32_1 = arith.constant 0 : i32
    return %c0_i32, %c0_i32_0 : i32, i32
  }
  func.func @transform_3(%arg0: i32) -> (i32, i32, i32) {
    %c0_i32 = arith.constant 0 : i32
    %c0_i32_0 = arith.constant 0 : i32
    %c0_i32_1 = arith.constant 0 : i32
    %c0_i32_2 = arith.constant 0 : i32
    return %c0_i32, %c0_i32_0, %c0_i32_1 : i32, i32, i32
  }
  func.func @transform_4(%arg0: i32) -> (i32, i32) {
    %c0_i32 = arith.constant 0 : i32
    %c0_i32_0 = arith.constant 0 : i32
    %c0_i32_1 = arith.constant 0 : i32
    return %c0_i32, %c0_i32_0 : i32, i32
  }
  func.func @transform_5(%arg0: i32) -> (i32, i32) {
    %c0_i32 = arith.constant 0 : i32
    %c0_i32_0 = arith.constant 0 : i32
    %c0_i32_1 = arith.constant 0 : i32
    return %c0_i32, %c0_i32_0 : i32, i32
  }
  func.func @transform_6(%arg0: i32) -> (i32, i32) {
    %c0_i32 = arith.constant 0 : i32
    %c0_i32_0 = arith.constant 0 : i32
    %c0_i32_1 = arith.constant 0 : i32
    return %c0_i32, %c0_i32_0 : i32, i32
  }
  func.func @transform_7(%arg0: i32) -> (i32, i32, i32, i32) {
    %c0_i32 = arith.constant 0 : i32
    %c0_i32_0 = arith.constant 0 : i32
    %c0_i32_1 = arith.constant 0 : i32
    %c0_i32_2 = arith.constant 0 : i32
    return %arg0, %c0_i32, %c0_i32_0, %c0_i32_1 : i32, i32, i32, i32
  }
}

</mosaic_0001>

<bundles_post_ra>
// kernel: tpu_custom_call.1
= control target key start
LH: loop header
LB: loop body
LE: loop exit
PB: predicated region body
PF: predicated region fallthrough
CT: control target
= control target key end

     0   :  { %12 = vsyncpa [#allocation7], 0  ;;  %s9886_s0 = inlined_call_operand.vmem [shape: f32[8,8,8,64], index: 0, kind: input, shape index: {}]   ;;  %s9887_s1 = inlined_call_operand.vmem [shape: f32[64,192], index: 1, kind: input, shape index: {}]   ;;  %s9888_s2 = inlined_call_operand.vmem [shape: f32[2,32], index: 2, kind: input, shape index: {}]   ;;  %s9889_s3 = inlined_call_operand.vmem [shape: f32[2,288,32], index: 3, kind: input, shape index: {}]   ;;  %s9890_s4 = inlined_call_operand.vmem [shape: f32[2,32], index: 4, kind: input, shape index: {}]   ;;  %s9891_s5 = inlined_call_operand.vmem [shape: f32[64,128], index: 5, kind: input, shape index: {}]   ;;  %s9892_s6 = inlined_call_operand.vmem [shape: f32[1,128], index: 6, kind: input, shape index: {}]   ;;  %s9893_s7 = inlined_call_operand.hbm [shape: f32[8,8,8,128], index: 7, kind: output, shape index: {}]  }
   0x1   :  { %14 = vsyncpa [#allocation7 + $0x1], 0  ;;  %s6377_s24 = smov 0   ;;  %s6379_s25 = smov 0  }
   0x2   :  { %s6381_s26 = smov 0   ;;  %s6383_s27 = smov 0  }
   0x3 LB: > { %s6398_s28 = sadd.s32 4294967295, %s6329_s27   ;;  %s5971_s29 = sadd.s32 4294967294, %s6329_s27   ;;  %s6329_s27 = sphi %s6383_s27, %s9915_s27   ;;  %s6325_s26 = sphi %s6381_s26, %s9914_s26   ;;  %s6321_s25 = sphi %s6379_s25, %s9913_s25   ;;  %s6317_s24 = sphi %s6377_s24, %s9912_s24  }
   0x4   : > { %s6402_s30 = sadd.s32 1, %s6329_s27   ;;  %s179_s8 = sadd.s32 1, %s6325_s26 }
   0x5   : > { %s176_s9 = ssub.s32 %s6329_s27, %s6402_s30  ;;  %p189_p0 = scmp.ne.s32.totalorder %s6325_s26, %s6321_s25 }
   0x6   : > { %p177_p1 = scmp.eq.s32.totalorder %s176_s9, 0  ;;  %p190_p2 = scmp.eq.s32.totalorder %s6398_s28, 1 }
   0x7   : > { %p195_p3 = scmp.ne.s32.totalorder %s6321_s25, %s6317_s24  ;;  %p196_p4 = scmp.eq.s32.totalorder %s5971_s29, 1 }
   0x8   : > { %s6413_s10 = scalar_select %p177_p1, %s6325_s26, %s179_s8  }
   0x9   : > { %p6415_p5 = por %p190_p2, %p189_p0  ;;  %p6419_p6 = por %p196_p4, %p195_p3 }
   0xa   : > { %p5974_p7 = scmp.ge.s32.totalorder %s6329_s27, 1  ;;  %p242_p8 = scmp.lt.s32.totalorder %s6329_s27, 3 }
   0xc   : > { %p243_p9 = pnand %p5974_p7, %p242_p8 }
   0xe   : > { %246 = sbr.rel (%p243_p9) target bundleno = 2027 (0x7eb), region = 48 }
  0x13   : > { %v329_v0 = vld [vmem:[%s9887_s1 + $0x70] sm:$0xff]  ;;  %v327_v1 = vld [vmem:[%s9887_s1 + $0x60] sm:$0xff]  ;;  %s5976_s17 = sshll.u32 %s6398_s28, 2  ;;  %vm331_vm0 = vcmask 523264   ;;  %v330_v9 = vld [vmem:[%s9887_s1 + $0x78] sm:$0xff]  ;;  %vm718_vm1 = vcmask 261120  }
  0x14   : > { %6184 = vmatpush.msra.mxu1 %v329_v0  ;;  %p276_p10 = scmp.lt.s32.totalorder %s5976_s17, 7  ;;  %436 = vmatpush.msra.mxu0 %v329_v0  ;;  %v325_v2 = vld [vmem:[%s9887_s1 + $0x50] sm:$0xff]  ;;  %v323_v3 = vld [vmem:[%s9887_s1 + $0x40] sm:$0xff]  ;;  %v328_v10 = vld [vmem:[%s9887_s1 + $0x68] sm:$0xff]  ;;  %v6331_v35 = vmov 0.0   ;;  %s6332_s23 = smov 32  }
  0x15   : > { %6185 = vmatpush.msra.mxu2 %v329_v0  ;;  %6186 = vmatpush.msra.mxu3 %v329_v0  ;;  %v321_v4 = vld [vmem:[%s9887_s1 + $0x30] sm:$0xff]  ;;  %v319_v5 = vld [vmem:[%s9887_s1 + $0x20] sm:$0xff]  ;;  %v326_v11 = vld [vmem:[%s9887_s1 + $0x58] sm:$0xff]  ;;  %750 = vst.msk [vmem:[#allocation3 + $0xf8] sm:$0xff] %vm718_vm1, %v6331_v35  ;;  %s6334_s8 = smov 96   ;;  %vm1226_vm2 = vcmask 523520  }
  0x16   : > { %6187 = vmatpush.msra.mxu1 %v327_v1  ;;  %s9917_s17 = smov (!%p276_p10, %s5976_s17), 7  ;;  %437 = vmatpush.msra.mxu0 %v327_v1  ;;  %v317_v6 = vld [vmem:[%s9887_s1 + $0x10] sm:$0xff]  ;;  %v315_v7 = vld [vmem:[%s9887_s1] sm:$0xff]  ;;  %v324_v12 = vld [vmem:[%s9887_s1 + $0x48] sm:$0xff]  ;;  %719 = vst.msk [vmem:[#allocation3] sm:$0xff] %vm718_vm1, %v6331_v35  ;;  %vm1419_vm3 = vcmask 785920  }
  0x17   : > { %6188 = vmatpush.msra.mxu2 %v327_v1  ;;  %6189 = vmatpush.msra.mxu3 %v327_v1  ;;  %s6181_s29 = sshll.u32 %s9917_s17, 6  ;;  %v322_v14 = vld [vmem:[%s9887_s1 + $0x38] sm:$0xff]  ;;  %v320_v15 = vld [vmem:[%s9887_s1 + $0x28] sm:$0xff]  ;;  %720 = vst.msk [vmem:[#allocation3 + $0x8] sm:$0xff] %vm718_vm1, %v6331_v35  ;;  %v6820_v60 = vld [vmem:[%s9888_s2] ss:$0 sm:$0xff] }
  0x18   : > { %6190 = vmatpush.msra.mxu1 %v325_v2  ;;  %438 = vmatpush.msra.mxu0 %v325_v2  ;;  %s6450_s18 = scalar_lea.vmem %s9886_s0, %s6181_s29  ;;  %v318_v17 = vld [vmem:[%s9887_s1 + $0x18] sm:$0xff]  ;;  %v316_v19 = vld [vmem:[%s9887_s1 + $0x8] sm:$0xff]  ;;  %721 = vst.msk [vmem:[#allocation3 + $0x10] sm:$0xff] %vm718_vm1, %v6331_v35  ;;  %s6333_s29 = smov 64   ;;  %vm1612_vm4 = vcmask 1048320  }
  0x19   : > { %6191 = vmatpush.msra.mxu2 %v325_v2  ;;  %6192 = vmatpush.msra.mxu3 %v325_v2  ;;  %v6456_v8 = vld [vmem:[%s6450_s18 + $0x48] sm:$0xff]  ;;  %v6473_v13 = vld [vmem:[%s6450_s18 + $0x50] sm:$0xff]  ;;  %v6484_v16 = vld [vmem:[%s6450_s18 + $0x58] sm:$0xff]  ;;  %722 = vst.msk [vmem:[#allocation3 + $0x18] sm:$0xff] %vm718_vm1, %v6331_v35  ;;  %s272_s19 = sand.u32 1, %s6321_s25  }
  0x1a   : > { %6193 = vmatpush.msra.mxu1 %v323_v3  ;;  %439 = vmatpush.msra.mxu0 %v323_v3  ;;  %v6492_v18 = vld [vmem:[%s6450_s18 + $0x60] sm:$0xff]  ;;  %v6500_v20 = vld [vmem:[%s6450_s18 + $0x68] sm:$0xff]  ;;  %v6507_v22 = vld [vmem:[%s6450_s18 + $0x70] sm:$0xff]  ;;  %723 = vst.msk [vmem:[#allocation3 + $0x20] sm:$0xff] %vm718_vm1, %v6331_v35  ;;  %s5975_s21 = sshll.u32 %s272_s19, 8  ;;  %s5893_s17 = scalar_lea.sflag [#allocation7], %s272_s19 }
  0x1b   : > { %6194 = vmatpush.msra.mxu2 %v323_v3  ;;  %6195 = vmatpush.msra.mxu3 %v323_v3  ;;  %v283_v21 = vld [vmem:[%s6450_s18] sm:$0xff]  ;;  %v284_v23 = vld [vmem:[%s6450_s18 + $0x8] sm:$0xff]  ;;  %v6514_v24 = vld [vmem:[%s6450_s18 + $0x78] sm:$0xff]  ;;  %724 = vst.msk [vmem:[#allocation3 + $0x28] sm:$0xff] %vm718_vm1, %v6331_v35  ;;  %s9687_s22 = scalar_lea.vmem [#allocation6], %s5975_s21 }
  0x1c   : > { %6196 = vmatpush.msra.mxu1 %v321_v4  ;;  %440 = vmatpush.msra.mxu0 %v321_v4  ;;  %v285_v25 = vld [vmem:[%s6450_s18 + $0x10] sm:$0xff]  ;;  %v6521_v26 = vld [vmem:[%s6450_s18 + $0x80] sm:$0xff]  ;;  %v286_v27 = vld [vmem:[%s6450_s18 + $0x18] sm:$0xff]  ;;  %725 = vst.msk [vmem:[#allocation3 + $0x30] sm:$0xff] %vm718_vm1, %v6331_v35  ;;  %s5906_s15 = sshll.u32 %s9687_s22, 4  ;;  %s5907_s15 = int_to_ptr.vmem [resolvable:$true] %s5906_s15 }
  0x1d   : > { %6197 = vmatpush.msra.mxu2 %v321_v4  ;;  %6198 = vmatpush.msra.mxu3 %v321_v4  ;;  %v6528_v28 = vld [vmem:[%s6450_s18 + $0x88] sm:$0xff]  ;;  %v287_v29 = vld [vmem:[%s6450_s18 + $0x20] sm:$0xff]  ;;  %v289_v31 = vld [vmem:[%s6450_s18 + $0x30] sm:$0xff]  ;;  %726 = vst.msk [vmem:[#allocation3 + $0x38] sm:$0xff] %vm718_vm1, %v6331_v35 }
  0x1e   : > { %6199 = vmatpush.msra.mxu1 %v319_v5  ;;  %441 = vmatpush.msra.mxu0 %v319_v5  ;;  %v288_v30 = vld [vmem:[%s6450_s18 + $0x28] sm:$0xff]  ;;  %v290_v34 = vld [vmem:[%s6450_s18 + $0x38] sm:$0xff]  ;;  %727 = vst.msk [vmem:[#allocation3 + $0x40] sm:$0xff] %vm718_vm1, %v6331_v35  ;;  %v291_v43 = vld [vmem:[%s6450_s18 + $0x40] sm:$0xff] }
  0x1f   : > { %6200 = vmatpush.msra.mxu2 %v319_v5  ;;  %6201 = vmatpush.msra.mxu3 %v319_v5  ;;  %v1074_v37 = vld [vmem:[#allocation3 + $0xf8] sm:$0xff]  ;;  %728 = vst.msk [vmem:[#allocation3 + $0x48] sm:$0xff] %vm718_vm1, %v6331_v35  ;;  %v1259_v45 = vld [vmem:[#allocation3 + $0x9] sm:$0xff] }
  0x20   : > { %6202 = vmatpush.msra.mxu1 %v317_v6  ;;  %442 = vmatpush.msra.mxu0 %v317_v6  ;;  %729 = vst.msk [vmem:[#allocation3 + $0x50] sm:$0xff] %vm718_vm1, %v6331_v35  ;;  %v1066_v46 = vld [vmem:[#allocation3 + $0x8] sm:$0xff] }
  0x21   : > { %6203 = vmatpush.msra.mxu2 %v317_v6  ;;  %6204 = vmatpush.msra.mxu3 %v317_v6  ;;  %730 = vst.msk [vmem:[#allocation3 + $0x58] sm:$0xff] %vm718_vm1, %v6331_v35 }
  0x22   : > { %6205 = vmatpush.msra.mxu1 %v315_v7  ;;  %443 = vmatpush.msra.mxu0 %v315_v7  ;;  %731 = vst.msk [vmem:[#allocation3 + $0x60] sm:$0xff] %vm718_vm1, %v6331_v35 }
  0x23   : > { %5988 = vmatmul.msk.f32.vlgmr.msra.gmra.mxu1 %vm331_vm0, %v6456_v8  ;;  %6206 = vmatpush.msra.mxu2 %v315_v7  ;;  %732 = vst.msk [vmem:[#allocation3 + $0x68] sm:$0xff] %vm718_vm1, %v6331_v35 }
  0x24   : > { %549 = vmatpush.msrb.mxu1 %v330_v9  ;;  %6207 = vmatpush.msra.mxu3 %v315_v7  ;;  %733 = vst.msk [vmem:[#allocation3 + $0x70] sm:$0xff] %vm718_vm1, %v6331_v35 }
  0x25   : > { %5979 = vmatmul.msk.f32.vlgmr.msra.gmra.mxu0 %vm331_vm0, %v283_v21  ;;  %1146 = vrot.lane.b32.xlu2 %v1074_v37, %s6332_s23  ;;  %734 = vst.msk [vmem:[#allocation3 + $0x78] sm:$0xff] %vm718_vm1, %v6331_v35 }
  0x26   : > { %550 = vmatpush.msrb.mxu1 %v328_v10  ;;  %735 = vst.msk [vmem:[#allocation3 + $0x80] sm:$0xff] %vm718_vm1, %v6331_v35  ;;  %1130 = vrot.lane.b32.xlu0 %v1066_v46, %s6332_s23  ;;  %v301_v46 = vld [vmem:[%s6450_s18 + $0x90] sm:$0xff] }
  0x27   : > { %736 = vst.msk [vmem:[#allocation3 + $0x88] sm:$0xff] %vm718_vm1, %v6331_v35  ;;  %5997 = vmatmul.msk.f32.vlgmr.msra.gmra.mxu2 %vm331_vm0, %v301_v46 }
  0x28   : > { %551 = vmatpush.msrb.mxu1 %v326_v11  ;;  %737 = vst.msk [vmem:[#allocation3 + $0x90] sm:$0xff] %vm718_vm1, %v6331_v35 }
  0x29   : > { %738 = vst.msk [vmem:[#allocation3 + $0x98] sm:$0xff] %vm718_vm1, %v6331_v35 }
  0x2a   : > { %552 = vmatpush.msrb.mxu1 %v324_v12  ;;  %739 = vst.msk [vmem:[#allocation3 + $0xa0] sm:$0xff] %vm718_vm1, %v6331_v35 }
  0x2b   : > { %5989 = vmatmul.msk.f32.gmra.mxu1 %vm331_vm0, %v6473_v13  ;;  %740 = vst.msk [vmem:[#allocation3 + $0xa8] sm:$0xff] %vm718_vm1, %v6331_v35 }
  0x2c   : > { %553 = vmatpush.msrb.mxu1 %v322_v14  ;;  %741 = vst.msk [vmem:[#allocation3 + $0xb0] sm:$0xff] %vm718_vm1, %v6331_v35  ;;  %v6839_v14 = vld [vmem:[%s9889_s3 + $0x110] sm:$0xff] }
  0x2d   : > { %5980 = vmatmul.msk.f32.gmra.mxu0 %vm331_vm0, %v284_v23  ;;  %742 = vst.msk [vmem:[#allocation3 + $0xb8] sm:$0xff] %vm718_vm1, %v6331_v35  ;;  %1323 = vrot.lane.b32.xlu2 %v1259_v45, %s6333_s29 }
  0x2e   : > { %554 = vmatpush.msrb.mxu1 %v320_v15  ;;  %743 = vst.msk [vmem:[#allocation3 + $0xc0] sm:$0xff] %vm718_vm1, %v6331_v35 }
  0x2f   : > { %744 = vst.msk [vmem:[#allocation3 + $0xc8] sm:$0xff] %vm718_vm1, %v6331_v35 }
  0x30   : > { %555 = vmatpush.msrb.mxu1 %v318_v17  ;;  %745 = vst.msk [vmem:[#allocation3 + $0xd0] sm:$0xff] %vm718_vm1, %v6331_v35 }
  0x31   : > { %746 = vst.msk [vmem:[#allocation3 + $0xd8] sm:$0xff] %vm718_vm1, %v6331_v35 }
  0x32   : > { %556 = vmatpush.msrb.mxu1 %v316_v19  ;;  %747 = vst.msk [vmem:[#allocation3 + $0xe0] sm:$0xff] %vm718_vm1, %v6331_v35 }
  0x33   : > { %5990 = vmatmul.msk.f32.gmra.mxu1 %vm331_vm0, %v6484_v16  ;;  %748 = vst.msk [vmem:[#allocation3 + $0xe8] sm:$0xff] %vm718_vm1, %v6331_v35 }
  0x34   : > { %749 = vst.msk [vmem:[#allocation3 + $0xf0] sm:$0xff] %vm718_vm1, %v6331_v35 }
  0x35   : > { %5981 = vmatmul.msk.f32.gmra.mxu0 %vm331_vm0, %v285_v25  ;;  %751 = vst.msk [vmem:[#allocation3 + $0x100] sm:$0xff] %vm718_vm1, %v6331_v35 }
  0x36   : > { %752 = vst.msk [vmem:[#allocation3 + $0x108] sm:$0xff] %vm718_vm1, %v6331_v35 }
  0x37   : > { %753 = vst.msk [vmem:[#allocation3 + $0x110] sm:$0xff] %vm718_vm1, %v6331_v35 }
  0x38   : > { %754 = vst.msk [vmem:[#allocation3 + $0x118] sm:$0xff] %vm718_vm1, %v6331_v35 }
  0x39   : > { %755 = vst.msk [vmem:[#allocation3 + $0x120] sm:$0xff] %vm718_vm1, %v6331_v35  ;;  %v1909_v57 = vld [vmem:[#allocation3 + $0xdf] sm:$0xff] }
  0x3a   : > { %756 = vst.msk [vmem:[#allocation3 + $0x128] sm:$0xff] %vm718_vm1, %v6331_v35  ;;  %v2101_v2 = vld [vmem:[#allocation3 + $0xe0] sm:$0xff] }
  0x3b   : > { %5991 = vmatmul.msk.f32.gmra.mxu1 %vm331_vm0, %v6492_v18  ;;  %757 = vst.msk [vmem:[#allocation3 + $0x130] sm:$0xff] %vm718_vm1, %v6331_v35 }
  0x3c   : > { %758 = vst.msk [vmem:[#allocation3 + $0x138] sm:$0xff] %vm718_vm1, %v6331_v35  ;;  %v1267_v48 = vld [vmem:[#allocation3 + $0xf9] sm:$0xff] }
  0x3d   : > { %5982 = vmatmul.msk.f32.gmra.mxu0 %vm331_vm0, %v286_v27  ;;  %759 = vst.msk [vmem:[#allocation3 + $0x140] sm:$0xff] %vm718_vm1, %v6331_v35 }
  0x3e   : > { %760 = vst.msk [vmem:[#allocation3 + $0x148] sm:$0xff] %vm718_vm1, %v6331_v35 }
  0x3f   : > { %761 = vst.msk [vmem:[#allocation3 + $0x150] sm:$0xff] %vm718_vm1, %v6331_v35 }
  0x40   : > { %762 = vst.msk [vmem:[#allocation3 + $0x158] sm:$0xff] %vm718_vm1, %v6331_v35 }
  0x41   : > { %763 = vst.msk [vmem:[#allocation3 + $0x160] sm:$0xff] %vm718_vm1, %v6331_v35 }
  0x42   : > { %764 = vst.msk [vmem:[#allocation3 + $0x168] sm:$0xff] %vm718_vm1, %v6331_v35 }
  0x43   : > { %5992 = vmatmul.msk.f32.gmra.mxu1 %vm331_vm0, %v6500_v20  ;;  %765 = vst.msk [vmem:[#allocation3 + $0x170] sm:$0xff] %vm718_vm1, %v6331_v35 }
  0x44   : > { %766 = vst.msk [vmem:[#allocation3 + $0x178] sm:$0xff] %vm718_vm1, %v6331_v35 }
  0x45   : > { %5983 = vmatmul.msk.f32.gmra.mxu0 %vm331_vm0, %v287_v29  ;;  %767 = vst.msk [vmem:[#allocation3 + $0x180] sm:$0xff] %vm718_vm1, %v6331_v35 }
  0x46   : > { %768 = vst.msk [vmem:[#allocation3 + $0x188] sm:$0xff] %vm718_vm1, %v6331_v35 }
  0x47   : > { %769 = vst.msk [vmem:[#allocation3 + $0x190] sm:$0xff] %vm718_vm1, %v6331_v35 }
  0x48   : > { %770 = vst.msk [vmem:[#allocation3 + $0x198] sm:$0xff] %vm718_vm1, %v6331_v35 }
  0x49   : > { %771 = vst.msk [vmem:[#allocation3 + $0x1a0] sm:$0xff] %vm718_vm1, %v6331_v35 }
  0x4a   : > { %772 = vst.msk [vmem:[#allocation3 + $0x1a8] sm:$0xff] %vm718_vm1, %v6331_v35 }
  0x4b   : > { %5993 = vmatmul.msk.f32.gmra.mxu1 %vm331_vm0, %v6507_v22  ;;  %773 = vst.msk [vmem:[#allocation3 + $0x1b0] sm:$0xff] %vm718_vm1, %v6331_v35 }
  0x4c   : > { %774 = vst.msk [vmem:[#allocation3 + $0x1b8] sm:$0xff] %vm718_vm1, %v6331_v35 }
  0x4d   : > { %5984 = vmatmul.msk.f32.gmra.mxu0 %vm331_vm0, %v288_v30  ;;  %775 = vst.msk [vmem:[#allocation3 + $0x1c0] sm:$0xff] %vm718_vm1, %v6331_v35 }
  0x4e   : > { %776 = vst.msk [vmem:[#allocation3 + $0x1c8] sm:$0xff] %vm718_vm1, %v6331_v35 }
  0x4f   : > { %777 = vst.msk [vmem:[#allocation3 + $0x1d0] sm:$0xff] %vm718_vm1, %v6331_v35 }
  0x50   : > { %778 = vst.msk [vmem:[#allocation3 + $0x1d8] sm:$0xff] %vm718_vm1, %v6331_v35 }
  0x51   : > { %779 = vst.msk [vmem:[#allocation3 + $0x1e0] sm:$0xff] %vm718_vm1, %v6331_v35 }
  0x52   : > { %780 = vst.msk [vmem:[#allocation3 + $0x1e8] sm:$0xff] %vm718_vm1, %v6331_v35 }
  0x53   : > { %5994 = vmatmul.msk.f32.gmra.mxu1 %vm331_vm0, %v6514_v24  ;;  %781 = vst.msk [vmem:[#allocation3 + $0x1f0] sm:$0xff] %vm718_vm1, %v6331_v35 }
  0x54   : > { %782 = vst.msk [vmem:[#allocation3 + $0x1f8] sm:$0xff] %vm718_vm1, %v6331_v35 }
  0x55   : > { %5985 = vmatmul.msk.f32.gmra.mxu0 %vm331_vm0, %v289_v31  ;;  %783 = vst.msk [vmem:[#allocation3 + $0x200] sm:$0xff] %vm718_vm1, %v6331_v35 }
  0x56   : > { %784 = vst.msk [vmem:[#allocation3 + $0x208] sm:$0xff] %vm718_vm1, %v6331_v35  ;;  %v1917_v54 = vld [vmem:[#allocation3 + $0x1cf] sm:$0xff] }
  0x57   : > { %785 = vst.msk [vmem:[#allocation3 + $0x210] sm:$0xff] %vm718_vm1, %v6331_v35  ;;  %v2109_v55 = vld [vmem:[#allocation3 + $0x1d0] sm:$0xff] }
  0x58   : > { %786 = vst.msk [vmem:[#allocation3 + $0x218] sm:$0xff] %vm718_vm1, %v6331_v35 }
  0x59   : > { %787 = vst.msk [vmem:[#allocation3 + $0x220] sm:$0xff] %vm718_vm1, %v6331_v35  ;;  %v1082_v44 = vld [vmem:[#allocation3 + $0x1e8] sm:$0xff] }
  0x5a   : > { %788 = vst.msk [vmem:[#allocation3 + $0x228] sm:$0xff] %vm718_vm1, %v6331_v35  ;;  %1162 = vrot.lane.b32.xlu1 %v1082_v44, %s6332_s23  ;;  %v1275_v53 = vld [vmem:[#allocation3 + $0x1e9] sm:$0xff] }
  0x5b   : > { %5995 = vmatmul.msk.f32.gmra.mxu1 %vm331_vm0, %v6521_v26  ;;  %789 = vst.msk [vmem:[#allocation3 + $0x230] sm:$0xff] %vm718_vm1, %v6331_v35 }
  0x5c   : > { %790 = vst.msk [vmem:[#allocation3 + $0x238] sm:$0xff] %vm718_vm1, %v6331_v35 }
  0x5d   : > { %5986 = vmatmul.msk.f32.gmra.mxu0 %vm331_vm0, %v290_v34  ;;  %791 = vst.msk [vmem:[#allocation3 + $0x240] sm:$0xff] %vm718_vm1, %v6331_v35 }
  0x5e   : > { %792 = vst.msk [vmem:[#allocation3 + $0x248] sm:$0xff] %vm718_vm1, %v6331_v35 }
  0x5f   : > { %793 = vst.msk [vmem:[#allocation3 + $0x250] sm:$0xff] %vm718_vm1, %v6331_v35 }
  0x60   : > { %794 = vst.msk [vmem:[#allocation3 + $0x258] sm:$0xff] %vm718_vm1, %v6331_v35 }
  0x61   : > { %795 = vst.msk [vmem:[#allocation3 + $0x260] sm:$0xff] %vm718_vm1, %v6331_v35 }
  0x62   : > { %796 = vst.msk [vmem:[#allocation3 + $0x268] sm:$0xff] %vm718_vm1, %v6331_v35  ;;  %1339 = vrot.lane.b32.xlu1 %v1267_v48, %s6333_s29 }
  0x63   : > { %5996 = vmatmul.msk.f32.gmra.mxu1 %vm331_vm0, %v6528_v28  ;;  %797 = vst.msk [vmem:[#allocation3 + $0x270] sm:$0xff] %vm718_vm1, %v6331_v35 }
  0x64   : > { %798 = vst.msk [vmem:[#allocation3 + $0x278] sm:$0xff] %vm718_vm1, %v6331_v35 }
  0x65   : > { %799 = vst.msk [vmem:[#allocation3 + $0x280] sm:$0xff] %vm718_vm1, %v6331_v35  ;;  %5987 = vmatmul.msk.f32.gmra.mxu0 %vm331_vm0, %v291_v43 }
  0x66   : > { %800 = vst.msk [vmem:[#allocation3 + $0x288] sm:$0xff] %vm718_vm1, %v6331_v35 }
  0x67   : > { %801 = vst.msk [vmem:[#allocation3 + $0x290] sm:$0xff] %vm718_vm1, %v6331_v35 }
  0x68   : > { %802 = vst.msk [vmem:[#allocation3 + $0x298] sm:$0xff] %vm718_vm1, %v6331_v35 }
  0x69   : > { %803 = vst.msk [vmem:[#allocation3 + $0x2a0] sm:$0xff] %vm718_vm1, %v6331_v35 }
  0x6a   : > { %804 = vst.msk [vmem:[#allocation3 + $0x2a8] sm:$0xff] %vm718_vm1, %v6331_v35 }
  0x6b   : > { %6011 = vmatmul.msk.f32.vlgmr.msrb.gmra.mxu1 %vm331_vm0, %v283_v21  ;;  %805 = vst.msk [vmem:[#allocation3 + $0x2b0] sm:$0xff] %vm718_vm1, %v6331_v35 }
  0x6c   : > { %806 = vst.msk [vmem:[#allocation3 + $0x2b8] sm:$0xff] %vm718_vm1, %v6331_v35 }
  0x6d   : > { %807 = vst.msk [vmem:[#allocation3 + $0x2c0] sm:$0xff] %vm718_vm1, %v6331_v35 }
  0x6e   : > { %808 = vst.msk [vmem:[#allocation3 + $0x2c8] sm:$0xff] %vm718_vm1, %v6331_v35 }
  0x6f   : > { %809 = vst.msk [vmem:[#allocation3 + $0x2d0] sm:$0xff] %vm718_vm1, %v6331_v35 }
  0x70   : > { %810 = vst.msk [vmem:[#allocation3 + $0x2d8] sm:$0xff] %vm718_vm1, %v6331_v35 }
  0x71   : > { %811 = vst.msk [vmem:[#allocation3 + $0x2e0] sm:$0xff] %vm718_vm1, %v6331_v35 }
  0x72   : > { %812 = vst.msk [vmem:[#allocation3 + $0x2e8] sm:$0xff] %vm718_vm1, %v6331_v35 }
  0x73   : > { %6012 = vmatmul.msk.f32.gmra.mxu1 %vm331_vm0, %v284_v23  ;;  %813 = vst.msk [vmem:[#allocation3 + $0x2f0] sm:$0xff] %vm718_vm1, %v6331_v35 }
  0x74   : > { %814 = vst.msk [vmem:[#allocation3 + $0x2f8] sm:$0xff] %vm718_vm1, %v6331_v35  ;;  %v1925_v52 = vld [vmem:[#allocation3 + $0x2bf] sm:$0xff] }
  0x75   : > { %815 = vst.msk [vmem:[#allocation3 + $0x300] sm:$0xff] %vm718_vm1, %v6331_v35  ;;  %2012 = vrot.lane.b32.xlu1 %v1925_v52, %s6333_s29  ;;  %v302_v52 = vld [vmem:[%s6450_s18 + $0x98] sm:$0xff] }
  0x76   : > { %816 = vst.msk [vmem:[#allocation3 + $0x308] sm:$0xff] %vm718_vm1, %v6331_v35  ;;  %5998 = vmatmul.msk.f32.gmra.mxu2 %vm331_vm0, %v302_v52 }
  0x77   : > { %817 = vst.msk [vmem:[#allocation3 + $0x310] sm:$0xff] %vm718_vm1, %v6331_v35  ;;  %v1090_v49 = vld [vmem:[#allocation3 + $0x2d8] sm:$0xff] }
  0x78   : > { %818 = vst.msk [vmem:[#allocation3 + $0x318] sm:$0xff] %vm718_vm1, %v6331_v35  ;;  %v1283_v50 = vld [vmem:[#allocation3 + $0x2d9] sm:$0xff]  ;;  %1178 = vrot.lane.b32.xlu0 %v1090_v49, %s6332_s23 }
  0x79   : > { %819 = vst.msk [vmem:[#allocation3 + $0x320] sm:$0xff] %vm718_vm1, %v6331_v35  ;;  %1371 = vrot.lane.b32.xlu2 %v1283_v50, %s6333_s29 }
  0x7a   : > { %820 = vst.msk [vmem:[#allocation3 + $0x328] sm:$0xff] %vm718_vm1, %v6331_v35 }
  0x7b   : > { %6013 = vmatmul.msk.f32.gmra.mxu1 %vm331_vm0, %v285_v25  ;;  %821 = vst.msk [vmem:[#allocation3 + $0x330] sm:$0xff] %vm718_vm1, %v6331_v35 }
  0x7c   : > { %822 = vst.msk [vmem:[#allocation3 + $0x338] sm:$0xff] %vm718_vm1, %v6331_v35 }
  0x7d   : > { %823 = vst.msk [vmem:[#allocation3 + $0x340] sm:$0xff] %vm718_vm1, %v6331_v35  ;;  %2188 = vrot.lane.b32.xlu1 %v2109_v55, %s6334_s8 }
  0x7e   : > { %824 = vst.msk [vmem:[#allocation3 + $0x348] sm:$0xff] %vm718_vm1, %v6331_v35 }
  0x7f   : > { %825 = vst.msk [vmem:[#allocation3 + $0x350] sm:$0xff] %vm718_vm1, %v6331_v35 }
  0x80   : > { %826 = vst.msk [vmem:[#allocation3 + $0x358] sm:$0xff] %vm718_vm1, %v6331_v35  ;;  %1355 = vrot.lane.b32.xlu0 %v1275_v53, %s6333_s29 }
  0x81   : > { %827 = vst.msk [vmem:[#allocation3 + $0x360] sm:$0xff] %vm718_vm1, %v6331_v35  ;;  %1996 = vrot.lane.b32.xlu2 %v1917_v54, %s6333_s29 }
  0x82   : > { %828 = vst.msk [vmem:[#allocation3 + $0x368] sm:$0xff] %vm718_vm1, %v6331_v35 }
  0x83   : > { %6014 = vmatmul.msk.f32.gmra.mxu1 %vm331_vm0, %v286_v27  ;;  %829 = vst.msk [vmem:[#allocation3 + $0x370] sm:$0xff] %vm718_vm1, %v6331_v35 }
  0x84   : > { %830 = vst.msk [vmem:[#allocation3 + $0x378] sm:$0xff] %vm718_vm1, %v6331_v35 }
  0x85   : > { %831 = vst.msk [vmem:[#allocation3 + $0x380] sm:$0xff] %vm718_vm1, %v6331_v35 }
  0x86   : > { %832 = vst.msk [vmem:[#allocation3 + $0x388] sm:$0xff] %vm718_vm1, %v6331_v35 }
  0x87   : > { %833 = vst.msk [vmem:[#allocation3 + $0x390] sm:$0xff] %vm718_vm1, %v6331_v35 }
  0x88   : > { %834 = vst.msk [vmem:[#allocation3 + $0x398] sm:$0xff] %vm718_vm1, %v6331_v35  ;;  %1980 = vrot.lane.b32.xlu0 %v1909_v57, %s6333_s29  ;;  %v303_v57 = vld [vmem:[%s6450_s18 + $0xa0] sm:$0xff] }
  0x89   : > { %835 = vst.msk [vmem:[#allocation3 + $0x3a0] sm:$0xff] %vm718_vm1, %v6331_v35  ;;  %5999 = vmatmul.msk.f32.gmra.mxu2 %vm331_vm0, %v303_v57 }
  0x8a   : > { %836 = vst.msk [vmem:[#allocation3 + $0x3a8] sm:$0xff] %vm718_vm1, %v6331_v35 }
  0x8b   : > { %6015 = vmatmul.msk.f32.gmra.mxu1 %vm331_vm0, %v287_v29  ;;  %837 = vst.msk [vmem:[#allocation3 + $0x3b0] sm:$0xff] %vm718_vm1, %v6331_v35 }
  0x8c   : > { %838 = vst.msk [vmem:[#allocation3 + $0x3b8] sm:$0xff] %vm718_vm1, %v6331_v35 }
  0x92   : > { %v1933_v59 = vld [vmem:[#allocation3 + $0x3af] sm:$0xff] }
  0x93   : > { %6016 = vmatmul.msk.f32.gmra.mxu1 %vm331_vm0, %v288_v30  ;;  %2028 = vrot.lane.b32.xlu2 %v1933_v59, %s6333_s29 }
  0x9b   : > { %6017 = vmatmul.msk.f32.gmra.mxu1 %vm331_vm0, %v289_v31  ;;  %2172 = vrot.lane.b32.xlu2 %v2101_v2, %s6334_s8  ;;  %v1018_v2 = vld [vmem:[#allocation3 + $0x1e7] sm:$0xff] }
  0x9c   : > { %1050 = vst.msk [vmem:[#allocation4 + $0x180] sm:$0xff] %vm718_vm1, %v1018_v2  ;;  %v2476_v2 = vld [vmem:[%s9889_s3 + $0xf0] sm:$0xff] }
  0xa0   : > { %v472_v32 = vpop.f32.mrf.mxu1 }
  0xa1   : > { %672 = vst [vmem:[#allocation2 + $0x90] sm:$0xff] %v472_v32 }
  0xa3   : > { %6018 = vmatmul.msk.f32.gmra.mxu1 %vm331_vm0, %v290_v34 }
  0xa8   : > { %v475_v33 = vpop.f32.mrf.mxu1 }
  0xa9   : > { %674 = vst [vmem:[#allocation2 + $0xa0] sm:$0xff] %v475_v33 }
  0xab   : > { %6019 = vmatmul.msk.f32.gmra.mxu1 %vm331_vm0, %v291_v43 }
  0xb0   : > { %v478_v36 = vpop.f32.mrf.mxu1 }
  0xb1   : > { %676 = vst [vmem:[#allocation2 + $0xb0] sm:$0xff] %v478_v36 }
  0xb3   : > { %6020 = vmatmul.msk.f32.gmra.mxu1 %vm331_vm0, %v6456_v8 }
  0xb8   : > { %v481_v38 = vpop.f32.mrf.mxu1 }
  0xb9   : > { %678 = vst [vmem:[#allocation2 + $0xc0] sm:$0xff] %v481_v38 }
  0xbb   : > { %6021 = vmatmul.msk.f32.gmra.mxu1 %vm331_vm0, %v6473_v13  ;;  %v6834_v13 = vld [vmem:[%s9889_s3 + $0x118] sm:$0xff] }
  0xbc   : > { %2818 = vmatpush.msrb.mxu0 %v6834_v13 }
  0xbe   : > { %2819 = vmatpush.msrb.mxu0 %v6839_v14 }
  0xc0   : > { %v484_v39 = vpop.f32.mrf.mxu1 }
  0xc1   : > { %680 = vst [vmem:[#allocation2 + $0xd0] sm:$0xff] %v484_v39 }
  0xc3   : > { %6022 = vmatmul.msk.f32.gmra.mxu1 %vm331_vm0, %v6484_v16  ;;  %v6850_v16 = vld [vmem:[%s9889_s3 + $0x108] sm:$0xff] }
  0xc4   : > { %2820 = vmatpush.msrb.mxu0 %v6850_v16 }
  0xc8   : > { %v487_v40 = vpop.f32.mrf.mxu1 }
  0xc9   : > { %682 = vst [vmem:[#allocation2 + $0xe0] sm:$0xff] %v487_v40  ;;  %v1010_v40 = vld [vmem:[#allocation3 + $0xf7] sm:$0xff] }
  0xca   : > { %1042 = vst.msk [vmem:[#allocation4 + $0xc0] sm:$0xff] %vm718_vm1, %v1010_v40  ;;  %v307_v40 = vld [vmem:[%s6450_s18 + $0xc0] sm:$0xff] }
  0xcb   : > { %6023 = vmatmul.msk.f32.gmra.mxu1 %vm331_vm0, %v6492_v18  ;;  %v6857_v18 = vld [vmem:[%s9889_s3 + $0x100] sm:$0xff] }
  0xcc   : > { %2821 = vmatpush.msrb.mxu0 %v6857_v18 }
  0xd0   : > { %v490_v41 = vpop.f32.mrf.mxu1 }
  0xd1   : > { %684 = vst [vmem:[#allocation2 + $0xf0] sm:$0xff] %v490_v41  ;;  %v1147_v41 = vpop.permute.xlu2 %1146 }
  0xd2   : > { %1235 = vst.msk [vmem:[#allocation4 + $0xc0] sm:$0xff] %vm1226_vm2, %v1147_v41 }
  0xd3   : > { %6024 = vmatmul.msk.f32.gmra.mxu1 %vm331_vm0, %v6500_v20 }
  0xd8   : > { %v6715_v42 = vpop.f32.mrf.mxu1 }
  0xd9   : > { %686 = vst [vmem:[#allocation2 + $0x100] sm:$0xff] %v6715_v42 }
  0xdb   : > { %6025 = vmatmul.msk.f32.gmra.mxu1 %vm331_vm0, %v6507_v22 }
  0xe0   : > { %v496_v47 = vpop.f32.mrf.mxu1 }
  0xe1   : > { %688 = vst [vmem:[#allocation2 + $0x110] sm:$0xff] %v496_v47 }
  0xe3   : > { %6026 = vmatmul.msk.f32.gmra.mxu1 %vm331_vm0, %v6514_v24 }
  0xe8   : > { %v558_v51 = vpop.f32.mrf.mxu1 }
  0xe9   : > { %655 = vst.msk [vmem:[#allocation2 + $0x8] sm:$0xff] %vm331_vm0, %v558_v51 }
  0xeb   : > { %6027 = vmatmul.msk.f32.gmra.mxu1 %vm331_vm0, %v6521_v26 }
  0xf0   : > { %v561_v56 = vpop.f32.mrf.mxu1  ;;  %v839_v62 = vld [vmem:[#allocation2 + $0x8] sm:$0xff] }
  0xf1   : > { %657 = vst.msk [vmem:[#allocation2 + $0x18] sm:$0xff] %vm331_vm0, %v561_v56  ;;  %v873_v63 = vadd.f32 %v6820_v60, %v839_v62 }
  0xf3   : > { %v905_v4 = vmax.f32 %v873_v63, 0.0  ;;  %6028 = vmatmul.msk.f32.gmra.mxu1 %vm331_vm0, %v6528_v28 }
  0xf5   : > { %v937_v7 = vmin.f32 %v905_v4, 20.0  ;;  %v304_v4 = vld [vmem:[%s6450_s18 + $0xa8] sm:$0xff] }
  0xf6   : > { %6000 = vmatmul.msk.f32.gmra.mxu2 %vm331_vm0, %v304_v4 }
  0xf7   : > { %970 = vst.msk [vmem:[#allocation3 + $0x20] sm:$0xff] %vm718_vm1, %v937_v7 }
  0xf8   : > { %v564_v58 = vpop.f32.mrf.mxu1  ;;  %v840_v0 = vld [vmem:[#allocation2 + $0x18] sm:$0xff] }
  0xf9   : > { %659 = vst.msk [vmem:[#allocation2 + $0x28] sm:$0xff] %vm331_vm0, %v564_v58  ;;  %v874_v1 = vadd.f32 %v6820_v60, %v840_v0  ;;  %v445_v0 = vpop.f32.mrf.mxu0 }
  0xfa   : > { %654 = vst [vmem:[#allocation2] sm:$0xff] %v445_v0  ;;  %v2448_v0 = vld [vmem:[%s9889_s3 + $0x10] sm:$0xff] }
  0xfb   : > { %v906_v6 = vmax.f32 %v874_v1, 0.0  ;;  %6029 = vmatmul.msk.f32.gmra.mxu1 %vm331_vm0, %v301_v46 }
  0xfd   : > { %v938_v9 = vmin.f32 %v906_v6, 20.0 }
  0xfe   : > { %v1452_v20 = vld [vmem:[#allocation3 + $0x1f] sm:$0xff] }
  0xff   : > { %971 = vst.msk [vmem:[#allocation3 + $0x38] sm:$0xff] %vm718_vm1, %v938_v9  ;;  %v1067_v21 = vld [vmem:[#allocation3 + $0x20] sm:$0xff]  ;;  %1516 = vrot.lane.b32.xlu1 %v1452_v20, %s6334_s8 }
 0x100   : > { %v567_v61 = vpop.f32.mrf.mxu1  ;;  %v841_v3 = vld [vmem:[#allocation2 + $0x28] sm:$0xff]  ;;  %1132 = vrot.lane.b32.xlu0 %v1067_v21, %s6332_s23  ;;  %1035 = vst.msk [vmem:[#allocation4 + $0x18] sm:$0xff] %vm718_vm1, %v1452_v20  ;;  %v1163_v20 = vpop.permute.xlu1 %1162 }
 0x101   : > { %661 = vst.msk [vmem:[#allocation2 + $0x38] sm:$0xff] %vm331_vm0, %v567_v61  ;;  %v875_v5 = vadd.f32 %v6820_v60, %v841_v3  ;;  %v1260_v34 = vld [vmem:[#allocation3 + $0x21] sm:$0xff]  ;;  %v1324_v61 = vpop.permute.xlu2 %1323 }
 0x102   : > { %1677 = vst.msk [vmem:[#allocation4 + $0x8] sm:$0xff] %vm718_vm1, %v1067_v21  ;;  %v1002_v3 = vld [vmem:[#allocation3 + $0x7] sm:$0xff]  ;;  %v1131_v21 = vpop.permute.xlu0 %1130 }
 0x103   : > { %v907_v8 = vmax.f32 %v875_v5, 0.0  ;;  %6030 = vmatmul.msk.f32.gmra.mxu1 %vm331_vm0, %v302_v52  ;;  %1034 = vst.msk [vmem:[#allocation4] sm:$0xff] %vm718_vm1, %v1002_v3 }
 0x104   : > { %1243 = vst.msk [vmem:[#allocation4 + $0x180] sm:$0xff] %vm1226_vm2, %v1163_v20 }
 0x105   : > { %v939_v10 = vmin.f32 %v907_v8, 20.0  ;;  %1227 = vst.msk [vmem:[#allocation4] sm:$0xff] %vm1226_vm2, %v1131_v21  ;;  %v2473_v21 = vld [vmem:[%s9889_s3 + $0xd8] sm:$0xff] }
 0x106   : > { %v1453_v22 = vld [vmem:[#allocation3 + $0x37] sm:$0xff]  ;;  %1420 = vst.msk [vmem:[#allocation4] sm:$0xff] %vm1419_vm3, %v1324_v61 }
 0x107   : > { %972 = vst.msk [vmem:[#allocation3 + $0x50] sm:$0xff] %vm718_vm1, %v939_v10  ;;  %v1261_v23 = vld [vmem:[#allocation3 + $0x39] sm:$0xff]  ;;  %1518 = vrot.lane.b32.xlu2 %v1453_v22, %s6334_s8 }
 0x108   : > { %v842_v11 = vld [vmem:[#allocation2 + $0x38] sm:$0xff]  ;;  %v570_v12 = vpop.f32.mrf.mxu1  ;;  %2318 = vst.msk [vmem:[#allocation4 + $0x10] sm:$0xff] %vm718_vm1, %v1261_v23  ;;  %1325 = vrot.lane.b32.xlu0 %v1260_v34, %s6333_s29 }
 0x109   : > { %v876_v15 = vadd.f32 %v6820_v60, %v842_v11  ;;  %663 = vst.msk [vmem:[#allocation2 + $0x48] sm:$0xff] %vm331_vm0, %v570_v12  ;;  %v1068_v32 = vld [vmem:[#allocation3 + $0x38] sm:$0xff]  ;;  %v1372_v7 = vpop.permute.xlu2 %1371  ;;  %v448_v11 = vpop.f32.mrf.mxu0  ;;  %v305_v12 = vld [vmem:[%s6450_s18 + $0xb0] sm:$0xff] }
 0x10a   : > { %1036 = vst.msk [vmem:[#allocation4 + $0x30] sm:$0xff] %vm718_vm1, %v1453_v22  ;;  %1134 = vrot.lane.b32.xlu1 %v1068_v32, %s6332_s23  ;;  %v1026_v10 = vld [vmem:[#allocation3 + $0x2d7] sm:$0xff]  ;;  %6001 = vmatmul.msk.f32.gmra.mxu2 %vm331_vm0, %v305_v12 }
 0x10b   : > { %v908_v17 = vmax.f32 %v876_v15, 0.0  ;;  %1678 = vst.msk [vmem:[#allocation4 + $0x20] sm:$0xff] %vm718_vm1, %v1068_v32  ;;  %6031 = vmatmul.msk.f32.gmra.mxu1 %vm331_vm0, %v303_v57  ;;  %v2461_v15 = vld [vmem:[%s9889_s3 + $0x78] sm:$0xff] }
 0x10c   : > { %1058 = vst.msk [vmem:[#allocation4 + $0x240] sm:$0xff] %vm718_vm1, %v1026_v10  ;;  %2580 = vmatpush.msrb.mxu2 %v2461_v15  ;;  %v2449_v57 = vld [vmem:[%s9889_s3 + $0x18] sm:$0xff] }
 0x10d   : > { %v940_v19 = vmin.f32 %v908_v17, 20.0  ;;  %656 = vst [vmem:[#allocation2 + $0x10] sm:$0xff] %v448_v11  ;;  %v2474_v11 = vld [vmem:[%s9889_s3 + $0xe0] sm:$0xff] }
 0x10e   : > { %v1262_v25 = vld [vmem:[#allocation3 + $0x51] sm:$0xff] }
 0x10f   : > { %973 = vst.msk [vmem:[#allocation3 + $0x68] sm:$0xff] %vm718_vm1, %v940_v19  ;;  %v6866_v27 = vld [vmem:[#allocation3 + $0x50] sm:$0xff]  ;;  %1966 = vrot.lane.b32.xlu2 %v1453_v22, %s6333_s29  ;;  %v2459_v22 = vld [vmem:[%s9889_s3 + $0x68] sm:$0xff] }
 0x110   : > { %v843_v29 = vld [vmem:[#allocation2 + $0x48] sm:$0xff]  ;;  %2319 = vst.msk [vmem:[#allocation4 + $0x28] sm:$0xff] %vm718_vm1, %v1262_v25  ;;  %v2352_v35 = vld [vmem:[#allocation4 + $0x10] sm:$0xff]  ;;  %1773 = vrot.lane.b32.xlu0 %v1260_v34, %s6332_s23  ;;  %v573_v39 = vpop.f32.mrf.mxu1  ;;  %v1340_v34 = vpop.permute.xlu1 %1339 }
 0x111   : > { %v877_v30 = vadd.f32 %v6820_v60, %v843_v29  ;;  %v6874_v31 = vld [vmem:[#allocation3 + $0x4f] sm:$0xff]  ;;  %1679 = vst.msk [vmem:[#allocation4 + $0x38] sm:$0xff] %vm718_vm1, %v6866_v27  ;;  %6043 = vmatmul.msk.f32.vlgmr.msrb.gmra.mxu0 %vm718_vm1, %v2352_v35  ;;  %v451_v29 = vpop.f32.mrf.mxu0  ;;  %v1179_v35 = vpop.permute.xlu0 %1178 }
 0x112   : > { %1037 = vst.msk [vmem:[#allocation4 + $0x48] sm:$0xff] %vm718_vm1, %v6874_v31  ;;  %1327 = vrot.lane.b32.xlu1 %v1261_v23, %s6333_s29  ;;  %v2460_v19 = vld [vmem:[%s9889_s3 + $0x70] sm:$0xff] }
 0x113   : > { %v909_v33 = vmax.f32 %v877_v30, 0.0  ;;  %665 = vst.msk [vmem:[#allocation2 + $0x58] sm:$0xff] %vm331_vm0, %v573_v39  ;;  %6032 = vmatmul.msk.f32.gmra.mxu1 %vm331_vm0, %v304_v4  ;;  %2581 = vmatpush.msrb.mxu2 %v2460_v19  ;;  %v7014_v30 = vld [vmem:[%s6450_s18 + $0xd0] sm:$0xff]  ;;  %v2454_v39 = vld [vmem:[%s9889_s3 + $0x40] sm:$0xff]  ;;  %v2447_v4 = vld [vmem:[%s9889_s3 + $0x8] sm:$0xff] }
 0x114   : > { %658 = vst [vmem:[#allocation2 + $0x20] sm:$0xff] %v451_v29  ;;  %6005 = vmatmul.msk.f32.vlgmr.msra.gmra.mxu3 %vm331_vm0, %v7014_v30 }
 0x115   : > { %v941_v24 = vmin.f32 %v909_v33, 20.0  ;;  %2582 = vmatpush.msrb.mxu2 %v2459_v22  ;;  %1428 = vst.msk [vmem:[#allocation4 + $0xc0] sm:$0xff] %vm1419_vm3, %v1340_v34  ;;  %v2470_v34 = vld [vmem:[%s9889_s3 + $0xc0] sm:$0xff] }
 0x116   : > { %v6887_v36 = vld [vmem:[#allocation3 + $0x67] sm:$0xff]  ;;  %1251 = vst.msk [vmem:[#allocation4 + $0x240] sm:$0xff] %vm1226_vm2, %v1179_v35 }
 0x117   : > { %974 = vst.msk [vmem:[#allocation3 + $0x80] sm:$0xff] %vm718_vm1, %v941_v24  ;;  %v6889_v37 = vld [vmem:[#allocation3 + $0x68] sm:$0xff]  ;;  %1329 = vrot.lane.b32.xlu2 %v1262_v25, %s6333_s29 }
 0x118   : > { %1038 = vst.msk [vmem:[#allocation4 + $0x60] sm:$0xff] %vm718_vm1, %v6887_v36  ;;  %v2355_v38 = vld [vmem:[#allocation4 + $0x28] sm:$0xff]  ;;  %2158 = vrot.lane.b32.xlu0 %v1068_v32, %s6334_s8  ;;  %v576_v44 = vpop.f32.mrf.mxu1  ;;  %v2456_v32 = vld [vmem:[%s9889_s3 + $0x50] sm:$0xff]  ;;  %v7137_v19 = vpop.permute.xlu1 %2012 }
 0x119   : > { %1680 = vst.msk [vmem:[#allocation4 + $0x50] sm:$0xff] %vm718_vm1, %v6889_v37  ;;  %6044 = vmatmul.msk.f32.gmra.mxu0 %vm718_vm1, %v2355_v38  ;;  %v6902_v26 = vld [vmem:[#allocation3 + $0x69] sm:$0xff] }
 0x11a   : > { %2320 = vst.msk [vmem:[#allocation4 + $0x40] sm:$0xff] %vm718_vm1, %v6902_v26  ;;  %1775 = vrot.lane.b32.xlu1 %v1261_v23, %s6332_s23  ;;  %v844_v43 = vld [vmem:[#allocation2 + $0x58] sm:$0xff]  ;;  %v7000_v23 = vpop.permute.xlu2 %1996  ;;  %v2455_v24 = vld [vmem:[%s9889_s3 + $0x48] sm:$0xff] }
 0x11b   : > { %v878_v28 = vadd.f32 %v6820_v60, %v844_v43  ;;  %667 = vst.msk [vmem:[#allocation2 + $0x68] sm:$0xff] %vm331_vm0, %v576_v44  ;;  %6033 = vmatmul.msk.f32.gmra.mxu1 %vm331_vm0, %v305_v12  ;;  %v2452_v43 = vld [vmem:[%s9889_s3 + $0x30] sm:$0xff]  ;;  %v2451_v44 = vld [vmem:[%s9889_s3 + $0x28] sm:$0xff] }
 0x11c   : > { %1444 = vst.msk [vmem:[#allocation4 + $0x240] sm:$0xff] %vm1419_vm3, %v1372_v7  ;;  %v2475_v7 = vld [vmem:[%s9889_s3 + $0xe8] sm:$0xff] }
 0x11d   : > { %v910_v48 = vmax.f32 %v878_v28, 0.0  ;;  %v7135_v12 = vld [vmem:[%s6450_s18 + $0xe8] sm:$0xff] }
 0x11e   : > { %v6908_v42 = vld [vmem:[#allocation3 + $0x80] sm:$0xff] }
 0x11f   : > { %1681 = vst.msk [vmem:[#allocation4 + $0x68] sm:$0xff] %vm718_vm1, %v6908_v42  ;;  %1777 = vrot.lane.b32.xlu2 %v1262_v25, %s6332_s23  ;;  %v6918_v45 = vld [vmem:[#allocation3 + $0x81] sm:$0xff]  ;;  %v942_v49 = vmin.f32 %v910_v48, 20.0 }
 0x120   : > { %v1456_v47 = vld [vmem:[#allocation3 + $0x7f] sm:$0xff]  ;;  %2321 = vst.msk [vmem:[#allocation4 + $0x58] sm:$0xff] %vm718_vm1, %v6918_v45  ;;  %1520 = vrot.lane.b32.xlu0 %v6874_v31, %s6334_s8  ;;  %v579_v56 = vpop.f32.mrf.mxu1 }
 0x121   : > { %1039 = vst.msk [vmem:[#allocation4 + $0x78] sm:$0xff] %vm718_vm1, %v1456_v47  ;;  %v2358_v51 = vld [vmem:[#allocation4 + $0x40] sm:$0xff] }
 0x122   : > { %975 = vst.msk [vmem:[#allocation3 + $0x98] sm:$0xff] %vm718_vm1, %v942_v49  ;;  %1136 = vrot.lane.b32.xlu1 %v6866_v27, %s6332_s23  ;;  %v845_v50 = vld [vmem:[#allocation2 + $0x68] sm:$0xff]  ;;  %6045 = vmatmul.msk.f32.gmra.mxu0 %vm718_vm1, %v2358_v51  ;;  %v2458_v25 = vld [vmem:[%s9889_s3 + $0x60] sm:$0xff]  ;;  %v7040_v38 = vpop.permute.xlu2 %2028 }
 0x123   : > { %v879_v53 = vadd.f32 %v6820_v60, %v845_v50  ;;  %669 = vst.msk [vmem:[#allocation2 + $0x78] sm:$0xff] %vm331_vm0, %v579_v56  ;;  %2583 = vmatpush.msrb.mxu2 %v2458_v25  ;;  %v2450_v51 = vld [vmem:[%s9889_s3 + $0x20] sm:$0xff] }
 0x124   : > { %v7092_v56 = vld [vmem:[%s6450_s18 + $0xe0] sm:$0xff] }
 0x125   : > { %v911_v54 = vmax.f32 %v879_v53, 0.0 }
 0x127   : > { %1138 = vrot.lane.b32.xlu2 %v6889_v37, %s6332_s23  ;;  %v943_v55 = vmin.f32 %v911_v54, 20.0  ;;  %v2361_v63 = vld [vmem:[#allocation4 + $0x58] sm:$0xff] }
 0x128   : > { %1968 = vrot.lane.b32.xlu0 %v6874_v31, %s6333_s29  ;;  %v2457_v31 = vld [vmem:[%s9889_s3 + $0x58] sm:$0xff] }
 0x129   : > { %976 = vst.msk [vmem:[#allocation3 + $0xb0] sm:$0xff] %vm718_vm1, %v943_v55  ;;  %v6947_v58 = vld [vmem:[#allocation3 + $0x99] sm:$0xff]  ;;  %2584 = vmatpush.msrb.mxu2 %v2457_v31  ;;  %v308_v55 = vld [vmem:[%s6450_s18 + $0xc8] sm:$0xff] }
 0x12a   : > { %1522 = vrot.lane.b32.xlu1 %v6887_v36, %s6334_s8  ;;  %v6950_v59 = vld [vmem:[#allocation3 + $0x98] sm:$0xff]  ;;  %2322 = vst.msk [vmem:[#allocation4 + $0x70] sm:$0xff] %vm718_vm1, %v6947_v58  ;;  %6046 = vmatmul.msk.f32.gmra.mxu0 %vm718_vm1, %v2361_v63  ;;  %v7085_v53 = vpop.permute.xlu2 %2172 }
 0x12b   : > { %1682 = vst.msk [vmem:[#allocation4 + $0x80] sm:$0xff] %vm718_vm1, %v6950_v59  ;;  %v846_v62 = vld [vmem:[#allocation2 + $0x78] sm:$0xff]  ;;  %2585 = vmatpush.msrb.mxu2 %v2456_v32 }
 0x12c   : > { %v880_v1 = vadd.f32 %v6820_v60, %v846_v62  ;;  %v6968_v5 = vld [vmem:[#allocation3 + $0x97] sm:$0xff] }
 0x12d   : > { %1040 = vst.msk [vmem:[#allocation4 + $0x90] sm:$0xff] %vm718_vm1, %v6968_v5  ;;  %2586 = vmatpush.msrb.mxu2 %v2455_v24 }
 0x12e   : > { %v912_v6 = vmax.f32 %v880_v1, 0.0 }
 0x12f   : > { %1140 = vrot.lane.b32.xlu2 %v6908_v42, %s6332_s23  ;;  %2587 = vmatpush.msrb.mxu2 %v2454_v39  ;;  %v7173_v39 = vld [vmem:[%s6450_s18 + $0xf0] sm:$0xff] }
 0x130   : > { %2160 = vrot.lane.b32.xlu0 %v6866_v27, %s6334_s8  ;;  %v944_v8 = vmin.f32 %v912_v6, 20.0  ;;  %v6986_v17 = vld [vmem:[#allocation3 + $0xaf] sm:$0xff]  ;;  %v306_v27 = vld [vmem:[%s6450_s18 + $0xb8] sm:$0xff] }
 0x131   : > { %v2364_v9 = vld [vmem:[#allocation4 + $0x70] sm:$0xff]  ;;  %1041 = vst.msk [vmem:[#allocation4 + $0xa8] sm:$0xff] %vm718_vm1, %v6986_v17  ;;  %6002 = vmatmul.msk.f32.gmra.mxu2 %vm331_vm0, %v306_v27  ;;  %6034 = vmatmul.msk.f32.gmra.mxu1 %vm331_vm0, %v306_v27 }
 0x132   : > { %1970 = vrot.lane.b32.xlu1 %v6887_v36, %s6333_s29  ;;  %977 = vst.msk [vmem:[#allocation3 + $0xc8] sm:$0xff] %vm718_vm1, %v944_v8  ;;  %6047 = vmatmul.msk.f32.gmra.mxu0 %vm718_vm1, %v2364_v9  ;;  %v7025_v33 = vld [vmem:[#allocation3 + $0xb1] sm:$0xff]  ;;  %v582_v36 = vpop.f32.mrf.mxu1  ;;  %v2446_v8 = vld [vmem:[%s9889_s3] sm:$0xff] }
 0x133   : > { %2323 = vst.msk [vmem:[#allocation4 + $0x88] sm:$0xff] %vm718_vm1, %v7025_v33  ;;  %v7069_v28 = vld [vmem:[#allocation3 + $0xb0] sm:$0xff] }
 0x134   : > { %671 = vst.msk [vmem:[#allocation2 + $0x88] sm:$0xff] %vm331_vm0, %v582_v36  ;;  %v1651_v3 = vld [vmem:[#allocation3 + $0xb0] sm:$0xff] }
 0x135   : > { %1683 = vst.msk [vmem:[#allocation4 + $0x98] sm:$0xff] %vm718_vm1, %v1651_v3  ;;  %v2472_v27 = vld [vmem:[%s9889_s3 + $0xd0] sm:$0xff]  ;;  %v2462_v3 = vld [vmem:[%s9889_s3 + $0x80] sm:$0xff] }
 0x137   : > { %1524 = vrot.lane.b32.xlu2 %v1456_v47, %s6334_s8 }
 0x138   : > { %1331 = vrot.lane.b32.xlu0 %v6902_v26, %s6333_s29 }
 0x139   : > { %v7049_v41 = vld [vmem:[#allocation3 + $0xc9] sm:$0xff]  ;;  %6003 = vmatmul.msk.f32.gmra.mxu2 %vm331_vm0, %v307_v40  ;;  %6035 = vmatmul.msk.f32.gmra.mxu1 %vm331_vm0, %v307_v40 }
 0x13a   : > { %1333 = vrot.lane.b32.xlu1 %v6918_v45, %s6333_s29  ;;  %2324 = vst.msk [vmem:[#allocation4 + $0xa0] sm:$0xff] %vm718_vm1, %v7049_v41  ;;  %v7078_v49 = vld [vmem:[#allocation3 + $0xc8] sm:$0xff] }
 0x13b   : > { %v847_v46 = vld [vmem:[#allocation2 + $0x88] sm:$0xff]  ;;  %1684 = vst.msk [vmem:[#allocation4 + $0xb0] sm:$0xff] %vm718_vm1, %v7078_v49 }
 0x13c   : > { %v881_v48 = vadd.f32 %v6820_v60, %v847_v46  ;;  %v2367_v50 = vld [vmem:[#allocation4 + $0x88] sm:$0xff] }
 0x13d   : > { %6048 = vmatmul.msk.f32.gmra.mxu0 %vm718_vm1, %v2367_v50  ;;  %v1459_v61 = vld [vmem:[#allocation3 + $0xc7] sm:$0xff] }
 0x13e   : > { %v913_v52 = vmax.f32 %v881_v48, 0.0  ;;  %v2467_v48 = vld [vmem:[%s9889_s3 + $0xa8] sm:$0xff] }
 0x13f   : > { %1972 = vrot.lane.b32.xlu2 %v1456_v47, %s6333_s29  ;;  %v585_v47 = vpop.f32.mrf.mxu1 }
 0x140   : > { %1779 = vrot.lane.b32.xlu0 %v6902_v26, %s6332_s23  ;;  %v454_v26 = vpop.f32.mrf.mxu0  ;;  %673 = vst.msk [vmem:[#allocation2 + $0x98] sm:$0xff] %vm331_vm0, %v585_v47  ;;  %v945_v54 = vmin.f32 %v913_v52, 20.0 }
 0x141   : > { %660 = vst [vmem:[#allocation2 + $0x30] sm:$0xff] %v454_v26  ;;  %6004 = vmatmul.msk.f32.gmra.mxu2 %vm331_vm0, %v308_v55  ;;  %6036 = vmatmul.msk.f32.gmra.mxu1 %vm331_vm0, %v308_v55  ;;  %v2370_v29 = vld [vmem:[#allocation4 + $0xa0] sm:$0xff]  ;;  %v2469_v26 = vld [vmem:[%s9889_s3 + $0xb8] sm:$0xff] }
 0x142   : > { %1781 = vrot.lane.b32.xlu1 %v6918_v45, %s6332_s23  ;;  %v1356_v45 = vpop.permute.xlu0 %1355  ;;  %978 = vst.msk [vmem:[#allocation3 + $0x110] sm:$0xff] %vm718_vm1, %v945_v54  ;;  %v2466_v54 = vld [vmem:[%s9889_s3 + $0xa0] sm:$0xff] }
 0x143   : > { %1436 = vst.msk [vmem:[#allocation4 + $0x180] sm:$0xff] %vm1419_vm3, %v1356_v45 }
 0x145   : > { %6049 = vmatmul.msk.f32.gmra.mxu0 %vm718_vm1, %v2370_v29 }
 0x147   : > { %1335 = vrot.lane.b32.xlu2 %v6947_v58, %s6333_s29  ;;  %v848_v62 = vld [vmem:[#allocation2 + $0x98] sm:$0xff]  ;;  %v588_v63 = vpop.f32.mrf.mxu1 }
 0x148   : > { %2162 = vrot.lane.b32.xlu0 %v6889_v37, %s6334_s8  ;;  %v7052_v37 = vld [vmem:[%s6450_s18 + $0xd8] sm:$0xff]  ;;  %v882_v1 = vadd.f32 %v6820_v60, %v848_v62  ;;  %675 = vst.msk [vmem:[#allocation2 + $0xa8] sm:$0xff] %vm331_vm0, %v588_v63  ;;  %v2463_v63 = vld [vmem:[%s9889_s3 + $0x88] sm:$0xff] }
 0x149   : > { %6006 = vmatmul.msk.f32.gmra.mxu3 %vm331_vm0, %v7052_v37  ;;  %v7142_v22 = vld [vmem:[#allocation3 + $0x110] sm:$0xff]  ;;  %6037 = vmatmul.msk.f32.gmra.mxu1 %vm331_vm0, %v7014_v30 }
 0x14a   : > { %2164 = vrot.lane.b32.xlu1 %v6908_v42, %s6334_s8  ;;  %v2453_v42 = vld [vmem:[%s9889_s3 + $0x38] sm:$0xff]  ;;  %v914_v6 = vmax.f32 %v882_v1, 0.0  ;;  %1685 = vst.msk [vmem:[#allocation4 + $0xc8] sm:$0xff] %vm718_vm1, %v7142_v22  ;;  %v7175_v40 = vld [vmem:[#allocation3 + $0x10f] sm:$0xff] }
 0x14b   : > { %2588 = vmatpush.msrb.mxu2 %v2453_v42  ;;  %v1268_v24 = vld [vmem:[#allocation3 + $0x111] sm:$0xff]  ;;  %v7188_v42 = vpop.permute.xlu1 %2188  ;;  %1043 = vst.msk [vmem:[#allocation4 + $0xd8] sm:$0xff] %vm718_vm1, %v7175_v40 }
 0x14c   : > { %v946_v9 = vmin.f32 %v914_v6, 20.0 }
 0x14d   : > { %2589 = vmatpush.msrb.mxu2 %v2452_v43  ;;  %v7190_v43 = vpop.permute.xlu0 %1980 }
 0x14e   : > { %979 = vst.msk [vmem:[#allocation3 + $0x128] sm:$0xff] %vm718_vm1, %v946_v9 }
 0x14f   : > { %1783 = vrot.lane.b32.xlu2 %v6947_v58, %s6332_s23  ;;  %2590 = vmatpush.msrb.mxu2 %v2451_v44  ;;  %v457_v58 = vpop.f32.mrf.mxu0  ;;  %v849_v20 = vld [vmem:[#allocation2 + $0xa8] sm:$0xff]  ;;  %v591_v31 = vpop.f32.mrf.mxu1 }
 0x150   : > { %1142 = vrot.lane.b32.xlu0 %v6950_v59, %s6332_s23  ;;  %662 = vst [vmem:[#allocation2 + $0x40] sm:$0xff] %v457_v58  ;;  %v883_v25 = vadd.f32 %v6820_v60, %v849_v20  ;;  %v2465_v58 = vld [vmem:[%s9889_s3 + $0x98] sm:$0xff] }
 0x151   : > { %2591 = vmatpush.msrb.mxu2 %v2450_v51  ;;  %6007 = vmatmul.msk.f32.gmra.mxu3 %vm331_vm0, %v7092_v56  ;;  %677 = vst.msk [vmem:[#allocation2 + $0xb8] sm:$0xff] %vm331_vm0, %v591_v31 }
 0x152   : > { %1144 = vrot.lane.b32.xlu1 %v7069_v28, %s6332_s23  ;;  %v915_v32 = vmax.f32 %v883_v25, 0.0  ;;  %6038 = vmatmul.msk.f32.gmra.mxu1 %vm331_vm0, %v7052_v37 }
 0x153   : > { %2592 = vmatpush.msrb.mxu2 %v2449_v57  ;;  %v7221_v57 = vld [vmem:[%s6450_s18 + $0xf8] sm:$0xff]  ;;  %s6287_s18 = scalar_lea.hbm %s9893_s7, 512 }
 0x155   : > { %2593 = vmatpush.msrb.mxu2 %v2448_v0  ;;  %v7170_v36 = vld [vmem:[#allocation3 + $0x127] sm:$0xff] }
 0x156   : > { %1044 = vst.msk [vmem:[#allocation4 + $0xf0] sm:$0xff] %vm718_vm1, %v7170_v36  ;;  %v7192_v44 = vld [vmem:[#allocation3 + $0x128] sm:$0xff] }
 0x157   : > { %2166 = vrot.lane.b32.xlu2 %v6950_v59, %s6334_s8  ;;  %v2477_v59 = vld [vmem:[%s9889_s3 + $0xf8] sm:$0xff]  ;;  %2594 = vmatpush.msrb.mxu2 %v2447_v4  ;;  %v460_v15 = vpop.f32.mrf.mxu0  ;;  %1686 = vst.msk [vmem:[#allocation4 + $0xe0] sm:$0xff] %vm718_vm1, %v7192_v44  ;;  %v7217_v55 = vld [vmem:[#allocation3 + $0x129] sm:$0xff] }
 0x158   : > { %2693 = vmatpush.msrb.mxu3 %v2477_v59  ;;  %1526 = vrot.lane.b32.xlu0 %v6968_v5, %s6334_s8  ;;  %664 = vst [vmem:[#allocation2 + $0x50] sm:$0xff] %v460_v15  ;;  %v850_v45 = vld [vmem:[#allocation2 + $0xb8] sm:$0xff]  ;;  %v2293_v59 = vld [vmem:[#allocation3 + $0xe1] sm:$0xff] }
 0x159   : > { %2595 = vmatpush.msrb.mxu2 %v2446_v8  ;;  %6008 = vmatmul.msk.f32.gmra.mxu3 %vm331_vm0, %v7135_v12  ;;  %v884_v37 = vadd.f32 %v6820_v60, %v850_v45  ;;  %2326 = vst.msk [vmem:[#allocation4 + $0xd0] sm:$0xff] %vm718_vm1, %v7217_v55 }
 0x15a   : > { %1528 = vrot.lane.b32.xlu1 %v6986_v17, %s6334_s8  ;;  %2694 = vmatpush.msrb.mxu3 %v2476_v2  ;;  %2325 = vst.msk [vmem:[#allocation4 + $0xb8] sm:$0xff] %vm718_vm1, %v2293_v59 }
 0x15b   : > { %v916_v47 = vmax.f32 %v884_v37, 0.0  ;;  %6039 = vmatmul.msk.f32.gmra.mxu1 %vm331_vm0, %v7092_v56 }
 0x15c   : > { %2695 = vmatpush.msrb.mxu3 %v2475_v7 }
 0x15d   : > { %v948_v51 = vmin.f32 %v916_v47, 20.0 }
 0x15e   : > { %2696 = vmatpush.msrb.mxu3 %v2474_v11 }
 0x15f   : > { %1530 = vrot.lane.b32.xlu2 %v1459_v61, %s6334_s8  ;;  %v463_v35 = vpop.f32.mrf.mxu0  ;;  %981 = vst.msk [vmem:[#allocation3 + $0x158] sm:$0xff] %vm718_vm1, %v948_v51 }
 0x160   : > { %1974 = vrot.lane.b32.xlu0 %v6968_v5, %s6333_s29  ;;  %2697 = vmatpush.msrb.mxu3 %v2473_v21  ;;  %v2471_v5 = vld [vmem:[%s9889_s3 + $0xc8] sm:$0xff]  ;;  %666 = vst [vmem:[#allocation2 + $0x60] sm:$0xff] %v463_v35  ;;  %v2376_v25 = vld [vmem:[#allocation4 + $0xd0] sm:$0xff] }
 0x161   : > { %v7128_v10 = vpop.permute.xlu2 %1518  ;;  %6009 = vmatmul.msk.f32.gmra.mxu3 %vm331_vm0, %v7173_v39  ;;  %v2373_v4 = vld [vmem:[#allocation4 + $0xb8] sm:$0xff] }
 0x162   : > { %1976 = vrot.lane.b32.xlu1 %v6986_v17, %s6333_s29  ;;  %v947_v17 = vmin.f32 %v915_v32, 20.0  ;;  %2698 = vmatpush.msrb.mxu3 %v2472_v27  ;;  %4660 = vst.msk [vmem:[#allocation4 + $0xb8] sm:$0xff] %vm718_vm1, %v2293_v59  ;;  %v499_v59 = vpop.f32.mrf.mxu2 }
 0x163   : > { %6040 = vmatmul.msk.f32.gmra.mxu1 %vm331_vm0, %v7135_v12  ;;  %6050 = vmatmul.msk.f32.gmra.mxu0 %vm718_vm1, %v2373_v4  ;;  %690 = vst [vmem:[#allocation2 + $0x120] sm:$0xff] %v499_v59 }
 0x164   : > { %980 = vst.msk [vmem:[#allocation3 + $0x140] sm:$0xff] %vm718_vm1, %v947_v17  ;;  %2699 = vmatpush.msrb.mxu3 %v2471_v5 }
 0x166   : > { %2700 = vmatpush.msrb.mxu3 %v2470_v34  ;;  %v7278_v21 = vld [vmem:[#allocation3 + $0x159] sm:$0xff] }
 0x167   : > { %1978 = vrot.lane.b32.xlu2 %v1459_v61, %s6333_s29  ;;  %v466_v52 = vpop.f32.mrf.mxu0  ;;  %v594_v61 = vpop.f32.mrf.mxu1  ;;  %2328 = vst.msk [vmem:[#allocation4 + $0x100] sm:$0xff] %vm718_vm1, %v7278_v21  ;;  %v7298_v31 = vld [vmem:[#allocation3 + $0x158] sm:$0xff] }
 0x168   : > { %1337 = vrot.lane.b32.xlu0 %v7025_v33, %s6333_s29  ;;  %2701 = vmatpush.msrb.mxu3 %v2469_v26  ;;  %668 = vst [vmem:[#allocation2 + $0x70] sm:$0xff] %v466_v52 }
 0x169   : > { %v7164_v30 = vpop.permute.xlu2 %1966  ;;  %6010 = vmatmul.msk.f32.gmra.mxu3 %vm331_vm0, %v7221_v57  ;;  %679 = vst.msk [vmem:[#allocation2 + $0xc8] sm:$0xff] %vm331_vm0, %v594_v61 }
 0x16a   : > { %1787 = vrot.lane.b32.xlu1 %v7049_v41, %s6332_s23  ;;  %v2468_v41 = vld [vmem:[%s9889_s3 + $0xb0] sm:$0xff]  ;;  %1688 = vst.msk [vmem:[#allocation4 + $0x110] sm:$0xff] %vm718_vm1, %v7298_v31 }
 0x16b   : > { %2702 = vmatpush.msrb.mxu3 %v2468_v41  ;;  %v7210_v50 = vld [vmem:[#allocation3 + $0x13f] sm:$0xff]  ;;  %6041 = vmatmul.msk.f32.gmra.mxu1 %vm331_vm0, %v7173_v39 }
 0x16c   : > { %1045 = vst.msk [vmem:[#allocation4 + $0x108] sm:$0xff] %vm718_vm1, %v7210_v50  ;;  %v7248_v1 = vld [vmem:[#allocation3 + $0x140] sm:$0xff]  ;;  %6051 = vmatmul.msk.f32.gmra.mxu0 %vm718_vm1, %v2376_v25 }
 0x16d   : > { %2703 = vmatpush.msrb.mxu3 %v2467_v48  ;;  %v7250_v2 = vld [vmem:[#allocation3 + $0x141] sm:$0xff]  ;;  %1687 = vst.msk [vmem:[#allocation4 + $0xf8] sm:$0xff] %vm718_vm1, %v7248_v1 }
 0x16e   : > { %2327 = vst.msk [vmem:[#allocation4 + $0xe8] sm:$0xff] %vm718_vm1, %v7250_v2  ;;  %v2382_v35 = vld [vmem:[#allocation4 + $0x100] sm:$0xff] }
 0x16f   : > { %1341 = vrot.lane.b32.xlu2 %v1268_v24, %s6333_s29  ;;  %2704 = vmatpush.msrb.mxu3 %v2466_v54  ;;  %v469_v0 = vpop.f32.mrf.mxu0  ;;  %v597_v6 = vpop.f32.mrf.mxu1 }
 0x170   : > { %1785 = vrot.lane.b32.xlu0 %v7025_v33, %s6332_s23  ;;  %670 = vst [vmem:[#allocation2 + $0x80] sm:$0xff] %v469_v0  ;;  %v851_v7 = vld [vmem:[#allocation2 + $0xc8] sm:$0xff] }
 0x171   : > { %v7205_v46 = vpop.permute.xlu2 %1329  ;;  %v1517_v56 = vpop.permute.xlu1 %1516  ;;  %2705 = vmatpush.msrb.mxu3 %v2465_v58  ;;  %681 = vst.msk [vmem:[#allocation2 + $0xd8] sm:$0xff] %vm331_vm0, %v597_v6 }
 0x172   : > { %2170 = vrot.lane.b32.xlu1 %v7078_v49, %s6334_s8  ;;  %v1133_v33 = vpop.permute.xlu0 %1132  ;;  %v2464_v49 = vld [vmem:[%s9889_s3 + $0x90] sm:$0xff]  ;;  %1613 = vst.msk [vmem:[#allocation4] sm:$0xff] %vm1612_vm4, %v1517_v56 }
 0x173   : > { %1228 = vst.msk [vmem:[#allocation4 + $0x18] sm:$0xff] %vm1226_vm2, %v1133_v33  ;;  %2706 = vmatpush.msrb.mxu3 %v2464_v49  ;;  %6042 = vmatmul.msk.f32.gmra.mxu1 %vm331_vm0, %v7221_v57 }
 0x175   : > { %2707 = vmatpush.msrb.mxu3 %v2463_v63  ;;  %v2379_v5 = vld [vmem:[#allocation4 + $0xe8] sm:$0xff] }
 0x176   : > { %6052 = vmatmul.msk.f32.gmra.mxu0 %vm718_vm1, %v2379_v5 }
 0x177   : > { %1789 = vrot.lane.b32.xlu2 %v1268_v24, %s6332_s23  ;;  %2708 = vmatpush.msrb.mxu3 %v2462_v3  ;;  %v7322_v24 = vld [vmem:[#allocation3 + $0x157] sm:$0xff] }
 0x178   : > { %2168 = vrot.lane.b32.xlu0 %v7069_v28, %s6334_s8  ;;  %v885_v28 = vadd.f32 %v6820_v60, %v851_v7  ;;  %1046 = vst.msk [vmem:[#allocation4 + $0x120] sm:$0xff] %vm718_vm1, %v7322_v24 }
 0x179   : > { %v1778_v62 = vpop.permute.xlu2 %1777  ;;  %v2350_v11 = vld [vmem:[#allocation4] sm:$0xff]  ;;  %6208 = vmatpush.msra.mxu3 %v6834_v13  ;;  %v852_v13 = vld [vmem:[#allocation2 + $0xd8] sm:$0xff] }
 0x17a   : > { %1871 = vst.msk [vmem:[#allocation4 + $0x38] sm:$0xff] %vm1226_vm2, %v1778_v62  ;;  %1150 = vrot.lane.b32.xlu1 %v7192_v44, %s6332_s23  ;;  %v1326_v8 = vpop.permute.xlu0 %1325  ;;  %2596 = vmatmul.f32.vlgmr.msrb.gmra.mxu2 %v2350_v11  ;;  %v917_v15 = vmax.f32 %v885_v28, 0.0  ;;  %v886_v27 = vadd.f32 %v6820_v60, %v852_v13  ;;  %v502_v62 = vpop.f32.mrf.mxu2 }
 0x17b   : > { %1421 = vst.msk [vmem:[#allocation4 + $0x18] sm:$0xff] %vm1419_vm3, %v1326_v8  ;;  %6209 = vmatpush.msra.mxu3 %v6839_v14 }
 0x17c   : > { %v1135_v9 = vpop.permute.xlu1 %1134  ;;  %1614 = vst.msk [vmem:[#allocation4 + $0x18] sm:$0xff] %vm1612_vm4, %v7128_v10  ;;  %v949_v20 = vmin.f32 %v917_v15, 20.0  ;;  %v918_v29 = vmax.f32 %v886_v27, 0.0 }
 0x17d   : > { %1229 = vst.msk [vmem:[#allocation4 + $0x30] sm:$0xff] %vm1226_vm2, %v1135_v9  ;;  %6210 = vmatpush.msra.mxu3 %v6850_v16 }
 0x17e   : > { %982 = vst.msk [vmem:[#allocation3 + $0x170] sm:$0xff] %vm718_vm1, %v949_v20  ;;  %v950_v32 = vmin.f32 %v918_v29, 20.0  ;;  %6053 = vmatmul.msk.f32.gmra.mxu0 %vm718_vm1, %v2382_v35 }
 0x17f   : > { %1152 = vrot.lane.b32.xlu2 %v7248_v1, %s6332_s23  ;;  %6211 = vmatpush.msra.mxu3 %v6857_v18  ;;  %692 = vst [vmem:[#allocation2 + $0x130] sm:$0xff] %v502_v62 }
 0x180   : > { %1148 = vrot.lane.b32.xlu0 %v7142_v22, %s6332_s23  ;;  %983 = vst.msk [vmem:[#allocation3 + $0x188] sm:$0xff] %vm718_vm1, %v950_v32 }
 0x181   : > { %v1139_v12 = vpop.permute.xlu2 %1138 }
 0x182   : > { %1231 = vst.msk [vmem:[#allocation4 + $0x60] sm:$0xff] %vm1226_vm2, %v1139_v12  ;;  %1534 = vrot.lane.b32.xlu1 %v7170_v36, %s6334_s8  ;;  %v1774_v14 = vpop.permute.xlu0 %1773  ;;  %v505_v12 = vpop.f32.mrf.mxu2 }
 0x183   : > { %1869 = vst.msk [vmem:[#allocation4 + $0x8] sm:$0xff] %vm1226_vm2, %v1774_v14  ;;  %v2353_v16 = vld [vmem:[#allocation4 + $0x18] sm:$0xff] }
 0x184   : > { %v1328_v10 = vpop.permute.xlu1 %1327  ;;  %2062 = vst.msk [vmem:[#allocation4 + $0x8] sm:$0xff] %vm1419_vm3, %v7164_v30  ;;  %2599 = vmatmul.f32.gmra.mxu2 %v2353_v16 }
 0x185   : > { %1422 = vst.msk [vmem:[#allocation4 + $0x30] sm:$0xff] %vm1419_vm3, %v1328_v10  ;;  %v7311_v18 = vld [vmem:[#allocation3 + $0x170] sm:$0xff] }
 0x186   : > { %1689 = vst.msk [vmem:[#allocation4 + $0x128] sm:$0xff] %vm718_vm1, %v7311_v18  ;;  %v7332_v39 = vld [vmem:[#allocation3 + $0x16f] sm:$0xff] }
 0x187   : > { %1536 = vrot.lane.b32.xlu2 %v7210_v50, %s6334_s8  ;;  %1047 = vst.msk [vmem:[#allocation4 + $0x138] sm:$0xff] %vm718_vm1, %v7332_v39  ;;  %v7344_v41 = vld [vmem:[#allocation3 + $0x188] sm:$0xff]  ;;  %v7363_v57 = vld [vmem:[#allocation3 + $0x171] sm:$0xff] }
 0x188   : > { %1532 = vrot.lane.b32.xlu0 %v7175_v40, %s6334_s8  ;;  %1690 = vst.msk [vmem:[#allocation4 + $0x140] sm:$0xff] %vm718_vm1, %v7344_v41  ;;  %v7352_v48 = vld [vmem:[#allocation3 + $0x187] sm:$0xff] }
 0x189   : > { %v1141_v22 = vpop.permute.xlu2 %1140  ;;  %1048 = vst.msk [vmem:[#allocation4 + $0x150] sm:$0xff] %vm718_vm1, %v7352_v48  ;;  %v7374_v61 = vld [vmem:[#allocation3 + $0x189] sm:$0xff] }
 0x18a   : > { %1232 = vst.msk [vmem:[#allocation4 + $0x78] sm:$0xff] %vm1226_vm2, %v1141_v22  ;;  %1982 = vrot.lane.b32.xlu1 %v7170_v36, %s6333_s29  ;;  %v2159_v17 = vpop.permute.xlu0 %2158  ;;  %v600_v36 = vpop.f32.mrf.mxu1 }
 0x18b   : > { %2254 = vst.msk [vmem:[#allocation4 + $0x8] sm:$0xff] %vm1612_vm4, %v2159_v17  ;;  %v508_v16 = vpop.f32.mrf.mxu2 }
 0x18c   : > { %v1776_v30 = vpop.permute.xlu1 %1775  ;;  %683 = vst.msk [vmem:[#allocation2 + $0xe8] sm:$0xff] %vm331_vm0, %v600_v36 }
 0x18d   : > { %1870 = vst.msk [vmem:[#allocation4 + $0x20] sm:$0xff] %vm1226_vm2, %v1776_v30 }
 0x18e   : > { %2329 = vst.msk [vmem:[#allocation4 + $0x118] sm:$0xff] %vm718_vm1, %v7363_v57 }
 0x18f   : > { %1984 = vrot.lane.b32.xlu2 %v7210_v50, %s6333_s29  ;;  %2330 = vst.msk [vmem:[#allocation4 + $0x130] sm:$0xff] %vm718_vm1, %v7374_v61 }
 0x190   : > { %1343 = vrot.lane.b32.xlu0 %v7217_v55, %s6333_s29  ;;  %694 = vst [vmem:[#allocation2 + $0x140] sm:$0xff] %v505_v12 }
 0x191   : > { %v7319_v34 = vpop.permute.xlu2 %1524  ;;  %696 = vst [vmem:[#allocation2 + $0x150] sm:$0xff] %v508_v16 }
 0x192   : > { %1345 = vrot.lane.b32.xlu1 %v7250_v2, %s6333_s29  ;;  %v1521_v40 = vpop.permute.xlu0 %1520  ;;  %v2351_v45 = vld [vmem:[#allocation4 + $0x8] sm:$0xff] }
 0x193   : > { %1615 = vst.msk [vmem:[#allocation4 + $0x30] sm:$0xff] %vm1612_vm4, %v1521_v40  ;;  %2709 = vmatmul.f32.vlgmr.msrb.gmra.mxu3 %v2351_v45  ;;  %v853_v47 = vld [vmem:[#allocation2 + $0xe8] sm:$0xff]  ;;  %v511_v30 = vpop.f32.mrf.mxu2 }
 0x194   : > { %v1137_v26 = vpop.permute.xlu1 %1136  ;;  %v887_v50 = vadd.f32 %v6820_v60, %v853_v47  ;;  %v603_v60 = vpop.f32.mrf.mxu1  ;;  %698 = vst [vmem:[#allocation2 + $0x160] sm:$0xff] %v511_v30 }
 0x195   : > { %1230 = vst.msk [vmem:[#allocation4 + $0x48] sm:$0xff] %vm1226_vm2, %v1137_v26  ;;  %v2385_v0 = vld [vmem:[#allocation4 + $0x118] sm:$0xff] }
 0x196   : > { %1423 = vst.msk [vmem:[#allocation4 + $0x48] sm:$0xff] %vm1419_vm3, %v7205_v46  ;;  %6054 = vmatmul.msk.f32.gmra.mxu0 %vm718_vm1, %v2385_v0  ;;  %v2388_v29 = vld [vmem:[#allocation4 + $0x130] sm:$0xff] }
 0x197   : > { %1347 = vrot.lane.b32.xlu2 %v7278_v21, %s6333_s29  ;;  %685 = vst.msk [vmem:[#allocation2 + $0xf8] sm:$0xff] %vm331_vm0, %v603_v60 }
 0x198   : > { %1791 = vrot.lane.b32.xlu0 %v7217_v55, %s6332_s23  ;;  %v919_v55 = vmax.f32 %v887_v50, 0.0  ;;  %v523_v50 = vpop.f32.mrf.mxu3 }
 0x199   : > { %v7339_v37 = vpop.permute.xlu2 %1972  ;;  %706 = vst [vmem:[#allocation2 + $0x1a0] sm:$0xff] %v523_v50 }
 0x19a   : > { %1793 = vrot.lane.b32.xlu1 %v7250_v2, %s6332_s23  ;;  %v1969_v46 = vpop.permute.xlu0 %1968  ;;  %v2356_v52 = vld [vmem:[#allocation4 + $0x30] sm:$0xff]  ;;  %v951_v58 = vmin.f32 %v919_v55, 20.0  ;;  %v7391_v2 = vld [vmem:[%s9888_s2] ss:$0 sm:$0xff] }
 0x19b   : > { %2063 = vst.msk [vmem:[#allocation4 + $0x20] sm:$0xff] %vm1419_vm3, %v1969_v46  ;;  %2602 = vmatmul.f32.gmra.mxu2 %v2356_v52 }
 0x19c   : > { %v1523_v51 = vpop.permute.xlu1 %1522  ;;  %984 = vst.msk [vmem:[#allocation3 + $0x1a0] sm:$0xff] %vm718_vm1, %v951_v58 }
 0x19d   : > { %1616 = vst.msk [vmem:[#allocation4 + $0x48] sm:$0xff] %vm1612_vm4, %v1523_v51 }
 0x19e   : > { %v854_v63 = vld [vmem:[#allocation2 + $0xf8] sm:$0xff]  ;;  %6055 = vmatmul.msk.f32.gmra.mxu0 %vm718_vm1, %v2388_v29 }
 0x19f   : > { %1795 = vrot.lane.b32.xlu2 %v7278_v21, %s6332_s23  ;;  %v888_v3 = vadd.f32 %v7391_v2, %v854_v63 }
 0x1a0   : > { %2174 = vrot.lane.b32.xlu0 %v7192_v44, %s6334_s8 }
 0x1a1   : > { %v7360_v54 = vpop.permute.xlu2 %1335  ;;  %v920_v11 = vmax.f32 %v888_v3, 0.0 }
 0x1a2   : > { %2176 = vrot.lane.b32.xlu1 %v7248_v1, %s6334_s8  ;;  %v2161_v56 = vpop.permute.xlu0 %2160  ;;  %v606_v1 = vpop.f32.mrf.mxu1 }
 0x1a3   : > { %2255 = vst.msk [vmem:[#allocation4 + $0x20] sm:$0xff] %vm1612_vm4, %v2161_v56  ;;  %v7394_v4 = vld [vmem:[#allocation3 + $0x1a1] sm:$0xff]  ;;  %v952_v28 = vmin.f32 %v920_v11, 20.0 }
 0x1a4   : > { %v1971_v33 = vpop.permute.xlu1 %1970  ;;  %v2359_v44 = vld [vmem:[#allocation4 + $0x48] sm:$0xff]  ;;  %687 = vst.msk [vmem:[#allocation2 + $0x108] sm:$0xff] %vm331_vm0, %v606_v1  ;;  %v7420_v22 = vld [vmem:[#allocation3 + $0x1a0] sm:$0xff] }
 0x1a5   : > { %2064 = vst.msk [vmem:[#allocation4 + $0x38] sm:$0xff] %vm1419_vm3, %v1971_v33  ;;  %2605 = vmatmul.f32.gmra.mxu2 %v2359_v44 }
 0x1a6   : > { %2331 = vst.msk [vmem:[#allocation4 + $0x148] sm:$0xff] %vm718_vm1, %v7394_v4 }
 0x1a7   : > { %2178 = vrot.lane.b32.xlu2 %v7298_v31, %s6334_s8  ;;  %985 = vst.msk [vmem:[#allocation3 + $0x1b8] sm:$0xff] %vm718_vm1, %v952_v28 }
 0x1a8   : > { %1154 = vrot.lane.b32.xlu0 %v7298_v31, %s6332_s23  ;;  %1691 = vst.msk [vmem:[#allocation4 + $0x158] sm:$0xff] %vm718_vm1, %v7420_v22 }
 0x1a9   : > { %v1784_v49 = vpop.permute.xlu2 %1783 }
 0x1aa   : > { %1874 = vst.msk [vmem:[#allocation4 + $0x80] sm:$0xff] %vm1226_vm2, %v1784_v49  ;;  %1156 = vrot.lane.b32.xlu1 %v7311_v18, %s6332_s23  ;;  %v1332_v6 = vpop.permute.xlu0 %1331  ;;  %v2354_v8 = vld [vmem:[#allocation4 + $0x20] sm:$0xff]  ;;  %v609_v31 = vpop.f32.mrf.mxu1 }
 0x1ab   : > { %1424 = vst.msk [vmem:[#allocation4 + $0x60] sm:$0xff] %vm1419_vm3, %v1332_v6  ;;  %2712 = vmatmul.f32.gmra.mxu3 %v2354_v8  ;;  %v855_v15 = vld [vmem:[#allocation2 + $0x108] sm:$0xff] }
 0x1ac   : > { %v1334_v7 = vpop.permute.xlu1 %1333  ;;  %1617 = vst.msk [vmem:[#allocation4 + $0x60] sm:$0xff] %vm1612_vm4, %v7319_v34  ;;  %v889_v20 = vadd.f32 %v7391_v2, %v855_v15  ;;  %v7437_v34 = vld [vmem:[#allocation3 + $0x19f] sm:$0xff] }
 0x1ad   : > { %1425 = vst.msk [vmem:[#allocation4 + $0x78] sm:$0xff] %vm1419_vm3, %v1334_v7  ;;  %v2391_v35 = vld [vmem:[#allocation4 + $0x148] sm:$0xff] }
 0x1ae   : > { %v921_v10 = vmax.f32 %v889_v20, 0.0  ;;  %689 = vst.msk [vmem:[#allocation2 + $0x118] sm:$0xff] %vm331_vm0, %v609_v31  ;;  %6056 = vmatmul.msk.f32.gmra.mxu0 %vm718_vm1, %v2391_v35  ;;  %v7473_v44 = vld [vmem:[#allocation3 + $0x1b9] sm:$0xff] }
 0x1af   : > { %1158 = vrot.lane.b32.xlu2 %v7344_v41, %s6332_s23  ;;  %1049 = vst.msk [vmem:[#allocation4 + $0x168] sm:$0xff] %vm718_vm1, %v7437_v34  ;;  %v7488_v3 = vld [vmem:[#allocation3 + $0x1b8] sm:$0xff] }
 0x1b0   : > { %1538 = vrot.lane.b32.xlu0 %v7322_v24, %s6334_s8  ;;  %v953_v27 = vmin.f32 %v921_v10, 20.0  ;;  %2332 = vst.msk [vmem:[#allocation4 + $0x160] sm:$0xff] %vm718_vm1, %v7473_v44 }
 0x1b1   : > { %v7401_v9 = vpop.permute.xlu2 %2166  ;;  %1692 = vst.msk [vmem:[#allocation4 + $0x170] sm:$0xff] %vm718_vm1, %v7488_v3 }
 0x1b2   : > { %1540 = vrot.lane.b32.xlu1 %v7332_v39, %s6334_s8  ;;  %v1780_v21 = vpop.permute.xlu0 %1779  ;;  %986 = vst.msk [vmem:[#allocation3 + $0x200] sm:$0xff] %vm718_vm1, %v953_v27  ;;  %v612_v36 = vpop.f32.mrf.mxu1 }
 0x1b3   : > { %1872 = vst.msk [vmem:[#allocation4 + $0x50] sm:$0xff] %vm1226_vm2, %v1780_v21  ;;  %v2362_v13 = vld [vmem:[#allocation4 + $0x60] sm:$0xff] }
 0x1b4   : > { %v1782_v25 = vpop.permute.xlu1 %1781  ;;  %2065 = vst.msk [vmem:[#allocation4 + $0x50] sm:$0xff] %vm1419_vm3, %v7339_v37  ;;  %2608 = vmatmul.f32.gmra.mxu2 %v2362_v13  ;;  %v514_v46 = vpop.f32.mrf.mxu2 }
 0x1b5   : > { %1873 = vst.msk [vmem:[#allocation4 + $0x68] sm:$0xff] %vm1226_vm2, %v1782_v25 }
 0x1b6   : > { %691 = vst.msk [vmem:[#allocation2 + $0x128] sm:$0xff] %vm331_vm0, %v612_v36 }
 0x1b7   : > { %1542 = vrot.lane.b32.xlu2 %v7352_v48, %s6334_s8  ;;  %700 = vst [vmem:[#allocation2 + $0x170] sm:$0xff] %v514_v46  ;;  %v2394_v28 = vld [vmem:[#allocation4 + $0x160] sm:$0xff] }
 0x1b8   : > { %1986 = vrot.lane.b32.xlu0 %v7322_v24, %s6333_s29  ;;  %v856_v24 = vld [vmem:[#allocation2 + $0x118] sm:$0xff]  ;;  %6057 = vmatmul.msk.f32.gmra.mxu0 %vm718_vm1, %v2394_v28 }
 0x1b9   : > { %v7415_v14 = vpop.permute.xlu2 %1530  ;;  %v7461_v52 = vld [vmem:[#allocation3 + $0x1ff] sm:$0xff] }
 0x1ba   : > { %1988 = vrot.lane.b32.xlu1 %v7332_v39, %s6333_s29  ;;  %v2163_v32 = vpop.permute.xlu0 %2162  ;;  %v890_v39 = vadd.f32 %v7391_v2, %v856_v24  ;;  %1051 = vst.msk [vmem:[#allocation4 + $0x198] sm:$0xff] %vm718_vm1, %v7461_v52  ;;  %v615_v62 = vpop.f32.mrf.mxu1  ;;  %v1276_v29 = vld [vmem:[#allocation3 + $0x201] sm:$0xff] }
 0x1bb   : > { %2256 = vst.msk [vmem:[#allocation4 + $0x38] sm:$0xff] %vm1612_vm4, %v2163_v32 }
 0x1bc   : > { %v2165_v5 = vpop.permute.xlu1 %2164  ;;  %v922_v47 = vmax.f32 %v890_v39, 0.0  ;;  %v517_v49 = vpop.f32.mrf.mxu2  ;;  %693 = vst.msk [vmem:[#allocation2 + $0x138] sm:$0xff] %vm331_vm0, %v615_v62 }
 0x1bd   : > { %2257 = vst.msk [vmem:[#allocation4 + $0x50] sm:$0xff] %vm1612_vm4, %v2165_v5  ;;  %v857_v51 = vld [vmem:[#allocation2 + $0x128] sm:$0xff] }
 0x1be   : > { %v891_v55 = vadd.f32 %v7391_v2, %v857_v51  ;;  %702 = vst [vmem:[#allocation2 + $0x180] sm:$0xff] %v517_v49 }
 0x1bf   : > { %1990 = vrot.lane.b32.xlu2 %v7352_v48, %s6333_s29  ;;  %v954_v48 = vmin.f32 %v922_v47, 20.0 }
 0x1c0   : > { %1349 = vrot.lane.b32.xlu0 %v7363_v57, %s6333_s29 }
 0x1c1   : > { %v7434_v17 = vpop.permute.xlu2 %1978  ;;  %987 = vst.msk [vmem:[#allocation3 + $0x218] sm:$0xff] %vm718_vm1, %v954_v48 }
 0x1c2   : > { %1351 = vrot.lane.b32.xlu1 %v7374_v61, %s6333_s29  ;;  %v1143_v40 = vpop.permute.xlu0 %1142  ;;  %v2357_v45 = vld [vmem:[#allocation4 + $0x38] sm:$0xff]  ;;  %v618_v30 = vpop.f32.mrf.mxu1 }
 0x1c3   : > { %1233 = vst.msk [vmem:[#allocation4 + $0x90] sm:$0xff] %vm1226_vm2, %v1143_v40  ;;  %2715 = vmatmul.f32.gmra.mxu3 %v2357_v45  ;;  %v858_v7 = vld [vmem:[#allocation2 + $0x138] sm:$0xff] }
 0x1c4   : > { %v1145_v26 = vpop.permute.xlu1 %1144  ;;  %1426 = vst.msk [vmem:[#allocation4 + $0x90] sm:$0xff] %vm1419_vm3, %v7360_v54  ;;  %v1083_v54 = vld [vmem:[#allocation3 + $0x200] sm:$0xff]  ;;  %v2360_v60 = vld [vmem:[#allocation4 + $0x50] sm:$0xff]  ;;  %v520_v8 = vpop.f32.mrf.mxu2 }
 0x1c5   : > { %1234 = vst.msk [vmem:[#allocation4 + $0xa8] sm:$0xff] %vm1226_vm2, %v1145_v26 }
 0x1c6   : > { %1693 = vst.msk [vmem:[#allocation4 + $0x188] sm:$0xff] %vm718_vm1, %v1083_v54 }
 0x1c7   : > { %1353 = vrot.lane.b32.xlu2 %v7394_v4, %s6333_s29  ;;  %704 = vst [vmem:[#allocation2 + $0x190] sm:$0xff] %v520_v8 }
 0x1c8   : > { %1797 = vrot.lane.b32.xlu0 %v7363_v57, %s6332_s23  ;;  %v7513_v10 = vld [vmem:[#allocation3 + $0x218] sm:$0xff]  ;;  %695 = vst.msk [vmem:[#allocation2 + $0x148] sm:$0xff] %vm331_vm0, %v618_v30 }
 0x1c9   : > { %v7451_v37 = vpop.permute.xlu2 %1341  ;;  %1694 = vst.msk [vmem:[#allocation4 + $0x1a0] sm:$0xff] %vm718_vm1, %v7513_v10  ;;  %v7549_v35 = vld [vmem:[#allocation3 + $0x217] sm:$0xff] }
 0x1ca   : > { %1799 = vrot.lane.b32.xlu1 %v7374_v61, %s6332_s23  ;;  %v1527_v58 = vpop.permute.xlu0 %1526  ;;  %v923_v61 = vmax.f32 %v891_v55, 0.0  ;;  %1052 = vst.msk [vmem:[#allocation4 + $0x1b0] sm:$0xff] %vm718_vm1, %v7549_v35  ;;  %v621_v26 = vpop.f32.mrf.mxu1 }
 0x1cb   : > { %1618 = vst.msk [vmem:[#allocation4 + $0x78] sm:$0xff] %vm1612_vm4, %v1527_v58  ;;  %2718 = vmatmul.f32.gmra.mxu3 %v2360_v60 }
 0x1cc   : > { %v1529_v59 = vpop.permute.xlu1 %1528  ;;  %v955_v56 = vmin.f32 %v923_v61, 20.0  ;;  %v526_v33 = vpop.f32.mrf.mxu3  ;;  %697 = vst.msk [vmem:[#allocation2 + $0x158] sm:$0xff] %vm331_vm0, %v621_v26 }
 0x1cd   : > { %1619 = vst.msk [vmem:[#allocation4 + $0x90] sm:$0xff] %vm1612_vm4, %v1529_v59 }
 0x1ce   : > { %708 = vst [vmem:[#allocation2 + $0x1b0] sm:$0xff] %v526_v33 }
 0x1cf   : > { %1801 = vrot.lane.b32.xlu2 %v7394_v4, %s6332_s23  ;;  %988 = vst.msk [vmem:[#allocation3 + $0x230] sm:$0xff] %vm718_vm1, %v955_v56  ;;  %v7491_v4 = vld [vmem:[#allocation3 + $0x219] sm:$0xff]  ;;  %v859_v45 = vld [vmem:[#allocation2 + $0x148] sm:$0xff] }
 0x1d0   : > { %2180 = vrot.lane.b32.xlu0 %v7311_v18, %s6334_s8  ;;  %2334 = vst.msk [vmem:[#allocation4 + $0x190] sm:$0xff] %vm718_vm1, %v7491_v4  ;;  %v893_v51 = vadd.f32 %v7391_v2, %v859_v45 }
 0x1d1   : > { %v1790_v57 = vpop.permute.xlu2 %1789 }
 0x1d2   : > { %1877 = vst.msk [vmem:[#allocation4 + $0xc8] sm:$0xff] %vm1226_vm2, %v1790_v57  ;;  %2182 = vrot.lane.b32.xlu1 %v7344_v41, %s6334_s8  ;;  %v1975_v63 = vpop.permute.xlu0 %1974  ;;  %v2365_v1 = vld [vmem:[#allocation4 + $0x78] sm:$0xff] }
 0x1d3   : > { %2066 = vst.msk [vmem:[#allocation4 + $0x68] sm:$0xff] %vm1419_vm3, %v1975_v63  ;;  %2611 = vmatmul.f32.gmra.mxu2 %v2365_v1  ;;  %v1467_v41 = vld [vmem:[#allocation3 + $0x1b7] sm:$0xff] }
 0x1d4   : > { %v1977_v0 = vpop.permute.xlu1 %1976  ;;  %2258 = vst.msk [vmem:[#allocation4 + $0x68] sm:$0xff] %vm1612_vm4, %v7401_v9  ;;  %v2368_v6 = vld [vmem:[#allocation4 + $0x90] sm:$0xff]  ;;  %v892_v9 = vadd.f32 %v7391_v2, %v858_v7  ;;  %v529_v11 = vpop.f32.mrf.mxu3  ;;  %v860_v60 = vld [vmem:[#allocation2 + $0x158] sm:$0xff] }
 0x1d5   : > { %2067 = vst.msk [vmem:[#allocation4 + $0x80] sm:$0xff] %vm1419_vm3, %v1977_v0  ;;  %v624_v0 = vpop.f32.mrf.mxu1 }
 0x1d6   : > { %710 = vst [vmem:[#allocation2 + $0x1c0] sm:$0xff] %v529_v11  ;;  %v924_v25 = vmax.f32 %v892_v9, 0.0  ;;  %v7530_v31 = vld [vmem:[#allocation3 + $0x22f] sm:$0xff] }
 0x1d7   : > { %2184 = vrot.lane.b32.xlu2 %v7420_v22, %s6334_s8  ;;  %v7532_v32 = vld [vmem:[#allocation3 + $0x230] sm:$0xff]  ;;  %1053 = vst.msk [vmem:[#allocation4 + $0x1c8] sm:$0xff] %vm718_vm1, %v7530_v31 }
 0x1d8   : > { %1160 = vrot.lane.b32.xlu0 %v7420_v22, %s6332_s23  ;;  %v956_v13 = vmin.f32 %v924_v25, 20.0  ;;  %1695 = vst.msk [vmem:[#allocation4 + $0x1b8] sm:$0xff] %vm718_vm1, %v7532_v32  ;;  %v2400_v40 = vld [vmem:[#allocation4 + $0x190] sm:$0xff]  ;;  %v7634_v25 = vld [vmem:[%s9890_s4] ss:$0 sm:$0xff] }
 0x1d9   : > { %v1153_v18 = vpop.permute.xlu2 %1152  ;;  %v7583_v57 = vld [vmem:[#allocation3 + $0x231] sm:$0xff]  ;;  %699 = vst.msk [vmem:[#allocation2 + $0x168] sm:$0xff] %vm331_vm0, %v624_v0 }
 0x1da   : > { %1238 = vst.msk [vmem:[#allocation4 + $0x108] sm:$0xff] %vm1226_vm2, %v1153_v18  ;;  %1546 = vrot.lane.b32.xlu1 %v1467_v41, %s6334_s8  ;;  %v1338_v12 = vpop.permute.xlu0 %1337 }
 0x1db   : > { %1427 = vst.msk [vmem:[#allocation4 + $0xa8] sm:$0xff] %vm1419_vm3, %v1338_v12  ;;  %2614 = vmatmul.f32.gmra.mxu2 %v2368_v6  ;;  %v2363_v20 = vld [vmem:[#allocation4 + $0x68] sm:$0xff] }
 0x1dc   : > { %v1788_v15 = vpop.permute.xlu1 %1787  ;;  %1620 = vst.msk [vmem:[#allocation4 + $0xa8] sm:$0xff] %vm1612_vm4, %v7415_v14  ;;  %2721 = vmatmul.f32.gmra.mxu3 %v2363_v20  ;;  %v2301_v14 = vld [vmem:[#allocation3 + $0x1d1] sm:$0xff]  ;;  %v532_v22 = vpop.f32.mrf.mxu3 }
 0x1dd   : > { %1876 = vst.msk [vmem:[#allocation4 + $0xb0] sm:$0xff] %vm1226_vm2, %v1788_v15 }
 0x1de   : > { %2069 = vst.msk [vmem:[#allocation4 + $0xb0] sm:$0xff] %vm1419_vm3, %v7190_v43 }
 0x1df   : > { %1164 = vrot.lane.b32.xlu2 %v1083_v54, %s6332_s23  ;;  %2261 = vst.msk [vmem:[#allocation4 + $0xb0] sm:$0xff] %vm1612_vm4, %v7085_v53  ;;  %v925_v54 = vmax.f32 %v893_v51, 0.0 }
 0x1e0   : > { %1544 = vrot.lane.b32.xlu0 %v7437_v34, %s6334_s8  ;;  %989 = vst.msk [vmem:[#allocation3 + $0x248] sm:$0xff] %vm718_vm1, %v956_v13  ;;  %v861_v8 = vld [vmem:[#allocation2 + $0x168] sm:$0xff] }
 0x1e1   : > { %v7504_v21 = vpop.permute.xlu2 %1536  ;;  %2333 = vst.msk [vmem:[#allocation4 + $0x178] sm:$0xff] %vm718_vm1, %v2301_v14  ;;  %v957_v55 = vmin.f32 %v925_v54, 20.0  ;;  %v895_v11 = vadd.f32 %v7391_v2, %v861_v8 }
 0x1e2   : > { %1994 = vrot.lane.b32.xlu1 %v1467_v41, %s6333_s29  ;;  %v1786_v27 = vpop.permute.xlu0 %1785  ;;  %712 = vst [vmem:[#allocation2 + $0x1d0] sm:$0xff] %v532_v22 }
 0x1e3   : > { %1875 = vst.msk [vmem:[#allocation4 + $0x98] sm:$0xff] %vm1226_vm2, %v1786_v27  ;;  %v2371_v53 = vld [vmem:[#allocation4 + $0xa8] sm:$0xff]  ;;  %v927_v20 = vmax.f32 %v895_v11, 0.0 }
 0x1e4   : > { %v2171_v43 = vpop.permute.xlu1 %2170  ;;  %2068 = vst.msk [vmem:[#allocation4 + $0x98] sm:$0xff] %vm1419_vm3, %v7434_v17  ;;  %2617 = vmatmul.f32.gmra.mxu2 %v2371_v53  ;;  %v535_v36 = vpop.f32.mrf.mxu3 }
 0x1e5   : > { %2260 = vst.msk [vmem:[#allocation4 + $0x98] sm:$0xff] %vm1612_vm4, %v2171_v43 }
 0x1e6   : > { %714 = vst [vmem:[#allocation2 + $0x1e0] sm:$0xff] %v535_v36  ;;  %v2372_v63 = vld [vmem:[#allocation4 + $0xb0] sm:$0xff] }
 0x1e7   : > { %1548 = vrot.lane.b32.xlu2 %v7461_v52, %s6334_s8  ;;  %v7552_v39 = vld [vmem:[#allocation3 + $0x248] sm:$0xff]  ;;  %990 = vst.msk [vmem:[#allocation3 + $0x260] sm:$0xff] %vm718_vm1, %v957_v55 }
 0x1e8   : > { %1992 = vrot.lane.b32.xlu0 %v7437_v34, %s6333_s29  ;;  %v2397_v5 = vld [vmem:[#allocation4 + $0x178] sm:$0xff]  ;;  %1696 = vst.msk [vmem:[#allocation4 + $0x1d0] sm:$0xff] %vm718_vm1, %v7552_v39  ;;  %v7564_v47 = vld [vmem:[#allocation3 + $0x249] sm:$0xff] }
 0x1e9   : > { %v7525_v16 = vpop.permute.xlu2 %1984  ;;  %6058 = vmatmul.msk.f32.gmra.mxu0 %vm718_vm1, %v2397_v5  ;;  %4668 = vst.msk [vmem:[#allocation4 + $0x178] sm:$0xff] %vm718_vm1, %v2301_v14  ;;  %v1471_v59 = vld [vmem:[#allocation3 + $0x247] sm:$0xff]  ;;  %v627_v14 = vpop.f32.mrf.mxu1 }
 0x1ea   : > { %1357 = vrot.lane.b32.xlu1 %v1276_v29, %s6333_s29  ;;  %v2169_v17 = vpop.permute.xlu0 %2168  ;;  %2336 = vst.msk [vmem:[#allocation4 + $0x1c0] sm:$0xff] %vm718_vm1, %v7564_v47 }
 0x1eb   : > { %2259 = vst.msk [vmem:[#allocation4 + $0x80] sm:$0xff] %vm1612_vm4, %v2169_v17  ;;  %v2823_v17 = vpop.f32.mrf.mxu0 }
 0x1ec   : > { %v1151_v24 = vpop.permute.xlu1 %1150  ;;  %v538_v58 = vpop.f32.mrf.mxu3  ;;  %1054 = vst.msk [vmem:[#allocation4 + $0x1e0] sm:$0xff] %vm718_vm1, %v1471_v59  ;;  %v2369_v33 = vld [vmem:[#allocation4 + $0x98] sm:$0xff] }
 0x1ed   : > { %1237 = vst.msk [vmem:[#allocation4 + $0xf0] sm:$0xff] %vm1226_vm2, %v1151_v24 }
 0x1ee   : > { %716 = vst [vmem:[#allocation2 + $0x1f0] sm:$0xff] %v538_v58  ;;  %v7599_v1 = vld [vmem:[#allocation3 + $0x261] sm:$0xff] }
 0x1ef   : > { %1359 = vrot.lane.b32.xlu2 %v7491_v4, %s6333_s29  ;;  %2335 = vst.msk [vmem:[#allocation4 + $0x1a8] sm:$0xff] %vm718_vm1, %v7583_v57  ;;  %v7656_v24 = vld [vmem:[#allocation3 + $0x25f] sm:$0xff] }
 0x1f0   : > { %1803 = vrot.lane.b32.xlu0 %v7473_v44, %s6332_s23  ;;  %2337 = vst.msk [vmem:[#allocation4 + $0x1d8] sm:$0xff] %vm718_vm1, %v7599_v1 }
 0x1f1   : > { %v7547_v34 = vpop.permute.xlu2 %1347  ;;  %6059 = vmatmul.msk.f32.gmra.mxu0 %vm718_vm1, %v2400_v40  ;;  %701 = vst.msk [vmem:[#allocation2 + $0x178] sm:$0xff] %vm331_vm0, %v627_v14  ;;  %v630_v26 = vpop.f32.mrf.mxu1 }
 0x1f2   : > { %1805 = vrot.lane.b32.xlu1 %v1276_v29, %s6332_s23  ;;  %v1149_v48 = vpop.permute.xlu0 %1148  ;;  %v2366_v46 = vld [vmem:[#allocation4 + $0x80] sm:$0xff]  ;;  %1055 = vst.msk [vmem:[#allocation4 + $0x1f8] sm:$0xff] %vm718_vm1, %v7656_v24 }
 0x1f3   : > { %1236 = vst.msk [vmem:[#allocation4 + $0xd8] sm:$0xff] %vm1226_vm2, %v1149_v48  ;;  %2724 = vmatmul.f32.gmra.mxu3 %v2366_v46 }
 0x1f4   : > { %v1535_v50 = vpop.permute.xlu1 %1534  ;;  %1429 = vst.msk [vmem:[#allocation4 + $0xd8] sm:$0xff] %vm1419_vm3, %v7451_v37  ;;  %v894_v37 = vadd.f32 %v7391_v2, %v860_v60 }
 0x1f5   : > { %1622 = vst.msk [vmem:[#allocation4 + $0xd8] sm:$0xff] %vm1612_vm4, %v1535_v50 }
 0x1f6   : > { %v926_v44 = vmax.f32 %v894_v37, 0.0  ;;  %v2403_v18 = vld [vmem:[#allocation4 + $0x1a8] sm:$0xff]  ;;  %703 = vst.msk [vmem:[#allocation2 + $0x188] sm:$0xff] %vm331_vm0, %v630_v26 }
 0x1f7   : > { %1807 = vrot.lane.b32.xlu2 %v7491_v4, %s6332_s23 }
 0x1f8   : > { %2186 = vrot.lane.b32.xlu0 %v7488_v3, %s6334_s8  ;;  %v958_v62 = vmin.f32 %v926_v44, 20.0  ;;  %v862_v40 = vld [vmem:[#allocation2 + $0x178] sm:$0xff] }
 0x1f9   : > { %v1796_v52 = vpop.permute.xlu2 %1795  ;;  %6060 = vmatmul.msk.f32.gmra.mxu0 %vm718_vm1, %v2403_v18  ;;  %v896_v46 = vadd.f32 %v7391_v2, %v862_v40  ;;  %v633_v60 = vpop.f32.mrf.mxu1 }
 0x1fa   : > { %1880 = vst.msk [vmem:[#allocation4 + $0x110] sm:$0xff] %vm1226_vm2, %v1796_v52  ;;  %1168 = vrot.lane.b32.xlu1 %v7532_v32, %s6332_s23  ;;  %v1533_v61 = vpop.permute.xlu0 %1532 }
 0x1fb   : > { %1621 = vst.msk [vmem:[#allocation4 + $0xc0] sm:$0xff] %vm1612_vm4, %v1533_v61  ;;  %2727 = vmatmul.f32.gmra.mxu3 %v2369_v33  ;;  %v928_v52 = vmax.f32 %v896_v46, 0.0 }
 0x1fc   : > { %v1983_v56 = vpop.permute.xlu1 %1982  ;;  %991 = vst.msk [vmem:[#allocation3 + $0x278] sm:$0xff] %vm718_vm1, %v958_v62  ;;  %v2377_v7 = vld [vmem:[#allocation4 + $0xd8] sm:$0xff] }
 0x1fd   : > { %2070 = vst.msk [vmem:[#allocation4 + $0xc8] sm:$0xff] %vm1419_vm3, %v1983_v56  ;;  %v2597_v13 = vpop.f32.mrf.mxu2  ;;  %v960_v58 = vmin.f32 %v928_v52, 20.0 }
 0x1fe   : > { %v2598_v29 = vadd.f32 %v7634_v25, %v2597_v13  ;;  %705 = vst.msk [vmem:[#allocation2 + $0x198] sm:$0xff] %vm331_vm0, %v633_v60 }
 0x1ff   : > { %2190 = vrot.lane.b32.xlu2 %v7513_v10, %s6334_s8  ;;  %993 = vst.msk [vmem:[#allocation3 + $0x2a8] sm:$0xff] %vm718_vm1, %v960_v58 }
 0x200   : > { %1166 = vrot.lane.b32.xlu0 %v7513_v10, %s6332_s23  ;;  %v2406_v10 = vld [vmem:[#allocation4 + $0x1c0] sm:$0xff] }
 0x201   : > { %v7589_v49 = vpop.permute.xlu2 %2178  ;;  %6061 = vmatmul.msk.f32.gmra.mxu0 %vm718_vm1, %v2406_v10 }
 0x202   : > { %1552 = vrot.lane.b32.xlu1 %v7530_v31, %s6334_s8  ;;  %v1344_v41 = vpop.permute.xlu0 %1343  ;;  %v2374_v4 = vld [vmem:[#allocation4 + $0xc0] sm:$0xff] }
 0x203   : > { %1430 = vst.msk [vmem:[#allocation4 + $0xf0] sm:$0xff] %vm1419_vm3, %v1344_v41  ;;  %2620 = vmatmul.f32.gmra.mxu2 %v2374_v4  ;;  %2730 = vmatmul.f32.gmra.mxu3 %v2372_v63  ;;  %v7614_v9 = vld [vmem:[#allocation3 + $0x278] sm:$0xff] }
 0x204   : > { %v1346_v3 = vpop.permute.xlu1 %1345  ;;  %1623 = vst.msk [vmem:[#allocation4 + $0xf0] sm:$0xff] %vm1612_vm4, %v7504_v21  ;;  %v959_v21 = vmin.f32 %v927_v20, 20.0  ;;  %v7706_v0 = vld [vmem:[#allocation3 + $0x279] sm:$0xff]  ;;  %v636_v20 = vpop.f32.mrf.mxu1 }
 0x205   : > { %1431 = vst.msk [vmem:[#allocation4 + $0x108] sm:$0xff] %vm1419_vm3, %v1346_v3  ;;  %v864_v63 = vld [vmem:[#allocation2 + $0x198] sm:$0xff] }
 0x206   : > { %1698 = vst.msk [vmem:[#allocation4 + $0x200] sm:$0xff] %vm718_vm1, %v7614_v9  ;;  %v898_v3 = vadd.f32 %v7391_v2, %v864_v63 }
 0x207   : > { %1170 = vrot.lane.b32.xlu2 %v7552_v39, %s6332_s23  ;;  %992 = vst.msk [vmem:[#allocation3 + $0x290] sm:$0xff] %vm718_vm1, %v959_v21  ;;  %v2600_v4 = vpop.f32.mrf.mxu2 }
 0x208   : > { %1550 = vrot.lane.b32.xlu0 %v7549_v35, %s6334_s8  ;;  %2338 = vst.msk [vmem:[#allocation4 + $0x1f0] sm:$0xff] %vm718_vm1, %v7706_v0  ;;  %v2601_v11 = vadd.f32 %v7634_v25, %v2600_v4 }
 0x209   : > { %v1159_v6 = vpop.permute.xlu2 %1158  ;;  %707 = vst.msk [vmem:[#allocation2 + $0x1a8] sm:$0xff] %vm331_vm0, %v636_v20 }
 0x20a   : > { %1241 = vst.msk [vmem:[#allocation4 + $0x150] sm:$0xff] %vm1226_vm2, %v1159_v6  ;;  %2000 = vrot.lane.b32.xlu1 %v7530_v31, %s6333_s29  ;;  %v1792_v28 = vpop.permute.xlu0 %1791  ;;  %v7646_v31 = vld [vmem:[#allocation3 + $0x277] sm:$0xff]  ;;  %v930_v6 = vmax.f32 %v898_v3, 0.0 }
 0x20b   : > { %1878 = vst.msk [vmem:[#allocation4 + $0xe0] sm:$0xff] %vm1226_vm2, %v1792_v28  ;;  %2623 = vmatmul.f32.gmra.mxu2 %v2377_v7  ;;  %v2380_v53 = vld [vmem:[#allocation4 + $0xf0] sm:$0xff] }
 0x20c   : > { %v1794_v12 = vpop.permute.xlu1 %1793  ;;  %2071 = vst.msk [vmem:[#allocation4 + $0xe0] sm:$0xff] %vm1419_vm3, %v7525_v16  ;;  %v7637_v16 = vld [vmem:[#allocation3 + $0x260] sm:$0xff]  ;;  %v962_v8 = vmin.f32 %v930_v6, 20.0 }
 0x20d   : > { %1879 = vst.msk [vmem:[#allocation4 + $0xf8] sm:$0xff] %vm1226_vm2, %v1794_v12 }
 0x20e   : > { %1697 = vst.msk [vmem:[#allocation4 + $0x1e8] sm:$0xff] %vm718_vm1, %v7637_v16  ;;  %v7671_v54 = vld [vmem:[#allocation3 + $0x290] sm:$0xff] }
 0x20f   : > { %1554 = vrot.lane.b32.xlu2 %v1471_v59, %s6334_s8  ;;  %1056 = vst.msk [vmem:[#allocation4 + $0x210] sm:$0xff] %vm718_vm1, %v7646_v31  ;;  %v7695_v44 = vld [vmem:[#allocation3 + $0x28f] sm:$0xff] }
 0x210   : > { %1998 = vrot.lane.b32.xlu0 %v7549_v35, %s6333_s29  ;;  %v2409_v35 = vld [vmem:[#allocation4 + $0x1d8] sm:$0xff]  ;;  %1699 = vst.msk [vmem:[#allocation4 + $0x218] sm:$0xff] %vm718_vm1, %v7671_v54 }
 0x211   : > { %v7621_v15 = vpop.permute.xlu2 %1542  ;;  %6062 = vmatmul.msk.f32.gmra.mxu0 %vm718_vm1, %v2409_v35  ;;  %1057 = vst.msk [vmem:[#allocation4 + $0x228] sm:$0xff] %vm718_vm1, %v7695_v44 }
 0x212   : > { %1363 = vrot.lane.b32.xlu1 %v7564_v47, %s6333_s29  ;;  %v2175_v27 = vpop.permute.xlu0 %2174  ;;  %995 = vst.msk [vmem:[#allocation3 + $0x308] sm:$0xff] %vm718_vm1, %v962_v8 }
 0x213   : > { %2262 = vst.msk [vmem:[#allocation4 + $0xc8] sm:$0xff] %vm1612_vm4, %v2175_v27  ;;  %2626 = vmatmul.f32.gmra.mxu2 %v2380_v53  ;;  %v2826_v27 = vpop.f32.mrf.mxu0  ;;  %v1732_v53 = vld [vmem:[#allocation3 + $0x2a9] sm:$0xff] }
 0x214   : > { %v2177_v43 = vpop.permute.xlu1 %2176  ;;  %2340 = vst.msk [vmem:[#allocation4 + $0x220] sm:$0xff] %vm718_vm1, %v1732_v53 }
 0x215   : > { %2263 = vst.msk [vmem:[#allocation4 + $0xe0] sm:$0xff] %vm1612_vm4, %v2177_v43 }
 0x216   : > { %v2710_v5 = vpop.f32.mrf.mxu3 }
 0x217   : > { %2002 = vrot.lane.b32.xlu2 %v1471_v59, %s6333_s29  ;;  %v2711_v30 = vadd.f32 %v2710_v5, %v2598_v29  ;;  %v863_v59 = vld [vmem:[#allocation2 + $0x188] sm:$0xff] }
 0x218   : > { %1361 = vrot.lane.b32.xlu0 %v7583_v57, %s6333_s29  ;;  %v865_v5 = vld [vmem:[#allocation2 + $0x1a8] sm:$0xff] }
 0x219   : > { %v7642_v22 = vpop.permute.xlu2 %1990  ;;  %v2824_v36 = vadd.f32 %v2823_v17, %v2711_v30  ;;  %v639_v30 = vpop.f32.mrf.mxu1  ;;  %v899_v40 = vadd.f32 %v7391_v2, %v865_v5  ;;  %v7757_v46 = vld [vmem:[#allocation3 + $0x308] sm:$0xff] }
 0x21a   : > { %1811 = vrot.lane.b32.xlu1 %v7564_v47, %s6332_s23  ;;  %v1155_v45 = vpop.permute.xlu0 %1154  ;;  %v2375_v50 = vld [vmem:[#allocation4 + $0xc8] sm:$0xff]  ;;  %709 = vst.msk [vmem:[#allocation2 + $0x1b8] sm:$0xff] %vm331_vm0, %v639_v30 }
 0x21b   : > { %1239 = vst.msk [vmem:[#allocation4 + $0x120] sm:$0xff] %vm1226_vm2, %v1155_v45  ;;  %2733 = vmatmul.f32.gmra.mxu3 %v2375_v50  ;;  %v2919_v51 = vmax.f32 %v2824_v36, 0.0  ;;  %v931_v45 = vmax.f32 %v899_v40, 0.0  ;;  %v2418_v60 = vld [vmem:[#allocation4 + $0x220] sm:$0xff]  ;;  %v2829_v63 = vpop.f32.mrf.mxu0 }
 0x21c   : > { %v1157_v48 = vpop.permute.xlu1 %1156  ;;  %1432 = vst.msk [vmem:[#allocation4 + $0x120] sm:$0xff] %vm1419_vm3, %v7547_v34  ;;  %v7684_v34 = vld [vmem:[#allocation3 + $0x291] sm:$0xff]  ;;  %v2378_v56 = vld [vmem:[#allocation4 + $0xe0] sm:$0xff] }
 0x21d   : > { %1240 = vst.msk [vmem:[#allocation4 + $0x138] sm:$0xff] %vm1226_vm2, %v1157_v48  ;;  %v7673_v55 = vmin.f32 %v2919_v51, 20.0  ;;  %v963_v50 = vmin.f32 %v931_v45, 20.0 }
 0x21e   : > { %2339 = vst.msk [vmem:[#allocation4 + $0x208] sm:$0xff] %vm718_vm1, %v7684_v34 }
 0x21f   : > { %1365 = vrot.lane.b32.xlu2 %v7599_v1, %s6333_s29  ;;  %2983 = vst.msk [vmem:[#allocation5] sm:$0xff] %vm718_vm1, %v7673_v55 }
 0x220   : > { %1809 = vrot.lane.b32.xlu0 %v7583_v57, %s6332_s23  ;;  %v897_v57 = vadd.f32 %v7391_v2, %v863_v59  ;;  %1702 = vst.msk [vmem:[#allocation4 + $0x260] sm:$0xff] %vm718_vm1, %v7757_v46 }
 0x221   : > { %v7666_v47 = vpop.permute.xlu2 %1353  ;;  %996 = vst.msk [vmem:[#allocation3 + $0x320] sm:$0xff] %vm718_vm1, %v963_v50  ;;  %v866_v51 = vld [vmem:[#allocation2 + $0x1b8] sm:$0xff] }
 0x222   : > { %2194 = vrot.lane.b32.xlu1 %v7552_v39, %s6334_s8  ;;  %v1539_v37 = vpop.permute.xlu0 %1538  ;;  %v929_v33 = vmax.f32 %v897_v57, 0.0  ;;  %v900_v59 = vadd.f32 %v7391_v2, %v866_v51  ;;  %v7781_v57 = vld [vmem:[#allocation3 + $0x2a8] sm:$0xff] }
 0x223   : > { %1624 = vst.msk [vmem:[#allocation4 + $0x108] sm:$0xff] %vm1612_vm4, %v1539_v37  ;;  %2736 = vmatmul.f32.gmra.mxu3 %v2378_v56 }
 0x224   : > { %v1541_v61 = vpop.permute.xlu1 %1540  ;;  %v961_v62 = vmin.f32 %v929_v33, 20.0  ;;  %v932_v37 = vmax.f32 %v900_v59, 0.0  ;;  %1700 = vst.msk [vmem:[#allocation4 + $0x230] sm:$0xff] %vm718_vm1, %v7781_v57 }
 0x225   : > { %1625 = vst.msk [vmem:[#allocation4 + $0x120] sm:$0xff] %vm1612_vm4, %v1541_v61  ;;  %v7776_v61 = vld [vmem:[#allocation3 + $0x309] sm:$0xff] }
 0x226   : > { %994 = vst.msk [vmem:[#allocation3 + $0x2f0] sm:$0xff] %vm718_vm1, %v961_v62  ;;  %v964_v33 = vmin.f32 %v932_v37, 20.0 }
 0x227   : > { %1813 = vrot.lane.b32.xlu2 %v7599_v1, %s6332_s23  ;;  %2342 = vst.msk [vmem:[#allocation4 + $0x250] sm:$0xff] %vm718_vm1, %v7776_v61 }
 0x228   : > { %2192 = vrot.lane.b32.xlu0 %v7532_v32, %s6334_s8  ;;  %997 = vst.msk [vmem:[#allocation3 + $0x338] sm:$0xff] %vm718_vm1, %v964_v33  ;;  %v7810_v20 = vld [vmem:[#allocation3 + $0x321] sm:$0xff] }
 0x229   : > { %v1802_v39 = vpop.permute.xlu2 %1801  ;;  %2343 = vst.msk [vmem:[#allocation4 + $0x268] sm:$0xff] %vm718_vm1, %v7810_v20 }
 0x22a   : > { %1883 = vst.msk [vmem:[#allocation4 + $0x158] sm:$0xff] %vm1226_vm2, %v1802_v39  ;;  %1174 = vrot.lane.b32.xlu1 %v7614_v9, %s6332_s23  ;;  %v1987_v1 = vpop.permute.xlu0 %1986  ;;  %v2383_v41 = vld [vmem:[#allocation4 + $0x108] sm:$0xff] }
 0x22b   : > { %2072 = vst.msk [vmem:[#allocation4 + $0xf8] sm:$0xff] %vm1419_vm3, %v1987_v1  ;;  %2629 = vmatmul.f32.gmra.mxu2 %v2383_v41  ;;  %v642_v1 = vpop.f32.mrf.mxu1 }
 0x22c   : > { %v1989_v18 = vpop.permute.xlu1 %1988  ;;  %2264 = vst.msk [vmem:[#allocation4 + $0xf8] sm:$0xff] %vm1612_vm4, %v7589_v49  ;;  %v2386_v28 = vld [vmem:[#allocation4 + $0x120] sm:$0xff]  ;;  %v2412_v49 = vld [vmem:[#allocation4 + $0x1f0] sm:$0xff] }
 0x22d   : > { %2073 = vst.msk [vmem:[#allocation4 + $0x110] sm:$0xff] %vm1419_vm3, %v1989_v18  ;;  %6063 = vmatmul.msk.f32.gmra.mxu0 %vm718_vm1, %v2412_v49  ;;  %v7739_v29 = vld [vmem:[#allocation3 + $0x2ef] sm:$0xff]  ;;  %v2832_v49 = vpop.f32.mrf.mxu0 }
 0x22e   : > { %v2713_v7 = vpop.f32.mrf.mxu3  ;;  %1059 = vst.msk [vmem:[#allocation4 + $0x258] sm:$0xff] %vm718_vm1, %v7739_v29  ;;  %v2424_v51 = vld [vmem:[#allocation4 + $0x250] sm:$0xff] }
 0x22f   : > { %2196 = vrot.lane.b32.xlu2 %v7637_v16, %s6334_s8  ;;  %v2714_v12 = vadd.f32 %v2713_v7, %v2601_v11  ;;  %711 = vst.msk [vmem:[#allocation2 + $0x1c8] sm:$0xff] %vm331_vm0, %v642_v1 }
 0x230   : > { %1172 = vrot.lane.b32.xlu0 %v7637_v16, %s6332_s23  ;;  %v7732_v16 = vld [vmem:[#allocation3 + $0x2f0] sm:$0xff] }
 0x231   : > { %v7712_v32 = vpop.permute.xlu2 %2184  ;;  %v2827_v43 = vadd.f32 %v2826_v27, %v2714_v12  ;;  %1701 = vst.msk [vmem:[#allocation4 + $0x248] sm:$0xff] %vm718_vm1, %v7732_v16 }
 0x232   : > { %1558 = vrot.lane.b32.xlu1 %v7646_v31, %s6334_s8  ;;  %v1350_v21 = vpop.permute.xlu0 %1349 }
 0x233   : > { %1433 = vst.msk [vmem:[#allocation4 + $0x138] sm:$0xff] %vm1419_vm3, %v1350_v21  ;;  %2632 = vmatmul.f32.gmra.mxu2 %v2386_v28  ;;  %v2381_v10 = vld [vmem:[#allocation4 + $0xf8] sm:$0xff]  ;;  %v2920_v17 = vmax.f32 %v2827_v43, 0.0  ;;  %v645_v59 = vpop.f32.mrf.mxu1 }
 0x234   : > { %v1352_v13 = vpop.permute.xlu1 %1351  ;;  %1626 = vst.msk [vmem:[#allocation4 + $0x138] sm:$0xff] %vm1612_vm4, %v7621_v15  ;;  %2739 = vmatmul.f32.gmra.mxu3 %v2381_v10  ;;  %v2415_v15 = vld [vmem:[#allocation4 + $0x208] sm:$0xff] }
 0x235   : > { %1434 = vst.msk [vmem:[#allocation4 + $0x150] sm:$0xff] %vm1419_vm3, %v1352_v13  ;;  %6064 = vmatmul.msk.f32.gmra.mxu0 %vm718_vm1, %v2415_v15  ;;  %v7754_v48 = vmin.f32 %v2920_v17, 20.0  ;;  %v2309_v10 = vld [vmem:[#allocation3 + $0x2c1] sm:$0xff]  ;;  %v7822_v15 = vld [vmem:[#allocation3 + $0x338] sm:$0xff] }
 0x236   : > { %2341 = vst.msk [vmem:[#allocation4 + $0x238] sm:$0xff] %vm718_vm1, %v2309_v10 }
 0x237   : > { %1176 = vrot.lane.b32.xlu2 %v7671_v54, %s6332_s23  ;;  %2984 = vst.msk [vmem:[#allocation5 + $0x8] sm:$0xff] %vm718_vm1, %v7754_v48 }
 0x238   : > { %1556 = vrot.lane.b32.xlu0 %v7656_v24, %s6334_s8  ;;  %1704 = vst.msk [vmem:[#allocation4 + $0x290] sm:$0xff] %vm718_vm1, %v7822_v15 }
 0x239   : > { %v1165_v14 = vpop.permute.xlu2 %1164  ;;  %713 = vst.msk [vmem:[#allocation2 + $0x1d8] sm:$0xff] %vm331_vm0, %v645_v59 }
 0x23a   : > { %1244 = vst.msk [vmem:[#allocation4 + $0x198] sm:$0xff] %vm1226_vm2, %v1165_v14  ;;  %2006 = vrot.lane.b32.xlu1 %v7646_v31, %s6333_s29  ;;  %v1798_v35 = vpop.permute.xlu0 %1797 }
 0x23b   : > { %1881 = vst.msk [vmem:[#allocation4 + $0x128] sm:$0xff] %vm1226_vm2, %v1798_v35  ;;  %v2389_v31 = vld [vmem:[#allocation4 + $0x138] sm:$0xff] }
 0x23c   : > { %v1800_v36 = vpop.permute.xlu1 %1799  ;;  %2074 = vst.msk [vmem:[#allocation4 + $0x128] sm:$0xff] %vm1419_vm3, %v7642_v22  ;;  %2635 = vmatmul.f32.gmra.mxu2 %v2389_v31  ;;  %v2603_v22 = vpop.f32.mrf.mxu2 }
 0x23d   : > { %1882 = vst.msk [vmem:[#allocation4 + $0x140] sm:$0xff] %vm1226_vm2, %v1800_v36  ;;  %6065 = vmatmul.msk.f32.gmra.mxu0 %vm718_vm1, %v2418_v60  ;;  %v2604_v56 = vadd.f32 %v7634_v25, %v2603_v22  ;;  %v2421_v17 = vld [vmem:[#allocation4 + $0x238] sm:$0xff] }
 0x23e   : > { %4676 = vst.msk [vmem:[#allocation4 + $0x238] sm:$0xff] %vm718_vm1, %v2309_v10  ;;  %v7846_v22 = vld [vmem:[#allocation3 + $0x337] sm:$0xff] }
 0x23f   : > { %1560 = vrot.lane.b32.xlu2 %v7695_v44, %s6334_s8  ;;  %1062 = vst.msk [vmem:[#allocation4 + $0x2a0] sm:$0xff] %vm718_vm1, %v7846_v22 }
 0x240   : > { %2004 = vrot.lane.b32.xlu0 %v7656_v24, %s6333_s29 }
 0x241   : > { %v1549_v26 = vpop.permute.xlu2 %1548 }
 0x242   : > { %1629 = vst.msk [vmem:[#allocation4 + $0x180] sm:$0xff] %vm1612_vm4, %v1549_v26  ;;  %1369 = vrot.lane.b32.xlu1 %v7684_v34, %s6333_s29  ;;  %v2181_v52 = vpop.permute.xlu0 %2180 }
 0x243   : > { %2265 = vst.msk [vmem:[#allocation4 + $0x110] sm:$0xff] %vm1612_vm4, %v2181_v52 }
 0x244   : > { %v2183_v58 = vpop.permute.xlu1 %2182  ;;  %v2606_v8 = vpop.f32.mrf.mxu2 }
 0x245   : > { %2266 = vst.msk [vmem:[#allocation4 + $0x128] sm:$0xff] %vm1612_vm4, %v2183_v58  ;;  %6066 = vmatmul.msk.f32.gmra.mxu0 %vm718_vm1, %v2421_v17  ;;  %v2835_v58 = vpop.f32.mrf.mxu0 }
 0x246   : > { %v2716_v39 = vpop.f32.mrf.mxu3 }
 0x247   : > { %2008 = vrot.lane.b32.xlu2 %v7695_v44, %s6333_s29  ;;  %v7783_v44 = vld [vmem:[#allocation3 + $0x307] sm:$0xff]  ;;  %v2717_v62 = vadd.f32 %v2716_v39, %v2604_v56 }
 0x248   : > { %1060 = vst.msk [vmem:[#allocation4 + $0x270] sm:$0xff] %vm718_vm1, %v7783_v44  ;;  %1367 = vrot.lane.b32.xlu0 %v7706_v0, %s6333_s29 }
 0x249   : > { %v7772_v24 = vpop.permute.xlu2 %1359  ;;  %v2830_v18 = vadd.f32 %v2829_v63, %v2717_v62  ;;  %v7864_v62 = vld [vmem:[#allocation3 + $0x31f] sm:$0xff]  ;;  %v1284_v63 = vld [vmem:[#allocation3 + $0x2f1] sm:$0xff] }
 0x24a   : > { %1817 = vrot.lane.b32.xlu1 %v7684_v34, %s6332_s23  ;;  %v1161_v41 = vpop.permute.xlu0 %1160  ;;  %v2384_v4 = vld [vmem:[#allocation4 + $0x110] sm:$0xff]  ;;  %v2607_v34 = vadd.f32 %v7634_v25, %v2606_v8  ;;  %1061 = vst.msk [vmem:[#allocation4 + $0x288] sm:$0xff] %vm718_vm1, %v7864_v62 }
 0x24b   : > { %1242 = vst.msk [vmem:[#allocation4 + $0x168] sm:$0xff] %vm1226_vm2, %v1161_v41  ;;  %2742 = vmatmul.f32.gmra.mxu3 %v2384_v4  ;;  %v2921_v7 = vmax.f32 %v2830_v18, 0.0  ;;  %v2427_v41 = vld [vmem:[#allocation4 + $0x268] sm:$0xff] }
 0x24c   : > { %v1547_v3 = vpop.permute.xlu1 %1546  ;;  %1435 = vst.msk [vmem:[#allocation4 + $0x168] sm:$0xff] %vm1419_vm3, %v7666_v47  ;;  %v867_v47 = vld [vmem:[#allocation2 + $0x1c8] sm:$0xff]  ;;  %v2609_v31 = vpop.f32.mrf.mxu2 }
 0x24d   : > { %1628 = vst.msk [vmem:[#allocation4 + $0x168] sm:$0xff] %vm1612_vm4, %v1547_v3  ;;  %v7801_v11 = vmin.f32 %v2921_v7, 20.0  ;;  %v901_v13 = vadd.f32 %v7391_v2, %v867_v47  ;;  %v2387_v43 = vld [vmem:[#allocation4 + $0x128] sm:$0xff]  ;;  %v2610_v45 = vadd.f32 %v7634_v25, %v2609_v31  ;;  %6067 = vmatmul.msk.f32.gmra.mxu0 %vm718_vm1, %v2424_v51 }
 0x24e   : > { %v2719_v28 = vpop.f32.mrf.mxu3  ;;  %v1475_v2 = vld [vmem:[#allocation3 + $0x2a7] sm:$0xff] }
 0x24f   : > { %1819 = vrot.lane.b32.xlu2 %v1732_v53, %s6332_s23  ;;  %v2720_v12 = vadd.f32 %v2719_v28, %v2607_v34  ;;  %2985 = vst.msk [vmem:[#allocation5 + $0x10] sm:$0xff] %vm718_vm1, %v7801_v11  ;;  %v933_v53 = vmax.f32 %v901_v13, 0.0 }
 0x250   : > { %1815 = vrot.lane.b32.xlu0 %v7706_v0, %s6332_s23 }
 0x251   : > { %v1808_v6 = vpop.permute.xlu2 %1807  ;;  %v2833_v21 = vadd.f32 %v2832_v49, %v2720_v12  ;;  %v965_v5 = vmin.f32 %v933_v53, 20.0 }
 0x252   : > { %1886 = vst.msk [vmem:[#allocation4 + $0x1a0] sm:$0xff] %vm1226_vm2, %v1808_v6  ;;  %1180 = vrot.lane.b32.xlu1 %v7732_v16, %s6332_s23  ;;  %v1545_v14 = vpop.permute.xlu0 %1544  ;;  %v2398_v6 = vld [vmem:[#allocation4 + $0x180] sm:$0xff] }
 0x253   : > { %1627 = vst.msk [vmem:[#allocation4 + $0x150] sm:$0xff] %vm1612_vm4, %v1545_v14  ;;  %2745 = vmatmul.f32.gmra.mxu3 %v2387_v43  ;;  %v2922_v16 = vmax.f32 %v2833_v21, 0.0  ;;  %v7904_v21 = vld [vmem:[#allocation3 + $0x339] sm:$0xff] }
 0x254   : > { %v1995_v27 = vpop.permute.xlu1 %1994  ;;  %998 = vst.msk [vmem:[#allocation3 + $0x350] sm:$0xff] %vm718_vm1, %v965_v5 }
 0x255   : > { %2076 = vst.msk [vmem:[#allocation4 + $0x158] sm:$0xff] %vm1419_vm3, %v1995_v27  ;;  %v7826_v30 = vmin.f32 %v2922_v16, 20.0  ;;  %6068 = vmatmul.msk.f32.gmra.mxu0 %vm718_vm1, %v2427_v41 }
 0x256   : > { %v2612_v12 = vpop.f32.mrf.mxu2  ;;  %2344 = vst.msk [vmem:[#allocation4 + $0x280] sm:$0xff] %vm718_vm1, %v7904_v21 }
 0x257   : > { %1182 = vrot.lane.b32.xlu2 %v7757_v46, %s6332_s23  ;;  %2986 = vst.msk [vmem:[#allocation5 + $0x18] sm:$0xff] %vm718_vm1, %v7826_v30 }
 0x258   : > { %1562 = vrot.lane.b32.xlu0 %v1475_v2, %s6334_s8 }
 0x259   : > { %v7819_v0 = vpop.permute.xlu2 %2190 }
 0x25a   : > { %1564 = vrot.lane.b32.xlu1 %v7739_v29, %s6334_s8  ;;  %v1993_v35 = vpop.permute.xlu0 %1992  ;;  %v2392_v40 = vld [vmem:[#allocation4 + $0x150] sm:$0xff]  ;;  %v7841_v29 = vld [vmem:[#allocation3 + $0x320] sm:$0xff] }
 0x25b   : > { %2075 = vst.msk [vmem:[#allocation4 + $0x140] sm:$0xff] %vm1419_vm3, %v1993_v35  ;;  %2638 = vmatmul.f32.gmra.mxu2 %v2392_v40  ;;  %v7871_v18 = vld [vmem:[#allocation3 + $0x350] sm:$0xff] }
 0x25c   : > { %v1358_v36 = vpop.permute.xlu1 %1357  ;;  %2267 = vst.msk [vmem:[#allocation4 + $0x140] sm:$0xff] %vm1612_vm4, %v7712_v32  ;;  %v2395_v32 = vld [vmem:[#allocation4 + $0x168] sm:$0xff]  ;;  %v7896_v28 = vld [vmem:[#allocation3 + $0x351] sm:$0xff] }
 0x25d   : > { %1437 = vst.msk [vmem:[#allocation4 + $0x198] sm:$0xff] %vm1419_vm3, %v1358_v36  ;;  %v7898_v49 = vld [vmem:[#allocation3 + $0x34f] sm:$0xff]  ;;  %v2838_v36 = vpop.f32.mrf.mxu0 }
 0x25e   : > { %1703 = vst.msk [vmem:[#allocation4 + $0x278] sm:$0xff] %vm718_vm1, %v7841_v29  ;;  %v2615_v17 = vpop.f32.mrf.mxu2 }
 0x25f   : > { %1566 = vrot.lane.b32.xlu2 %v7783_v44, %s6334_s8  ;;  %v2722_v50 = vpop.f32.mrf.mxu3  ;;  %1705 = vst.msk [vmem:[#allocation4 + $0x2a8] sm:$0xff] %vm718_vm1, %v7871_v18 }
 0x260   : > { %v2723_v52 = vadd.f32 %v2722_v50, %v2610_v45  ;;  %2010 = vrot.lane.b32.xlu0 %v1475_v2, %s6333_s29  ;;  %2345 = vst.msk [vmem:[#allocation4 + $0x298] sm:$0xff] %vm718_vm1, %v7896_v28 }
 0x261   : > { %v1171_v26 = vpop.permute.xlu2 %1170  ;;  %1063 = vst.msk [vmem:[#allocation4 + $0x2b8] sm:$0xff] %vm718_vm1, %v7898_v49 }
 0x262   : > { %1247 = vst.msk [vmem:[#allocation4 + $0x1e0] sm:$0xff] %vm1226_vm2, %v1171_v26  ;;  %1375 = vrot.lane.b32.xlu1 %v7776_v61, %s6333_s29  ;;  %v2836_v60 = vadd.f32 %v2835_v58, %v2723_v52  ;;  %v1804_v37 = vpop.permute.xlu0 %1803  ;;  %v2616_v58 = vadd.f32 %v7634_v25, %v2615_v17 }
 0x263   : > { %1884 = vst.msk [vmem:[#allocation4 + $0x170] sm:$0xff] %vm1226_vm2, %v1804_v37  ;;  %2641 = vmatmul.f32.gmra.mxu2 %v2395_v32  ;;  %v2390_v39 = vld [vmem:[#allocation4 + $0x140] sm:$0xff] }
 0x264   : > { %v1806_v56 = vpop.permute.xlu1 %1805  ;;  %2077 = vst.msk [vmem:[#allocation4 + $0x170] sm:$0xff] %vm1419_vm3, %v7000_v23  ;;  %2748 = vmatmul.f32.gmra.mxu3 %v2390_v39  ;;  %v868_v23 = vld [vmem:[#allocation2 + $0x1d8] sm:$0xff] }
 0x265   : > { %2269 = vst.msk [vmem:[#allocation4 + $0x170] sm:$0xff] %vm1612_vm4, %v7188_v42  ;;  %v648_v42 = vpop.f32.mrf.mxu1 }
 0x266   : > { %1885 = vst.msk [vmem:[#allocation4 + $0x188] sm:$0xff] %vm1226_vm2, %v1806_v56  ;;  %v2841_v56 = vpop.f32.mrf.mxu0 }
 0x267   : > { %2014 = vrot.lane.b32.xlu2 %v7783_v44, %s6333_s29  ;;  %v2923_v44 = vmax.f32 %v2836_v60, 0.0  ;;  %715 = vst.msk [vmem:[#allocation2 + $0x1e8] sm:$0xff] %vm331_vm0, %v648_v42  ;;  %v2618_v39 = vpop.f32.mrf.mxu2 }
 0x268   : > { %1373 = vrot.lane.b32.xlu0 %v1284_v63, %s6333_s29 }
 0x269   : > { %v7860_v33 = vpop.permute.xlu2 %1554  ;;  %v7869_v1 = vmin.f32 %v2923_v44, 20.0 }
 0x26a   : > { %1823 = vrot.lane.b32.xlu1 %v7776_v61, %s6332_s23  ;;  %v2187_v3 = vpop.permute.xlu0 %2186  ;;  %v7888_v61 = vld [vmem:[%s9888_s2] ss:$0 sm:$0xff] }
 0x26b   : > { %2987 = vst.msk [vmem:[#allocation5 + $0x20] sm:$0xff] %vm718_vm1, %v7869_v1  ;;  %v902_v7 = vadd.f32 %v7888_v61, %v868_v23  ;;  %2644 = vmatmul.f32.gmra.mxu2 %v2398_v6 }
 0x26c   : > { %v1169_v4 = vpop.permute.xlu1 %1168  ;;  %2268 = vst.msk [vmem:[#allocation4 + $0x158] sm:$0xff] %vm1612_vm4, %v2187_v3  ;;  %v2396_v51 = vld [vmem:[#allocation4 + $0x170] sm:$0xff] }
 0x26d   : > { %1246 = vst.msk [vmem:[#allocation4 + $0x1c8] sm:$0xff] %vm1226_vm2, %v1169_v4  ;;  %v934_v34 = vmax.f32 %v902_v7, 0.0  ;;  %v651_v41 = vpop.f32.mrf.mxu1  ;;  %v2619_v7 = vadd.f32 %v7634_v25, %v2618_v39 }
 0x26e   : > { %v869_v13 = vld [vmem:[#allocation2 + $0x1e8] sm:$0xff]  ;;  %717 = vst.msk [vmem:[#allocation2 + $0x1f8] sm:$0xff] %vm331_vm0, %v651_v41 }
 0x26f   : > { %1377 = vrot.lane.b32.xlu2 %v7810_v20, %s6333_s29  ;;  %v966_v47 = vmin.f32 %v934_v34, 20.0  ;;  %v903_v43 = vadd.f32 %v7888_v61, %v869_v13 }
 0x270   : > { %1821 = vrot.lane.b32.xlu0 %v1284_v63, %s6332_s23  ;;  %v2433_v63 = vld [vmem:[#allocation4 + $0x298] sm:$0xff] }
 0x271   : > { %v7893_v8 = vpop.permute.xlu2 %2002  ;;  %999 = vst.msk [vmem:[#allocation3 + $0x368] sm:$0xff] %vm718_vm1, %v966_v47  ;;  %v935_v16 = vmax.f32 %v903_v43, 0.0 }
 0x272   : > { %1186 = vrot.lane.b32.xlu1 %v7822_v15, %s6332_s23  ;;  %v1167_v10 = vpop.permute.xlu0 %1166 }
 0x273   : > { %v2393_v27 = vld [vmem:[#allocation4 + $0x158] sm:$0xff]  ;;  %1245 = vst.msk [vmem:[#allocation4 + $0x1b0] sm:$0xff] %vm1226_vm2, %v1167_v10  ;;  %v967_v5 = vmin.f32 %v935_v16, 20.0  ;;  %v2844_v10 = vpop.f32.mrf.mxu0 }
 0x274   : > { %v1553_v14 = vpop.permute.xlu1 %1552  ;;  %2751 = vmatmul.f32.gmra.mxu3 %v2393_v27  ;;  %1438 = vst.msk [vmem:[#allocation4 + $0x1b0] sm:$0xff] %vm1419_vm3, %v7772_v24  ;;  %v2430_v24 = vld [vmem:[#allocation4 + $0x280] sm:$0xff] }
 0x275   : > { %1631 = vst.msk [vmem:[#allocation4 + $0x1b0] sm:$0xff] %vm1612_vm4, %v1553_v14  ;;  %6069 = vmatmul.msk.f32.gmra.mxu0 %vm718_vm1, %v2430_v24  ;;  %v870_v27 = vld [vmem:[#allocation2 + $0x1f8] sm:$0xff] }
 0x276   : > { %v2725_v2 = vpop.f32.mrf.mxu3  ;;  %1000 = vst.msk [vmem:[#allocation3 + $0x380] sm:$0xff] %vm718_vm1, %v967_v5  ;;  %v904_v5 = vadd.f32 %v7888_v61, %v870_v27 }
 0x277   : > { %1825 = vrot.lane.b32.xlu2 %v7810_v20, %s6332_s23  ;;  %v2613_v20 = vadd.f32 %v7634_v25, %v2612_v12 }
 0x278   : > { %1184 = vrot.lane.b32.xlu0 %v7841_v29, %s6332_s23  ;;  %v7927_v40 = vld [vmem:[#allocation3 + $0x369] sm:$0xff] }
 0x279   : > { %v7916_v53 = vpop.permute.xlu2 %1365  ;;  %v2726_v35 = vadd.f32 %v2725_v2, %v2613_v20  ;;  %v7931_v26 = vld [vmem:[#allocation3 + $0x367] sm:$0xff]  ;;  %2346 = vst.msk [vmem:[#allocation4 + $0x2b0] sm:$0xff] %vm718_vm1, %v7927_v40 }
 0x27a   : > { %1570 = vrot.lane.b32.xlu1 %v7846_v22, %s6334_s8  ;;  %v1551_v45 = vpop.permute.xlu0 %1550  ;;  %1064 = vst.msk [vmem:[#allocation4 + $0x2d0] sm:$0xff] %vm718_vm1, %v7931_v26 }
 0x27b   : > { %v2839_v31 = vadd.f32 %v2838_v36, %v2726_v35  ;;  %1630 = vst.msk [vmem:[#allocation4 + $0x198] sm:$0xff] %vm1612_vm4, %v1551_v45 }
 0x27c   : > { %v2001_v50 = vpop.permute.xlu1 %2000  ;;  %2754 = vmatmul.f32.gmra.mxu3 %v2396_v51 }
 0x27d   : > { %v2924_v32 = vmax.f32 %v2839_v31, 0.0  ;;  %2079 = vst.msk [vmem:[#allocation4 + $0x1a0] sm:$0xff] %vm1419_vm3, %v2001_v50  ;;  %6070 = vmatmul.msk.f32.gmra.mxu0 %vm718_vm1, %v2433_v63  ;;  %v7965_v47 = vld [vmem:[#allocation3 + $0x380] sm:$0xff] }
 0x27e   : > { %v2728_v60 = vpop.f32.mrf.mxu3  ;;  %1707 = vst.msk [vmem:[#allocation4 + $0x2d8] sm:$0xff] %vm718_vm1, %v7965_v47  ;;  %v7979_v43 = vld [vmem:[#allocation3 + $0x37f] sm:$0xff] }
 0x27f   : > { %1188 = vrot.lane.b32.xlu2 %v7871_v18, %s6332_s23  ;;  %v7942_v59 = vmin.f32 %v2924_v32, 20.0  ;;  %v2729_v37 = vadd.f32 %v2728_v60, %v2616_v58  ;;  %1065 = vst.msk [vmem:[#allocation4 + $0x2e8] sm:$0xff] %vm718_vm1, %v7979_v43  ;;  %v7992_v24 = vld [vmem:[#allocation3 + $0x381] sm:$0xff] }
 0x280   : > { %1568 = vrot.lane.b32.xlu0 %v7864_v62, %s6334_s8  ;;  %v2436_v16 = vld [vmem:[#allocation4 + $0x2b0] sm:$0xff]  ;;  %2347 = vst.msk [vmem:[#allocation4 + $0x2c8] sm:$0xff] %vm718_vm1, %v7992_v24 }
 0x281   : > { %v1814_v52 = vpop.permute.xlu2 %1813  ;;  %2988 = vst.msk [vmem:[#allocation5 + $0x28] sm:$0xff] %vm718_vm1, %v7942_v59  ;;  %v2842_v44 = vadd.f32 %v2841_v56, %v2729_v37  ;;  %v2847_v56 = vpop.f32.mrf.mxu0 }
 0x282   : > { %1889 = vst.msk [vmem:[#allocation4 + $0x1e8] sm:$0xff] %vm1226_vm2, %v1814_v52  ;;  %2018 = vrot.lane.b32.xlu1 %v7846_v22, %s6333_s29  ;;  %v1999_v23 = vpop.permute.xlu0 %1998  ;;  %v2401_v3 = vld [vmem:[#allocation4 + $0x198] sm:$0xff]  ;;  %v7957_v22 = vld [vmem:[#allocation3 + $0x368] sm:$0xff] }
 0x283   : > { %2078 = vst.msk [vmem:[#allocation4 + $0x188] sm:$0xff] %vm1419_vm3, %v1999_v23  ;;  %2647 = vmatmul.f32.gmra.mxu2 %v2401_v3  ;;  %v2925_v6 = vmax.f32 %v2842_v44, 0.0 }
 0x284   : > { %v1364_v42 = vpop.permute.xlu1 %1363  ;;  %2270 = vst.msk [vmem:[#allocation4 + $0x188] sm:$0xff] %vm1612_vm4, %v7819_v0  ;;  %v2404_v0 = vld [vmem:[#allocation4 + $0x1b0] sm:$0xff] }
 0x285   : > { %1440 = vst.msk [vmem:[#allocation4 + $0x1e0] sm:$0xff] %vm1419_vm3, %v1364_v42  ;;  %v7963_v34 = vmin.f32 %v2925_v6, 20.0  ;;  %6071 = vmatmul.msk.f32.gmra.mxu0 %vm718_vm1, %v2436_v16 }
 0x286   : > { %v2731_v12 = vpop.f32.mrf.mxu3  ;;  %1706 = vst.msk [vmem:[#allocation4 + $0x2c0] sm:$0xff] %vm718_vm1, %v7957_v22 }
 0x287   : > { %1572 = vrot.lane.b32.xlu2 %v7898_v49, %s6334_s8  ;;  %v2732_v13 = vadd.f32 %v2731_v12, %v2619_v7  ;;  %2989 = vst.msk [vmem:[#allocation5 + $0x30] sm:$0xff] %vm718_vm1, %v7963_v34  ;;  %v2439_v32 = vld [vmem:[#allocation4 + $0x2c8] sm:$0xff] }
 0x288   : > { %2016 = vrot.lane.b32.xlu0 %v7864_v62, %s6333_s29 }
 0x289   : > { %v7955_v4 = vpop.permute.xlu2 %2196  ;;  %v2845_v14 = vadd.f32 %v2844_v10, %v2732_v13  ;;  %v2850_v12 = vpop.f32.mrf.mxu0 }
 0x28a   : > { %1381 = vrot.lane.b32.xlu1 %v7896_v28, %s6333_s29  ;;  %v1362_v20 = vpop.permute.xlu0 %1361 }
 0x28b   : > { %1439 = vst.msk [vmem:[#allocation4 + $0x1c8] sm:$0xff] %vm1419_vm3, %v1362_v20  ;;  %2650 = vmatmul.f32.gmra.mxu2 %v2404_v0  ;;  %v2399_v62 = vld [vmem:[#allocation4 + $0x188] sm:$0xff]  ;;  %v2926_v35 = vmax.f32 %v2845_v14, 0.0 }
 0x28c   : > { %v1812_v2 = vpop.permute.xlu1 %1811  ;;  %1632 = vst.msk [vmem:[#allocation4 + $0x1c8] sm:$0xff] %vm1612_vm4, %v7860_v33  ;;  %2757 = vmatmul.f32.gmra.mxu3 %v2399_v62 }
 0x28d   : > { %1888 = vst.msk [vmem:[#allocation4 + $0x1d0] sm:$0xff] %vm1226_vm2, %v1812_v2  ;;  %v7989_v36 = vmin.f32 %v2926_v35, 20.0  ;;  %6072 = vmatmul.msk.f32.gmra.mxu0 %vm718_vm1, %v2439_v32 }
 0x28f   : > { %2020 = vrot.lane.b32.xlu2 %v7898_v49, %s6333_s29  ;;  %v936_v49 = vmax.f32 %v904_v5, 0.0  ;;  %2990 = vst.msk [vmem:[#allocation5 + $0x38] sm:$0xff] %vm718_vm1, %v7989_v36 }
 0x290   : > { %1379 = vrot.lane.b32.xlu0 %v7904_v21, %s6333_s29 }
 0x291   : > { %v1177_v17 = vpop.permute.xlu2 %1176  ;;  %v968_v61 = vmin.f32 %v936_v49, 20.0  ;;  %v2853_v49 = vpop.f32.mrf.mxu0 }
 0x292   : > { %1250 = vst.msk [vmem:[#allocation4 + $0x228] sm:$0xff] %vm1226_vm2, %v1177_v17  ;;  %1829 = vrot.lane.b32.xlu1 %v7896_v28, %s6332_s23  ;;  %v1810_v33 = vpop.permute.xlu0 %1809  ;;  %v2621_v28 = vpop.f32.mrf.mxu2 }
 0x293   : > { %1001 = vst.msk [vmem:[#allocation3 + $0x398] sm:$0xff] %vm718_vm1, %v968_v61  ;;  %v2407_v45 = vld [vmem:[#allocation4 + $0x1c8] sm:$0xff] }
 0x294   : > { %v2195_v31 = vpop.permute.xlu1 %2194  ;;  %1887 = vst.msk [vmem:[#allocation4 + $0x1b8] sm:$0xff] %vm1226_vm2, %v1810_v33  ;;  %2653 = vmatmul.f32.gmra.mxu2 %v2407_v45 }
 0x295   : > { %2080 = vst.msk [vmem:[#allocation4 + $0x1b8] sm:$0xff] %vm1419_vm3, %v7893_v8 }
 0x296   : > { %2272 = vst.msk [vmem:[#allocation4 + $0x1b8] sm:$0xff] %vm1612_vm4, %v2195_v31 }
 0x297   : > { %1383 = vrot.lane.b32.xlu2 %v7927_v40, %s6333_s29 }
 0x298   : > { %1827 = vrot.lane.b32.xlu0 %v7904_v21, %s6332_s23  ;;  %v2622_v21 = vadd.f32 %v7634_v25, %v2621_v28 }
 0x299   : > { %v8006_v50 = vpop.permute.xlu2 %1560 }
 0x29a   : > { %2022 = vrot.lane.b32.xlu1 %v7931_v26, %s6333_s29  ;;  %v2193_v51 = vpop.permute.xlu0 %2192  ;;  %v1740_v8 = vld [vmem:[#allocation3 + $0x399] sm:$0xff] }
 0x29b   : > { %2271 = vst.msk [vmem:[#allocation4 + $0x1a0] sm:$0xff] %vm1612_vm4, %v2193_v51  ;;  %v1483_v27 = vld [vmem:[#allocation3 + $0x397] sm:$0xff] }
 0x29c   : > { %v1175_v52 = vpop.permute.xlu1 %1174  ;;  %2348 = vst.msk [vmem:[#allocation4 + $0x2e0] sm:$0xff] %vm718_vm1, %v1740_v8 }
 0x29d   : > { %1249 = vst.msk [vmem:[#allocation4 + $0x210] sm:$0xff] %vm1226_vm2, %v1175_v52  ;;  %v2405_v0 = vld [vmem:[#allocation4 + $0x1b8] sm:$0xff] }
 0x29e   : > { %v2734_v60 = vpop.f32.mrf.mxu3 }
 0x29f   : > { %1831 = vrot.lane.b32.xlu2 %v7927_v40, %s6332_s23  ;;  %v2735_v37 = vadd.f32 %v2734_v60, %v2622_v21  ;;  %v2624_v40 = vpop.f32.mrf.mxu2 }
 0x2a0   : > { %1190 = vrot.lane.b32.xlu0 %v7957_v22, %s6332_s23  ;;  %v2625_v3 = vadd.f32 %v7634_v25, %v2624_v40 }
 0x2a1   : > { %v8018_v58 = vpop.permute.xlu2 %2008  ;;  %v2848_v39 = vadd.f32 %v2847_v56, %v2735_v37 }
 0x2a2   : > { %1192 = vrot.lane.b32.xlu1 %v7965_v47, %s6332_s23  ;;  %v1173_v44 = vpop.permute.xlu0 %1172  ;;  %v2402_v41 = vld [vmem:[#allocation4 + $0x1a0] sm:$0xff] }
 0x2a3   : > { %1248 = vst.msk [vmem:[#allocation4 + $0x1f8] sm:$0xff] %vm1226_vm2, %v1173_v44  ;;  %2760 = vmatmul.f32.gmra.mxu3 %v2402_v41  ;;  %v2927_v42 = vmax.f32 %v2848_v39, 0.0 }
 0x2a4   : > { %v1559_v63 = vpop.permute.xlu1 %1558  ;;  %1441 = vst.msk [vmem:[#allocation4 + $0x1f8] sm:$0xff] %vm1419_vm3, %v7916_v53 }
 0x2a5   : > { %1634 = vst.msk [vmem:[#allocation4 + $0x1f8] sm:$0xff] %vm1612_vm4, %v1559_v63  ;;  %v8035_v6 = vmin.f32 %v2927_v42, 20.0 }
 0x2a6   : > { %v2737_v7 = vpop.f32.mrf.mxu3 }
 0x2a7   : > { %2202 = vrot.lane.b32.xlu2 %v7781_v57, %s6334_s8  ;;  %v2738_v57 = vadd.f32 %v2737_v7, %v2625_v3  ;;  %2991 = vst.msk [vmem:[#allocation5 + $0x40] sm:$0xff] %vm718_vm1, %v8035_v6  ;;  %v2627_v2 = vpop.f32.mrf.mxu2 }
 0x2a8   : > { %1574 = vrot.lane.b32.xlu0 %v7931_v26, %s6334_s8  ;;  %v2628_v62 = vadd.f32 %v7634_v25, %v2627_v2 }
 0x2a9   : > { %v1820_v23 = vpop.permute.xlu2 %1819  ;;  %v2851_v53 = vadd.f32 %v2850_v12, %v2738_v57 }
 0x2aa   : > { %1892 = vst.msk [vmem:[#allocation4 + $0x230] sm:$0xff] %vm1226_vm2, %v1820_v23  ;;  %1576 = vrot.lane.b32.xlu1 %v7979_v43, %s6334_s8  ;;  %v1557_v13 = vpop.permute.xlu0 %1556 }
 0x2ab   : > { %2085 = vst.msk [vmem:[#allocation4 + $0x230] sm:$0xff] %vm1419_vm3, %v7137_v19  ;;  %2763 = vmatmul.f32.gmra.mxu3 %v2405_v0  ;;  %v2928_v14 = vmax.f32 %v2851_v53, 0.0 }
 0x2ac   : > { %v2007_v10 = vpop.permute.xlu1 %2006  ;;  %1633 = vst.msk [vmem:[#allocation4 + $0x1e0] sm:$0xff] %vm1612_vm4, %v1557_v13  ;;  %v2413_v35 = vld [vmem:[#allocation4 + $0x1f8] sm:$0xff] }
 0x2ad   : > { %2082 = vst.msk [vmem:[#allocation4 + $0x1e8] sm:$0xff] %vm1419_vm3, %v2007_v10  ;;  %v8051_v26 = vmin.f32 %v2928_v14, 20.0 }
 0x2af   : > { %2024 = vrot.lane.b32.xlu2 %v7979_v43, %s6333_s29  ;;  %2992 = vst.msk [vmem:[#allocation5 + $0x48] sm:$0xff] %vm718_vm1, %v8051_v26 }
 0x2b0   : > { %1385 = vrot.lane.b32.xlu0 %v7992_v24, %s6333_s29 }
 0x2b1   : > { %v1183_v19 = vpop.permute.xlu2 %1182 }
 0x2b2   : > { %1253 = vst.msk [vmem:[#allocation4 + $0x270] sm:$0xff] %vm1226_vm2, %v1183_v19  ;;  %2200 = vrot.lane.b32.xlu1 %v7671_v54, %s6334_s8  ;;  %v2005_v43 = vpop.permute.xlu0 %2004  ;;  %v6259_v19 = vld [vmem:[%s9888_s2 + $0x1] ss:$0 sm:$0xff] }
 0x2b3   : > { %v2410_v20 = vld [vmem:[#allocation4 + $0x1e0] sm:$0xff]  ;;  %2081 = vst.msk [vmem:[#allocation4 + $0x1d0] sm:$0xff] %vm1419_vm3, %v2005_v43 }
 0x2b4   : > { %v1370_v16 = vpop.permute.xlu1 %1369  ;;  %2656 = vmatmul.f32.gmra.mxu2 %v2410_v20  ;;  %2273 = vst.msk [vmem:[#allocation4 + $0x1d0] sm:$0xff] %vm1612_vm4, %v7955_v4 }
 0x2b5   : > { %1443 = vst.msk [vmem:[#allocation4 + $0x228] sm:$0xff] %vm1419_vm3, %v1370_v16 }
 0x2b7   : > { %1578 = vrot.lane.b32.xlu2 %v1483_v27, %s6334_s8  ;;  %v2740_v17 = vpop.f32.mrf.mxu3 }
 0x2b8   : > { %v2741_v54 = vadd.f32 %v2740_v17, %v2628_v62  ;;  %1833 = vrot.lane.b32.xlu0 %v7992_v24, %s6332_s23 }
 0x2b9   : > { %v8061_v5 = vpop.permute.xlu2 %1566 }
 0x2ba   : > { %1835 = vrot.lane.b32.xlu1 %v1740_v8, %s6332_s23  ;;  %v2854_v61 = vadd.f32 %v2853_v49, %v2741_v54  ;;  %v1368_v33 = vpop.permute.xlu0 %1367 }
 0x2bb   : > { %1442 = vst.msk [vmem:[#allocation4 + $0x210] sm:$0xff] %vm1419_vm3, %v1368_v33  ;;  %v2408_v4 = vld [vmem:[#allocation4 + $0x1d0] sm:$0xff] }
 0x2bc   : > { %v1818_v31 = vpop.permute.xlu1 %1817  ;;  %2659 = vmatmul.f32.gmra.mxu2 %v2413_v35  ;;  %1635 = vst.msk [vmem:[#allocation4 + $0x210] sm:$0xff] %vm1612_vm4, %v8006_v50  ;;  %2766 = vmatmul.f32.gmra.mxu3 %v2408_v4  ;;  %v2929_v24 = vmax.f32 %v2854_v61, 0.0 }
 0x2bd   : > { %1891 = vst.msk [vmem:[#allocation4 + $0x218] sm:$0xff] %vm1226_vm2, %v1818_v31 }
 0x2be   : > { %v8078_v45 = vmin.f32 %v2929_v24, 20.0 }
 0x2bf   : > { %2208 = vrot.lane.b32.xlu2 %v7841_v29, %s6334_s8 }
 0x2c0   : > { %2198 = vrot.lane.b32.xlu0 %v7614_v9, %s6334_s8  ;;  %2993 = vst.msk [vmem:[#allocation5 + $0x50] sm:$0xff] %vm718_vm1, %v8078_v45  ;;  %v2117_v9 = vld [vmem:[#allocation3 + $0x2c0] sm:$0xff] }
 0x2c1   : > { %v8073_v25 = vpop.permute.xlu2 %2014 }
 0x2c2   : > { %2026 = vrot.lane.b32.xlu1 %v1483_v27, %s6333_s29  ;;  %v1816_v29 = vpop.permute.xlu0 %1815 }
 0x2c3   : > { %1890 = vst.msk [vmem:[#allocation4 + $0x200] sm:$0xff] %vm1226_vm2, %v1816_v29  ;;  %v2416_v50 = vld [vmem:[#allocation4 + $0x210] sm:$0xff]  ;;  %v2124_v29 = vld [vmem:[#allocation3 + $0x398] sm:$0xff] }
 0x2c4   : > { %v1181_v28 = vpop.permute.xlu1 %1180  ;;  %2083 = vst.msk [vmem:[#allocation4 + $0x200] sm:$0xff] %vm1419_vm3, %v8018_v58  ;;  %2662 = vmatmul.f32.gmra.mxu2 %v2416_v50  ;;  %v8101_v58 = vld [vmem:[%s9890_s4] ss:$0 sm:$0xff] }
 0x2c5   : > { %1252 = vst.msk [vmem:[#allocation4 + $0x258] sm:$0xff] %vm1226_vm2, %v1181_v28 }
 0x2c6   : > { %1708 = vst.msk [vmem:[#allocation4 + $0x2f0] sm:$0xff] %vm718_vm1, %v2124_v29 }
 0x2c7   : > { %2214 = vrot.lane.b32.xlu2 %v7957_v22, %s6334_s8  ;;  %v2630_v22 = vpop.f32.mrf.mxu2 }
 0x2c8   : > { %2204 = vrot.lane.b32.xlu0 %v2117_v9, %s6334_s8  ;;  %v2631_v21 = vadd.f32 %v8101_v58, %v2630_v22 }
 0x2c9   : > { %v8088_v51 = vpop.permute.xlu2 %1377 }
 0x2ca   : > { %2206 = vrot.lane.b32.xlu1 %v7757_v46, %s6334_s8  ;;  %v1563_v52 = vpop.permute.xlu0 %1562  ;;  %v2856_v46 = vpop.f32.mrf.mxu0 }
 0x2cb   : > { %1636 = vst.msk [vmem:[#allocation4 + $0x228] sm:$0xff] %vm1612_vm4, %v1563_v52 }
 0x2cc   : > { %v1565_v32 = vpop.permute.xlu1 %1564 }
 0x2cd   : > { %1637 = vst.msk [vmem:[#allocation4 + $0x240] sm:$0xff] %vm1612_vm4, %v1565_v32 }
 0x2ce   : > { %v2743_v60 = vpop.f32.mrf.mxu3 }
 0x2cf   : > { %v2744_v37 = vadd.f32 %v2743_v60, %v2631_v21  ;;  %v2633_v23 = vpop.f32.mrf.mxu2 }
 0x2d0   : > { %2210 = vrot.lane.b32.xlu0 %v7822_v15, %s6334_s8  ;;  %v2634_v42 = vadd.f32 %v8101_v58, %v2633_v23 }
 0x2d1   : > { %v1826_v8 = vpop.permute.xlu2 %1825  ;;  %v2857_v56 = vadd.f32 %v2856_v46, %v2744_v37 }
 0x2d2   : > { %1895 = vst.msk [vmem:[#allocation4 + $0x278] sm:$0xff] %vm1226_vm2, %v1826_v8  ;;  %2212 = vrot.lane.b32.xlu1 %v7871_v18, %s6334_s8  ;;  %v2011_v40 = vpop.permute.xlu0 %2010  ;;  %v2419_v44 = vld [vmem:[#allocation4 + $0x228] sm:$0xff]  ;;  %v2859_v7 = vpop.f32.mrf.mxu0 }
 0x2d3   : > { %2084 = vst.msk [vmem:[#allocation4 + $0x218] sm:$0xff] %vm1419_vm3, %v2011_v40  ;;  %2665 = vmatmul.f32.gmra.mxu2 %v2419_v44  ;;  %v2930_v41 = vmax.f32 %v2857_v56, 0.0 }
 0x2d4   : > { %v1376_v39 = vpop.permute.xlu1 %1375  ;;  %v2422_v57 = vld [vmem:[#allocation4 + $0x240] sm:$0xff] }
 0x2d5   : > { %1446 = vst.msk [vmem:[#allocation4 + $0x270] sm:$0xff] %vm1419_vm3, %v1376_v39  ;;  %v8113_v15 = vmin.f32 %v2930_v41, 20.0 }
 0x2d6   : > { %v2746_v3 = vpop.f32.mrf.mxu3 }
 0x2d7   : > { %v2747_v18 = vadd.f32 %v2746_v3, %v2634_v42  ;;  %2994 = vst.msk [vmem:[#allocation5 + $0x58] sm:$0xff] %vm718_vm1, %v8113_v15  ;;  %v2636_v43 = vpop.f32.mrf.mxu2 }
 0x2d8   : > { %2216 = vrot.lane.b32.xlu0 %v7965_v47, %s6334_s8  ;;  %v2637_v2 = vadd.f32 %v8101_v58, %v2636_v43 }
 0x2d9   : > { %v1189_v63 = vpop.permute.xlu2 %1188  ;;  %v2860_v12 = vadd.f32 %v2859_v7, %v2747_v18 }
 0x2da   : > { %1256 = vst.msk [vmem:[#allocation4 + $0x2b8] sm:$0xff] %vm1226_vm2, %v1189_v63  ;;  %v1374_v53 = vpop.permute.xlu0 %1373  ;;  %v2862_v17 = vpop.f32.mrf.mxu0  ;;  %2218 = vrot.lane.b32.xlu1 %v2124_v29, %s6334_s8 }
 0x2db   : > { %1445 = vst.msk [vmem:[#allocation4 + $0x258] sm:$0xff] %vm1419_vm3, %v1374_v53  ;;  %2668 = vmatmul.f32.gmra.mxu2 %v2422_v57  ;;  %v2931_v0 = vmax.f32 %v2860_v12, 0.0 }
 0x2dc   : > { %v1824_v13 = vpop.permute.xlu1 %1823  ;;  %1638 = vst.msk [vmem:[#allocation4 + $0x258] sm:$0xff] %vm1612_vm4, %v8061_v5 }
 0x2dd   : > { %1894 = vst.msk [vmem:[#allocation4 + $0x260] sm:$0xff] %vm1226_vm2, %v1824_v13  ;;  %v8128_v47 = vmin.f32 %v2931_v0, 20.0 }
 0x2df   : > { %2995 = vst.msk [vmem:[#allocation5 + $0x60] sm:$0xff] %vm718_vm1, %v8128_v47  ;;  %v2639_v4 = vpop.f32.mrf.mxu2 }
 0x2e0   : > { %3050 = vrot.lane.b32.xlu0 %v6259_v19, %s6332_s23  ;;  %v2640_v50 = vadd.f32 %v8101_v58, %v2639_v4 }
 0x2e1   : > { %v8120_v10 = vpop.permute.xlu2 %1572 }
 0x2e2   : > { %v1822_v14 = vpop.permute.xlu0 %1821 }
 0x2e3   : > { %1893 = vst.msk [vmem:[#allocation4 + $0x248] sm:$0xff] %vm1226_vm2, %v1822_v14  ;;  %v2425_v16 = vld [vmem:[#allocation4 + $0x258] sm:$0xff] }
 0x2e4   : > { %v1187_v27 = vpop.permute.xlu1 %1186  ;;  %2086 = vst.msk [vmem:[#allocation4 + $0x248] sm:$0xff] %vm1419_vm3, %v8073_v25  ;;  %2671 = vmatmul.f32.gmra.mxu2 %v2425_v16  ;;  %v2125_v16 = vld [vmem:[#allocation3 + $0x3b0] sm:$0xff] }
 0x2e5   : > { %1255 = vst.msk [vmem:[#allocation4 + $0x2a0] sm:$0xff] %vm1226_vm2, %v1187_v27  ;;  %2220 = vrot.lane.b32.xlu2 %v2125_v16, %s6334_s8 }
 0x2e7   : > { %v2749_v5 = vpop.f32.mrf.mxu3  ;;  %v2642_v46 = vpop.f32.mrf.mxu2 }
 0x2e8   : > { %v2750_v62 = vadd.f32 %v2749_v5, %v2637_v2  ;;  %v2643_v56 = vadd.f32 %v8101_v58, %v2642_v46 }
 0x2e9   : > { %v8134_v20 = vpop.permute.xlu2 %2020 }
 0x2ea   : > { %v2863_v54 = vadd.f32 %v2862_v17, %v2750_v62  ;;  %v1185_v35 = vpop.permute.xlu0 %1184 }
 0x2eb   : > { %1254 = vst.msk [vmem:[#allocation4 + $0x288] sm:$0xff] %vm1226_vm2, %v1185_v35  ;;  %v2442_v35 = vld [vmem:[#allocation4 + $0x2e0] sm:$0xff] }
 0x2ec   : > { %v1571_v49 = vpop.permute.xlu1 %1570  ;;  %1447 = vst.msk [vmem:[#allocation4 + $0x288] sm:$0xff] %vm1419_vm3, %v8088_v51  ;;  %v2932_v33 = vmax.f32 %v2863_v54, 0.0  ;;  %v2865_v51 = vpop.f32.mrf.mxu0  ;;  %6073 = vmatmul.msk.f32.gmra.mxu0 %vm718_vm1, %v2442_v35 }
 0x2ed   : > { %1640 = vst.msk [vmem:[#allocation4 + $0x288] sm:$0xff] %vm1612_vm4, %v1571_v49 }
 0x2ee   : > { %v8146_v31 = vmin.f32 %v2932_v33, 20.0 }
 0x2ef   : > { %v2645_v13 = vpop.f32.mrf.mxu2 }
 0x2f0   : > { %2996 = vst.msk [vmem:[#allocation5 + $0x68] sm:$0xff] %vm718_vm1, %v8146_v31 }
 0x2f1   : > { %v8141_v61 = vpop.permute.xlu2 %1383 }
 0x2f2   : > { %v1569_v25 = vpop.permute.xlu0 %1568 }
 0x2f3   : > { %1639 = vst.msk [vmem:[#allocation4 + $0x270] sm:$0xff] %vm1612_vm4, %v1569_v25 }
 0x2f4   : > { %v2019_v24 = vpop.permute.xlu1 %2018  ;;  %v2868_v63 = vpop.f32.mrf.mxu0  ;;  %v2431_v41 = vld [vmem:[#allocation4 + $0x288] sm:$0xff] }
 0x2f5   : > { %2088 = vst.msk [vmem:[#allocation4 + $0x278] sm:$0xff] %vm1419_vm3, %v2019_v24 }
 0x2f7   : > { %v2752_v9 = vpop.f32.mrf.mxu3 }
 0x2f8   : > { %v2753_v22 = vadd.f32 %v2752_v9, %v2640_v50 }
 0x2f9   : > { %v1832_v28 = vpop.permute.xlu2 %1831 }
 0x2fa   : > { %1898 = vst.msk [vmem:[#allocation4 + $0x2c0] sm:$0xff] %vm1226_vm2, %v1832_v28  ;;  %v2866_v52 = vadd.f32 %v2865_v51, %v2753_v22  ;;  %v2017_v32 = vpop.permute.xlu0 %2016  ;;  %v2428_v21 = vld [vmem:[#allocation4 + $0x270] sm:$0xff] }
 0x2fb   : > { %2087 = vst.msk [vmem:[#allocation4 + $0x260] sm:$0xff] %vm1419_vm3, %v2017_v32  ;;  %2674 = vmatmul.f32.gmra.mxu2 %v2428_v21 }
 0x2fc   : > { %v1382_v8 = vpop.permute.xlu1 %1381  ;;  %v2933_v37 = vmax.f32 %v2866_v52, 0.0  ;;  %v2871_v43 = vpop.f32.mrf.mxu0 }
 0x2fd   : > { %1449 = vst.msk [vmem:[#allocation4 + $0x2b8] sm:$0xff] %vm1419_vm3, %v1382_v8 }
 0x2fe   : > { %v8160_v40 = vmin.f32 %v2933_v37, 20.0 }
 0x2ff   : > { %v2755_v39 = vpop.f32.mrf.mxu3 }
 0x300   : > { %v2756_v44 = vadd.f32 %v2755_v39, %v2643_v56  ;;  %2997 = vst.msk [vmem:[#allocation5 + $0x70] sm:$0xff] %vm718_vm1, %v8160_v40 }
 0x301   : > { %v2203_v60 = vpop.permute.xlu2 %2202 }
 0x302   : > { %2276 = vst.msk [vmem:[#allocation4 + $0x218] sm:$0xff] %vm1612_vm4, %v2203_v60  ;;  %v2869_v23 = vadd.f32 %v2868_v63, %v2756_v44  ;;  %v1380_v42 = vpop.permute.xlu0 %1379 }
 0x303   : > { %1448 = vst.msk [vmem:[#allocation4 + $0x2a0] sm:$0xff] %vm1419_vm3, %v1380_v42  ;;  %2677 = vmatmul.f32.gmra.mxu2 %v2431_v41 }
 0x304   : > { %v1830_v3 = vpop.permute.xlu1 %1829  ;;  %v2934_v7 = vmax.f32 %v2869_v23, 0.0  ;;  %1641 = vst.msk [vmem:[#allocation4 + $0x2a0] sm:$0xff] %vm1612_vm4, %v8120_v10  ;;  %v2646_v10 = vadd.f32 %v8101_v58, %v2645_v13  ;;  %v2874_v9 = vpop.f32.mrf.mxu0 }
 0x305   : > { %1897 = vst.msk [vmem:[#allocation4 + $0x2a8] sm:$0xff] %vm1226_vm2, %v1830_v3 }
 0x306   : > { %v8168_v57 = vmin.f32 %v2934_v7, 20.0 }
 0x308   : > { %2998 = vst.msk [vmem:[#allocation5 + $0x78] sm:$0xff] %vm718_vm1, %v8168_v57 }
 0x309   : > { %v2025_v18 = vpop.permute.xlu2 %2024 }
 0x30a   : > { %2091 = vst.msk [vmem:[#allocation4 + $0x2c0] sm:$0xff] %vm1419_vm3, %v2025_v18  ;;  %v1828_v12 = vpop.permute.xlu0 %1827 }
 0x30b   : > { %1896 = vst.msk [vmem:[#allocation4 + $0x290] sm:$0xff] %vm1226_vm2, %v1828_v12  ;;  %v2434_v0 = vld [vmem:[#allocation4 + $0x2a0] sm:$0xff] }
 0x30c   : > { %v2023_v53 = vpop.permute.xlu1 %2022  ;;  %2089 = vst.msk [vmem:[#allocation4 + $0x290] sm:$0xff] %vm1419_vm3, %v8134_v20  ;;  %2680 = vmatmul.f32.gmra.mxu2 %v2434_v0  ;;  %v2877_v44 = vpop.f32.mrf.mxu0 }
 0x30d   : > { %2090 = vst.msk [vmem:[#allocation4 + $0x2a8] sm:$0xff] %vm1419_vm3, %v2023_v53 }
 0x30f   : > { %v2758_v14 = vpop.f32.mrf.mxu3 }
 0x310   : > { %v2759_v27 = vadd.f32 %v2758_v14, %v2646_v10 }
 0x311   : > { %v1579_v19 = vpop.permute.xlu2 %1578 }
 0x312   : > { %v2872_v2 = vadd.f32 %v2871_v43, %v2759_v27  ;;  %v1191_v5 = vpop.permute.xlu0 %1190 }
 0x313   : > { %1257 = vst.msk [vmem:[#allocation4 + $0x2d0] sm:$0xff] %vm1226_vm2, %v1191_v5 }
 0x314   : > { %v1193_v62 = vpop.permute.xlu1 %1192  ;;  %1450 = vst.msk [vmem:[#allocation4 + $0x2d0] sm:$0xff] %vm1419_vm3, %v8141_v61  ;;  %v2935_v20 = vmax.f32 %v2872_v2, 0.0  ;;  %v2648_v61 = vpop.f32.mrf.mxu2 }
 0x315   : > { %1258 = vst.msk [vmem:[#allocation4 + $0x2e8] sm:$0xff] %vm1226_vm2, %v1193_v62  ;;  %v2649_v28 = vadd.f32 %v8101_v58, %v2648_v61  ;;  %v2417_v62 = vld [vmem:[#allocation4 + $0x218] sm:$0xff] }
 0x316   : > { %v8184_v54 = vmin.f32 %v2935_v20, 20.0 }
 0x318   : > { %2999 = vst.msk [vmem:[#allocation5 + $0x80] sm:$0xff] %vm718_vm1, %v8184_v54 }
 0x319   : > { %v2209_v17 = vpop.permute.xlu2 %2208 }
 0x31a   : > { %2279 = vst.msk [vmem:[#allocation4 + $0x260] sm:$0xff] %vm1612_vm4, %v2209_v17  ;;  %v1575_v49 = vpop.permute.xlu0 %1574  ;;  %v3015_v17 = vld [vmem:[#allocation2 + $0x8] sm:$0xff] }
 0x31b   : > { %1642 = vst.msk [vmem:[#allocation4 + $0x2b8] sm:$0xff] %vm1612_vm4, %v1575_v49  ;;  %v3017_v49 = vld [vmem:[#allocation2 + $0x28] sm:$0xff] }
 0x31c   : > { %v1577_v33 = vpop.permute.xlu1 %1576  ;;  %v2651_v60 = vpop.f32.mrf.mxu2 }
 0x31d   : > { %1643 = vst.msk [vmem:[#allocation4 + $0x2d0] sm:$0xff] %vm1612_vm4, %v1577_v33  ;;  %v2652_v37 = vadd.f32 %v8101_v58, %v2651_v60  ;;  %v3016_v33 = vld [vmem:[#allocation2 + $0x18] sm:$0xff] }
 0x321   : > { %v2215_v4 = vpop.permute.xlu2 %2214 }
 0x322   : > { %2282 = vst.msk [vmem:[#allocation4 + $0x2a8] sm:$0xff] %vm1612_vm4, %v2215_v4  ;;  %v1386_v25 = vpop.permute.xlu0 %1385  ;;  %v2437_v29 = vld [vmem:[#allocation4 + $0x2b8] sm:$0xff] }
 0x323   : > { %1451 = vst.msk [vmem:[#allocation4 + $0x2e8] sm:$0xff] %vm1419_vm3, %v1386_v25  ;;  %2683 = vmatmul.f32.gmra.mxu2 %v2437_v29 }
 0x324   : > { %v2201_v24 = vpop.permute.xlu1 %2200  ;;  %1644 = vst.msk [vmem:[#allocation4 + $0x2e8] sm:$0xff] %vm1612_vm4, %v1579_v19  ;;  %v2440_v22 = vld [vmem:[#allocation4 + $0x2d0] sm:$0xff]  ;;  %v2654_v12 = vpop.f32.mrf.mxu2 }
 0x325   : > { %2275 = vst.msk [vmem:[#allocation4 + $0x200] sm:$0xff] %vm1612_vm4, %v2201_v24  ;;  %v2655_v53 = vadd.f32 %v8101_v58, %v2654_v12  ;;  %v2880_v19 = vpop.f32.mrf.mxu0 }
 0x326   : > { %v2761_v50 = vpop.f32.mrf.mxu3 }
 0x327   : > { %v2762_v51 = vadd.f32 %v2761_v50, %v2649_v28  ;;  %v3020_v50 = vld [vmem:[#allocation2 + $0x58] sm:$0xff] }
 0x329   : > { %v2875_v52 = vadd.f32 %v2874_v9, %v2762_v51  ;;  %v3018_v9 = vld [vmem:[#allocation2 + $0x38] sm:$0xff] }
 0x32a   : > { %v1834_v32 = vpop.permute.xlu0 %1833 }
 0x32b   : > { %1899 = vst.msk [vmem:[#allocation4 + $0x2d8] sm:$0xff] %vm1226_vm2, %v1834_v32  ;;  %2686 = vmatmul.f32.gmra.mxu2 %v2440_v22  ;;  %v2936_v21 = vmax.f32 %v2875_v52, 0.0 }
 0x32c   : > { %v1836_v8 = vpop.permute.xlu1 %1835  ;;  %v2414_v43 = vld [vmem:[#allocation4 + $0x200] sm:$0xff] }
 0x32d   : > { %1900 = vst.msk [vmem:[#allocation4 + $0x2f0] sm:$0xff] %vm1226_vm2, %v1836_v8  ;;  %v8201_v46 = vmin.f32 %v2936_v21, 20.0  ;;  %v3019_v21 = vld [vmem:[#allocation2 + $0x48] sm:$0xff] }
 0x32e   : > { %2093 = vst.msk [vmem:[#allocation4 + $0x2f0] sm:$0xff] %vm1419_vm3, %v7040_v38  ;;  %v2764_v56 = vpop.f32.mrf.mxu3 }
 0x32f   : > { %v2765_v39 = vadd.f32 %v2764_v56, %v2652_v37  ;;  %3000 = vst.msk [vmem:[#allocation5 + $0x88] sm:$0xff] %vm718_vm1, %v8201_v46 }
 0x331   : > { %v2878_v63 = vadd.f32 %v2877_v44, %v2765_v39 }
 0x332   : > { %v2199_v41 = vpop.permute.xlu0 %2198 }
 0x333   : > { %2274 = vst.msk [vmem:[#allocation4 + $0x1e8] sm:$0xff] %vm1612_vm4, %v2199_v41  ;;  %v2937_v42 = vmax.f32 %v2878_v63, 0.0  ;;  %v3023_v63 = vld [vmem:[#allocation2 + $0x88] sm:$0xff] }
 0x334   : > { %v2027_v23 = vpop.permute.xlu1 %2026  ;;  %v3021_v41 = vld [vmem:[#allocation2 + $0x68] sm:$0xff] }
 0x335   : > { %2092 = vst.msk [vmem:[#allocation4 + $0x2d8] sm:$0xff] %vm1419_vm3, %v2027_v23  ;;  %v8207_v3 = vmin.f32 %v2937_v42, 20.0 }
 0x337   : > { %3001 = vst.msk [vmem:[#allocation5 + $0x90] sm:$0xff] %vm718_vm1, %v8207_v3 }
 0x33a   : > { %v2205_v38 = vpop.permute.xlu0 %2204  ;;  %v2411_v7 = vld [vmem:[#allocation4 + $0x1e8] sm:$0xff] }
 0x33b   : > { %2277 = vst.msk [vmem:[#allocation4 + $0x230] sm:$0xff] %vm1612_vm4, %v2205_v38  ;;  %2769 = vmatmul.f32.gmra.mxu3 %v2411_v7  ;;  %v3022_v7 = vld [vmem:[#allocation2 + $0x78] sm:$0xff] }
 0x33c   : > { %v2207_v18 = vpop.permute.xlu1 %2206 }
 0x33d   : > { %2278 = vst.msk [vmem:[#allocation4 + $0x248] sm:$0xff] %vm1612_vm4, %v2207_v18 }
 0x33f   : > { %v2767_v13 = vpop.f32.mrf.mxu3 }
 0x340   : > { %v2768_v0 = vadd.f32 %v2767_v13, %v2655_v53  ;;  %v2426_v13 = vld [vmem:[#allocation4 + $0x260] sm:$0xff] }
 0x342   : > { %v2881_v10 = vadd.f32 %v2880_v19, %v2768_v0  ;;  %v2211_v14 = vpop.permute.xlu0 %2210  ;;  %v2420_v35 = vld [vmem:[#allocation4 + $0x230] sm:$0xff] }
 0x343   : > { %2280 = vst.msk [vmem:[#allocation4 + $0x278] sm:$0xff] %vm1612_vm4, %v2211_v14  ;;  %2772 = vmatmul.f32.gmra.mxu3 %v2414_v43  ;;  %v3024_v43 = vld [vmem:[#allocation2 + $0x98] sm:$0xff] }
 0x344   : > { %v2213_v27 = vpop.permute.xlu1 %2212  ;;  %v2938_v16 = vmax.f32 %v2881_v10, 0.0  ;;  %v2423_v37 = vld [vmem:[#allocation4 + $0x248] sm:$0xff] }
 0x345   : > { %2281 = vst.msk [vmem:[#allocation4 + $0x290] sm:$0xff] %vm1612_vm4, %v2213_v27  ;;  %v3026_v27 = vld [vmem:[#allocation2 + $0xb8] sm:$0xff] }
 0x346   : > { %v8216_v2 = vmin.f32 %v2938_v16, 20.0 }
 0x348   : > { %3002 = vst.msk [vmem:[#allocation5 + $0x98] sm:$0xff] %vm718_vm1, %v8216_v2 }
 0x34a   : > { %v2217_v5 = vpop.permute.xlu0 %2216 }
 0x34b   : > { %2283 = vst.msk [vmem:[#allocation4 + $0x2c0] sm:$0xff] %vm1612_vm4, %v2217_v5  ;;  %2775 = vmatmul.f32.gmra.mxu3 %v2417_v62 }
 0x34c   : > { %v2219_v14 = vpop.permute.xlu1 %2218 }
 0x34d   : > { %2284 = vst.msk [vmem:[#allocation4 + $0x2d8] sm:$0xff] %vm1612_vm4, %v2219_v14 }
 0x352   : > { %v8221_v20 = vpop.permute.xlu0 %3050 }
 0x353   : > { %2778 = vmatmul.f32.gmra.mxu3 %v2420_v35  ;;  %v3055_v4 = vadd.f32 %v8221_v20, %v3017_v49  ;;  %v3053_v61 = vadd.f32 %v8221_v20, %v3015_v17  ;;  %v3054_v25 = vadd.f32 %v8221_v20, %v3016_v33  ;;  %v3058_v51 = vadd.f32 %v8221_v20, %v3020_v50  ;;  %v3025_v35 = vld [vmem:[#allocation2 + $0xa8] sm:$0xff] }
 0x354   : > { %v3056_v8 = vadd.f32 %v8221_v20, %v3018_v9  ;;  %v3057_v60 = vadd.f32 %v8221_v20, %v3019_v21  ;;  %v3061_v38 = vadd.f32 %v8221_v20, %v3023_v63  ;;  %v3059_v18 = vadd.f32 %v8221_v20, %v3021_v41  ;;  %v3027_v50 = vld [vmem:[#allocation2 + $0xc8] sm:$0xff]  ;;  %v3032_v63 = vld [vmem:[#allocation2 + $0x118] sm:$0xff] }
 0x355   : > { %v3087_v24 = vmax.f32 %v3055_v4, 0.0  ;;  %v3085_v29 = vmax.f32 %v3053_v61, 0.0  ;;  %v3086_v28 = vmax.f32 %v3054_v25, 0.0  ;;  %v3090_v56 = vmax.f32 %v3058_v51, 0.0  ;;  %v2429_v4 = vld [vmem:[#allocation4 + $0x278] sm:$0xff] }
 0x356   : > { %v3088_v39 = vmax.f32 %v3056_v8, 0.0  ;;  %v3089_v44 = vmax.f32 %v3057_v60, 0.0  ;;  %v3060_v53 = vadd.f32 %v8221_v20, %v3022_v7  ;;  %v3093_v0 = vmax.f32 %v3061_v38, 0.0  ;;  %v2432_v60 = vld [vmem:[#allocation4 + $0x290] sm:$0xff]  ;;  %v3030_v41 = vld [vmem:[#allocation2 + $0xf8] sm:$0xff]  ;;  %v3031_v7 = vld [vmem:[#allocation2 + $0x108] sm:$0xff] }
 0x357   : > { %v3119_v22 = vmin.f32 %v3087_v24, 20.0  ;;  %v3117_v52 = vmin.f32 %v3085_v29, 20.0  ;;  %v3118_v32 = vmin.f32 %v3086_v28, 20.0  ;;  %v3122_v23 = vmin.f32 %v3090_v56, 20.0  ;;  %v2221_v29 = vpop.permute.xlu2 %2220  ;;  %v3029_v28 = vld [vmem:[#allocation2 + $0xe8] sm:$0xff] }
 0x358   : > { %v3120_v42 = vmin.f32 %v3088_v39, 20.0  ;;  %v3121_v12 = vmin.f32 %v3089_v44, 20.0  ;;  %v3091_v19 = vmax.f32 %v3059_v18, 0.0  ;;  %v3092_v10 = vmax.f32 %v3060_v53, 0.0  ;;  %2285 = vst.msk [vmem:[#allocation4 + $0x2f0] sm:$0xff] %vm1612_vm4, %v2221_v29  ;;  %v2443_v39 = vld [vmem:[#allocation4 + $0x2e8] sm:$0xff] }
 0x359   : > { %3185 = vrot.lane.b32.xlu0 %v3119_v22, %s6334_s8  ;;  %3181 = vrot.lane.b32.xlu1 %v3117_v52, %s6334_s8  ;;  %v3125_v16 = vmin.f32 %v3093_v0, 20.0  ;;  %v3064_v62 = vadd.f32 %v8221_v20, %v3026_v27  ;;  %v3062_v17 = vadd.f32 %v8221_v20, %v3024_v43  ;;  %v3063_v33 = vadd.f32 %v8221_v20, %v3025_v35  ;;  %v2317_v0 = vld [vmem:[#allocation3 + $0x3b1] sm:$0xff]  ;;  %v3035_v27 = vld [vmem:[#allocation2 + $0x148] sm:$0xff] }
 0x35a   : > { %3183 = vrot.lane.b32.xlu2 %v3118_v32, %s6334_s8  ;;  %v3123_v5 = vmin.f32 %v3091_v19, 20.0  ;;  %v3124_v49 = vmin.f32 %v3092_v10, 20.0  ;;  %v3067_v22 = vadd.f32 %v8221_v20, %v3029_v28  ;;  %v3065_v52 = vadd.f32 %v8221_v20, %v3027_v50  ;;  %v3028_v32 = vld [vmem:[#allocation2 + $0xd8] sm:$0xff]  ;;  %2689 = vmatmul.f32.gmra.mxu2 %v2443_v39  ;;  %2349 = vst.msk [vmem:[#allocation4 + $0x2f8] sm:$0xff] %vm718_vm1, %v2317_v0  ;;  %v3033_v43 = vld [vmem:[#allocation2 + $0x128] sm:$0xff] }
 0x35b   : > { %2781 = vmatmul.f32.gmra.mxu3 %v2423_v37  ;;  %v3096_v61 = vmax.f32 %v3064_v62, 0.0  ;;  %v3094_v25 = vmax.f32 %v3062_v17, 0.0  ;;  %v3095_v24 = vmax.f32 %v3063_v33, 0.0  ;;  %v3066_v21 = vadd.f32 %v8221_v20, %v3028_v32  ;;  %v3034_v35 = vld [vmem:[#allocation2 + $0x138] sm:$0xff]  ;;  %v3037_v32 = vld [vmem:[#allocation2 + $0x168] sm:$0xff] }
 0x35c   : > { %v3099_v37 = vmax.f32 %v3067_v22, 0.0  ;;  %v3097_v56 = vmax.f32 %v3065_v52, 0.0  ;;  %v3070_v38 = vadd.f32 %v8221_v20, %v3032_v63  ;;  %v3068_v18 = vadd.f32 %v8221_v20, %v3030_v41  ;;  %v3038_v28 = vld [vmem:[#allocation2 + $0x178] sm:$0xff]  ;;  %v3039_v63 = vld [vmem:[#allocation2 + $0x188] sm:$0xff] }
 0x35d   : > { %v3128_v51 = vmin.f32 %v3096_v61, 20.0  ;;  %v3126_v9 = vmin.f32 %v3094_v25, 20.0  ;;  %v3127_v8 = vmin.f32 %v3095_v24, 20.0  ;;  %v3098_v44 = vmax.f32 %v3066_v21, 0.0  ;;  %v3036_v50 = vld [vmem:[#allocation2 + $0x158] sm:$0xff] }
 0x35e   : > { %v3069_v53 = vadd.f32 %v8221_v20, %v3031_v7  ;;  %v3102_v19 = vmax.f32 %v3070_v38, 0.0  ;;  %v3100_v10 = vmax.f32 %v3068_v18, 0.0  ;;  %v3073_v62 = vadd.f32 %v8221_v20, %v3035_v27  ;;  %v2441_v21 = vld [vmem:[#allocation4 + $0x2d8] sm:$0xff] }
 0x35f   : > { %v3071_v17 = vadd.f32 %v8221_v20, %v3033_v43  ;;  %v3072_v33 = vadd.f32 %v8221_v20, %v3034_v35  ;;  %v3076_v22 = vadd.f32 %v8221_v20, %v3038_v28  ;;  %v3074_v52 = vadd.f32 %v8221_v20, %v3036_v50  ;;  %v3040_v18 = vld [vmem:[#allocation2 + $0x198] sm:$0xff] }
 0x360   : > { %v3101_v14 = vmax.f32 %v3069_v53, 0.0  ;;  %v3105_v25 = vmax.f32 %v3073_v62, 0.0  ;;  %v3077_v38 = vadd.f32 %v8221_v20, %v3039_v63  ;;  %v3078_v53 = vadd.f32 %v8221_v20, %v3040_v18  ;;  %v3043_v62 = vld [vmem:[#allocation2 + $0x1c8] sm:$0xff]  ;;  %v3046_v50 = vld [vmem:[#allocation2 + $0x1f8] sm:$0xff]  ;;  %v2883_v63 = vpop.f32.mrf.mxu0 }
 0x361   : > { %3191 = vrot.lane.b32.xlu0 %v3122_v23, %s6334_s8  ;;  %3187 = vrot.lane.b32.xlu1 %v3120_v42, %s6334_s8  ;;  %v3131_v23 = vmin.f32 %v3099_v37, 20.0  ;;  %v3129_v42 = vmin.f32 %v3097_v56, 20.0  ;;  %v2445_v61 = vld [vmem:[#allocation4 + $0x2f8] sm:$0xff]  ;;  %v3103_v24 = vmax.f32 %v3071_v17, 0.0  ;;  %v3104_v29 = vmax.f32 %v3072_v33, 0.0 }
 0x362   : > { %3189 = vrot.lane.b32.xlu2 %v3121_v12, %s6334_s8  ;;  %v3130_v12 = vmin.f32 %v3098_v44, 20.0  ;;  %4684 = vst.msk [vmem:[#allocation4 + $0x2f8] sm:$0xff] %vm718_vm1, %v2317_v0  ;;  %v3108_v37 = vmax.f32 %v3076_v22, 0.0  ;;  %v3106_v56 = vmax.f32 %v3074_v52, 0.0  ;;  %v3041_v44 = vld [vmem:[#allocation2 + $0x1a8] sm:$0xff]  ;;  %v3109_v0 = vmax.f32 %v3077_v38, 0.0 }
 0x363   : > { %2784 = vmatmul.f32.gmra.mxu3 %v2426_v13  ;;  %v2435_v13 = vld [vmem:[#allocation4 + $0x2a8] sm:$0xff]  ;;  %v3081_v35 = vadd.f32 %v8221_v20, %v3043_v62  ;;  %v6109_v22 = vld [vmem:[%s9889_s3 + $0x230] sm:$0xff] }
 0x364   : > { %v3140_v41 = vmin.f32 %v3108_v37, 20.0  ;;  %v3141_v43 = vmin.f32 %v3109_v0, 20.0  ;;  %v2657_v37 = vpop.f32.mrf.mxu2 }
 0x368   : > { %v2886_v38 = vpop.f32.mrf.mxu0 }
 0x369   : > { %3197 = vrot.lane.b32.xlu0 %v3125_v16, %s6334_s8  ;;  %3193 = vrot.lane.b32.xlu1 %v3123_v5, %s6334_s8  ;;  %v3134_v16 = vmin.f32 %v3102_v19, 20.0  ;;  %v3132_v5 = vmin.f32 %v3100_v10, 20.0  ;;  %v3110_v19 = vmax.f32 %v3078_v53, 0.0  ;;  %v3044_v10 = vld [vmem:[#allocation2 + $0x1d8] sm:$0xff] }
 0x36a   : > { %3195 = vrot.lane.b32.xlu2 %v3124_v49, %s6334_s8  ;;  %v3133_v49 = vmin.f32 %v3101_v14, 20.0  ;;  %v3042_v14 = vld [vmem:[#allocation2 + $0x1b8] sm:$0xff] }
 0x36b   : > { %2787 = vmatmul.f32.gmra.mxu3 %v2429_v4  ;;  %v2438_v4 = vld [vmem:[#allocation4 + $0x2c0] sm:$0xff]  ;;  %v3142_v17 = vmin.f32 %v3110_v19, 20.0 }
 0x371   : > { %3203 = vrot.lane.b32.xlu0 %v3128_v51, %s6334_s8  ;;  %3199 = vrot.lane.b32.xlu1 %v3126_v9, %s6334_s8  ;;  %v3137_v51 = vmin.f32 %v3105_v25, 20.0  ;;  %v3135_v9 = vmin.f32 %v3103_v24, 20.0  ;;  %v3045_v25 = vld [vmem:[#allocation2 + $0x1e8] sm:$0xff] }
 0x372   : > { %3201 = vrot.lane.b32.xlu2 %v3127_v8, %s6334_s8  ;;  %v3136_v8 = vmin.f32 %v3104_v29, 20.0  ;;  %v3083_v28 = vadd.f32 %v8221_v20, %v3045_v25 }
 0x373   : > { %2790 = vmatmul.f32.gmra.mxu3 %v2432_v60  ;;  %v3075_v60 = vadd.f32 %v8221_v20, %v3037_v32 }
 0x374   : > { %v3115_v52 = vmax.f32 %v3083_v28, 0.0 }
 0x375   : > { %v3107_v39 = vmax.f32 %v3075_v60, 0.0 }
 0x377   : > { %v3139_v7 = vmin.f32 %v3107_v39, 20.0  ;;  %v3405_v39 = vld [vmem:[#allocation3 + $0x8] sm:$0xff] }
 0x379   : > { %3209 = vrot.lane.b32.xlu0 %v3131_v23, %s6334_s8  ;;  %3205 = vrot.lane.b32.xlu1 %v3129_v42, %s6334_s8  ;;  %v3138_v23 = vmin.f32 %v3106_v56, 20.0  ;;  %v3079_v42 = vadd.f32 %v8221_v20, %v3041_v44  ;;  %v6106_v56 = vld [vmem:[%s9889_s3 + $0x218] sm:$0xff] }
 0x37a   : > { %3207 = vrot.lane.b32.xlu2 %v3130_v12, %s6334_s8  ;;  %v2444_v12 = vld [vmem:[#allocation4 + $0x2f0] sm:$0xff]  ;;  %5029 = vmatpush.msra.mxu2 %v6106_v56  ;;  %v6090_v44 = vld [vmem:[%s9889_s3 + $0x198] sm:$0xff] }
 0x37b   : > { %2793 = vmatmul.f32.gmra.mxu3 %v2435_v13  ;;  %v3111_v13 = vmax.f32 %v3079_v42, 0.0  ;;  %4916 = vmatpush.msra.mxu1 %v6090_v44  ;;  %v2660_v42 = vpop.f32.mrf.mxu2  ;;  %v6088_v44 = vld [vmem:[%s9889_s3 + $0x188] sm:$0xff] }
 0x37d   : > { %v3143_v27 = vmin.f32 %v3111_v13, 20.0 }
 0x381   : > { %3215 = vrot.lane.b32.xlu0 %v3134_v16, %s6334_s8  ;;  %3211 = vrot.lane.b32.xlu1 %v3132_v5, %s6334_s8  ;;  %v3082_v16 = vadd.f32 %v8221_v20, %v3044_v10  ;;  %v3080_v5 = vadd.f32 %v8221_v20, %v3042_v14 }
 0x382   : > { %3213 = vrot.lane.b32.xlu2 %v3133_v49, %s6334_s8 }
 0x383   : > { %2796 = vmatmul.f32.gmra.mxu3 %v2438_v4  ;;  %v3114_v49 = vmax.f32 %v3082_v16, 0.0  ;;  %v3112_v33 = vmax.f32 %v3080_v5, 0.0  ;;  %v3113_v4 = vmax.f32 %v3081_v35, 0.0  ;;  %v2661_v5 = vadd.f32 %v8101_v58, %v2660_v42  ;;  %v2889_v35 = vpop.f32.mrf.mxu0 }
 0x385   : > { %v3146_v24 = vmin.f32 %v3114_v49, 20.0  ;;  %v3144_v29 = vmin.f32 %v3112_v33, 20.0 }
 0x389   : > { %3221 = vrot.lane.b32.xlu0 %v3137_v51, %s6334_s8  ;;  %3217 = vrot.lane.b32.xlu1 %v3135_v9, %s6334_s8  ;;  %v3145_v51 = vmin.f32 %v3113_v4, 20.0  ;;  %v3084_v9 = vadd.f32 %v8221_v20, %v3046_v50  ;;  %v6108_v20 = vld [vmem:[%s9889_s3 + $0x228] sm:$0xff] }
 0x38a   : > { %3219 = vrot.lane.b32.xlu2 %v3136_v8, %s6334_s8  ;;  %v3147_v8 = vmin.f32 %v3115_v52, 20.0 }
 0x38b   : > { %2799 = vmatmul.f32.gmra.mxu3 %v2441_v21  ;;  %v3116_v32 = vmax.f32 %v3084_v9, 0.0  ;;  %v6107_v21 = vld [vmem:[%s9889_s3 + $0x220] sm:$0xff] }
 0x38d   : > { %v3148_v60 = vmin.f32 %v3116_v32, 20.0 }
 0x391   : > { %3227 = vrot.lane.b32.xlu0 %v3140_v41, %s6334_s8  ;;  %3223 = vrot.lane.b32.xlu1 %v3138_v23, %s6334_s8 }
 0x392   : > { %3225 = vrot.lane.b32.xlu2 %v3139_v7, %s6334_s8  ;;  %v2658_v7 = vadd.f32 %v8101_v58, %v2657_v37 }
 0x393   : > { %2802 = vmatmul.f32.gmra.mxu3 %v2444_v12 }
 0x399   : > { %3233 = vrot.lane.b32.xlu0 %v3143_v27, %s6334_s8  ;;  %3229 = vrot.lane.b32.xlu1 %v3141_v43, %s6334_s8  ;;  %v6089_v27 = vld [vmem:[%s9889_s3 + $0x190] sm:$0xff] }
 0x39a   : > { %3231 = vrot.lane.b32.xlu2 %v3142_v17, %s6334_s8  ;;  %4917 = vmatpush.msra.mxu1 %v6089_v27 }
 0x39b   : > { %6074 = vmatmul.msk.f32.vlgmr.msra.gmra.mxu3 %vm718_vm1, %v2445_v61  ;;  %v6110_v61 = vld [vmem:[%s9889_s3 + $0x238] sm:$0xff] }
 0x39c   : > { %5154 = vmatpush.msrb.mxu3 %v6110_v61  ;;  %4918 = vmatpush.msra.mxu1 %v6088_v44 }
 0x39e   : > { %5155 = vmatpush.msrb.mxu3 %v6109_v22 }
 0x3a0   : > { %5156 = vmatpush.msrb.mxu3 %v6108_v20  ;;  %v3413_v20 = vld [vmem:[#allocation3 + $0xf8] sm:$0xff] }
 0x3a1   : > { %3239 = vrot.lane.b32.xlu0 %v3146_v24, %s6334_s8  ;;  %3235 = vrot.lane.b32.xlu1 %v3144_v29, %s6334_s8 }
 0x3a2   : > { %3237 = vrot.lane.b32.xlu2 %v3145_v51, %s6334_s8  ;;  %5157 = vmatpush.msrb.mxu3 %v6107_v21 }
 0x3a9   : > { %3241 = vrot.lane.b32.xlu1 %v3147_v8, %s6334_s8  ;;  %3469 = vrot.lane.b32.xlu0 %v3405_v39, %s6332_s23 }
 0x3aa   : > { %3243 = vrot.lane.b32.xlu2 %v3148_v60, %s6334_s8  ;;  %v2892_v60 = vpop.f32.mrf.mxu0 }
 0x3b4   : > { %v3184_v41 = vpop.permute.xlu2 %3183 }
 0x3b5   : > { %v3278_v23 = vadd.f32 %v3184_v41, %v7754_v48  ;;  %v2663_v48 = vpop.f32.mrf.mxu2 }
 0x3b6   : > { %v2664_v32 = vadd.f32 %v8101_v58, %v2663_v48 }
 0x3b7   : > { %3310 = vst.msk [vmem:[#allocation3 + $0x38] sm:$0xff] %vm718_vm1, %v3278_v23 }
 0x3bc   : > { %v3190_v18 = vpop.permute.xlu2 %3189 }
 0x3bd   : > { %v3281_v12 = vadd.f32 %v3190_v18, %v7869_v1  ;;  %v6105_v1 = vld [vmem:[%s9889_s3 + $0x210] sm:$0xff]  ;;  %v2666_v28 = vpop.f32.mrf.mxu2 }
 0x3be   : > { %v2770_v53 = vpop.f32.mrf.mxu3  ;;  %v8315_v13 = vld [vmem:[#allocation3 + $0x38] sm:$0xff]  ;;  %5030 = vmatpush.msra.mxu2 %v6105_v1 }
 0x3bf   : > { %v8317_v0 = vld [vmem:[#allocation3 + $0x39] sm:$0xff]  ;;  %3313 = vst.msk [vmem:[#allocation3 + $0x80] sm:$0xff] %vm718_vm1, %v3281_v12  ;;  %v2771_v10 = vadd.f32 %v2770_v53, %v2658_v7  ;;  %3473 = vrot.lane.b32.xlu2 %v8315_v13, %s6332_s23  ;;  %v2667_v12 = vadd.f32 %v8101_v58, %v2666_v28 }
 0x3c0   : > { %v8319_v19 = vld [vmem:[#allocation3 + $0x37] sm:$0xff]  ;;  %4653 = vst.msk [vmem:[#allocation4 + $0x10] sm:$0xff] %vm718_vm1, %v8317_v0 }
 0x3c1   : > { %v2884_v14 = vadd.f32 %v2883_v63, %v2771_v10  ;;  %3375 = vst.msk [vmem:[#allocation4 + $0x30] sm:$0xff] %vm718_vm1, %v8319_v19 }
 0x3c2   : > { %4014 = vst.msk [vmem:[#allocation4 + $0x20] sm:$0xff] %vm718_vm1, %v8315_v13 }
 0x3c3   : > { %v2939_v43 = vmax.f32 %v2884_v14, 0.0 }
 0x3c4   : > { %v3196_v16 = vpop.permute.xlu2 %3195 }
 0x3c5   : > { %v3284_v62 = vadd.f32 %v3196_v16, %v7989_v36  ;;  %v8338_v17 = vmin.f32 %v2939_v43, 20.0  ;;  %v2669_v63 = vpop.f32.mrf.mxu2 }
 0x3c6   : > { %v2773_v49 = vpop.f32.mrf.mxu3  ;;  %v8340_v33 = vld [vmem:[#allocation3 + $0x80] sm:$0xff] }
 0x3c7   : > { %v8342_v4 = vld [vmem:[#allocation3 + $0x81] sm:$0xff]  ;;  %3316 = vst.msk [vmem:[#allocation3 + $0xc8] sm:$0xff] %vm718_vm1, %v3284_v62  ;;  %v2774_v25 = vadd.f32 %v2773_v49, %v2661_v5  ;;  %v4687_v24 = vld [vmem:[#allocation4 + $0x10] sm:$0xff]  ;;  %3479 = vrot.lane.b32.xlu2 %v8340_v33, %s6332_s23 }
 0x3c8   : > { %v8347_v29 = vld [vmem:[#allocation3 + $0x7f] sm:$0xff]  ;;  %6111 = vmatmul.msk.f32.vlgmr.msrb.gmra.mxu3 %vm718_vm1, %v4687_v24  ;;  %4656 = vst.msk [vmem:[#allocation4 + $0x58] sm:$0xff] %vm718_vm1, %v8342_v4 }
 0x3c9   : > { %v2887_v36 = vadd.f32 %v2886_v38, %v2774_v25  ;;  %3003 = vst.msk [vmem:[#allocation5 + $0xa0] sm:$0xff] %vm718_vm1, %v8338_v17 }
 0x3ca   : > { %3378 = vst.msk [vmem:[#allocation4 + $0x78] sm:$0xff] %vm718_vm1, %v8347_v29 }
 0x3cb   : > { %v3186_v50 = vpop.permute.xlu0 %3185  ;;  %v3182_v51 = vpop.permute.xlu1 %3181  ;;  %v2940_v9 = vmax.f32 %v2887_v36, 0.0 }
 0x3cc   : > { %v3279_v61 = vadd.f32 %v3186_v50, %v7801_v11  ;;  %v3277_v22 = vadd.f32 %v3182_v51, %v7673_v55  ;;  %v3202_v52 = vpop.permute.xlu2 %3201  ;;  %v6104_v55 = vld [vmem:[%s9889_s3 + $0x208] sm:$0xff]  ;;  %v8424_v50 = vld [vmem:[%s9890_s4] ss:$0 sm:$0xff] }
 0x3cd   : > { %v3287_v8 = vadd.f32 %v3202_v52, %v8078_v45  ;;  %v8360_v21 = vmin.f32 %v2940_v9, 20.0  ;;  %5031 = vmatpush.msra.mxu2 %v6104_v55  ;;  %v2672_v25 = vpop.f32.mrf.mxu2  ;;  %v2670_v51 = vadd.f32 %v8424_v50, %v2669_v63 }
 0x3ce   : > { %3311 = vst.msk [vmem:[#allocation3 + $0x50] sm:$0xff] %vm718_vm1, %v3279_v61  ;;  %v2776_v37 = vpop.f32.mrf.mxu3  ;;  %v8365_v11 = vld [vmem:[#allocation3 + $0xc9] sm:$0xff] }
 0x3cf   : > { %3309 = vst.msk [vmem:[#allocation3 + $0x20] sm:$0xff] %vm718_vm1, %v3277_v22  ;;  %v2777_v56 = vadd.f32 %v2776_v37, %v2664_v32  ;;  %3485 = vrot.lane.b32.xlu2 %v3413_v20, %s6332_s23  ;;  %v8371_v45 = vld [vmem:[#allocation3 + $0xc8] sm:$0xff]  ;;  %v6103_v32 = vld [vmem:[%s9889_s3 + $0x200] sm:$0xff] }
 0x3d0   : > { %3319 = vst.msk [vmem:[#allocation3 + $0x140] sm:$0xff] %vm718_vm1, %v3287_v8  ;;  %5032 = vmatpush.msra.mxu2 %v6103_v32 }
 0x3d1   : > { %v2890_v39 = vadd.f32 %v2889_v35, %v2777_v56  ;;  %3004 = vst.msk [vmem:[#allocation5 + $0xa8] sm:$0xff] %vm718_vm1, %v8360_v21 }
 0x3d2   : > { %4659 = vst.msk [vmem:[#allocation4 + $0xa0] sm:$0xff] %vm718_vm1, %v8365_v11 }
 0x3d3   : > { %v3192_v41 = vpop.permute.xlu0 %3191  ;;  %v3188_v23 = vpop.permute.xlu1 %3187  ;;  %v2941_v42 = vmax.f32 %v2890_v39, 0.0  ;;  %4020 = vst.msk [vmem:[#allocation4 + $0xb0] sm:$0xff] %vm718_vm1, %v8371_v45 }
 0x3d4   : > { %v3282_v38 = vadd.f32 %v3192_v41, %v7942_v59  ;;  %v3280_v18 = vadd.f32 %v3188_v23, %v7826_v30  ;;  %v3208_v7 = vpop.permute.xlu2 %3207 }
 0x3d5   : > { %v3290_v53 = vadd.f32 %v3208_v7, %v8146_v31  ;;  %v8386_v10 = vld [vmem:[#allocation3 + $0x50] sm:$0xff]  ;;  %v8395_v59 = vmin.f32 %v2941_v42, 20.0  ;;  %v2895_v31 = vpop.f32.mrf.mxu0  ;;  %v2675_v23 = vpop.f32.mrf.mxu2  ;;  %v2673_v7 = vadd.f32 %v8424_v50, %v2672_v25 }
 0x3d6   : > { %3314 = vst.msk [vmem:[#allocation3 + $0x98] sm:$0xff] %vm718_vm1, %v3282_v38  ;;  %v2779_v48 = vpop.f32.mrf.mxu3  ;;  %3475 = vrot.lane.b32.xlu0 %v8386_v10, %s6332_s23  ;;  %v8391_v1 = vld [vmem:[#allocation3 + $0x20] sm:$0xff]  ;;  %v8393_v14 = vld [vmem:[#allocation3 + $0x51] sm:$0xff]  ;;  %v2676_v32 = vadd.f32 %v8424_v50, %v2675_v23 }
 0x3d7   : > { %3312 = vst.msk [vmem:[#allocation3 + $0x68] sm:$0xff] %vm718_vm1, %v3280_v18  ;;  %v2780_v30 = vadd.f32 %v2779_v48, %v2667_v12  ;;  %v8398_v58 = vld [vmem:[#allocation3 + $0x140] sm:$0xff]  ;;  %3471 = vrot.lane.b32.xlu1 %v8391_v1, %s6332_s23  ;;  %v8413_v5 = vld [vmem:[#allocation3 + $0x4f] sm:$0xff]  ;;  %v4696_v23 = vld [vmem:[#allocation4 + $0x58] sm:$0xff] }
 0x3d8   : > { %3322 = vst.msk [vmem:[#allocation3 + $0x188] sm:$0xff] %vm718_vm1, %v3290_v53  ;;  %3491 = vrot.lane.b32.xlu2 %v8398_v58, %s6332_s23  ;;  %v8405_v27 = vld [vmem:[#allocation3 + $0x141] sm:$0xff] }
 0x3d9   : > { %v2893_v43 = vadd.f32 %v2892_v60, %v2780_v30  ;;  %4654 = vst.msk [vmem:[#allocation4 + $0x28] sm:$0xff] %vm718_vm1, %v8393_v14  ;;  %v8409_v16 = vld [vmem:[#allocation3 + $0x13f] sm:$0xff] }
 0x3da   : > { %3005 = vst.msk [vmem:[#allocation5 + $0xb0] sm:$0xff] %vm718_vm1, %v8395_v59  ;;  %v8491_v25 = vld [vmem:[#allocation3 + $0x1f] sm:$0xff] }
 0x3db   : > { %v3198_v62 = vpop.permute.xlu0 %3197  ;;  %v3194_v35 = vpop.permute.xlu1 %3193  ;;  %v2942_v49 = vmax.f32 %v2893_v43, 0.0  ;;  %4662 = vst.msk [vmem:[#allocation4 + $0xe8] sm:$0xff] %vm718_vm1, %v8405_v27 }
 0x3dc   : > { %v3285_v24 = vadd.f32 %v3198_v62, %v8035_v6  ;;  %v3283_v28 = vadd.f32 %v3194_v35, %v7963_v34  ;;  %v3214_v36 = vpop.permute.xlu2 %3213  ;;  %3384 = vst.msk [vmem:[#allocation4 + $0x108] sm:$0xff] %vm718_vm1, %v8409_v16 }
 0x3dd   : > { %v3293_v9 = vadd.f32 %v3214_v36, %v8184_v54  ;;  %v8428_v61 = vld [vmem:[#allocation3 + $0x98] sm:$0xff]  ;;  %3376 = vst.msk [vmem:[#allocation4 + $0x48] sm:$0xff] %vm718_vm1, %v8413_v5  ;;  %v8447_v8 = vmin.f32 %v2942_v49, 20.0  ;;  %v2898_v55 = vpop.f32.mrf.mxu0  ;;  %v6087_v49 = vld [vmem:[%s9889_s3 + $0x180] sm:$0xff] }
 0x3de   : > { %3317 = vst.msk [vmem:[#allocation3 + $0x110] sm:$0xff] %vm718_vm1, %v3285_v24  ;;  %v2782_v34 = vpop.f32.mrf.mxu3  ;;  %3481 = vrot.lane.b32.xlu0 %v8428_v61, %s6332_s23  ;;  %v8435_v6 = vld [vmem:[#allocation3 + $0x68] sm:$0xff]  ;;  %v8442_v54 = vld [vmem:[#allocation3 + $0x99] sm:$0xff]  ;;  %4919 = vmatpush.msra.mxu1 %v6087_v49 }
 0x3df   : > { %v8437_v22 = vld [vmem:[#allocation3 + $0x69] sm:$0xff]  ;;  %3315 = vst.msk [vmem:[#allocation3 + $0xb0] sm:$0xff] %vm718_vm1, %v3283_v28  ;;  %v2783_v52 = vadd.f32 %v2782_v34, %v2670_v51  ;;  %3477 = vrot.lane.b32.xlu1 %v8435_v6, %s6332_s23  ;;  %v8495_v24 = vld [vmem:[#allocation3 + $0x97] sm:$0xff] }
 0x3e0   : > { %v3419_v20 = vld [vmem:[#allocation3 + $0x188] sm:$0xff]  ;;  %3325 = vst.msk [vmem:[#allocation3 + $0x200] sm:$0xff] %vm718_vm1, %v3293_v9 }
 0x3e1   : > { %v4690_v60 = vld [vmem:[#allocation4 + $0x28] sm:$0xff]  ;;  %3497 = vrot.lane.b32.xlu2 %v3419_v20, %s6332_s23  ;;  %v2896_v37 = vadd.f32 %v2895_v31, %v2783_v52  ;;  %4655 = vst.msk [vmem:[#allocation4 + $0x40] sm:$0xff] %vm718_vm1, %v8437_v22 }
 0x3e2   : > { %6112 = vmatmul.msk.f32.gmra.mxu3 %vm718_vm1, %v4690_v60  ;;  %v8454_v56 = vld [vmem:[#allocation3 + $0x189] sm:$0xff]  ;;  %4657 = vst.msk [vmem:[#allocation4 + $0x70] sm:$0xff] %vm718_vm1, %v8442_v54 }
 0x3e3   : > { %v8458_v39 = vld [vmem:[#allocation3 + $0x187] sm:$0xff]  ;;  %v3204_v44 = vpop.permute.xlu0 %3203  ;;  %v3200_v63 = vpop.permute.xlu1 %3199  ;;  %3006 = vst.msk [vmem:[#allocation5 + $0xb8] sm:$0xff] %vm718_vm1, %v8447_v8  ;;  %v2943_v41 = vmax.f32 %v2896_v37, 0.0 }
 0x3e4   : > { %v3288_v42 = vadd.f32 %v3204_v44, %v8113_v15  ;;  %v3286_v38 = vadd.f32 %v3200_v63, %v8051_v26  ;;  %v3220_v18 = vpop.permute.xlu2 %3219  ;;  %4665 = vst.msk [vmem:[#allocation4 + $0x130] sm:$0xff] %vm718_vm1, %v8454_v56  ;;  %v2678_v44 = vpop.f32.mrf.mxu2 }
 0x3e5   : > { %v3296_v12 = vadd.f32 %v3220_v18, %v8216_v2  ;;  %v3414_v53 = vld [vmem:[#allocation3 + $0x110] sm:$0xff]  ;;  %3387 = vst.msk [vmem:[#allocation4 + $0x150] sm:$0xff] %vm718_vm1, %v8458_v39  ;;  %v8476_v30 = vmin.f32 %v2943_v41, 20.0  ;;  %v2901_v9 = vpop.f32.mrf.mxu0  ;;  %v8529_v18 = vld [vmem:[#allocation3 + $0x67] sm:$0xff] }
 0x3e6   : > { %3320 = vst.msk [vmem:[#allocation3 + $0x158] sm:$0xff] %vm718_vm1, %v3288_v42  ;;  %v2785_v48 = vpop.f32.mrf.mxu3  ;;  %3487 = vrot.lane.b32.xlu0 %v3414_v53, %s6332_s23  ;;  %v8472_v15 = vld [vmem:[#allocation3 + $0xb0] sm:$0xff] }
 0x3e7   : > { %v8474_v26 = vld [vmem:[#allocation3 + $0xb1] sm:$0xff]  ;;  %3318 = vst.msk [vmem:[#allocation3 + $0x128] sm:$0xff] %vm718_vm1, %v3286_v38  ;;  %v2786_v31 = vadd.f32 %v2785_v48, %v2673_v7  ;;  %v3422_v43 = vld [vmem:[#allocation3 + $0x200] sm:$0xff]  ;;  %3483 = vrot.lane.b32.xlu1 %v8472_v15, %s6332_s23 }
 0x3e8   : > { %3328 = vst.msk [vmem:[#allocation3 + $0x248] sm:$0xff] %vm718_vm1, %v3296_v12  ;;  %v4693_v2 = vld [vmem:[#allocation4 + $0x40] sm:$0xff]  ;;  %v6086_v7 = vld [vmem:[%s9889_s3 + $0x178] sm:$0xff]  ;;  %v8536_v12 = vld [vmem:[#allocation3 + $0x10f] sm:$0xff] }
 0x3e9   : > { %3503 = vrot.lane.b32.xlu2 %v3422_v43, %s6332_s23  ;;  %v8483_v62 = vld [vmem:[#allocation3 + $0x1ff] sm:$0xff]  ;;  %v2899_v35 = vadd.f32 %v2898_v55, %v2786_v31  ;;  %4658 = vst.msk [vmem:[#allocation4 + $0x88] sm:$0xff] %vm718_vm1, %v8474_v26  ;;  %4920 = vmatpush.msra.mxu1 %v6086_v7  ;;  %v3421_v7 = vld [vmem:[#allocation3 + $0x1e8] sm:$0xff] }
 0x3ea   : > { %6113 = vmatmul.msk.f32.gmra.mxu3 %vm718_vm1, %v4693_v2  ;;  %3007 = vst.msk [vmem:[#allocation5 + $0xc0] sm:$0xff] %vm718_vm1, %v8476_v30 }
 0x3eb   : > { %v3210_v28 = vpop.permute.xlu0 %3209  ;;  %v3206_v36 = vpop.permute.xlu1 %3205  ;;  %v2944_v51 = vmax.f32 %v2899_v35, 0.0  ;;  %3390 = vst.msk [vmem:[#allocation4 + $0x198] sm:$0xff] %vm718_vm1, %v8483_v62  ;;  %v2679_v35 = vadd.f32 %v8424_v50, %v2678_v44 }
 0x3ec   : > { %v3291_v34 = vadd.f32 %v3210_v28, %v8160_v40  ;;  %v3289_v52 = vadd.f32 %v3206_v36, %v8128_v47  ;;  %v3226_v20 = vpop.permute.xlu2 %3225  ;;  %3374 = vst.msk [vmem:[#allocation4 + $0x18] sm:$0xff] %vm718_vm1, %v8491_v25 }
 0x3ed   : > { %v3299_v60 = vadd.f32 %v3226_v20, %v8395_v59  ;;  %v8505_v37 = vld [vmem:[#allocation3 + $0x158] sm:$0xff]  ;;  %v2976_v55 = vmin.f32 %v2944_v51, 20.0  ;;  %3379 = vst.msk [vmem:[#allocation4 + $0x90] sm:$0xff] %vm718_vm1, %v8495_v24  ;;  %v2904_v51 = vpop.f32.mrf.mxu0  ;;  %v4699_v20 = vld [vmem:[#allocation4 + $0x70] sm:$0xff] }
 0x3ee   : > { %3323 = vst.msk [vmem:[#allocation3 + $0x1a0] sm:$0xff] %vm718_vm1, %v3291_v34  ;;  %v2788_v40 = vpop.f32.mrf.mxu3  ;;  %3493 = vrot.lane.b32.xlu0 %v8505_v37, %s6332_s23  ;;  %v8512_v47 = vld [vmem:[#allocation3 + $0x128] sm:$0xff]  ;;  %v6102_v59 = vld [vmem:[%s9889_s3 + $0x1f8] sm:$0xff] }
 0x3ef   : > { %3321 = vst.msk [vmem:[#allocation3 + $0x170] sm:$0xff] %vm718_vm1, %v3289_v52  ;;  %v2789_v63 = vadd.f32 %v2788_v40, %v2676_v32  ;;  %3489 = vrot.lane.b32.xlu1 %v8512_v47, %s6332_s23  ;;  %v8520_v41 = vld [vmem:[#allocation3 + $0x129] sm:$0xff]  ;;  %5033 = vmatpush.msra.mxu2 %v6102_v59  ;;  %v8525_v42 = vld [vmem:[#allocation3 + $0x159] sm:$0xff]  ;;  %v2681_v52 = vpop.f32.mrf.mxu2 }
 0x3f0   : > { %3331 = vst.msk [vmem:[#allocation3 + $0x290] sm:$0xff] %vm718_vm1, %v3299_v60  ;;  %v8570_v44 = vld [vmem:[#allocation3 + $0x157] sm:$0xff] }
 0x3f1   : > { %4493 = vrot.lane.b32.xlu2 %v8315_v13, %s6334_s8  ;;  %v2902_v38 = vadd.f32 %v2901_v9, %v2789_v63  ;;  %3008 = vst.msk [vmem:[#allocation5 + $0xc8] sm:$0xff] %vm718_vm1, %v2976_v55 }
 0x3f2   : > { %6114 = vmatmul.msk.f32.gmra.mxu3 %vm718_vm1, %v4696_v23  ;;  %4661 = vst.msk [vmem:[#allocation4 + $0xd0] sm:$0xff] %vm718_vm1, %v8520_v41 }
 0x3f3   : > { %v3216_v13 = vpop.permute.xlu0 %3215  ;;  %v3212_v53 = vpop.permute.xlu1 %3211  ;;  %v2945_v48 = vmax.f32 %v2902_v38, 0.0  ;;  %4663 = vst.msk [vmem:[#allocation4 + $0x100] sm:$0xff] %vm718_vm1, %v8525_v42 }
 0x3f4   : > { %v3294_v31 = vadd.f32 %v3216_v13, %v8201_v46  ;;  %v3292_v43 = vadd.f32 %v3212_v53, %v8168_v57  ;;  %v3232_v2 = vpop.permute.xlu2 %3231  ;;  %3377 = vst.msk [vmem:[#allocation4 + $0x60] sm:$0xff] %vm718_vm1, %v8529_v18  ;;  %v2682_v13 = vadd.f32 %v8424_v50, %v2681_v52  ;;  %v4045_v53 = vld [vmem:[#allocation3 + $0x21] sm:$0xff] }
 0x3f5   : > { %v3302_v49 = vadd.f32 %v3232_v2, %v2976_v55  ;;  %v3420_v28 = vld [vmem:[#allocation3 + $0x1a0] sm:$0xff]  ;;  %v8545_v36 = vmin.f32 %v2945_v48, 20.0  ;;  %3382 = vst.msk [vmem:[#allocation4 + $0xd8] sm:$0xff] %vm718_vm1, %v8536_v12  ;;  %v8566_v55 = vld [vmem:[#allocation3 + $0xaf] sm:$0xff] }
 0x3f6   : > { %3326 = vst.msk [vmem:[#allocation3 + $0x218] sm:$0xff] %vm718_vm1, %v3294_v31  ;;  %v2791_v9 = vpop.f32.mrf.mxu3  ;;  %3499 = vrot.lane.b32.xlu0 %v3420_v28, %s6332_s23  ;;  %v8551_v57 = vld [vmem:[#allocation3 + $0x170] sm:$0xff]  ;;  %v8561_v32 = vld [vmem:[#allocation3 + $0x1a1] sm:$0xff] }
 0x3f7   : > { %3324 = vst.msk [vmem:[#allocation3 + $0x1b8] sm:$0xff] %vm718_vm1, %v3292_v43  ;;  %v2792_v46 = vadd.f32 %v2791_v9, %v2679_v35  ;;  %3495 = vrot.lane.b32.xlu1 %v8551_v57, %s6332_s23  ;;  %v8556_v34 = vld [vmem:[#allocation3 + $0x171] sm:$0xff]  ;;  %v2907_v35 = vpop.f32.mrf.mxu0  ;;  %v4702_v28 = vld [vmem:[#allocation4 + $0x88] sm:$0xff]  ;;  %v8606_v52 = vld [vmem:[#allocation3 + $0x19f] sm:$0xff] }
 0x3f8   : > { %3334 = vst.msk [vmem:[#allocation3 + $0x308] sm:$0xff] %vm718_vm1, %v3302_v49  ;;  %v2684_v49 = vpop.f32.mrf.mxu2 }
 0x3f9   : > { %4111 = vrot.lane.b32.xlu2 %v8317_v0, %s6332_s23  ;;  %v2905_v60 = vadd.f32 %v2904_v51, %v2792_v46  ;;  %3009 = vst.msk [vmem:[#allocation5 + $0xd0] sm:$0xff] %vm718_vm1, %v8545_v36  ;;  %v8597_v51 = vld [vmem:[#allocation3 + $0x127] sm:$0xff] }
 0x3fa   : > { %6115 = vmatmul.msk.f32.gmra.mxu3 %vm718_vm1, %v4699_v20  ;;  %4664 = vst.msk [vmem:[#allocation4 + $0x118] sm:$0xff] %vm718_vm1, %v8556_v34  ;;  %v8602_v46 = vld [vmem:[#allocation3 + $0x249] sm:$0xff] }
 0x3fb   : > { %v3222_v40 = vpop.permute.xlu0 %3221  ;;  %v3218_v63 = vpop.permute.xlu1 %3217  ;;  %v2946_v59 = vmax.f32 %v2905_v60, 0.0  ;;  %4666 = vst.msk [vmem:[#allocation4 + $0x148] sm:$0xff] %vm718_vm1, %v8561_v32 }
 0x3fc   : > { %v3297_v23 = vadd.f32 %v3222_v40, %v8338_v17  ;;  %v3295_v38 = vadd.f32 %v3218_v63, %v8207_v3  ;;  %3380 = vst.msk [vmem:[#allocation4 + $0xa8] sm:$0xff] %vm718_vm1, %v8566_v55  ;;  %v6101_v3 = vld [vmem:[%s9889_s3 + $0x1f0] sm:$0xff] }
 0x3fd   : > { %v8579_v48 = vmin.f32 %v2946_v59, 20.0  ;;  %3385 = vst.msk [vmem:[#allocation4 + $0x120] sm:$0xff] %vm718_vm1, %v8570_v44  ;;  %5034 = vmatpush.msra.mxu2 %v6101_v3  ;;  %v8592_v2 = vld [vmem:[#allocation3 + $0x219] sm:$0xff]  ;;  %v3597_v63 = vld [vmem:[#allocation3 + $0x9] sm:$0xff] }
 0x3fe   : > { %3329 = vst.msk [vmem:[#allocation3 + $0x260] sm:$0xff] %vm718_vm1, %v3297_v23  ;;  %v2794_v31 = vpop.f32.mrf.mxu3  ;;  %4109 = vrot.lane.b32.xlu0 %v4045_v53, %s6332_s23  ;;  %v8588_v17 = vld [vmem:[#allocation3 + $0x1b9] sm:$0xff] }
 0x3ff   : > { %3327 = vst.msk [vmem:[#allocation3 + $0x230] sm:$0xff] %vm718_vm1, %v3295_v38  ;;  %v2795_v43 = vadd.f32 %v2794_v31, %v2682_v13  ;;  %3501 = vrot.lane.b32.xlu1 %v3421_v7, %s6332_s23  ;;  %v2685_v38 = vadd.f32 %v8424_v50, %v2684_v49  ;;  %v3238_v13 = vpop.permute.xlu2 %3237  ;;  %v2910_v3 = vpop.f32.mrf.mxu0 }
 0x400   : > { %3010 = vst.msk [vmem:[#allocation5 + $0xd8] sm:$0xff] %vm718_vm1, %v8579_v48 }
 0x401   : > { %3663 = vrot.lane.b32.xlu2 %v4045_v53, %s6333_s29  ;;  %v2908_v9 = vadd.f32 %v2907_v35, %v2795_v43  ;;  %4667 = vst.msk [vmem:[#allocation4 + $0x160] sm:$0xff] %vm718_vm1, %v8588_v17  ;;  %v4705_v43 = vld [vmem:[#allocation4 + $0xa0] sm:$0xff] }
 0x402   : > { %6116 = vmatmul.msk.f32.gmra.mxu3 %vm718_vm1, %v4702_v28  ;;  %4669 = vst.msk [vmem:[#allocation4 + $0x190] sm:$0xff] %vm718_vm1, %v8592_v2  ;;  %v3349_v28 = vld [vmem:[#allocation3 + $0xf7] sm:$0xff] }
 0x403   : > { %v2947_v20 = vmax.f32 %v2908_v9, 0.0  ;;  %v3228_v60 = vpop.permute.xlu0 %3227  ;;  %v3224_v40 = vpop.permute.xlu1 %3223  ;;  %3383 = vst.msk [vmem:[#allocation4 + $0xf0] sm:$0xff] %vm718_vm1, %v8597_v51  ;;  %v8632_v9 = vld [vmem:[#allocation3 + $0x16f] sm:$0xff] }
 0x404   : > { %v3300_v59 = vadd.f32 %v3228_v60, %v8447_v8  ;;  %v3298_v23 = vadd.f32 %v3224_v40, %v8360_v21  ;;  %4671 = vst.msk [vmem:[#allocation4 + $0x1c0] sm:$0xff] %vm718_vm1, %v8602_v46  ;;  %v6085_v21 = vld [vmem:[%s9889_s3 + $0x170] sm:$0xff]  ;;  %v6100_v60 = vld [vmem:[%s9889_s3 + $0x1e8] sm:$0xff] }
 0x405   : > { %v2979_v7 = vmin.f32 %v2947_v20, 20.0  ;;  %3388 = vst.msk [vmem:[#allocation4 + $0x168] sm:$0xff] %vm718_vm1, %v8606_v52  ;;  %4921 = vmatpush.msra.mxu1 %v6085_v21  ;;  %v2687_v20 = vpop.f32.mrf.mxu2  ;;  %v8638_v40 = vld [vmem:[#allocation3 + $0x261] sm:$0xff]  ;;  %5035 = vmatpush.msra.mxu2 %v6100_v60 }
 0x406   : > { %3332 = vst.msk [vmem:[#allocation3 + $0x2a8] sm:$0xff] %vm718_vm1, %v3300_v59  ;;  %v2797_v53 = vpop.f32.mrf.mxu3  ;;  %3661 = vrot.lane.b32.xlu0 %v3597_v63, %s6333_s29  ;;  %v8628_v35 = vld [vmem:[#allocation3 + $0x231] sm:$0xff] }
 0x407   : > { %v3305_v31 = vadd.f32 %v3238_v13, %v2979_v7  ;;  %3011 = vst.msk [vmem:[#allocation5 + $0xe0] sm:$0xff] %vm718_vm1, %v2979_v7  ;;  %v2798_v8 = vadd.f32 %v2797_v53, %v2685_v38  ;;  %4301 = vrot.lane.b32.xlu1 %v8319_v19, %s6333_s29  ;;  %v2688_v13 = vadd.f32 %v8424_v50, %v2687_v20  ;;  %v2913_v21 = vpop.f32.mrf.mxu0 }
 0x408   : > { %3330 = vst.msk [vmem:[#allocation3 + $0x278] sm:$0xff] %vm718_vm1, %v3298_v23 }
 0x409   : > { %4305 = vrot.lane.b32.xlu2 %v8529_v18, %s6333_s29  ;;  %3337 = vst.msk [vmem:[#allocation3 + $0x350] sm:$0xff] %vm718_vm1, %v3305_v31  ;;  %v2911_v49 = vadd.f32 %v2910_v3, %v2798_v8  ;;  %v4708_v8 = vld [vmem:[#allocation4 + $0xb8] sm:$0xff]  ;;  %v3983_v3 = vld [vmem:[#allocation3 + $0x50] sm:$0xff] }
 0x40a   : > { %6117 = vmatmul.msk.f32.gmra.mxu3 %vm718_vm1, %v4705_v43  ;;  %3381 = vst.msk [vmem:[#allocation4 + $0xc0] sm:$0xff] %vm718_vm1, %v3349_v28  ;;  %v8658_v43 = vpop.permute.xlu2 %3243  ;;  %v3984_v28 = vld [vmem:[#allocation3 + $0x68] sm:$0xff] }
 0x40b   : > { %v3234_v63 = vpop.permute.xlu0 %3233  ;;  %v3230_v59 = vpop.permute.xlu1 %3229  ;;  %v2948_v23 = vmax.f32 %v2911_v49, 0.0  ;;  %4670 = vst.msk [vmem:[#allocation4 + $0x1a8] sm:$0xff] %vm718_vm1, %v8628_v35 }
 0x40c   : > { %v3303_v38 = vadd.f32 %v3234_v63, %v8545_v36  ;;  %v3301_v7 = vadd.f32 %v3230_v59, %v8476_v30  ;;  %3386 = vst.msk [vmem:[#allocation4 + $0x138] sm:$0xff] %vm718_vm1, %v8632_v9  ;;  %v3985_v30 = vld [vmem:[#allocation3 + $0x80] sm:$0xff] }
 0x40d   : > { %v2980_v53 = vmin.f32 %v2948_v23, 20.0  ;;  %4672 = vst.msk [vmem:[#allocation4 + $0x1d8] sm:$0xff] %vm718_vm1, %v8638_v40 }
 0x40e   : > { %3335 = vst.msk [vmem:[#allocation3 + $0x320] sm:$0xff] %vm718_vm1, %v3303_v38  ;;  %v2800_v31 = vpop.f32.mrf.mxu3  ;;  %4303 = vrot.lane.b32.xlu0 %v8413_v5, %s6333_s29 }
 0x40f   : > { %3333 = vst.msk [vmem:[#allocation3 + $0x2f0] sm:$0xff] %vm718_vm1, %v3301_v7  ;;  %v2801_v36 = vadd.f32 %v2800_v31, %v2688_v13  ;;  %3853 = vrot.lane.b32.xlu1 %v8491_v25, %s6334_s8  ;;  %v3986_v25 = vld [vmem:[#allocation3 + $0x98] sm:$0xff]  ;;  %v2690_v7 = vpop.f32.mrf.mxu2  ;;  %v3987_v13 = vld [vmem:[#allocation3 + $0xb0] sm:$0xff] }
 0x410   : > { %3012 = vst.msk [vmem:[#allocation5 + $0xe8] sm:$0xff] %vm718_vm1, %v2980_v53  ;;  %v2691_v31 = vadd.f32 %v8424_v50, %v2690_v7  ;;  %v3993_v7 = vld [vmem:[#allocation3 + $0x170] sm:$0xff] }
 0x411   : > { %3857 = vrot.lane.b32.xlu2 %v8413_v5, %s6334_s8  ;;  %v2914_v49 = vadd.f32 %v2913_v21, %v2801_v36  ;;  %4013 = vst.msk [vmem:[#allocation4 + $0x8] sm:$0xff] %vm718_vm1, %v8391_v1  ;;  %v6084_v5 = vld [vmem:[%s9889_s3 + $0x168] sm:$0xff] }
 0x412   : > { %6118 = vmatmul.msk.f32.gmra.mxu3 %vm718_vm1, %v4708_v8  ;;  %4017 = vst.msk [vmem:[#allocation4 + $0x68] sm:$0xff] %vm718_vm1, %v3985_v30  ;;  %4922 = vmatpush.msra.mxu1 %v6084_v5  ;;  %v3990_v36 = vld [vmem:[#allocation3 + $0x128] sm:$0xff] }
 0x413   : > { %v3240_v20 = vpop.permute.xlu0 %3239  ;;  %v3236_v60 = vpop.permute.xlu1 %3235  ;;  %v2949_v63 = vmax.f32 %v2914_v49, 0.0  ;;  %4015 = vst.msk [vmem:[#allocation4 + $0x38] sm:$0xff] %vm718_vm1, %v3983_v3  ;;  %v8688_v21 = vld [vmem:[#allocation3 + $0x188] sm:$0xff]  ;;  %v3992_v3 = vld [vmem:[#allocation3 + $0x158] sm:$0xff] }
 0x414   : > { %v3306_v59 = vadd.f32 %v3240_v20, %v2980_v53  ;;  %v3304_v23 = vadd.f32 %v3236_v60, %v8579_v48  ;;  %4016 = vst.msk [vmem:[#allocation4 + $0x50] sm:$0xff] %vm718_vm1, %v3984_v28  ;;  %v4711_v48 = vld [vmem:[#allocation4 + $0xd0] sm:$0xff]  ;;  %v3991_v53 = vld [vmem:[#allocation3 + $0x140] sm:$0xff]  ;;  %v4714_v20 = vld [vmem:[#allocation4 + $0xe8] sm:$0xff] }
 0x415   : > { %v2981_v1 = vmin.f32 %v2949_v63, 20.0  ;;  %4018 = vst.msk [vmem:[#allocation4 + $0x80] sm:$0xff] %vm718_vm1, %v3986_v25  ;;  %v3997_v28 = vld [vmem:[#allocation3 + $0x200] sm:$0xff] }
 0x416   : > { %3338 = vst.msk [vmem:[#allocation3 + $0x368] sm:$0xff] %vm718_vm1, %v3306_v59  ;;  %v2803_v38 = vpop.f32.mrf.mxu3  ;;  %3855 = vrot.lane.b32.xlu0 %v8319_v19, %s6334_s8  ;;  %v3989_v19 = vld [vmem:[#allocation3 + $0x110] sm:$0xff]  ;;  %v3341_v5 = vld [vmem:[#allocation3 + $0x7] sm:$0xff] }
 0x417   : > { %3336 = vst.msk [vmem:[#allocation3 + $0x338] sm:$0xff] %vm718_vm1, %v3304_v23  ;;  %4495 = vrot.lane.b32.xlu1 %v8386_v10, %s6334_s8  ;;  %v6099_v10 = vld [vmem:[%s9889_s3 + $0x1e0] sm:$0xff]  ;;  %v2804_v50 = vadd.f32 %v2803_v38, %v2691_v31 }
 0x418   : > { %3013 = vst.msk [vmem:[#allocation5 + $0xf0] sm:$0xff] %vm718_vm1, %v2981_v1  ;;  %5036 = vmatpush.msra.mxu2 %v6099_v10  ;;  %v6083_v23 = vld [vmem:[%s9889_s3 + $0x160] sm:$0xff]  ;;  %v4720_v10 = vld [vmem:[#allocation4 + $0x118] sm:$0xff] }
 0x419   : > { %4499 = vrot.lane.b32.xlu2 %v8340_v33, %s6334_s8  ;;  %v3474_v8 = vpop.permute.xlu2 %3473  ;;  %4019 = vst.msk [vmem:[#allocation4 + $0x98] sm:$0xff] %vm718_vm1, %v3987_v13  ;;  %4923 = vmatpush.msra.mxu1 %v6083_v23  ;;  %v4717_v13 = vld [vmem:[#allocation4 + $0x100] sm:$0xff]  ;;  %v4648_v23 = vld [vmem:[#allocation3 + $0x351] sm:$0xff] }
 0x41a   : > { %6119 = vmatmul.msk.f32.gmra.mxu3 %vm718_vm1, %v4711_v48  ;;  %3567 = vst.msk [vmem:[#allocation4 + $0x30] sm:$0xff] %vm1226_vm2, %v3474_v8  ;;  %v8723_v48 = vld [vmem:[#allocation3 + $0x279] sm:$0xff] }
 0x41b   : > { %v3242_v30 = vpop.permute.xlu1 %3241  ;;  %4023 = vst.msk [vmem:[#allocation4 + $0xf8] sm:$0xff] %vm718_vm1, %v3991_v53  ;;  %v3470_v59 = vpop.permute.xlu0 %3469  ;;  %v8729_v53 = vld [vmem:[#allocation3 + $0x309] sm:$0xff]  ;;  %v8731_v31 = vld [vmem:[#allocation3 + $0x1a0] sm:$0xff]  ;;  %v8741_v8 = vld [vmem:[#allocation3 + $0x218] sm:$0xff] }
 0x41c   : > { %v3307_v33 = vadd.f32 %v3242_v30, %v2981_v1  ;;  %4021 = vst.msk [vmem:[#allocation4 + $0xc8] sm:$0xff] %vm718_vm1, %v3989_v19  ;;  %v8709_v1 = vld [vmem:[#allocation3 + $0x291] sm:$0xff]  ;;  %v8753_v30 = vld [vmem:[#allocation3 + $0x247] sm:$0xff] }
 0x41d   : > { %4022 = vst.msk [vmem:[#allocation4 + $0xe0] sm:$0xff] %vm718_vm1, %v3990_v36  ;;  %v8743_v19 = vld [vmem:[#allocation3 + $0x217] sm:$0xff]  ;;  %v8747_v36 = vld [vmem:[#allocation3 + $0x248] sm:$0xff] }
 0x41e   : > { %3339 = vst.msk [vmem:[#allocation3 + $0x380] sm:$0xff] %vm718_vm1, %v3307_v33  ;;  %v2916_v49 = vpop.f32.mrf.mxu3  ;;  %4497 = vrot.lane.b32.xlu0 %v8435_v6, %s6334_s8  ;;  %v8768_v33 = vld [vmem:[#allocation3 + $0x230] sm:$0xff] }
 0x41f   : > { %v2917_v25 = vadd.f32 %v2916_v49, %v2804_v50  ;;  %4113 = vrot.lane.b32.xlu1 %v8393_v14, %s6332_s23  ;;  %4026 = vst.msk [vmem:[#allocation4 + $0x140] sm:$0xff] %vm718_vm1, %v8688_v21  ;;  %v6082_v49 = vld [vmem:[%s9889_s3 + $0x158] sm:$0xff] }
 0x420   : > { %4024 = vst.msk [vmem:[#allocation4 + $0x110] sm:$0xff] %vm718_vm1, %v3992_v3  ;;  %v8772_v3 = vld [vmem:[#allocation3 + $0x260] sm:$0xff]  ;;  %4924 = vmatpush.msra.mxu1 %v6082_v49 }
 0x421   : > { %4117 = vrot.lane.b32.xlu2 %v8342_v4, %s6332_s23  ;;  %v2950_v60 = vmax.f32 %v2917_v25, 0.0  ;;  %v3480_v63 = vpop.permute.xlu2 %3479  ;;  %4029 = vst.msk [vmem:[#allocation4 + $0x188] sm:$0xff] %vm718_vm1, %v3997_v28  ;;  %v8780_v28 = vld [vmem:[#allocation3 + $0x25f] sm:$0xff]  ;;  %v8782_v25 = vld [vmem:[#allocation3 + $0x290] sm:$0xff] }
 0x422   : > { %6120 = vmatmul.msk.f32.gmra.mxu3 %vm718_vm1, %v4714_v20  ;;  %3570 = vst.msk [vmem:[#allocation4 + $0x78] sm:$0xff] %vm1226_vm2, %v3480_v63  ;;  %v8786_v20 = vld [vmem:[#allocation3 + $0x308] sm:$0xff]  ;;  %v4723_v63 = vld [vmem:[#allocation4 + $0x130] sm:$0xff]  ;;  %v8854_v49 = vld [vmem:[#allocation3 + $0x31f] sm:$0xff] }
 0x423   : > { %v2982_v6 = vmin.f32 %v2950_v60, 20.0  ;;  %3373 = vst.msk [vmem:[#allocation4] sm:$0xff] %vm718_vm1, %v3341_v5  ;;  %v8792_v60 = vld [vmem:[#allocation3 + $0x28f] sm:$0xff] }
 0x424   : > { %3565 = vst.msk [vmem:[#allocation4] sm:$0xff] %vm1226_vm2, %v3470_v59  ;;  %v8805_v5 = vld [vmem:[#allocation3 + $0x2a9] sm:$0xff]  ;;  %v8817_v59 = vld [vmem:[#allocation3 + $0x277] sm:$0xff] }
 0x425   : > { %v3308_v38 = vadd.f32 %v8658_v43, %v2982_v6  ;;  %3014 = vst.msk [vmem:[#allocation5 + $0xf8] sm:$0xff] %vm718_vm1, %v2982_v6  ;;  %v8807_v6 = vld [vmem:[#allocation3 + $0x278] sm:$0xff] }
 0x426   : > { %4115 = vrot.lane.b32.xlu0 %v8437_v22, %s6332_s23  ;;  %4674 = vst.msk [vmem:[#allocation4 + $0x208] sm:$0xff] %vm718_vm1, %v8709_v1 }
 0x427   : > { %3340 = vst.msk [vmem:[#allocation3 + $0x398] sm:$0xff] %vm718_vm1, %v3308_v38  ;;  %3665 = vrot.lane.b32.xlu1 %v8317_v0, %s6333_s29  ;;  %v8734_v0 = vld [vmem:[#allocation3 + $0x1b8] sm:$0xff]  ;;  %v8819_v38 = vld [vmem:[#allocation3 + $0x2a8] sm:$0xff] }
 0x428   : > { %4025 = vst.msk [vmem:[#allocation4 + $0x128] sm:$0xff] %vm718_vm1, %v3993_v7  ;;  %v8824_v7 = vld [vmem:[#allocation3 + $0x350] sm:$0xff] }
 0x429   : > { %3669 = vrot.lane.b32.xlu2 %v8437_v22, %s6333_s29  ;;  %v3486_v43 = vpop.permute.xlu2 %3485  ;;  %4673 = vst.msk [vmem:[#allocation4 + $0x1f0] sm:$0xff] %vm718_vm1, %v8723_v48  ;;  %v6098_v22 = vld [vmem:[%s9889_s3 + $0x1d8] sm:$0xff] }
 0x42a   : > { %6121 = vmatmul.msk.f32.gmra.mxu3 %vm718_vm1, %v4717_v13  ;;  %3573 = vst.msk [vmem:[#allocation4 + $0xc0] sm:$0xff] %vm1226_vm2, %v3486_v43  ;;  %5037 = vmatpush.msra.mxu2 %v6098_v22  ;;  %v8828_v13 = vld [vmem:[#allocation3 + $0x307] sm:$0xff] }
 0x42b   : > { %4677 = vst.msk [vmem:[#allocation4 + $0x250] sm:$0xff] %vm718_vm1, %v8729_v53  ;;  %v4726_v43 = vld [vmem:[#allocation4 + $0x148] sm:$0xff] }
 0x42c   : > { %4027 = vst.msk [vmem:[#allocation4 + $0x158] sm:$0xff] %vm718_vm1, %v8731_v31 }
 0x42d   : > { %4028 = vst.msk [vmem:[#allocation4 + $0x170] sm:$0xff] %vm718_vm1, %v8734_v0 }
 0x42e   : > { %3667 = vrot.lane.b32.xlu0 %v8393_v14, %s6333_s29  ;;  %4030 = vst.msk [vmem:[#allocation4 + $0x1a0] sm:$0xff] %vm718_vm1, %v8741_v8  ;;  %v8766_v14 = vld [vmem:[#allocation3 + $0x22f] sm:$0xff] }
 0x42f   : > { %4307 = vrot.lane.b32.xlu1 %v8347_v29, %s6333_s29  ;;  %3391 = vst.msk [vmem:[#allocation4 + $0x1b0] sm:$0xff] %vm718_vm1, %v8743_v19 }
 0x430   : > { %4032 = vst.msk [vmem:[#allocation4 + $0x1d0] sm:$0xff] %vm718_vm1, %v8747_v36 }
 0x431   : > { %4311 = vrot.lane.b32.xlu2 %v8566_v55, %s6333_s29  ;;  %3393 = vst.msk [vmem:[#allocation4 + $0x1e0] sm:$0xff] %vm718_vm1, %v8753_v30 }
 0x432   : > { %6122 = vmatmul.msk.f32.gmra.mxu3 %vm718_vm1, %v4720_v10  ;;  %v3492_v50 = vpop.permute.xlu2 %3491  ;;  %4031 = vst.msk [vmem:[#allocation4 + $0x1b8] sm:$0xff] %vm718_vm1, %v8768_v33  ;;  %v8847_v10 = vld [vmem:[#allocation3 + $0x2f0] sm:$0xff] }
 0x433   : > { %3576 = vst.msk [vmem:[#allocation4 + $0x108] sm:$0xff] %vm1226_vm2, %v3492_v50  ;;  %v8852_v50 = vld [vmem:[#allocation3 + $0x320] sm:$0xff] }
 0x434   : > { %3392 = vst.msk [vmem:[#allocation4 + $0x1c8] sm:$0xff] %vm718_vm1, %v8766_v14 }
 0x435   : > { %4033 = vst.msk [vmem:[#allocation4 + $0x1e8] sm:$0xff] %vm718_vm1, %v8772_v3 }
 0x436   : > { %4309 = vrot.lane.b32.xlu0 %v8495_v24, %s6333_s29  ;;  %3394 = vst.msk [vmem:[#allocation4 + $0x1f8] sm:$0xff] %vm718_vm1, %v8780_v28 }
 0x437   : > { %3859 = vrot.lane.b32.xlu1 %v8529_v18, %s6334_s8  ;;  %4035 = vst.msk [vmem:[#allocation4 + $0x218] sm:$0xff] %vm718_vm1, %v8782_v25 }
 0x438   : > { %4038 = vst.msk [vmem:[#allocation4 + $0x260] sm:$0xff] %vm718_vm1, %v8786_v20 }
 0x439   : > { %3863 = vrot.lane.b32.xlu2 %v8495_v24, %s6334_s8  ;;  %3396 = vst.msk [vmem:[#allocation4 + $0x228] sm:$0xff] %vm718_vm1, %v8792_v60  ;;  %v6097_v24 = vld [vmem:[%s9889_s3 + $0x1d0] sm:$0xff] }
 0x43a   : > { %6123 = vmatmul.msk.f32.gmra.mxu3 %vm718_vm1, %v4723_v63  ;;  %4675 = vst.msk [vmem:[#allocation4 + $0x220] sm:$0xff] %vm718_vm1, %v8805_v5  ;;  %5038 = vmatpush.msra.mxu2 %v6097_v24  ;;  %v8858_v63 = vld [vmem:[#allocation3 + $0x34f] sm:$0xff] }
 0x43b   : > { %v3498_v18 = vpop.permute.xlu2 %3497  ;;  %4034 = vst.msk [vmem:[#allocation4 + $0x200] sm:$0xff] %vm718_vm1, %v8807_v6 }
 0x43c   : > { %3579 = vst.msk [vmem:[#allocation4 + $0x150] sm:$0xff] %vm1226_vm2, %v3498_v18  ;;  %v4729_v18 = vld [vmem:[#allocation4 + $0x160] sm:$0xff] }
 0x43d   : > { %4680 = vst.msk [vmem:[#allocation4 + $0x298] sm:$0xff] %vm718_vm1, %v4648_v23  ;;  %v4647_v23 = vld [vmem:[#allocation3 + $0x339] sm:$0xff] }
 0x43e   : > { %9904 = vst [vmem:[#allocation9_spill] sm:$0xff] %v8824_v7  ;;  %3861 = vrot.lane.b32.xlu0 %v8347_v29, %s6334_s8  ;;  %v4646_v29 = vld [vmem:[#allocation3 + $0x321] sm:$0xff] }
 0x43f   : > { %3395 = vst.msk [vmem:[#allocation4 + $0x210] sm:$0xff] %vm718_vm1, %v8817_v59  ;;  %4501 = vrot.lane.b32.xlu1 %v8428_v61, %s6334_s8  ;;  %v6081_v61 = vld [vmem:[%s9889_s3 + $0x150] sm:$0xff] }
 0x440   : > { %4036 = vst.msk [vmem:[#allocation4 + $0x230] sm:$0xff] %vm718_vm1, %v8819_v38  ;;  %4925 = vmatpush.msra.mxu1 %v6081_v61  ;;  %v6096_v61 = vld [vmem:[%s9889_s3 + $0x1c8] sm:$0xff] }
 0x441   : > { %4505 = vrot.lane.b32.xlu2 %v8371_v45, %s6334_s8  ;;  %4041 = vst.msk [vmem:[#allocation4 + $0x2a8] sm:$0xff] %vm718_vm1, %v8824_v7  ;;  %v8850_v45 = vld [vmem:[#allocation3 + $0x2ef] sm:$0xff]  ;;  %5039 = vmatpush.msra.mxu2 %v6096_v61  ;;  %v3357_v7 = vld [vmem:[#allocation3 + $0x1e7] sm:$0xff] }
 0x442   : > { %6124 = vmatmul.msk.f32.gmra.mxu3 %vm718_vm1, %v4726_v43  ;;  %3399 = vst.msk [vmem:[#allocation4 + $0x270] sm:$0xff] %vm718_vm1, %v8828_v13 }
 0x443   : > { %v3504_v22 = vpop.permute.xlu2 %3503  ;;  %4678 = vst.msk [vmem:[#allocation4 + $0x268] sm:$0xff] %vm718_vm1, %v4646_v29  ;;  %v4649_v29 = vld [vmem:[#allocation3 + $0x369] sm:$0xff] }
 0x444   : > { %3582 = vst.msk [vmem:[#allocation4 + $0x198] sm:$0xff] %vm1226_vm2, %v3504_v22  ;;  %v8879_v22 = vld [vmem:[#allocation3 + $0x337] sm:$0xff] }
 0x445   : > { %3398 = vst.msk [vmem:[#allocation4 + $0x258] sm:$0xff] %vm718_vm1, %v8850_v45 }
 0x446   : > { %4037 = vst.msk [vmem:[#allocation4 + $0x248] sm:$0xff] %vm718_vm1, %v8847_v10  ;;  %4503 = vrot.lane.b32.xlu0 %v8472_v15, %s6334_s8 }
 0x447   : > { %4039 = vst.msk [vmem:[#allocation4 + $0x278] sm:$0xff] %vm718_vm1, %v8852_v50  ;;  %4119 = vrot.lane.b32.xlu1 %v8442_v54, %s6332_s23 }
 0x448   : > { %3400 = vst.msk [vmem:[#allocation4 + $0x288] sm:$0xff] %vm718_vm1, %v8854_v49  ;;  %v3476_v24 = vpop.permute.xlu0 %3475 }
 0x449   : > { %4123 = vrot.lane.b32.xlu2 %v8365_v11, %s6332_s23  ;;  %3402 = vst.msk [vmem:[#allocation4 + $0x2b8] sm:$0xff] %vm718_vm1, %v8858_v63  ;;  %v3472_v15 = vpop.permute.xlu1 %3471  ;;  %v8882_v11 = vld [vmem:[#allocation3 + $0x338] sm:$0xff] }
 0x44a   : > { %6125 = vmatmul.msk.f32.gmra.mxu3 %vm718_vm1, %v4729_v18  ;;  %3568 = vst.msk [vmem:[#allocation4 + $0x48] sm:$0xff] %vm1226_vm2, %v3476_v24  ;;  %v8888_v18 = vld [vmem:[#allocation3 + $0x368] sm:$0xff] }
 0x44b   : > { %v8876_v43 = vpop.permute.xlu2 %4493  ;;  %3566 = vst.msk [vmem:[#allocation4 + $0x18] sm:$0xff] %vm1226_vm2, %v3472_v15  ;;  %v8890_v24 = vld [vmem:[#allocation3 + $0x367] sm:$0xff]  ;;  %v4732_v15 = vld [vmem:[#allocation4 + $0x178] sm:$0xff] }
 0x44c   : > { %4679 = vst.msk [vmem:[#allocation4 + $0x280] sm:$0xff] %vm718_vm1, %v4647_v23 }
 0x44d   : > { %4681 = vst.msk [vmem:[#allocation4 + $0x2b0] sm:$0xff] %vm718_vm1, %v4649_v29 }
 0x44e   : > { %9905 = vst [vmem:[#allocation10_spill] sm:$0xff] %v8888_v18  ;;  %4121 = vrot.lane.b32.xlu0 %v8474_v26, %s6332_s23 }
 0x44f   : > { %3401 = vst.msk [vmem:[#allocation4 + $0x2a0] sm:$0xff] %vm718_vm1, %v8879_v22  ;;  %3671 = vrot.lane.b32.xlu1 %v8342_v4, %s6333_s29  ;;  %v6080_v4 = vld [vmem:[%s9889_s3 + $0x148] sm:$0xff] }
 0x450   : > { %4040 = vst.msk [vmem:[#allocation4 + $0x290] sm:$0xff] %vm718_vm1, %v8882_v11  ;;  %v3482_v23 = vpop.permute.xlu0 %3481  ;;  %4926 = vmatpush.msra.mxu1 %v6080_v4  ;;  %v4244_v4 = vld [vmem:[#allocation3 + $0xdf] sm:$0xff] }
 0x451   : > { %4042 = vst.msk [vmem:[#allocation4 + $0x2c0] sm:$0xff] %vm718_vm1, %v8888_v18  ;;  %3675 = vrot.lane.b32.xlu2 %v8474_v26, %s6333_s29  ;;  %v3478_v29 = vpop.permute.xlu1 %3477  ;;  %v4650_v18 = vld [vmem:[#allocation3 + $0x381] sm:$0xff] }
 0x452   : > { %3403 = vst.msk [vmem:[#allocation4 + $0x2d0] sm:$0xff] %vm718_vm1, %v8890_v24  ;;  %6126 = vmatmul.msk.f32.gmra.mxu3 %vm718_vm1, %v4732_v15  ;;  %v8913_v26 = vld [vmem:[#allocation3 + $0x37f] sm:$0xff] }
 0x453   : > { %3571 = vst.msk [vmem:[#allocation4 + $0x90] sm:$0xff] %vm1226_vm2, %v3482_v23  ;;  %v4112_v61 = vpop.permute.xlu2 %4111  ;;  %v8916_v15 = vld [vmem:[#allocation3 + $0x380] sm:$0xff] }
 0x454   : > { %3569 = vst.msk [vmem:[#allocation4 + $0x60] sm:$0xff] %vm1226_vm2, %v3478_v29  ;;  %v4243_v23 = vld [vmem:[#allocation3 + $0xc7] sm:$0xff]  ;;  %v4735_v29 = vld [vmem:[#allocation4 + $0x190] sm:$0xff] }
 0x455   : > { %4206 = vst.msk [vmem:[#allocation4 + $0x20] sm:$0xff] %vm1226_vm2, %v4112_v61  ;;  %v4651_v61 = vld [vmem:[#allocation3 + $0x399] sm:$0xff] }
 0x456   : > { %9906 = vst [vmem:[#allocation11_spill] sm:$0xff] %v8913_v26  ;;  %3673 = vrot.lane.b32.xlu0 %v8442_v54, %s6333_s29 }
 0x457   : > { %3389 = vst.msk [vmem:[#allocation4 + $0x180] sm:$0xff] %vm718_vm1, %v3357_v7  ;;  %4313 = vrot.lane.b32.xlu1 %v4243_v23, %s6333_s29 }
 0x458   : > { %9907 = vst [vmem:[#allocation12_spill] sm:$0xff] %v8916_v15  ;;  %v3488_v7 = vpop.permute.xlu0 %3487 }
 0x459   : > { %4682 = vst.msk [vmem:[#allocation4 + $0x2c8] sm:$0xff] %vm718_vm1, %v4650_v18  ;;  %4317 = vrot.lane.b32.xlu2 %v8597_v51, %s6333_s29  ;;  %v3484_v18 = vpop.permute.xlu1 %3483 }
 0x45a   : > { %3404 = vst.msk [vmem:[#allocation4 + $0x2e8] sm:$0xff] %vm718_vm1, %v8913_v26  ;;  %6127 = vmatmul.msk.f32.gmra.mxu3 %vm718_vm1, %v4735_v29  ;;  %v8932_v26 = vld [vmem:[#allocation3 + $0x398] sm:$0xff] }
 0x45b   : > { %4043 = vst.msk [vmem:[#allocation4 + $0x2d8] sm:$0xff] %vm718_vm1, %v8916_v15  ;;  %v3664_v54 = vpop.permute.xlu2 %3663  ;;  %v6095_v15 = vld [vmem:[%s9889_s3 + $0x1c0] sm:$0xff]  ;;  %v6094_v29 = vld [vmem:[%s9889_s3 + $0x1b8] sm:$0xff] }
 0x45c   : > { %3574 = vst.msk [vmem:[#allocation4 + $0xd8] sm:$0xff] %vm1226_vm2, %v3488_v7  ;;  %5040 = vmatpush.msra.mxu2 %v6095_v15  ;;  %v6093_v7 = vld [vmem:[%s9889_s3 + $0x1b0] sm:$0xff] }
 0x45d   : > { %3572 = vst.msk [vmem:[#allocation4 + $0xa8] sm:$0xff] %vm1226_vm2, %v3484_v18  ;;  %v4738_v18 = vld [vmem:[#allocation4 + $0x1a8] sm:$0xff] }
 0x45e   : > { %3758 = vst.msk [vmem:[#allocation4 + $0x18] sm:$0xff] %vm1419_vm3, %v3664_v54  ;;  %4315 = vrot.lane.b32.xlu0 %v4244_v4, %s6333_s29  ;;  %5041 = vmatpush.msra.mxu2 %v6094_v29  ;;  %v4436_v29 = vld [vmem:[#allocation3 + $0xe0] sm:$0xff] }
 0x45f   : > { %4683 = vst.msk [vmem:[#allocation4 + $0x2e0] sm:$0xff] %vm718_vm1, %v4651_v61  ;;  %3865 = vrot.lane.b32.xlu1 %v8566_v55, %s6334_s8  ;;  %v6092_v61 = vld [vmem:[%s9889_s3 + $0x1a8] sm:$0xff]  ;;  %v6079_v55 = vld [vmem:[%s9889_s3 + $0x140] sm:$0xff] }
 0x460   : > { %4044 = vst.msk [vmem:[#allocation4 + $0x2f0] sm:$0xff] %vm718_vm1, %v8932_v26  ;;  %v3494_v54 = vpop.permute.xlu0 %3493  ;;  %5042 = vmatpush.msra.mxu2 %v6093_v7  ;;  %4927 = vmatpush.msra.mxu1 %v6079_v55  ;;  %v6078_v7 = vld [vmem:[%s9889_s3 + $0x138] sm:$0xff] }
 0x461   : > { %3869 = vrot.lane.b32.xlu2 %v8536_v12, %s6334_s8  ;;  %3577 = vst.msk [vmem:[#allocation4 + $0x120] sm:$0xff] %vm1226_vm2, %v3494_v54  ;;  %v3490_v15 = vpop.permute.xlu1 %3489  ;;  %v6091_v12 = vld [vmem:[%s9889_s3 + $0x1a0] sm:$0xff]  ;;  %v6076_v54 = vld [vmem:[%s9889_s3 + $0x128] sm:$0xff] }
 0x462   : > { %6128 = vmatmul.msk.f32.gmra.mxu3 %vm718_vm1, %v4738_v18  ;;  %3575 = vst.msk [vmem:[#allocation4 + $0xf0] sm:$0xff] %vm1226_vm2, %v3490_v15  ;;  %5043 = vmatpush.msra.mxu2 %v6092_v61  ;;  %v6077_v18 = vld [vmem:[%s9889_s3 + $0x130] sm:$0xff]  ;;  %v4741_v15 = vld [vmem:[#allocation4 + $0x1c0] sm:$0xff] }
 0x463   : > { %v8959_v4 = vpop.permute.xlu2 %4305  ;;  %4928 = vmatpush.msra.mxu1 %v6078_v7 }
 0x464   : > { %5044 = vmatpush.msra.mxu2 %v6091_v12 }
 0x465   : > { %4929 = vmatpush.msra.mxu1 %v6077_v18 }
 0x466   : > { %3867 = vrot.lane.b32.xlu0 %v4243_v23, %s6334_s8  ;;  %v6075_v23 = vld [vmem:[%s9889_s3 + $0x120] sm:$0xff] }
 0x467   : > { %4507 = vrot.lane.b32.xlu1 %v4436_v29, %s6334_s8  ;;  %4930 = vmatpush.msra.mxu1 %v6076_v54  ;;  %v4744_v29 = vld [vmem:[#allocation4 + $0x1d8] sm:$0xff] }
 0x468   : > { %v3500_v61 = vpop.permute.xlu0 %3499 }
 0x469   : > { %4511 = vrot.lane.b32.xlu2 %v8398_v58, %s6334_s8  ;;  %3580 = vst.msk [vmem:[#allocation4 + $0x168] sm:$0xff] %vm1226_vm2, %v3500_v61  ;;  %v3496_v55 = vpop.permute.xlu1 %3495  ;;  %4931 = vmatpush.msra.mxu1 %v6075_v23  ;;  %v4053_v58 = vld [vmem:[#allocation3 + $0x111] sm:$0xff] }
 0x46a   : > { %6129 = vmatmul.msk.f32.gmra.mxu3 %vm718_vm1, %v4741_v15  ;;  %3578 = vst.msk [vmem:[#allocation4 + $0x138] sm:$0xff] %vm1226_vm2, %v3496_v55  ;;  %v3605_v15 = vld [vmem:[#allocation3 + $0xf9] sm:$0xff] }
 0x46b   : > { %v8983_v12 = vpop.permute.xlu2 %3857 }
 0x46e   : > { %4509 = vrot.lane.b32.xlu0 %v8512_v47, %s6334_s8  ;;  %v4747_v47 = vld [vmem:[#allocation4 + $0x1f0] sm:$0xff] }
 0x46f   : > { %4125 = vrot.lane.b32.xlu1 %v4053_v58, %s6332_s23 }
 0x470   : > { %v4110_v7 = vpop.permute.xlu0 %4109 }
 0x471   : > { %4129 = vrot.lane.b32.xlu2 %v8405_v27, %s6332_s23  ;;  %4205 = vst.msk [vmem:[#allocation4 + $0x8] sm:$0xff] %vm1226_vm2, %v4110_v7  ;;  %v3502_v18 = vpop.permute.xlu1 %3501 }
 0x472   : > { %6130 = vmatmul.msk.f32.gmra.mxu3 %vm718_vm1, %v4744_v29  ;;  %3581 = vst.msk [vmem:[#allocation4 + $0x180] sm:$0xff] %vm1226_vm2, %v3502_v18 }
 0x473   : > { %v8993_v54 = vpop.permute.xlu2 %4499 }
 0x476   : > { %4127 = vrot.lane.b32.xlu0 %v8520_v41, %s6332_s23 }
 0x477   : > { %3677 = vrot.lane.b32.xlu1 %v3605_v15, %s6333_s29 }
 0x478   : > { %v3662_v61 = vpop.permute.xlu0 %3661 }
 0x479   : > { %3681 = vrot.lane.b32.xlu2 %v8520_v41, %s6333_s29  ;;  %3757 = vst.msk [vmem:[#allocation4] sm:$0xff] %vm1419_vm3, %v3662_v61  ;;  %v4302_v55 = vpop.permute.xlu1 %4301  ;;  %v4750_v41 = vld [vmem:[#allocation4 + $0x208] sm:$0xff] }
 0x47a   : > { %6131 = vmatmul.msk.f32.gmra.mxu3 %vm718_vm1, %v4747_v47  ;;  %4397 = vst.msk [vmem:[#allocation4 + $0x8] sm:$0xff] %vm1419_vm3, %v4302_v55 }
 0x47b   : > { %v4118_v23 = vpop.permute.xlu2 %4117  ;;  %4589 = vst.msk [vmem:[#allocation4 + $0x8] sm:$0xff] %vm1612_vm4, %v8876_v43 }
 0x47c   : > { %4209 = vst.msk [vmem:[#allocation4 + $0x68] sm:$0xff] %vm1226_vm2, %v4118_v23  ;;  %v4756_v23 = vld [vmem:[#allocation4 + $0x238] sm:$0xff] }
 0x47e   : > { %3679 = vrot.lane.b32.xlu0 %v4053_v58, %s6333_s29  ;;  %v4753_v58 = vld [vmem:[#allocation4 + $0x220] sm:$0xff] }
 0x47f   : > { %4319 = vrot.lane.b32.xlu1 %v8409_v16, %s6333_s29 }
 0x480   : > { %v4304_v29 = vpop.permute.xlu0 %4303 }
 0x481   : > { %4323 = vrot.lane.b32.xlu2 %v8632_v9, %s6333_s29  ;;  %4398 = vst.msk [vmem:[#allocation4 + $0x20] sm:$0xff] %vm1419_vm3, %v4304_v29  ;;  %v3854_v7 = vpop.permute.xlu1 %3853 }
 0x482   : > { %6132 = vmatmul.msk.f32.gmra.mxu3 %vm718_vm1, %v4750_v41  ;;  %3949 = vst.msk [vmem:[#allocation4] sm:$0xff] %vm1612_vm4, %v3854_v7  ;;  %v4686_v43 = vld [vmem:[#allocation4 + $0x8] sm:$0xff] }
 0x483   : > { %v3670_v18 = vpop.permute.xlu2 %3669  ;;  %5045 = vmatmul.f32.vlgmr.msra.gmra.mxu2 %v4686_v43 }
 0x484   : > { %3761 = vst.msk [vmem:[#allocation4 + $0x60] sm:$0xff] %vm1419_vm3, %v3670_v18 }
 0x486   : > { %4321 = vrot.lane.b32.xlu0 %v8570_v44, %s6333_s29 }
 0x487   : > { %3871 = vrot.lane.b32.xlu1 %v8597_v51, %s6334_s8  ;;  %v9029_v51 = vpop.f32.mrf.mxu3 }
 0x488   : > { %v3856_v15 = vpop.permute.xlu0 %3855 }
 0x489   : > { %3875 = vrot.lane.b32.xlu2 %v8570_v44, %s6334_s8  ;;  %3950 = vst.msk [vmem:[#allocation4 + $0x18] sm:$0xff] %vm1612_vm4, %v3856_v15  ;;  %v4496_v47 = vpop.permute.xlu1 %4495  ;;  %v4685_v61 = vld [vmem:[#allocation4] sm:$0xff] }
 0x48a   : > { %6133 = vmatmul.msk.f32.gmra.mxu3 %vm718_vm1, %v4753_v58  ;;  %4590 = vst.msk [vmem:[#allocation4 + $0x20] sm:$0xff] %vm1612_vm4, %v4496_v47  ;;  %4932 = vmatmul.f32.vlgmr.msra.gmra.mxu1 %v4685_v61  ;;  %v4762_v58 = vld [vmem:[#allocation4 + $0x268] sm:$0xff] }
 0x48b   : > { %v9024_v55 = vpop.permute.xlu2 %4311 }
 0x48e   : > { %3873 = vrot.lane.b32.xlu0 %v8409_v16, %s6334_s8 }
 0x48f   : > { %4513 = vrot.lane.b32.xlu1 %v8505_v37, %s6334_s8  ;;  %v9044_v16 = vpop.f32.mrf.mxu3  ;;  %v4759_v37 = vld [vmem:[#allocation4 + $0x250] sm:$0xff] }
 0x490   : > { %v4498_v44 = vpop.permute.xlu0 %4497  ;;  %v4688_v41 = vld [vmem:[#allocation4 + $0x18] sm:$0xff] }
 0x491   : > { %4517 = vrot.lane.b32.xlu2 %v8688_v21, %s6334_s8  ;;  %v4114_v29 = vpop.permute.xlu1 %4113  ;;  %v4689_v7 = vld [vmem:[#allocation4 + $0x20] sm:$0xff] }
 0x492   : > { %6134 = vmatmul.msk.f32.gmra.mxu3 %vm718_vm1, %v4756_v23  ;;  %4207 = vst.msk [vmem:[#allocation4 + $0x38] sm:$0xff] %vm1226_vm2, %v4114_v29  ;;  %4935 = vmatmul.f32.gmra.mxu1 %v4688_v41 }
 0x493   : > { %v9036_v18 = vpop.permute.xlu2 %3863  ;;  %5048 = vmatmul.f32.gmra.mxu2 %v4689_v7  ;;  %4399 = vst.msk [vmem:[#allocation4 + $0x38] sm:$0xff] %vm1419_vm3, %v8959_v4  ;;  %v4768_v7 = vld [vmem:[#allocation4 + $0x298] sm:$0xff] }
 0x494   : > { %4591 = vst.msk [vmem:[#allocation4 + $0x38] sm:$0xff] %vm1612_vm4, %v4498_v44 }
 0x496   : > { %4515 = vrot.lane.b32.xlu0 %v8551_v57, %s6334_s8 }
 0x497   : > { %4131 = vrot.lane.b32.xlu1 %v8525_v42, %s6332_s23  ;;  %v9063_v47 = vpop.f32.mrf.mxu3 }
 0x498   : > { %v4116_v21 = vpop.permute.xlu0 %4115 }
 0x499   : > { %4135 = vrot.lane.b32.xlu2 %v8454_v56, %s6332_s23  ;;  %4208 = vst.msk [vmem:[#allocation4 + $0x50] sm:$0xff] %vm1226_vm2, %v4116_v21  ;;  %v3666_v4 = vpop.permute.xlu1 %3665 }
 0x49a   : > { %6135 = vmatmul.msk.f32.gmra.mxu3 %vm718_vm1, %v4759_v37  ;;  %3759 = vst.msk [vmem:[#allocation4 + $0x30] sm:$0xff] %vm1419_vm3, %v3666_v4 }
 0x49b   : > { %v9052_v43 = vpop.permute.xlu2 %4505  ;;  %3951 = vst.msk [vmem:[#allocation4 + $0x30] sm:$0xff] %vm1612_vm4, %v8983_v12  ;;  %v4692_v57 = vld [vmem:[#allocation4 + $0x38] sm:$0xff] }
 0x49c   : > { %5051 = vmatmul.f32.gmra.mxu2 %v4692_v57 }
 0x49e   : > { %4133 = vrot.lane.b32.xlu0 %v8556_v34, %s6332_s23 }
 0x49f   : > { %3683 = vrot.lane.b32.xlu1 %v8405_v27, %s6333_s29  ;;  %v9073_v27 = vld [vmem:[#allocation3 + $0x1b7] sm:$0xff] }
 0x4a0   : > { %v3668_v15 = vpop.permute.xlu0 %3667 }
 0x4a1   : > { %3687 = vrot.lane.b32.xlu2 %v8556_v34, %s6333_s29  ;;  %3760 = vst.msk [vmem:[#allocation4 + $0x48] sm:$0xff] %vm1419_vm3, %v3668_v15  ;;  %v4308_v12 = vpop.permute.xlu1 %4307  ;;  %v4765_v34 = vld [vmem:[#allocation4 + $0x280] sm:$0xff]  ;;  %v4444_v15 = vld [vmem:[#allocation3 + $0x1d0] sm:$0xff] }
 0x4a2   : > { %6136 = vmatmul.msk.f32.gmra.mxu3 %vm718_vm1, %v4762_v58  ;;  %4400 = vst.msk [vmem:[#allocation4 + $0x50] sm:$0xff] %vm1419_vm3, %v4308_v12  ;;  %v4691_v23 = vld [vmem:[#allocation4 + $0x30] sm:$0xff] }
 0x4a3   : > { %v4124_v61 = vpop.permute.xlu2 %4123  ;;  %4938 = vmatmul.f32.gmra.mxu1 %v4691_v23  ;;  %4592 = vst.msk [vmem:[#allocation4 + $0x50] sm:$0xff] %vm1612_vm4, %v8993_v54  ;;  %v9082_v54 = vpop.f32.mrf.mxu3 }
 0x4a4   : > { %4212 = vst.msk [vmem:[#allocation4 + $0xb0] sm:$0xff] %vm1226_vm2, %v4124_v61 }
 0x4a6   : > { %3685 = vrot.lane.b32.xlu0 %v8525_v42, %s6333_s29 }
 0x4a7   : > { %4325 = vrot.lane.b32.xlu1 %v8458_v39, %s6333_s29 }
 0x4a8   : > { %v4310_v44 = vpop.permute.xlu0 %4309 }
 0x4a9   : > { %4329 = vrot.lane.b32.xlu2 %v9073_v27, %s6333_s29  ;;  %4401 = vst.msk [vmem:[#allocation4 + $0x68] sm:$0xff] %vm1419_vm3, %v4310_v44  ;;  %v3860_v41 = vpop.permute.xlu1 %3859  ;;  %v4774_v44 = vld [vmem:[#allocation4 + $0x2c8] sm:$0xff] }
 0x4aa   : > { %6137 = vmatmul.msk.f32.gmra.mxu3 %vm718_vm1, %v4765_v34  ;;  %3952 = vst.msk [vmem:[#allocation4 + $0x48] sm:$0xff] %vm1612_vm4, %v3860_v41  ;;  %v4695_v42 = vld [vmem:[#allocation4 + $0x50] sm:$0xff] }
 0x4ab   : > { %v3676_v29 = vpop.permute.xlu2 %3675  ;;  %5054 = vmatmul.f32.gmra.mxu2 %v4695_v42  ;;  %v9096_v58 = vpop.f32.mrf.mxu3  ;;  %v3613_v42 = vld [vmem:[#allocation3 + $0x1e9] sm:$0xff] }
 0x4ac   : > { %3764 = vst.msk [vmem:[#allocation4 + $0xa8] sm:$0xff] %vm1419_vm3, %v3676_v29 }
 0x4ae   : > { %4327 = vrot.lane.b32.xlu0 %v8606_v52, %s6333_s29 }
 0x4af   : > { %3877 = vrot.lane.b32.xlu1 %v8632_v9, %s6334_s8 }
 0x4b0   : > { %v3862_v37 = vpop.permute.xlu0 %3861 }
 0x4b1   : > { %3881 = vrot.lane.b32.xlu2 %v8606_v52, %s6334_s8  ;;  %3953 = vst.msk [vmem:[#allocation4 + $0x60] sm:$0xff] %vm1612_vm4, %v3862_v37  ;;  %v4502_v21 = vpop.permute.xlu1 %4501  ;;  %v4694_v4 = vld [vmem:[#allocation4 + $0x48] sm:$0xff]  ;;  %v4771_v52 = vld [vmem:[#allocation4 + $0x2b0] sm:$0xff] }
 0x4b2   : > { %6138 = vmatmul.msk.f32.gmra.mxu3 %vm718_vm1, %v4768_v7  ;;  %4593 = vst.msk [vmem:[#allocation4 + $0x68] sm:$0xff] %vm1612_vm4, %v4502_v21  ;;  %4941 = vmatmul.f32.gmra.mxu1 %v4694_v4  ;;  %v4777_v7 = vld [vmem:[#allocation4 + $0x2e0] sm:$0xff] }
 0x4b3   : > { %v9093_v57 = vpop.permute.xlu2 %4317 }
 0x4b6   : > { %3879 = vrot.lane.b32.xlu0 %v8458_v39, %s6334_s8  ;;  %v9112_v39 = vpop.f32.mrf.mxu3 }
 0x4b7   : > { %4519 = vrot.lane.b32.xlu1 %v8731_v31, %s6334_s8  ;;  %v9114_v31 = vld [vmem:[#allocation3 + $0x201] sm:$0xff] }
 0x4b8   : > { %v4504_v9 = vpop.permute.xlu0 %4503  ;;  %v4697_v12 = vld [vmem:[#allocation4 + $0x60] sm:$0xff] }
 0x4b9   : > { %4523 = vrot.lane.b32.xlu2 %v4444_v15, %s6334_s8  ;;  %v4120_v61 = vpop.permute.xlu1 %4119  ;;  %v4698_v23 = vld [vmem:[#allocation4 + $0x68] sm:$0xff] }
 0x4ba   : > { %6139 = vmatmul.msk.f32.gmra.mxu3 %vm718_vm1, %v4771_v52  ;;  %4210 = vst.msk [vmem:[#allocation4 + $0x80] sm:$0xff] %vm1226_vm2, %v4120_v61  ;;  %4944 = vmatmul.f32.gmra.mxu1 %v4697_v12 }
 0x4bb   : > { %v9104_v34 = vpop.permute.xlu2 %3869  ;;  %5057 = vmatmul.f32.gmra.mxu2 %v4698_v23  ;;  %4402 = vst.msk [vmem:[#allocation4 + $0x80] sm:$0xff] %vm1419_vm3, %v9024_v55 }
 0x4bc   : > { %4594 = vst.msk [vmem:[#allocation4 + $0x80] sm:$0xff] %vm1612_vm4, %v4504_v9 }
 0x4be   : > { %4521 = vrot.lane.b32.xlu0 %v8734_v0, %s6334_s8  ;;  %v9132_v21 = vpop.f32.mrf.mxu3 }
 0x4bf   : > { %4137 = vrot.lane.b32.xlu1 %v8561_v32, %s6332_s23 }
 0x4c0   : > { %v4122_v41 = vpop.permute.xlu0 %4121 }
 0x4c1   : > { %4141 = vrot.lane.b32.xlu2 %v9114_v31, %s6332_s23  ;;  %4211 = vst.msk [vmem:[#allocation4 + $0x98] sm:$0xff] %vm1226_vm2, %v4122_v41  ;;  %v3672_v55 = vpop.permute.xlu1 %3671 }
 0x4c2   : > { %6140 = vmatmul.msk.f32.gmra.mxu3 %vm718_vm1, %v4774_v44  ;;  %3762 = vst.msk [vmem:[#allocation4 + $0x78] sm:$0xff] %vm1419_vm3, %v3672_v55 }
 0x4c3   : > { %v9122_v29 = vpop.permute.xlu2 %4511  ;;  %3954 = vst.msk [vmem:[#allocation4 + $0x78] sm:$0xff] %vm1612_vm4, %v9036_v18  ;;  %v4701_v0 = vld [vmem:[#allocation4 + $0x80] sm:$0xff] }
 0x4c4   : > { %5060 = vmatmul.f32.gmra.mxu2 %v4701_v0 }
 0x4c6   : > { %4139 = vrot.lane.b32.xlu0 %v8588_v17, %s6332_s23 }
 0x4c7   : > { %3689 = vrot.lane.b32.xlu1 %v8454_v56, %s6333_s29  ;;  %v4252_v56 = vld [vmem:[#allocation3 + $0x1cf] sm:$0xff] }
 0x4c8   : > { %v3674_v37 = vpop.permute.xlu0 %3673 }
 0x4c9   : > { %3693 = vrot.lane.b32.xlu2 %v3613_v42, %s6333_s29  ;;  %3763 = vst.msk [vmem:[#allocation4 + $0x90] sm:$0xff] %vm1419_vm3, %v3674_v37  ;;  %v4314_v18 = vpop.permute.xlu1 %4313 }
 0x4ca   : > { %6141 = vmatmul.msk.f32.gmra.mxu3 %vm718_vm1, %v4777_v7  ;;  %4403 = vst.msk [vmem:[#allocation4 + $0x98] sm:$0xff] %vm1419_vm3, %v4314_v18  ;;  %v4700_v15 = vld [vmem:[#allocation4 + $0x78] sm:$0xff] }
 0x4cb   : > { %v4130_v4 = vpop.permute.xlu2 %4129  ;;  %4947 = vmatmul.f32.gmra.mxu1 %v4700_v15  ;;  %4595 = vst.msk [vmem:[#allocation4 + $0x98] sm:$0xff] %vm1612_vm4, %v9052_v43 }
 0x4cc   : > { %4215 = vst.msk [vmem:[#allocation4 + $0xf8] sm:$0xff] %vm1226_vm2, %v4130_v4 }
 0x4ce   : > { %3691 = vrot.lane.b32.xlu0 %v8561_v32, %s6333_s29 }
 0x4cf   : > { %4331 = vrot.lane.b32.xlu1 %v4252_v56, %s6333_s29 }
 0x4d0   : > { %v4316_v17 = vpop.permute.xlu0 %4315 }
 0x4d1   : > { %4335 = vrot.lane.b32.xlu2 %v8766_v14, %s6333_s29  ;;  %4404 = vst.msk [vmem:[#allocation4 + $0xb0] sm:$0xff] %vm1419_vm3, %v4316_v17  ;;  %v3866_v52 = vpop.permute.xlu1 %3865 }
 0x4d2   : > { %3955 = vst.msk [vmem:[#allocation4 + $0x90] sm:$0xff] %vm1612_vm4, %v3866_v52  ;;  %v4704_v12 = vld [vmem:[#allocation4 + $0x98] sm:$0xff] }
 0x4d3   : > { %v3682_v9 = vpop.permute.xlu2 %3681  ;;  %5063 = vmatmul.f32.gmra.mxu2 %v4704_v12 }
 0x4d4   : > { %3767 = vst.msk [vmem:[#allocation4 + $0xf0] sm:$0xff] %vm1419_vm3, %v3682_v9 }
 0x4d6   : > { %4333 = vrot.lane.b32.xlu0 %v8743_v19, %s6333_s29 }
 0x4d7   : > { %3883 = vrot.lane.b32.xlu1 %v9073_v27, %s6334_s8 }
 0x4d8   : > { %v3868_v32 = vpop.permute.xlu0 %3867 }
 0x4d9   : > { %3887 = vrot.lane.b32.xlu2 %v8743_v19, %s6334_s8  ;;  %3956 = vst.msk [vmem:[#allocation4 + $0xa8] sm:$0xff] %vm1612_vm4, %v3868_v32  ;;  %v4508_v43 = vpop.permute.xlu1 %4507  ;;  %v4703_v61 = vld [vmem:[#allocation4 + $0x90] sm:$0xff] }
 0x4da   : > { %4596 = vst.msk [vmem:[#allocation4 + $0xb0] sm:$0xff] %vm1612_vm4, %v4508_v43  ;;  %4950 = vmatmul.f32.gmra.mxu1 %v4703_v61 }
 0x4db   : > { %v9155_v23 = vpop.permute.xlu2 %4323 }
 0x4de   : > { %3885 = vrot.lane.b32.xlu0 %v8483_v62, %s6334_s8 }
 0x4df   : > { %4525 = vrot.lane.b32.xlu1 %v8741_v8, %s6334_s8 }
 0x4e0   : > { %v4510_v19 = vpop.permute.xlu0 %4509  ;;  %v4706_v27 = vld [vmem:[#allocation4 + $0xa8] sm:$0xff] }
 0x4e1   : > { %4529 = vrot.lane.b32.xlu2 %v8747_v36, %s6334_s8  ;;  %v4126_v44 = vpop.permute.xlu1 %4125  ;;  %v4707_v41 = vld [vmem:[#allocation4 + $0xb0] sm:$0xff] }
 0x4e2   : > { %4213 = vst.msk [vmem:[#allocation4 + $0xc8] sm:$0xff] %vm1226_vm2, %v4126_v44  ;;  %4953 = vmatmul.f32.gmra.mxu1 %v4706_v27  ;;  %5066 = vmatmul.f32.gmra.mxu2 %v4707_v41  ;;  %v9257_v27 = vld [vmem:[%s9890_s4 + $0x1] ss:$0 sm:$0xff] }
 0x4e3   : > { %v9164_v55 = vpop.permute.xlu2 %3875  ;;  %4405 = vst.msk [vmem:[#allocation4 + $0xc8] sm:$0xff] %vm1419_vm3, %v9093_v57 }
 0x4e4   : > { %4597 = vst.msk [vmem:[#allocation4 + $0xc8] sm:$0xff] %vm1612_vm4, %v4510_v19 }
 0x4e6   : > { %4527 = vrot.lane.b32.xlu0 %v8768_v33, %s6334_s8 }
 0x4e7   : > { %4143 = vrot.lane.b32.xlu1 %v8592_v2, %s6332_s23 }
 0x4e8   : > { %v4128_v62 = vpop.permute.xlu0 %4127 }
 0x4e9   : > { %3889 = vrot.lane.b32.xlu2 %v8766_v14, %s6334_s8  ;;  %4214 = vst.msk [vmem:[#allocation4 + $0xe0] sm:$0xff] %vm1226_vm2, %v4128_v62  ;;  %v3678_v0 = vpop.permute.xlu1 %3677 }
 0x4ea   : > { %3765 = vst.msk [vmem:[#allocation4 + $0xc0] sm:$0xff] %vm1419_vm3, %v3678_v0 }
 0x4eb   : > { %v9177_v42 = vpop.permute.xlu2 %4517  ;;  %3957 = vst.msk [vmem:[#allocation4 + $0xc0] sm:$0xff] %vm1612_vm4, %v9104_v34  ;;  %v4710_v57 = vld [vmem:[#allocation4 + $0xc8] sm:$0xff] }
 0x4ec   : > { %5069 = vmatmul.f32.gmra.mxu2 %v4710_v57 }
 0x4ee   : > { %4145 = vrot.lane.b32.xlu0 %v8628_v35, %s6332_s23 }
 0x4ef   : > { %3695 = vrot.lane.b32.xlu1 %v9114_v31, %s6333_s29 }
 0x4f0   : > { %v3680_v14 = vpop.permute.xlu0 %3679 }
 0x4f1   : > { %4531 = vrot.lane.b32.xlu2 %v8772_v3, %s6334_s8  ;;  %3766 = vst.msk [vmem:[#allocation4 + $0xd8] sm:$0xff] %vm1419_vm3, %v3680_v14  ;;  %v4320_v7 = vpop.permute.xlu1 %4319  ;;  %v4452_v14 = vld [vmem:[#allocation3 + $0x2c0] sm:$0xff] }
 0x4f2   : > { %4406 = vst.msk [vmem:[#allocation4 + $0xe0] sm:$0xff] %vm1419_vm3, %v4320_v7  ;;  %v4709_v18 = vld [vmem:[#allocation4 + $0xc0] sm:$0xff] }
 0x4f3   : > { %v4136_v37 = vpop.permute.xlu2 %4135  ;;  %4956 = vmatmul.f32.gmra.mxu1 %v4709_v18  ;;  %4598 = vst.msk [vmem:[#allocation4 + $0xe0] sm:$0xff] %vm1612_vm4, %v9122_v29 }
 0x4f4   : > { %4218 = vst.msk [vmem:[#allocation4 + $0x140] sm:$0xff] %vm1226_vm2, %v4136_v37 }
 0x4f6   : > { %3505 = vrot.lane.b32.xlu0 %v8741_v8, %s6332_s23 }
 0x4f7   : > { %4337 = vrot.lane.b32.xlu1 %v8753_v30, %s6333_s29 }
 0x4f8   : > { %v4322_v34 = vpop.permute.xlu0 %4321 }
 0x4f9   : > { %3891 = vrot.lane.b32.xlu2 %v8753_v30, %s6334_s8  ;;  %4407 = vst.msk [vmem:[#allocation4 + $0xf8] sm:$0xff] %vm1419_vm3, %v4322_v34  ;;  %v3872_v31 = vpop.permute.xlu1 %3871 }
 0x4fa   : > { %3958 = vst.msk [vmem:[#allocation4 + $0xd8] sm:$0xff] %vm1612_vm4, %v3872_v31  ;;  %v4713_v15 = vld [vmem:[#allocation4 + $0xe0] sm:$0xff] }
 0x4fb   : > { %v3688_v4 = vpop.permute.xlu2 %3687  ;;  %5072 = vmatmul.f32.gmra.mxu2 %v4713_v15 }
 0x4fc   : > { %3770 = vst.msk [vmem:[#allocation4 + $0x138] sm:$0xff] %vm1419_vm3, %v3688_v4 }
 0x4fe   : > { %4147 = vrot.lane.b32.xlu0 %v8602_v46, %s6332_s23 }
 0x4ff   : > { %3697 = vrot.lane.b32.xlu1 %v8592_v2, %s6333_s29 }
 0x500   : > { %v3874_v8 = vpop.permute.xlu0 %3873 }
 0x501   : > { %4533 = vrot.lane.b32.xlu2 %v8807_v6, %s6334_s8  ;;  %3959 = vst.msk [vmem:[#allocation4 + $0xf0] sm:$0xff] %vm1612_vm4, %v3874_v8  ;;  %v4514_v30 = vpop.permute.xlu1 %4513  ;;  %v4712_v29 = vld [vmem:[#allocation4 + $0xd8] sm:$0xff] }
 0x502   : > { %4599 = vst.msk [vmem:[#allocation4 + $0xf8] sm:$0xff] %vm1612_vm4, %v4514_v30  ;;  %4959 = vmatmul.f32.gmra.mxu1 %v4712_v29 }
 0x503   : > { %v9209_v56 = vpop.permute.xlu2 %4329 }
 0x506   : > { %3507 = vrot.lane.b32.xlu0 %v8768_v33, %s6332_s23 }
 0x507   : > { %4339 = vrot.lane.b32.xlu1 %v8780_v28, %s6333_s29  ;;  %v4933_v41 = vpop.f32.mrf.mxu1 }
 0x508   : > { %v4516_v2 = vpop.permute.xlu0 %4515  ;;  %v4715_v17 = vld [vmem:[#allocation4 + $0xf0] sm:$0xff] }
 0x509   : > { %3893 = vrot.lane.b32.xlu2 %v8780_v28, %s6334_s8  ;;  %v4132_v52 = vpop.permute.xlu1 %4131  ;;  %v4716_v9 = vld [vmem:[#allocation4 + $0xf8] sm:$0xff] }
 0x50a   : > { %4216 = vst.msk [vmem:[#allocation4 + $0x110] sm:$0xff] %vm1226_vm2, %v4132_v52  ;;  %4962 = vmatmul.f32.gmra.mxu1 %v4715_v17  ;;  %5075 = vmatmul.f32.gmra.mxu2 %v4716_v9  ;;  %v3621_v17 = vld [vmem:[#allocation3 + $0x2d9] sm:$0xff] }
 0x50b   : > { %v9218_v12 = vpop.permute.xlu2 %3881  ;;  %4408 = vst.msk [vmem:[#allocation4 + $0x110] sm:$0xff] %vm1419_vm3, %v9155_v23 }
 0x50c   : > { %4600 = vst.msk [vmem:[#allocation4 + $0x110] sm:$0xff] %vm1612_vm4, %v4516_v2 }
 0x50e   : > { %4149 = vrot.lane.b32.xlu0 %v8638_v40, %s6332_s23 }
 0x50f   : > { %3699 = vrot.lane.b32.xlu1 %v8628_v35, %s6333_s29 }
 0x510   : > { %v4134_v33 = vpop.permute.xlu0 %4133 }
 0x511   : > { %4535 = vrot.lane.b32.xlu2 %v8782_v25, %s6334_s8  ;;  %4217 = vst.msk [vmem:[#allocation4 + $0x128] sm:$0xff] %vm1226_vm2, %v4134_v33  ;;  %v3684_v28 = vpop.permute.xlu1 %3683 }
 0x512   : > { %3768 = vst.msk [vmem:[#allocation4 + $0x108] sm:$0xff] %vm1419_vm3, %v3684_v28  ;;  %v4936_v28 = vpop.f32.mrf.mxu1 }
 0x513   : > { %v9231_v32 = vpop.permute.xlu2 %4523  ;;  %3960 = vst.msk [vmem:[#allocation4 + $0x108] sm:$0xff] %vm1612_vm4, %v9164_v55  ;;  %v4719_v43 = vld [vmem:[#allocation4 + $0x110] sm:$0xff]  ;;  %v5046_v55 = vpop.f32.mrf.mxu2 }
 0x514   : > { %5078 = vmatmul.f32.gmra.mxu2 %v4719_v43  ;;  %v4937_v43 = vadd.f32 %v9257_v27, %v4936_v28  ;;  %v5515_v28 = vld [vmem:[%s9891_s5 + $0x20] sm:$0xff] }
 0x516   : > { %3509 = vrot.lane.b32.xlu0 %v8747_v36, %s6332_s23 }
 0x517   : > { %4341 = vrot.lane.b32.xlu1 %v8817_v59, %s6333_s29 }
 0x518   : > { %v3686_v35 = vpop.permute.xlu0 %3685 }
 0x519   : > { %3895 = vrot.lane.b32.xlu2 %v8817_v59, %s6334_s8  ;;  %3769 = vst.msk [vmem:[#allocation4 + $0x120] sm:$0xff] %vm1419_vm3, %v3686_v35  ;;  %v4326_v61 = vpop.permute.xlu1 %4325 }
 0x51a   : > { %4409 = vst.msk [vmem:[#allocation4 + $0x128] sm:$0xff] %vm1419_vm3, %v4326_v61  ;;  %v4718_v19 = vld [vmem:[#allocation4 + $0x108] sm:$0xff] }
 0x51b   : > { %v4142_v23 = vpop.permute.xlu2 %4141  ;;  %4965 = vmatmul.f32.gmra.mxu1 %v4718_v19  ;;  %4601 = vst.msk [vmem:[#allocation4 + $0x128] sm:$0xff] %vm1612_vm4, %v9177_v42 }
 0x51c   : > { %4221 = vst.msk [vmem:[#allocation4 + $0x188] sm:$0xff] %vm1226_vm2, %v4142_v23 }
 0x51e   : > { %4151 = vrot.lane.b32.xlu0 %v8723_v48, %s6332_s23 }
 0x51f   : > { %3701 = vrot.lane.b32.xlu1 %v8602_v46, %s6333_s29  ;;  %v4934_v46 = vadd.f32 %v9257_v27, %v4933_v41  ;;  %v4069_v41 = vld [vmem:[#allocation3 + $0x2f1] sm:$0xff] }
 0x520   : > { %v4328_v36 = vpop.permute.xlu0 %4327 }
 0x521   : > { %4537 = vrot.lane.b32.xlu2 %v8819_v38, %s6334_s8  ;;  %4410 = vst.msk [vmem:[#allocation4 + $0x140] sm:$0xff] %vm1419_vm3, %v4328_v36  ;;  %v3878_v59 = vpop.permute.xlu1 %3877  ;;  %v5047_v42 = vadd.f32 %v5046_v55, %v4934_v46 }
 0x522   : > { %3961 = vst.msk [vmem:[#allocation4 + $0x120] sm:$0xff] %vm1612_vm4, %v3878_v59  ;;  %v4722_v48 = vld [vmem:[#allocation4 + $0x128] sm:$0xff]  ;;  %v4939_v59 = vpop.f32.mrf.mxu1 }
 0x523   : > { %v3694_v44 = vpop.permute.xlu2 %3693  ;;  %5081 = vmatmul.f32.gmra.mxu2 %v4722_v48 }
 0x524   : > { %3773 = vst.msk [vmem:[#allocation4 + $0x180] sm:$0xff] %vm1419_vm3, %v3694_v44 }
 0x526   : > { %3511 = vrot.lane.b32.xlu0 %v8772_v3, %s6332_s23  ;;  %v5160_v3 = vadd.f32 %v9029_v51, %v5047_v42 }
 0x527   : > { %4343 = vrot.lane.b32.xlu1 %v8792_v60, %s6333_s29 }
 0x528   : > { %v3880_v38 = vpop.permute.xlu0 %3879  ;;  %v5255_v34 = vmax.f32 %v5160_v3, 0.0 }
 0x529   : > { %3897 = vrot.lane.b32.xlu2 %v8792_v60, %s6334_s8  ;;  %3962 = vst.msk [vmem:[#allocation4 + $0x138] sm:$0xff] %vm1612_vm4, %v3880_v38  ;;  %v4520_v62 = vpop.permute.xlu1 %4519  ;;  %v4721_v0 = vld [vmem:[#allocation4 + $0x120] sm:$0xff] }
 0x52a   : > { %4602 = vst.msk [vmem:[#allocation4 + $0x140] sm:$0xff] %vm1612_vm4, %v4520_v62  ;;  %4968 = vmatmul.f32.gmra.mxu1 %v4721_v0  ;;  %v5518_v0 = vld [vmem:[%s9891_s5 + $0x38] sm:$0xff] }
 0x52b   : > { %v9269_v57 = vpop.permute.xlu2 %4335  ;;  %5655 = vmatpush.msra.mxu0 %v5518_v0 }
 0x52e   : > { %4153 = vrot.lane.b32.xlu0 %v8709_v1, %s6332_s23  ;;  %v5287_v1 = vmin.f32 %v5255_v34, 20.0 }
 0x52f   : > { %3703 = vrot.lane.b32.xlu1 %v8638_v40, %s6333_s29  ;;  %v4259_v40 = vld [vmem:[#allocation3 + $0x2a7] sm:$0xff]  ;;  %v4942_v42 = vpop.f32.mrf.mxu1 }
 0x530   : > { %v4522_v60 = vpop.permute.xlu0 %4521  ;;  %v4724_v7 = vld [vmem:[#allocation4 + $0x138] sm:$0xff]  ;;  %v4943_v3 = vadd.f32 %v9257_v27, %v4942_v42 }
 0x531   : > { %4539 = vrot.lane.b32.xlu2 %v4452_v14, %s6334_s8  ;;  %v4138_v37 = vpop.permute.xlu1 %4137  ;;  %v4725_v18 = vld [vmem:[#allocation4 + $0x140] sm:$0xff]  ;;  %v3429_v14 = vld [vmem:[#allocation3 + $0x2d8] sm:$0xff] }
 0x532   : > { %4219 = vst.msk [vmem:[#allocation4 + $0x158] sm:$0xff] %vm1226_vm2, %v4138_v37  ;;  %4971 = vmatmul.f32.gmra.mxu1 %v4724_v7  ;;  %5084 = vmatmul.f32.gmra.mxu2 %v4725_v18 }
 0x533   : > { %v9278_v31 = vpop.permute.xlu2 %3887  ;;  %4411 = vst.msk [vmem:[#allocation4 + $0x158] sm:$0xff] %vm1419_vm3, %v9209_v56 }
 0x534   : > { %4603 = vst.msk [vmem:[#allocation4 + $0x158] sm:$0xff] %vm1612_vm4, %v4522_v60 }
 0x536   : > { %3513 = vrot.lane.b32.xlu0 %v8807_v6, %s6332_s23  ;;  %v3619_v6 = vld [vmem:[#allocation3 + $0x279] sm:$0xff] }
 0x537   : > { %4345 = vrot.lane.b32.xlu1 %v4259_v40, %s6333_s29 }
 0x538   : > { %v4140_v51 = vpop.permute.xlu0 %4139 }
 0x539   : > { %5351 = vrot.lane.b32.xlu2 %v5287_v1, %s6332_s23  ;;  %4220 = vst.msk [vmem:[#allocation4 + $0x170] sm:$0xff] %vm1226_vm2, %v4140_v51  ;;  %v3690_v4 = vpop.permute.xlu1 %3689  ;;  %v4940_v1 = vadd.f32 %v9257_v27, %v4939_v59 }
 0x53a   : > { %3771 = vst.msk [vmem:[#allocation4 + $0x150] sm:$0xff] %vm1419_vm3, %v3690_v4 }
 0x53b   : > { %v9289_v15 = vpop.permute.xlu2 %4529  ;;  %3963 = vst.msk [vmem:[#allocation4 + $0x150] sm:$0xff] %vm1612_vm4, %v9218_v12  ;;  %v4728_v8 = vld [vmem:[#allocation4 + $0x158] sm:$0xff] }
 0x53c   : > { %5087 = vmatmul.f32.gmra.mxu2 %v4728_v8 }
 0x53e   : > { %4155 = vrot.lane.b32.xlu0 %v8805_v5, %s6332_s23  ;;  %v4260_v5 = vld [vmem:[#allocation3 + $0x2bf] sm:$0xff] }
 0x53f   : > { %3705 = vrot.lane.b32.xlu1 %v3619_v6, %s6333_s29 }
 0x540   : > { %v3692_v30 = vpop.permute.xlu0 %3691 }
 0x541   : > { %4349 = vrot.lane.b32.xlu2 %v8828_v13, %s6333_s29  ;;  %3772 = vst.msk [vmem:[#allocation4 + $0x168] sm:$0xff] %vm1419_vm3, %v3692_v30  ;;  %v4332_v29 = vpop.permute.xlu1 %4331 }
 0x542   : > { %4412 = vst.msk [vmem:[#allocation4 + $0x170] sm:$0xff] %vm1419_vm3, %v4332_v29  ;;  %v4727_v2 = vld [vmem:[#allocation4 + $0x150] sm:$0xff] }
 0x543   : > { %v9300_v56 = vpop.permute.xlu2 %3889  ;;  %4604 = vst.msk [vmem:[#allocation4 + $0x170] sm:$0xff] %vm1612_vm4, %v9231_v32  ;;  %4974 = vmatmul.f32.gmra.mxu1 %v4727_v2  ;;  %v5049_v32 = vpop.f32.mrf.mxu2 }
 0x544   : > { %v5050_v35 = vadd.f32 %v5049_v32, %v4937_v43  ;;  %v5514_v32 = vld [vmem:[%s9891_s5 + $0x18] sm:$0xff] }
 0x546   : > { %3515 = vrot.lane.b32.xlu0 %v8782_v25, %s6332_s23  ;;  %v3620_v25 = vld [vmem:[#allocation3 + $0x291] sm:$0xff]  ;;  %v5163_v44 = vadd.f32 %v9044_v16, %v5050_v35 }
 0x547   : > { %4347 = vrot.lane.b32.xlu1 %v4260_v5, %s6333_s29 }
 0x548   : > { %v4334_v52 = vpop.permute.xlu0 %4333 }
 0x549   : > { %3709 = vrot.lane.b32.xlu2 %v3621_v17, %s6333_s29  ;;  %4413 = vst.msk [vmem:[#allocation4 + $0x188] sm:$0xff] %vm1419_vm3, %v4334_v52  ;;  %v3884_v9 = vpop.permute.xlu1 %3883  ;;  %v5516_v17 = vld [vmem:[%s9891_s5 + $0x28] sm:$0xff] }
 0x54a   : > { %3964 = vst.msk [vmem:[#allocation4 + $0x168] sm:$0xff] %vm1612_vm4, %v3884_v9  ;;  %v4731_v33 = vld [vmem:[#allocation4 + $0x170] sm:$0xff]  ;;  %v4945_v9 = vpop.f32.mrf.mxu1 }
 0x54b   : > { %v9310_v12 = vpop.permute.xlu2 %4531  ;;  %5090 = vmatmul.f32.gmra.mxu2 %v4731_v33  ;;  %v5052_v38 = vpop.f32.mrf.mxu2  ;;  %v4071_v33 = vld [vmem:[#allocation3 + $0x321] sm:$0xff] }
 0x54c   : > { %v5053_v51 = vadd.f32 %v5052_v38, %v4940_v1  ;;  %v4946_v38 = vadd.f32 %v9257_v27, %v4945_v9 }
 0x54e   : > { %3899 = vrot.lane.b32.xlu0 %v4259_v40, %s6334_s8 }
 0x54f   : > { %3707 = vrot.lane.b32.xlu1 %v3620_v25, %s6333_s29 }
 0x550   : > { %v3886_v61 = vpop.permute.xlu0 %3885 }
 0x551   : > { %4159 = vrot.lane.b32.xlu2 %v8729_v53, %s6332_s23  ;;  %3965 = vst.msk [vmem:[#allocation4 + $0x180] sm:$0xff] %vm1612_vm4, %v3886_v61  ;;  %v4526_v23 = vpop.permute.xlu1 %4525  ;;  %v4730_v19 = vld [vmem:[#allocation4 + $0x168] sm:$0xff]  ;;  %v5256_v53 = vmax.f32 %v5163_v44, 0.0  ;;  %v5513_v61 = vld [vmem:[%s9891_s5 + $0x10] sm:$0xff] }
 0x552   : > { %4605 = vst.msk [vmem:[#allocation4 + $0x188] sm:$0xff] %vm1612_vm4, %v4526_v23  ;;  %4977 = vmatmul.f32.gmra.mxu1 %v4730_v19  ;;  %v5512_v23 = vld [vmem:[%s9891_s5 + $0x8] sm:$0xff]  ;;  %v9401_v19 = vpop.f32.mrf.mxu1 }
 0x553   : > { %v9319_v36 = vpop.permute.xlu2 %3891  ;;  %v5055_v7 = vpop.f32.mrf.mxu2 }
 0x556   : > { %4541 = vrot.lane.b32.xlu0 %v8786_v20, %s6334_s8 }
 0x557   : > { %4157 = vrot.lane.b32.xlu1 %v4069_v41, %s6332_s23 }
 0x558   : > { %v4528_v48 = vpop.permute.xlu0 %4527  ;;  %v4733_v46 = vld [vmem:[#allocation4 + $0x180] sm:$0xff] }
 0x559   : > { %3519 = vrot.lane.b32.xlu2 %v8847_v10, %s6332_s23  ;;  %v4144_v55 = vpop.permute.xlu1 %4143  ;;  %v4734_v62 = vld [vmem:[#allocation4 + $0x188] sm:$0xff]  ;;  %v5288_v10 = vmin.f32 %v5256_v53, 20.0 }
 0x55a   : > { %4222 = vst.msk [vmem:[#allocation4 + $0x1a0] sm:$0xff] %vm1226_vm2, %v4144_v55  ;;  %4980 = vmatmul.f32.gmra.mxu1 %v4733_v46  ;;  %5093 = vmatmul.f32.gmra.mxu2 %v4734_v62  ;;  %v4951_v46 = vpop.f32.mrf.mxu1  ;;  %v3623_v55 = vld [vmem:[#allocation3 + $0x309] sm:$0xff]  ;;  %v9422_v62 = vld [vmem:[#allocation3 + $0x351] sm:$0xff] }
 0x55b   : > { %v9331_v16 = vpop.permute.xlu2 %4533  ;;  %4414 = vst.msk [vmem:[#allocation4 + $0x1a0] sm:$0xff] %vm1419_vm3, %v9269_v57  ;;  %v5056_v57 = vadd.f32 %v5055_v7, %v4943_v3  ;;  %v5058_v59 = vpop.f32.mrf.mxu2  ;;  %v9908_v7 = vld [vmem:[#allocation9_spill] sm:$0xff] }
 0x55c   : > { %4606 = vst.msk [vmem:[#allocation4 + $0x1a0] sm:$0xff] %vm1612_vm4, %v4528_v48  ;;  %v9417_v48 = vpop.f32.mrf.mxu3  ;;  %v5059_v0 = vadd.f32 %v5058_v59, %v4946_v38 }
 0x55d   : > { %v5169_v40 = vadd.f32 %v9082_v54, %v5056_v57 }
 0x55e   : > { %5353 = vrot.lane.b32.xlu0 %v5288_v10, %s6332_s23 }
 0x55f   : > { %3517 = vrot.lane.b32.xlu1 %v3429_v14, %s6332_s23  ;;  %v5258_v4 = vmax.f32 %v5169_v40, 0.0 }
 0x560   : > { %v4146_v60 = vpop.permute.xlu0 %4145 }
 0x561   : > { %3903 = vrot.lane.b32.xlu2 %v8828_v13, %s6334_s8  ;;  %4223 = vst.msk [vmem:[#allocation4 + $0x1b8] sm:$0xff] %vm1226_vm2, %v4146_v60  ;;  %v3696_v37 = vpop.permute.xlu1 %3695  ;;  %v5290_v6 = vmin.f32 %v5258_v4, 20.0  ;;  %v4072_v60 = vld [vmem:[#allocation3 + $0x339] sm:$0xff] }
 0x562   : > { %3774 = vst.msk [vmem:[#allocation4 + $0x198] sm:$0xff] %vm1419_vm3, %v3696_v37  ;;  %v9438_v57 = vpop.f32.mrf.mxu1 }
 0x563   : > { %v9343_v18 = vpop.permute.xlu2 %3893  ;;  %3966 = vst.msk [vmem:[#allocation4 + $0x198] sm:$0xff] %vm1612_vm4, %v9278_v31  ;;  %v4737_v34 = vld [vmem:[#allocation4 + $0x1a0] sm:$0xff]  ;;  %v5061_v42 = vpop.f32.mrf.mxu2 }
 0x564   : > { %5096 = vmatmul.f32.gmra.mxu2 %v4737_v34  ;;  %v9436_v37 = vpop.f32.mrf.mxu3 }
 0x566   : > { %4351 = vrot.lane.b32.xlu0 %v8854_v49, %s6333_s29 }
 0x567   : > { %3901 = vrot.lane.b32.xlu1 %v8850_v45, %s6334_s8  ;;  %v5166_v45 = vadd.f32 %v9063_v47, %v5053_v51  ;;  %v5517_v47 = vld [vmem:[%s9891_s5 + $0x30] sm:$0xff] }
 0x568   : > { %v3506_v13 = vpop.permute.xlu0 %3505  ;;  %5656 = vmatpush.msra.mxu0 %v5517_v47 }
 0x569   : > { %4545 = vrot.lane.b32.xlu2 %v8882_v11, %s6334_s8  ;;  %3583 = vst.msk [vmem:[#allocation4 + $0x1b0] sm:$0xff] %vm1226_vm2, %v3506_v13  ;;  %v4338_v31 = vpop.permute.xlu1 %4337  ;;  %v5257_v29 = vmax.f32 %v5166_v45, 0.0 }
 0x56a   : > { %4415 = vst.msk [vmem:[#allocation4 + $0x1b8] sm:$0xff] %vm1419_vm3, %v4338_v31  ;;  %v4736_v54 = vld [vmem:[#allocation4 + $0x198] sm:$0xff]  ;;  %5657 = vmatpush.msra.mxu0 %v5516_v17  ;;  %v4952_v31 = vadd.f32 %v9257_v27, %v4951_v46 }
 0x56b   : > { %v9357_v8 = vpop.permute.xlu2 %4535  ;;  %4607 = vst.msk [vmem:[#allocation4 + $0x1b8] sm:$0xff] %vm1612_vm4, %v9289_v15  ;;  %4983 = vmatmul.f32.gmra.mxu1 %v4736_v54  ;;  %v5289_v52 = vmin.f32 %v5257_v29, 20.0  ;;  %v5064_v1 = vpop.f32.mrf.mxu2 }
 0x56c   : > { %5658 = vmatpush.msra.mxu0 %v5515_v28  ;;  %v9458_v45 = vpop.f32.mrf.mxu3 }
 0x56e   : > { %3711 = vrot.lane.b32.xlu0 %v4069_v41, %s6333_s29  ;;  %5659 = vmatpush.msra.mxu0 %v5514_v32  ;;  %v5511_v41 = vld [vmem:[%s9891_s5] sm:$0xff] }
 0x56f   : > { %4543 = vrot.lane.b32.xlu1 %v8852_v50, %s6334_s8 }
 0x570   : > { %v4148_v30 = vpop.permute.xlu0 %4147  ;;  %5660 = vmatpush.msra.mxu0 %v5513_v61 }
 0x571   : > { %5357 = vrot.lane.b32.xlu2 %v5290_v6, %s6332_s23  ;;  %4224 = vst.msk [vmem:[#allocation4 + $0x1d0] sm:$0xff] %vm1226_vm2, %v4148_v30  ;;  %v3698_v2 = vpop.permute.xlu1 %3697  ;;  %v5065_v6 = vadd.f32 %v5064_v1, %v4952_v31  ;;  %v3365_v1 = vld [vmem:[#allocation3 + $0x2d7] sm:$0xff] }
 0x572   : > { %3775 = vst.msk [vmem:[#allocation4 + $0x1b0] sm:$0xff] %vm1419_vm3, %v3698_v2  ;;  %v4740_v15 = vld [vmem:[#allocation4 + $0x1b8] sm:$0xff]  ;;  %5661 = vmatpush.msra.mxu0 %v5512_v23 }
 0x573   : > { %v9368_v5 = vpop.permute.xlu2 %3895  ;;  %3967 = vst.msk [vmem:[#allocation4 + $0x1b0] sm:$0xff] %vm1612_vm4, %v9300_v56  ;;  %5099 = vmatmul.f32.gmra.mxu2 %v4740_v15  ;;  %v9454_v4 = vpop.f32.mrf.mxu2  ;;  %v5178_v2 = vadd.f32 %v9132_v21, %v5065_v6 }
 0x574   : > { %5662 = vmatpush.msra.mxu0 %v5511_v41  ;;  %v4074_v41 = vld [vmem:[#allocation3 + $0x369] sm:$0xff]  ;;  %3397 = vst.msk [vmem:[#allocation4 + $0x240] sm:$0xff] %vm718_vm1, %v3365_v1 }
 0x576   : > { %4161 = vrot.lane.b32.xlu0 %v4071_v33, %s6332_s23 }
 0x577   : > { %5355 = vrot.lane.b32.xlu1 %v5289_v52, %s6332_s23 }
 0x578   : > { %v3508_v56 = vpop.permute.xlu0 %3507 }
 0x579   : > { %4355 = vrot.lane.b32.xlu2 %v8858_v63, %s6333_s29  ;;  %3584 = vst.msk [vmem:[#allocation4 + $0x1c8] sm:$0xff] %vm1226_vm2, %v3508_v56  ;;  %v4340_v43 = vpop.permute.xlu1 %4339  ;;  %v9484_v56 = vpop.f32.mrf.mxu3 }
 0x57a   : > { %4416 = vst.msk [vmem:[#allocation4 + $0x1d0] sm:$0xff] %vm1419_vm3, %v4340_v43  ;;  %v4739_v35 = vld [vmem:[#allocation4 + $0x1b0] sm:$0xff]  ;;  %v9910_v43 = vld [vmem:[#allocation10_spill] sm:$0xff] }
 0x57b   : > { %v9390_v25 = vpop.permute.xlu2 %4537  ;;  %4608 = vst.msk [vmem:[#allocation4 + $0x1d0] sm:$0xff] %vm1612_vm4, %v9310_v12  ;;  %4986 = vmatmul.f32.gmra.mxu1 %v4739_v35  ;;  %v9476_v47 = vpop.f32.mrf.mxu2 }
 0x57e   : > { %3521 = vrot.lane.b32.xlu0 %v8786_v20, %s6332_s23 }
 0x57f   : > { %4353 = vrot.lane.b32.xlu1 %v8879_v22, %s6333_s29 }
 0x580   : > { %v4150_v12 = vpop.permute.xlu0 %4149 }
 0x581   : > { %3715 = vrot.lane.b32.xlu2 %v4071_v33, %s6333_s29  ;;  %4225 = vst.msk [vmem:[#allocation4 + $0x1e8] sm:$0xff] %vm1226_vm2, %v4150_v12  ;;  %v3700_v44 = vpop.permute.xlu1 %3699  ;;  %v5261_v33 = vmax.f32 %v5178_v2, 0.0  ;;  %v9502_v12 = vpop.f32.mrf.mxu3 }
 0x582   : > { %3776 = vst.msk [vmem:[#allocation4 + $0x1c8] sm:$0xff] %vm1419_vm3, %v3700_v44  ;;  %v4743_v20 = vld [vmem:[#allocation4 + $0x1d0] sm:$0xff] }
 0x583   : > { %v9412_v53 = vpop.permute.xlu2 %3897  ;;  %3968 = vst.msk [vmem:[#allocation4 + $0x1c8] sm:$0xff] %vm1612_vm4, %v9319_v36  ;;  %5102 = vmatmul.f32.gmra.mxu2 %v4743_v20  ;;  %v5293_v32 = vmin.f32 %v5261_v33, 20.0  ;;  %v9492_v35 = vpop.f32.mrf.mxu2  ;;  %v9505_v20 = vld [vmem:[#allocation3 + $0x397] sm:$0xff] }
 0x586   : > { %3905 = vrot.lane.b32.xlu0 %v8854_v49, %s6334_s8  ;;  %v5172_v49 = vadd.f32 %v9096_v58, %v5059_v0 }
 0x587   : > { %3713 = vrot.lane.b32.xlu1 %v3623_v55, %s6333_s29 }
 0x588   : > { %v3510_v36 = vpop.permute.xlu0 %3509  ;;  %v5259_v34 = vmax.f32 %v5172_v49, 0.0 }
 0x589   : > { %4165 = vrot.lane.b32.xlu2 %v9422_v62, %s6332_s23  ;;  %3585 = vst.msk [vmem:[#allocation4 + $0x1e0] sm:$0xff] %vm1226_vm2, %v3510_v36  ;;  %v4342_v10 = vpop.permute.xlu1 %4341  ;;  %v9519_v36 = vpop.f32.mrf.mxu3 }
 0x58a   : > { %4417 = vst.msk [vmem:[#allocation4 + $0x1e8] sm:$0xff] %vm1419_vm3, %v4342_v10  ;;  %v4742_v3 = vld [vmem:[#allocation4 + $0x1c8] sm:$0xff]  ;;  %v5291_v51 = vmin.f32 %v5259_v34, 20.0  ;;  %v9911_v10 = vld [vmem:[#allocation11_spill] sm:$0xff] }
 0x58b   : > { %v9428_v14 = vpop.permute.xlu2 %4539  ;;  %4609 = vst.msk [vmem:[#allocation4 + $0x1e8] sm:$0xff] %vm1612_vm4, %v9331_v16  ;;  %4989 = vmatmul.f32.gmra.mxu1 %v4742_v3 }
 0x58d   : > { %v9508_v46 = vpop.f32.mrf.mxu2 }
 0x58e   : > { %4547 = vrot.lane.b32.xlu0 %v9908_v7, %s6334_s8 }
 0x58f   : > { %4163 = vrot.lane.b32.xlu1 %v4072_v60, %s6332_s23 }
 0x590   : > { %v4152_v40 = vpop.permute.xlu0 %4151 }
 0x591   : > { %3525 = vrot.lane.b32.xlu2 %v8882_v11, %s6332_s23  ;;  %4226 = vst.msk [vmem:[#allocation4 + $0x200] sm:$0xff] %vm1226_vm2, %v4152_v40  ;;  %v3702_v16 = vpop.permute.xlu1 %3701  ;;  %v9450_v11 = vpop.f32.mrf.mxu1  ;;  %v4955_v40 = vadd.f32 %v9257_v27, %v9438_v57 }
 0x592   : > { %3777 = vst.msk [vmem:[#allocation4 + $0x1e0] sm:$0xff] %vm1419_vm3, %v3702_v16  ;;  %v4746_v13 = vld [vmem:[#allocation4 + $0x1e8] sm:$0xff]  ;;  %v4076_v16 = vld [vmem:[#allocation3 + $0x399] sm:$0xff] }
 0x593   : > { %v5352_v58 = vpop.permute.xlu2 %5351  ;;  %5105 = vmatmul.f32.gmra.mxu2 %v4746_v13  ;;  %3969 = vst.msk [vmem:[#allocation4 + $0x1e0] sm:$0xff] %vm1612_vm4, %v9343_v18 }
 0x594   : > { %5447 = vst.msk [vmem:[#allocation5] sm:$0xff] %vm1226_vm2, %v5352_v58  ;;  %v5068_v58 = vadd.f32 %v9454_v4, %v4955_v40 }
 0x596   : > { %5359 = vrot.lane.b32.xlu0 %v5291_v51, %s6332_s23 }
 0x597   : > { %3523 = vrot.lane.b32.xlu1 %v8852_v50, %s6332_s23  ;;  %v5079_v3 = vpop.f32.mrf.mxu2 }
 0x598   : > { %v3512_v54 = vpop.permute.xlu0 %3511 }
 0x599   : > { %3909 = vrot.lane.b32.xlu2 %v8858_v63, %s6334_s8  ;;  %3586 = vst.msk [vmem:[#allocation4 + $0x1f8] sm:$0xff] %vm1226_vm2, %v3512_v54  ;;  %v4344_v18 = vpop.permute.xlu1 %4343  ;;  %v4949_v63 = vadd.f32 %v9257_v27, %v9401_v19  ;;  %v9472_v15 = vpop.f32.mrf.mxu1 }
 0x59a   : > { %4418 = vst.msk [vmem:[#allocation4 + $0x200] sm:$0xff] %vm1419_vm3, %v4344_v18  ;;  %v4745_v50 = vld [vmem:[#allocation4 + $0x1e0] sm:$0xff]  ;;  %v9546_v54 = vpop.f32.mrf.mxu3 }
 0x59b   : > { %v9461_v30 = vpop.permute.xlu2 %4349  ;;  %v5479_v29 = vld [vmem:[#allocation5] sm:$0xff]  ;;  %4610 = vst.msk [vmem:[#allocation4 + $0x200] sm:$0xff] %vm1612_vm4, %v9357_v8  ;;  %4992 = vmatmul.f32.gmra.mxu1 %v4745_v50  ;;  %v9909_v8 = vld [vmem:[#allocation12_spill] sm:$0xff]  ;;  %v5062_v52 = vadd.f32 %v5061_v42, %v4949_v63 }
 0x59c   : > { %6143 = vmatmul.msk.f32.vlgmr.msra.gmra.mxu0 %vm331_vm0, %v5479_v29  ;;  %v4075_v18 = vld [vmem:[#allocation3 + $0x381] sm:$0xff] }
 0x59e   : > { %4357 = vrot.lane.b32.xlu0 %v8890_v24, %s6333_s29 }
 0x59f   : > { %3907 = vrot.lane.b32.xlu1 %v8879_v22, %s6334_s8  ;;  %v5175_v22 = vadd.f32 %v9112_v39, %v5062_v52 }
 0x5a0   : > { %v4154_v17 = vpop.permute.xlu0 %4153 }
 0x5a1   : > { %4551 = vrot.lane.b32.xlu2 %v9909_v8, %s6334_s8  ;;  %4227 = vst.msk [vmem:[#allocation4 + $0x218] sm:$0xff] %vm1226_vm2, %v4154_v17  ;;  %v3704_v9 = vpop.permute.xlu1 %3703  ;;  %v5260_v23 = vmax.f32 %v5175_v22, 0.0  ;;  %v9495_v19 = vpop.f32.mrf.mxu1 }
 0x5a2   : > { %3778 = vst.msk [vmem:[#allocation4 + $0x1f8] sm:$0xff] %vm1419_vm3, %v3704_v9  ;;  %v4749_v28 = vld [vmem:[#allocation4 + $0x200] sm:$0xff]  ;;  %v5201_v9 = vpop.f32.mrf.mxu3 }
 0x5a3   : > { %v9481_v21 = vpop.permute.xlu2 %3709  ;;  %3970 = vst.msk [vmem:[#allocation4 + $0x1f8] sm:$0xff] %vm1612_vm4, %v9368_v5  ;;  %5108 = vmatmul.f32.gmra.mxu2 %v4749_v28  ;;  %v5292_v44 = vmin.f32 %v5260_v23, 20.0 }
 0x5a6   : > { %3717 = vrot.lane.b32.xlu0 %v4072_v60, %s6333_s29 }
 0x5a7   : > { %4549 = vrot.lane.b32.xlu1 %v9910_v43, %s6334_s8 }
 0x5a8   : > { %v3514_v61 = vpop.permute.xlu0 %3513 }
 0x5a9   : > { %5363 = vrot.lane.b32.xlu2 %v5293_v32, %s6332_s23  ;;  %3587 = vst.msk [vmem:[#allocation4 + $0x210] sm:$0xff] %vm1226_vm2, %v3514_v61  ;;  %v4346_v5 = vpop.permute.xlu1 %4345  ;;  %v4966_v55 = vpop.f32.mrf.mxu1 }
 0x5aa   : > { %4419 = vst.msk [vmem:[#allocation4 + $0x218] sm:$0xff] %vm1419_vm3, %v4346_v5  ;;  %v4748_v39 = vld [vmem:[#allocation4 + $0x1f8] sm:$0xff]  ;;  %v4967_v4 = vadd.f32 %v9257_v27, %v4966_v55 }
 0x5ab   : > { %v4160_v59 = vpop.permute.xlu2 %4159  ;;  %4995 = vmatmul.f32.gmra.mxu1 %v4748_v39  ;;  %4611 = vst.msk [vmem:[#allocation4 + $0x218] sm:$0xff] %vm1612_vm4, %v9390_v25  ;;  %v4958_v39 = vadd.f32 %v9257_v27, %v9450_v11 }
 0x5ac   : > { %4230 = vst.msk [vmem:[#allocation4 + $0x260] sm:$0xff] %vm1226_vm2, %v4160_v59  ;;  %v5080_v2 = vadd.f32 %v5079_v3, %v4967_v4  ;;  %v4268_v59 = vld [vmem:[#allocation3 + $0x3af] sm:$0xff] }
 0x5ad   : > { %v5071_v55 = vadd.f32 %v9476_v47, %v4958_v39  ;;  %v4460_v3 = vld [vmem:[#allocation3 + $0x3b0] sm:$0xff] }
 0x5ae   : > { %4167 = vrot.lane.b32.xlu0 %v4074_v41, %s6332_s23 }
 0x5af   : > { %5361 = vrot.lane.b32.xlu1 %v5292_v44, %s6332_s23 }
 0x5b0   : > { %v4156_v38 = vpop.permute.xlu0 %4155 }
 0x5b1   : > { %4361 = vrot.lane.b32.xlu2 %v9505_v20, %s6333_s29  ;;  %4228 = vst.msk [vmem:[#allocation4 + $0x230] sm:$0xff] %vm1226_vm2, %v4156_v38  ;;  %v3706_v25 = vpop.permute.xlu1 %3705  ;;  %v9524_v60 = vpop.f32.mrf.mxu1 }
 0x5b2   : > { %3779 = vst.msk [vmem:[#allocation4 + $0x210] sm:$0xff] %vm1419_vm3, %v3706_v25  ;;  %v4752_v42 = vld [vmem:[#allocation4 + $0x218] sm:$0xff] }
 0x5b3   : > { %v3520_v0 = vpop.permute.xlu2 %3519  ;;  %3971 = vst.msk [vmem:[#allocation4 + $0x210] sm:$0xff] %vm1612_vm4, %v9412_v53  ;;  %5111 = vmatmul.f32.gmra.mxu2 %v4752_v42 }
 0x5b4   : > { %3590 = vst.msk [vmem:[#allocation4 + $0x258] sm:$0xff] %vm1226_vm2, %v3520_v0 }
 0x5b6   : > { %3527 = vrot.lane.b32.xlu0 %v9908_v7, %s6332_s23 }
 0x5b7   : > { %4359 = vrot.lane.b32.xlu1 %v9911_v10, %s6333_s29 }
 0x5b8   : > { %v3516_v49 = vpop.permute.xlu0 %3515 }
 0x5b9   : > { %3721 = vrot.lane.b32.xlu2 %v4074_v41, %s6333_s29  ;;  %3588 = vst.msk [vmem:[#allocation4 + $0x228] sm:$0xff] %vm1226_vm2, %v3516_v49  ;;  %v4348_v34 = vpop.permute.xlu1 %4347  ;;  %v5184_v49 = vadd.f32 %v9436_v37, %v5071_v55 }
 0x5ba   : > { %4420 = vst.msk [vmem:[#allocation4 + $0x230] sm:$0xff] %vm1419_vm3, %v4348_v34  ;;  %v4751_v7 = vld [vmem:[#allocation4 + $0x210] sm:$0xff]  ;;  %v4964_v34 = vadd.f32 %v9257_v27, %v9495_v19 }
 0x5bb   : > { %v9527_v53 = vpop.permute.xlu2 %3903  ;;  %4612 = vst.msk [vmem:[#allocation4 + $0x230] sm:$0xff] %vm1612_vm4, %v9428_v14  ;;  %4998 = vmatmul.f32.gmra.mxu1 %v4751_v7  ;;  %v9541_v14 = vpop.f32.mrf.mxu2 }
 0x5bc   : > { %v5077_v37 = vadd.f32 %v9508_v46, %v4964_v34 }
 0x5be   : > { %3911 = vrot.lane.b32.xlu0 %v8890_v24, %s6334_s8  ;;  %v9548_v24 = vpop.f32.mrf.mxu1  ;;  %v5190_v4 = vadd.f32 %v9484_v56, %v5077_v37 }
 0x5bf   : > { %3719 = vrot.lane.b32.xlu1 %v9422_v62, %s6333_s29  ;;  %v5181_v62 = vadd.f32 %v9417_v48, %v5068_v58 }
 0x5c0   : > { %v3900_v13 = vpop.permute.xlu0 %3899 }
 0x5c1   : > { %4171 = vrot.lane.b32.xlu2 %v4076_v16, %s6332_s23  ;;  %v3708_v51 = vpop.permute.xlu1 %3707  ;;  %v5262_v6 = vmax.f32 %v5181_v62, 0.0 }
 0x5c2   : > { %3780 = vst.msk [vmem:[#allocation4 + $0x228] sm:$0xff] %vm1419_vm3, %v3708_v51  ;;  %v4755_v57 = vld [vmem:[#allocation4 + $0x230] sm:$0xff] }
 0x5c3   : > { %v9543_v31 = vpop.permute.xlu2 %4545  ;;  %3972 = vst.msk [vmem:[#allocation4 + $0x228] sm:$0xff] %vm1612_vm4, %v3900_v13  ;;  %5114 = vmatmul.f32.gmra.mxu2 %v4755_v57  ;;  %v9558_v50 = vpop.f32.mrf.mxu2 }
 0x5c6   : > { %4553 = vrot.lane.b32.xlu0 %v8932_v26, %s6334_s8  ;;  %v4975_v52 = vpop.f32.mrf.mxu1  ;;  %v5294_v26 = vmin.f32 %v5262_v6, 20.0 }
 0x5c7   : > { %4169 = vrot.lane.b32.xlu1 %v4075_v18, %s6332_s23  ;;  %v4976_v33 = vadd.f32 %v9257_v27, %v4975_v52 }
 0x5c8   : > { %v4542_v29 = vpop.permute.xlu0 %4541 }
 0x5c9   : > { %3531 = vrot.lane.b32.xlu2 %v9909_v8, %s6332_s23  ;;  %v4158_v63 = vpop.permute.xlu1 %4157  ;;  %v5193_v8 = vadd.f32 %v9502_v12, %v5080_v2 }
 0x5ca   : > { %4229 = vst.msk [vmem:[#allocation4 + $0x248] sm:$0xff] %vm1226_vm2, %v4158_v63  ;;  %v4754_v17 = vld [vmem:[#allocation4 + $0x228] sm:$0xff] }
 0x5cb   : > { %v5358_v48 = vpop.permute.xlu2 %5357  ;;  %4421 = vst.msk [vmem:[#allocation4 + $0x248] sm:$0xff] %vm1419_vm3, %v9461_v30  ;;  %5001 = vmatmul.f32.gmra.mxu1 %v4754_v17  ;;  %v5088_v28 = vpop.f32.mrf.mxu2  ;;  %v5266_v32 = vmax.f32 %v5193_v8, 0.0 }
 0x5cc   : > { %4613 = vst.msk [vmem:[#allocation4 + $0x248] sm:$0xff] %vm1612_vm4, %v4542_v29  ;;  %v5089_v61 = vadd.f32 %v5088_v28, %v4976_v33 }
 0x5cd   : > { %5450 = vst.msk [vmem:[#allocation5 + $0x18] sm:$0xff] %vm1226_vm2, %v5358_v48  ;;  %v5298_v12 = vmin.f32 %v5266_v32, 20.0 }
 0x5ce   : > { %5365 = vrot.lane.b32.xlu0 %v5294_v26, %s6332_s23  ;;  %v5202_v44 = vadd.f32 %v5201_v9, %v5089_v61 }
 0x5cf   : > { %3529 = vrot.lane.b32.xlu1 %v9910_v43, %s6332_s23  ;;  %v4961_v43 = vadd.f32 %v9257_v27, %v9472_v15  ;;  %v4978_v41 = vpop.f32.mrf.mxu1 }
 0x5d0   : > { %v5354_v30 = vpop.permute.xlu0 %5353  ;;  %v5269_v11 = vmax.f32 %v5202_v44, 0.0  ;;  %v4979_v62 = vadd.f32 %v9257_v27, %v4978_v41 }
 0x5d1   : > { %3915 = vrot.lane.b32.xlu2 %v9505_v20, %s6334_s8  ;;  %v3518_v22 = vpop.permute.xlu1 %3517  ;;  %5448 = vst.msk [vmem:[#allocation5 + $0x8] sm:$0xff] %vm1226_vm2, %v5354_v30  ;;  %v9583_v20 = vpop.f32.mrf.mxu3 }
 0x5d2   : > { %3589 = vst.msk [vmem:[#allocation4 + $0x240] sm:$0xff] %vm1226_vm2, %v3518_v22  ;;  %v5301_v47 = vmin.f32 %v5269_v11, 20.0 }
 0x5d3   : > { %v9574_v23 = vpop.permute.xlu2 %4355  ;;  %3781 = vst.msk [vmem:[#allocation4 + $0x240] sm:$0xff] %vm1419_vm3, %v9481_v21  ;;  %v4758_v5 = vld [vmem:[#allocation4 + $0x248] sm:$0xff]  ;;  %v5074_v21 = vadd.f32 %v9492_v35, %v4961_v43  ;;  %v5091_v0 = vpop.f32.mrf.mxu2  ;;  %v4970_v35 = vadd.f32 %v9257_v27, %v9524_v60  ;;  %v5263_v60 = vmax.f32 %v5184_v49, 0.0 }
 0x5d4   : > { %5117 = vmatmul.f32.gmra.mxu2 %v4758_v5  ;;  %v5092_v29 = vadd.f32 %v5091_v0, %v4979_v62 }
 0x5d5   : > { %v5083_v7 = vadd.f32 %v9541_v14, %v4970_v35  ;;  %v5295_v46 = vmin.f32 %v5263_v60, 20.0 }
 0x5d6   : > { %4363 = vrot.lane.b32.xlu0 %v4268_v59, %s6333_s29  ;;  %v5205_v30 = vadd.f32 %v9583_v20, %v5092_v29 }
 0x5d7   : > { %3913 = vrot.lane.b32.xlu1 %v9911_v10, %s6334_s8  ;;  %v5187_v10 = vadd.f32 %v9458_v45, %v5074_v21  ;;  %v4981_v40 = vpop.f32.mrf.mxu1  ;;  %v5196_v57 = vadd.f32 %v9519_v36, %v5083_v7  ;;  %v5265_v36 = vmax.f32 %v5190_v4, 0.0 }
 0x5d8   : > { %v4352_v38 = vpop.permute.xlu0 %4351  ;;  %v5480_v15 = vld [vmem:[#allocation5 + $0x8] sm:$0xff]  ;;  %v4982_v32 = vadd.f32 %v9257_v27, %v4981_v40  ;;  %v5270_v5 = vmax.f32 %v5205_v30, 0.0 }
 0x5d9   : > { %5373 = vrot.lane.b32.xlu2 %v5298_v12, %s6332_s23  ;;  %v3902_v25 = vpop.permute.xlu1 %3901  ;;  %4422 = vst.msk [vmem:[#allocation4 + $0x260] sm:$0xff] %vm1419_vm3, %v4352_v38  ;;  %6144 = vmatmul.msk.f32.gmra.mxu0 %vm331_vm0, %v5480_v15  ;;  %v5264_v1 = vmax.f32 %v5187_v10, 0.0  ;;  %v9605_v16 = vpop.f32.mrf.mxu3  ;;  %v5267_v6 = vmax.f32 %v5196_v57, 0.0  ;;  %v5482_v10 = vld [vmem:[#allocation5 + $0x18] sm:$0xff] }
 0x5da   : > { %3973 = vst.msk [vmem:[#allocation4 + $0x240] sm:$0xff] %vm1612_vm4, %v3902_v25 }
 0x5db   : > { %v9593_v42 = vpop.permute.xlu2 %3715  ;;  %v5296_v14 = vmin.f32 %v5264_v1, 20.0  ;;  %v5299_v33 = vmin.f32 %v5267_v6, 20.0 }
 0x5dd   : > { %v5094_v51 = vpop.f32.mrf.mxu2 }
 0x5de   : > { %3723 = vrot.lane.b32.xlu0 %v4075_v18, %s6333_s29  ;;  %v4973_v18 = vadd.f32 %v9257_v27, %v9548_v24  ;;  %v5095_v39 = vadd.f32 %v5094_v51, %v4982_v32 }
 0x5df   : > { %4555 = vrot.lane.b32.xlu1 %v4460_v3, %s6334_s8 }
 0x5e0   : > { %v3712_v45 = vpop.permute.xlu0 %3711  ;;  %v5086_v48 = vadd.f32 %v9558_v50, %v4973_v18  ;;  %v5297_v50 = vmin.f32 %v5265_v36, 20.0  ;;  %v5208_v38 = vadd.f32 %v9605_v16, %v5095_v39  ;;  %v5519_v36 = vld [vmem:[#allocation2] sm:$0xff] }
 0x5e1   : > { %5379 = vrot.lane.b32.xlu2 %v5301_v47, %s6332_s23  ;;  %v4544_v58 = vpop.permute.xlu1 %4543  ;;  %3782 = vst.msk [vmem:[#allocation4 + $0x258] sm:$0xff] %vm1419_vm3, %v3712_v45  ;;  %v4757_v13 = vld [vmem:[#allocation4 + $0x240] sm:$0xff]  ;;  %v5210_v8 = vpop.f32.mrf.mxu3 }
 0x5e2   : > { %4614 = vst.msk [vmem:[#allocation4 + $0x260] sm:$0xff] %vm1612_vm4, %v4544_v58  ;;  %5004 = vmatmul.f32.gmra.mxu1 %v4757_v13  ;;  %v5199_v28 = vadd.f32 %v9546_v54, %v5086_v48  ;;  %v5302_v54 = vmin.f32 %v5270_v5, 20.0  ;;  %v5271_v25 = vmax.f32 %v5208_v38, 0.0 }
 0x5e3   : > { %v4166_v19 = vpop.permute.xlu2 %4165  ;;  %3974 = vst.msk [vmem:[#allocation4 + $0x258] sm:$0xff] %vm1612_vm4, %v9527_v53 }
 0x5e4   : > { %4233 = vst.msk [vmem:[#allocation4 + $0x2a8] sm:$0xff] %vm1226_vm2, %v4166_v19  ;;  %v5268_v43 = vmax.f32 %v5199_v28, 0.0  ;;  %v5303_v34 = vmin.f32 %v5271_v25, 20.0 }
 0x5e6   : > { %5369 = vrot.lane.b32.xlu0 %v5296_v14, %s6332_s23  ;;  %v5300_v21 = vmin.f32 %v5268_v43, 20.0 }
 0x5e7   : > { %5367 = vrot.lane.b32.xlu1 %v5295_v46, %s6332_s23  ;;  %v5097_v52 = vpop.f32.mrf.mxu2 }
 0x5e8   : > { %v4984_v63 = vpop.f32.mrf.mxu1  ;;  %v4162_v2 = vpop.permute.xlu0 %4161 }
 0x5e9   : > { %v4985_v17 = vadd.f32 %v9257_v27, %v4984_v63  ;;  %v5356_v53 = vpop.permute.xlu1 %5355  ;;  %4231 = vst.msk [vmem:[#allocation4 + $0x278] sm:$0xff] %vm1226_vm2, %v4162_v2  ;;  %v4761_v56 = vld [vmem:[#allocation4 + $0x260] sm:$0xff]  ;;  %v5213_v47 = vpop.f32.mrf.mxu3 }
 0x5ea   : > { %5449 = vst.msk [vmem:[#allocation5 + $0x10] sm:$0xff] %vm1226_vm2, %v5356_v53  ;;  %5120 = vmatmul.f32.gmra.mxu2 %v4761_v56  ;;  %v4760_v9 = vld [vmem:[#allocation4 + $0x258] sm:$0xff] }
 0x5eb   : > { %v3526_v26 = vpop.permute.xlu2 %3525  ;;  %v5098_v24 = vadd.f32 %v5097_v52, %v4985_v17  ;;  %5007 = vmatmul.f32.gmra.mxu1 %v4760_v9 }
 0x5ec   : > { %3593 = vst.msk [vmem:[#allocation4 + $0x2a0] sm:$0xff] %vm1226_vm2, %v3526_v26 }
 0x5ed   : > { %v5211_v22 = vadd.f32 %v5210_v8, %v5098_v24  ;;  %v9677_v24 = vld [vmem:[%s9890_s4 + $0x1] ss:$0 sm:$0xff] }
 0x5ee   : > { %5375 = vrot.lane.b32.xlu0 %v5299_v33, %s6332_s23 }
 0x5ef   : > { %v5272_v61 = vmax.f32 %v5211_v22, 0.0  ;;  %5371 = vrot.lane.b32.xlu1 %v5297_v50, %s6332_s23 }
 0x5f0   : > { %v3522_v59 = vpop.permute.xlu0 %3521 }
 0x5f1   : > { %v5304_v12 = vmin.f32 %v5272_v61, 20.0  ;;  %v4354_v44 = vpop.permute.xlu1 %4353  ;;  %3591 = vst.msk [vmem:[#allocation4 + $0x270] sm:$0xff] %vm1226_vm2, %v3522_v59  ;;  %v5481_v41 = vld [vmem:[#allocation5 + $0x10] sm:$0xff] }
 0x5f2   : > { %4423 = vst.msk [vmem:[#allocation4 + $0x278] sm:$0xff] %vm1419_vm3, %v4354_v44  ;;  %6145 = vmatmul.msk.f32.gmra.mxu0 %vm331_vm0, %v5481_v41 }
 0x5f3   : > { %v9631_v20 = vpop.permute.xlu2 %3909  ;;  %4615 = vst.msk [vmem:[#allocation4 + $0x278] sm:$0xff] %vm1612_vm4, %v9543_v31  ;;  %5385 = vrot.lane.b32.xlu2 %v5304_v12, %s6332_s23 }
 0x5f6   : > { %5381 = vrot.lane.b32.xlu0 %v5302_v54, %s6332_s23  ;;  %v5100_v35 = vpop.f32.mrf.mxu2 }
 0x5f7   : > { %5377 = vrot.lane.b32.xlu1 %v5300_v21, %s6332_s23 }
 0x5f8   : > { %v4987_v15 = vpop.f32.mrf.mxu1  ;;  %v3906_v55 = vpop.permute.xlu0 %3905 }
 0x5f9   : > { %v4988_v11 = vadd.f32 %v9257_v27, %v4987_v15  ;;  %v3714_v0 = vpop.permute.xlu1 %3713 }
 0x5fa   : > { %3783 = vst.msk [vmem:[#allocation4 + $0x270] sm:$0xff] %vm1419_vm3, %v3714_v0  ;;  %6146 = vmatmul.msk.f32.gmra.mxu0 %vm331_vm0, %v5482_v10  ;;  %v4764_v31 = vld [vmem:[#allocation4 + $0x278] sm:$0xff] }
 0x5fb   : > { %v9642_v3 = vpop.permute.xlu2 %4551  ;;  %v5101_v49 = vadd.f32 %v5100_v35, %v4988_v11  ;;  %3975 = vst.msk [vmem:[#allocation4 + $0x270] sm:$0xff] %vm1612_vm4, %v3906_v55  ;;  %5123 = vmatmul.f32.gmra.mxu2 %v4764_v31 }
 0x5fd   : > { %v5214_v1 = vadd.f32 %v5213_v47, %v5101_v49 }
 0x5ff   : > { %v5273_v7 = vmax.f32 %v5214_v1, 0.0  ;;  %5383 = vrot.lane.b32.xlu1 %v5303_v34, %s6332_s23 }
 0x600   : > { %v4548_v40 = vpop.permute.xlu0 %4547 }
 0x601   : > { %v5305_v45 = vmin.f32 %v5273_v7, 20.0  ;;  %v4164_v16 = vpop.permute.xlu1 %4163 }
 0x602   : > { %4232 = vst.msk [vmem:[#allocation4 + $0x290] sm:$0xff] %vm1226_vm2, %v4164_v16  ;;  %v4763_v37 = vld [vmem:[#allocation4 + $0x270] sm:$0xff] }
 0x603   : > { %v5364_v60 = vpop.permute.xlu2 %5363  ;;  %5387 = vrot.lane.b32.xlu0 %v5305_v45, %s6332_s23  ;;  %5010 = vmatmul.f32.gmra.mxu1 %v4763_v37  ;;  %4424 = vst.msk [vmem:[#allocation4 + $0x290] sm:$0xff] %vm1419_vm3, %v9574_v23  ;;  %v5216_v23 = vpop.f32.mrf.mxu3 }
 0x604   : > { %5453 = vst.msk [vmem:[#allocation5 + $0x30] sm:$0xff] %vm1226_vm2, %v5364_v60 }
 0x605   : > { %4616 = vst.msk [vmem:[#allocation4 + $0x290] sm:$0xff] %vm1612_vm4, %v4548_v40 }
 0x606   : > { %v5103_v14 = vpop.f32.mrf.mxu2 }
 0x608   : > { %v4990_v58 = vpop.f32.mrf.mxu1  ;;  %v5360_v13 = vpop.permute.xlu0 %5359 }
 0x609   : > { %v4991_v51 = vadd.f32 %v9257_v27, %v4990_v58  ;;  %v3524_v19 = vpop.permute.xlu1 %3523  ;;  %5451 = vst.msk [vmem:[#allocation5 + $0x20] sm:$0xff] %vm1226_vm2, %v5360_v13 }
 0x60a   : > { %3592 = vst.msk [vmem:[#allocation4 + $0x288] sm:$0xff] %vm1226_vm2, %v3524_v19 }
 0x60b   : > { %v9656_v57 = vpop.permute.xlu2 %4361  ;;  %v5104_v62 = vadd.f32 %v5103_v14, %v4991_v51  ;;  %3784 = vst.msk [vmem:[#allocation4 + $0x288] sm:$0xff] %vm1419_vm3, %v9593_v42  ;;  %v9670_v42 = vld [vmem:[%s9892_s6] ss:$0 sm:$0xff]  ;;  %v5219_v28 = vpop.f32.mrf.mxu3  ;;  %v5485_v34 = vld [vmem:[#allocation5 + $0x30] sm:$0xff]  ;;  %v4780_v14 = vld [vmem:[#allocation4 + $0x2f8] sm:$0xff] }
 0x60c   : > { %v4767_v46 = vld [vmem:[#allocation4 + $0x290] sm:$0xff]  ;;  %6142 = vmatmul.msk.f32.gmra.mxu3 %vm718_vm1, %v4780_v14 }
 0x60d   : > { %v5217_v4 = vadd.f32 %v5216_v23, %v5104_v62  ;;  %5126 = vmatmul.f32.gmra.mxu2 %v4767_v46  ;;  %v5522_v14 = vld [vmem:[#allocation2 + $0x30] sm:$0xff] }
 0x60f   : > { %v5274_v18 = vmax.f32 %v5217_v4, 0.0 }
 0x610   : > { %v4358_v6 = vpop.permute.xlu0 %4357  ;;  %v5483_v27 = vld [vmem:[#allocation5 + $0x20] sm:$0xff] }
 0x611   : > { %v5306_v29 = vmin.f32 %v5274_v18, 20.0  ;;  %v3908_v63 = vpop.permute.xlu1 %3907  ;;  %4425 = vst.msk [vmem:[#allocation4 + $0x2a8] sm:$0xff] %vm1419_vm3, %v4358_v6  ;;  %6147 = vmatmul.msk.f32.gmra.mxu0 %vm331_vm0, %v5483_v27 }
 0x612   : > { %3976 = vst.msk [vmem:[#allocation4 + $0x288] sm:$0xff] %vm1612_vm4, %v3908_v63 }
 0x613   : > { %v9663_v2 = vpop.permute.xlu2 %3721  ;;  %5389 = vrot.lane.b32.xlu1 %v5306_v29, %s6332_s23  ;;  %v5222_v0 = vpop.f32.mrf.mxu3 }
 0x616   : > { %v5106_v33 = vpop.f32.mrf.mxu2 }
 0x618   : > { %v3718_v17 = vpop.permute.xlu0 %3717  ;;  %v4993_v56 = vpop.f32.mrf.mxu1 }
 0x619   : > { %v5664_v48 = vpop.f32.mrf.mxu0  ;;  %v4550_v52 = vpop.permute.xlu1 %4549  ;;  %3785 = vst.msk [vmem:[#allocation4 + $0x2a0] sm:$0xff] %vm1419_vm3, %v3718_v17  ;;  %v4766_v26 = vld [vmem:[#allocation4 + $0x288] sm:$0xff]  ;;  %v4994_v9 = vadd.f32 %v9677_v24, %v4993_v56 }
 0x61a   : > { %v5665_v53 = vadd.f32 %v5664_v48, %v5519_v36  ;;  %4617 = vst.msk [vmem:[#allocation4 + $0x2a8] sm:$0xff] %vm1612_vm4, %v4550_v52  ;;  %5013 = vmatmul.f32.gmra.mxu1 %v4766_v26 }
 0x61b   : > { %v4172_v8 = vpop.permute.xlu2 %4171  ;;  %v5107_v50 = vadd.f32 %v5106_v33, %v4994_v9  ;;  %3977 = vst.msk [vmem:[#allocation4 + $0x2a0] sm:$0xff] %vm1612_vm4, %v9631_v20  ;;  %v5225_v51 = vpop.f32.mrf.mxu3  ;;  %v5520_v33 = vld [vmem:[#allocation2 + $0x10] sm:$0xff] }
 0x61c   : > { %v5764_v30 = vadd.f32 %v9670_v42, %v5665_v53  ;;  %4236 = vst.msk [vmem:[#allocation4 + $0x2f0] sm:$0xff] %vm1226_vm2, %v4172_v8 }
 0x61d   : > { %v5220_v32 = vadd.f32 %v5219_v28, %v5107_v50 }
 0x61e   : > { %v5796_v22 = vmax.f32 %v5764_v30, 0.0 }
 0x61f   : > { %v5275_v5 = vmax.f32 %v5220_v32, 0.0 }
 0x620   : > { %v5828_v61 = vmin.f32 %v5796_v22, 20.0  ;;  %v4168_v59 = vpop.permute.xlu0 %4167 }
 0x621   : > { %v5362_v43 = vpop.permute.xlu1 %5361  ;;  %v4770_v39 = vld [vmem:[#allocation4 + $0x2a8] sm:$0xff]  ;;  %v5307_v12 = vmin.f32 %v5275_v5, 20.0  ;;  %4234 = vst.msk [vmem:[#allocation4 + $0x2c0] sm:$0xff] %vm1226_vm2, %v4168_v59 }
 0x622   : > { %5860 = vst [vmem:[%s9687_s22] sm:$0xff] %v5828_v61  ;;  %5129 = vmatmul.f32.gmra.mxu2 %v4770_v39  ;;  %v4769_v41 = vld [vmem:[#allocation4 + $0x2a0] sm:$0xff] }
 0x623   : > { %v3532_v44 = vpop.permute.xlu2 %3531  ;;  %5452 = vst.msk [vmem:[#allocation5 + $0x28] sm:$0xff] %vm1226_vm2, %v5362_v43  ;;  %5391 = vrot.lane.b32.xlu2 %v5307_v12, %s6332_s23  ;;  %5016 = vmatmul.f32.gmra.mxu1 %v4769_v41  ;;  %v5228_v17 = vpop.f32.mrf.mxu3 }
 0x624   : > { %3596 = vst.msk [vmem:[#allocation4 + $0x2e8] sm:$0xff] %vm1226_vm2, %v3532_v44 }
 0x626   : > { %v5109_v55 = vpop.f32.mrf.mxu2 }
 0x628   : > { %v4996_v20 = vpop.f32.mrf.mxu1  ;;  %v3528_v54 = vpop.permute.xlu0 %3527 }
 0x629   : > { %v4997_v21 = vadd.f32 %v9677_v24, %v4996_v20  ;;  %v4360_v38 = vpop.permute.xlu1 %4359  ;;  %3594 = vst.msk [vmem:[#allocation4 + $0x2b8] sm:$0xff] %vm1226_vm2, %v3528_v54 }
 0x62a   : > { %v5484_v15 = vld [vmem:[#allocation5 + $0x28] sm:$0xff]  ;;  %4426 = vst.msk [vmem:[#allocation4 + $0x2c0] sm:$0xff] %vm1419_vm3, %v4360_v38 }
 0x62b   : > { %v9696_v25 = vpop.permute.xlu2 %3915  ;;  %6148 = vmatmul.msk.f32.gmra.mxu0 %vm331_vm0, %v5484_v15  ;;  %v5110_v11 = vadd.f32 %v5109_v55, %v4997_v21  ;;  %4618 = vst.msk [vmem:[#allocation4 + $0x2c0] sm:$0xff] %vm1612_vm4, %v9642_v3  ;;  %v5231_v38 = vpop.f32.mrf.mxu3 }
 0x62d   : > { %v5223_v10 = vadd.f32 %v5222_v0, %v5110_v11 }
 0x62f   : > { %v5276_v35 = vmax.f32 %v5223_v10, 0.0 }
 0x630   : > { %v3912_v31 = vpop.permute.xlu0 %3911 }
 0x631   : > { %v5308_v49 = vmin.f32 %v5276_v35, 20.0  ;;  %v3720_v47 = vpop.permute.xlu1 %3719 }
 0x632   : > { %3786 = vst.msk [vmem:[#allocation4 + $0x2b8] sm:$0xff] %vm1419_vm3, %v3720_v47  ;;  %v4773_v7 = vld [vmem:[#allocation4 + $0x2c0] sm:$0xff] }
 0x633   : > { %v5374_v1 = vpop.permute.xlu2 %5373  ;;  %6149 = vmatmul.msk.f32.gmra.mxu0 %vm331_vm0, %v5485_v34  ;;  %5393 = vrot.lane.b32.xlu0 %v5308_v49, %s6332_s23  ;;  %3978 = vst.msk [vmem:[#allocation4 + $0x2b8] sm:$0xff] %vm1612_vm4, %v3912_v31  ;;  %v5234_v34 = vpop.f32.mrf.mxu3 }
 0x634   : > { %5458 = vst.msk [vmem:[#allocation5 + $0x58] sm:$0xff] %vm1226_vm2, %v5374_v1  ;;  %5132 = vmatmul.f32.gmra.mxu2 %v4773_v7  ;;  %v5521_v1 = vld [vmem:[#allocation2 + $0x20] sm:$0xff] }
 0x636   : > { %v5112_v37 = vpop.f32.mrf.mxu2 }
 0x638   : > { %v4554_v3 = vpop.permute.xlu0 %4553  ;;  %v4999_v40 = vpop.f32.mrf.mxu1 }
 0x639   : > { %v4170_v45 = vpop.permute.xlu1 %4169  ;;  %v5000_v16 = vadd.f32 %v9677_v24, %v4999_v40 }
 0x63a   : > { %4235 = vst.msk [vmem:[#allocation4 + $0x2d8] sm:$0xff] %vm1226_vm2, %v4170_v45  ;;  %v4772_v58 = vld [vmem:[#allocation4 + $0x2b8] sm:$0xff] }
 0x63b   : > { %v5380_v60 = vpop.permute.xlu2 %5379  ;;  %v5113_v13 = vadd.f32 %v5112_v37, %v5000_v16  ;;  %4427 = vst.msk [vmem:[#allocation4 + $0x2d8] sm:$0xff] %vm1419_vm3, %v9656_v57  ;;  %5019 = vmatmul.f32.gmra.mxu1 %v4772_v58 }
 0x63c   : > { %5461 = vst.msk [vmem:[#allocation5 + $0x70] sm:$0xff] %vm1226_vm2, %v5380_v60 }
 0x63d   : > { %4619 = vst.msk [vmem:[#allocation4 + $0x2d8] sm:$0xff] %vm1612_vm4, %v4554_v3  ;;  %v5226_v19 = vadd.f32 %v5225_v51, %v5113_v13 }
 0x63f   : > { %v5277_v62 = vmax.f32 %v5226_v19, 0.0 }
 0x640   : > { %v5366_v23 = vpop.permute.xlu0 %5365 }
 0x641   : > { %v3530_v46 = vpop.permute.xlu1 %3529  ;;  %5454 = vst.msk [vmem:[#allocation5 + $0x38] sm:$0xff] %vm1226_vm2, %v5366_v23  ;;  %v5309_v4 = vmin.f32 %v5277_v62, 20.0 }
 0x642   : > { %3595 = vst.msk [vmem:[#allocation4 + $0x2d0] sm:$0xff] %vm1226_vm2, %v3530_v46  ;;  %v5490_v46 = vld [vmem:[#allocation5 + $0x58] sm:$0xff] }
 0x643   : > { %3787 = vst.msk [vmem:[#allocation4 + $0x2d0] sm:$0xff] %vm1419_vm3, %v9663_v2  ;;  %5395 = vrot.lane.b32.xlu1 %v5309_v4, %s6332_s23 }
 0x644   : > { %v4776_v57 = vld [vmem:[#allocation4 + $0x2d8] sm:$0xff] }
 0x645   : > { %5135 = vmatmul.f32.gmra.mxu2 %v4776_v57 }
 0x646   : > { %v5115_v36 = vpop.f32.mrf.mxu2 }
 0x648   : > { %v5002_v18 = vpop.f32.mrf.mxu1  ;;  %v4364_v6 = vpop.permute.xlu0 %4363  ;;  %v5486_v27 = vld [vmem:[#allocation5 + $0x38] sm:$0xff] }
 0x649   : > { %v5003_v29 = vadd.f32 %v9677_v24, %v5002_v18  ;;  %v3914_v63 = vpop.permute.xlu1 %3913  ;;  %4428 = vst.msk [vmem:[#allocation4 + $0x2f0] sm:$0xff] %vm1419_vm3, %v4364_v6  ;;  %6150 = vmatmul.msk.f32.gmra.mxu0 %vm331_vm0, %v5486_v27 }
 0x64a   : > { %3979 = vst.msk [vmem:[#allocation4 + $0x2d0] sm:$0xff] %vm1612_vm4, %v3914_v63 }
 0x64b   : > { %v5116_v48 = vadd.f32 %v5115_v36, %v5003_v29 }
 0x64d   : > { %v5229_v2 = vadd.f32 %v5228_v17, %v5116_v48  ;;  %v5386_v53 = vpop.permute.xlu2 %5385  ;;  %v5237_v17 = vpop.f32.mrf.mxu3 }
 0x64e   : > { %5464 = vst.msk [vmem:[#allocation5 + $0x88] sm:$0xff] %vm1226_vm2, %v5386_v53 }
 0x64f   : > { %v5278_v56 = vmax.f32 %v5229_v2, 0.0 }
 0x650   : > { %v3724_v52 = vpop.permute.xlu0 %3723 }
 0x651   : > { %v5310_v26 = vmin.f32 %v5278_v56, 20.0  ;;  %v4556_v9 = vpop.permute.xlu1 %4555  ;;  %3788 = vst.msk [vmem:[#allocation4 + $0x2e8] sm:$0xff] %vm1419_vm3, %v3724_v52  ;;  %v4775_v8 = vld [vmem:[#allocation4 + $0x2d0] sm:$0xff] }
 0x652   : > { %4620 = vst.msk [vmem:[#allocation4 + $0x2f0] sm:$0xff] %vm1612_vm4, %v4556_v9  ;;  %5022 = vmatmul.f32.gmra.mxu1 %v4775_v8  ;;  %v5523_v9 = vld [vmem:[#allocation2 + $0x40] sm:$0xff] }
 0x653   : > { %3980 = vst.msk [vmem:[#allocation4 + $0x2e8] sm:$0xff] %vm1612_vm4, %v9696_v25  ;;  %5397 = vrot.lane.b32.xlu2 %v5310_v26, %s6332_s23 }
 0x656   : > { %v5667_v30 = vpop.f32.mrf.mxu0 }
 0x657   : > { %v5668_v50 = vadd.f32 %v5667_v30, %v5520_v33  ;;  %v5118_v41 = vpop.f32.mrf.mxu2 }
 0x658   : > { %v5370_v28 = vpop.permute.xlu0 %5369 }
 0x659   : > { %v5765_v22 = vadd.f32 %v9670_v42, %v5668_v50  ;;  %v5368_v32 = vpop.permute.xlu1 %5367  ;;  %5456 = vst.msk [vmem:[#allocation5 + $0x48] sm:$0xff] %vm1226_vm2, %v5370_v28  ;;  %v4779_v61 = vld [vmem:[#allocation4 + $0x2f0] sm:$0xff] }
 0x65a   : > { %5455 = vst.msk [vmem:[#allocation5 + $0x40] sm:$0xff] %vm1226_vm2, %v5368_v32  ;;  %5138 = vmatmul.f32.gmra.mxu2 %v4779_v61  ;;  %v4778_v5 = vld [vmem:[#allocation4 + $0x2e8] sm:$0xff]  ;;  %v5493_v50 = vld [vmem:[#allocation5 + $0x70] sm:$0xff] }
 0x65b   : > { %v5797_v59 = vmax.f32 %v5765_v22, 0.0  ;;  %5025 = vmatmul.f32.gmra.mxu1 %v4778_v5 }
 0x65d   : > { %v5829_v43 = vmin.f32 %v5797_v59, 20.0 }
 0x65f   : > { %5861 = vst [vmem:[%s9687_s22 + $0x8] sm:$0xff] %v5829_v43  ;;  %v5005_v39 = vpop.f32.mrf.mxu1 }
 0x660   : > { %v5006_v12 = vadd.f32 %v9677_v24, %v5005_v39  ;;  %v5376_v44 = vpop.permute.xlu0 %5375  ;;  %v5488_v35 = vld [vmem:[#allocation5 + $0x48] sm:$0xff]  ;;  %v5240_v39 = vpop.f32.mrf.mxu3 }
 0x661   : > { %v5372_v20 = vpop.permute.xlu1 %5371  ;;  %5459 = vst.msk [vmem:[#allocation5 + $0x60] sm:$0xff] %vm1226_vm2, %v5376_v44  ;;  %v5487_v54 = vld [vmem:[#allocation5 + $0x40] sm:$0xff] }
 0x662   : > { %v5119_v21 = vadd.f32 %v5118_v41, %v5006_v12  ;;  %5457 = vst.msk [vmem:[#allocation5 + $0x50] sm:$0xff] %vm1226_vm2, %v5372_v20  ;;  %6151 = vmatmul.msk.f32.gmra.mxu0 %vm331_vm0, %v5487_v54 }
 0x664   : > { %v5232_v15 = vadd.f32 %v5231_v38, %v5119_v21 }
 0x666   : > { %v5279_v55 = vmax.f32 %v5232_v15, 0.0 }
 0x668   : > { %v5311_v25 = vmin.f32 %v5279_v55, 20.0  ;;  %v5382_v11 = vpop.permute.xlu0 %5381  ;;  %v5008_v0 = vpop.f32.mrf.mxu1  ;;  %v5491_v63 = vld [vmem:[#allocation5 + $0x60] sm:$0xff] }
 0x669   : > { %v5378_v10 = vpop.permute.xlu1 %5377  ;;  %5462 = vst.msk [vmem:[#allocation5 + $0x78] sm:$0xff] %vm1226_vm2, %v5382_v11  ;;  %v5009_v31 = vadd.f32 %v9677_v24, %v5008_v0  ;;  %v5489_v16 = vld [vmem:[#allocation5 + $0x50] sm:$0xff] }
 0x66a   : > { %5460 = vst.msk [vmem:[#allocation5 + $0x68] sm:$0xff] %vm1226_vm2, %v5378_v10  ;;  %5399 = vrot.lane.b32.xlu0 %v5311_v25, %s6332_s23  ;;  %6152 = vmatmul.msk.f32.gmra.mxu0 %vm331_vm0, %v5488_v35  ;;  %v5243_v25 = vpop.f32.mrf.mxu3  ;;  %v5524_v11 = vld [vmem:[#allocation2 + $0x50] sm:$0xff] }
 0x66d   : > { %v5121_v49 = vpop.f32.mrf.mxu2 }
 0x66e   : > { %v5122_v47 = vadd.f32 %v5121_v49, %v5009_v31  ;;  %v5496_v31 = vld [vmem:[#allocation5 + $0x88] sm:$0xff] }
 0x66f   : > { %v5670_v7 = vpop.f32.mrf.mxu0 }
 0x670   : > { %v5235_v3 = vadd.f32 %v5234_v34, %v5122_v47  ;;  %v5671_v40 = vadd.f32 %v5670_v7, %v5521_v1  ;;  %v5494_v59 = vld [vmem:[#allocation5 + $0x78] sm:$0xff] }
 0x671   : > { %v5384_v45 = vpop.permute.xlu1 %5383  ;;  %v5492_v26 = vld [vmem:[#allocation5 + $0x68] sm:$0xff] }
 0x672   : > { %v5280_v60 = vmax.f32 %v5235_v3, 0.0  ;;  %v5766_v37 = vadd.f32 %v9670_v42, %v5671_v40  ;;  %5463 = vst.msk [vmem:[#allocation5 + $0x80] sm:$0xff] %vm1226_vm2, %v5384_v45  ;;  %6153 = vmatmul.msk.f32.gmra.mxu0 %vm331_vm0, %v5489_v16  ;;  %v5525_v40 = vld [vmem:[#allocation2 + $0x60] sm:$0xff] }
 0x674   : > { %v5312_v58 = vmin.f32 %v5280_v60, 20.0  ;;  %v5798_v13 = vmax.f32 %v5766_v37, 0.0 }
 0x675   : > { %v5388_v51 = vpop.permute.xlu0 %5387 }
 0x676   : > { %v5830_v19 = vmin.f32 %v5798_v13, 20.0  ;;  %5465 = vst.msk [vmem:[#allocation5 + $0x90] sm:$0xff] %vm1226_vm2, %v5388_v51  ;;  %5401 = vrot.lane.b32.xlu1 %v5312_v58, %s6332_s23 }
 0x677   : > { %v5673_v62 = vpop.f32.mrf.mxu0 }
 0x678   : > { %5862 = vst [vmem:[%s9687_s22 + $0x10] sm:$0xff] %v5830_v19  ;;  %v5674_v23 = vadd.f32 %v5673_v62, %v5522_v14 }
 0x679   : > { %v5495_v54 = vld [vmem:[#allocation5 + $0x80] sm:$0xff] }
 0x67a   : > { %v5767_v4 = vadd.f32 %v9670_v42, %v5674_v23  ;;  %6154 = vmatmul.msk.f32.gmra.mxu0 %vm331_vm0, %v5490_v46 }
 0x67c   : > { %v5799_v57 = vmax.f32 %v5767_v4, 0.0  ;;  %v5246_v4 = vpop.f32.mrf.mxu3 }
 0x67d   : > { %v5392_v6 = vpop.permute.xlu2 %5391  ;;  %v5497_v60 = vld [vmem:[#allocation5 + $0x90] sm:$0xff] }
 0x67e   : > { %v5831_v18 = vmin.f32 %v5799_v57, 20.0  ;;  %5467 = vst.msk [vmem:[#allocation5 + $0xa0] sm:$0xff] %vm1226_vm2, %v5392_v6  ;;  %v5124_v36 = vpop.f32.mrf.mxu2 }
 0x680   : > { %5863 = vst [vmem:[%s9687_s22 + $0x18] sm:$0xff] %v5831_v18  ;;  %v5011_v27 = vpop.f32.mrf.mxu1 }
 0x681   : > { %v5012_v29 = vadd.f32 %v9677_v24, %v5011_v27 }
 0x682   : > { %6155 = vmatmul.msk.f32.gmra.mxu0 %vm331_vm0, %v5491_v63 }
 0x683   : > { %v5125_v48 = vadd.f32 %v5124_v36, %v5012_v29  ;;  %v5526_v29 = vld [vmem:[#allocation2 + $0x70] sm:$0xff] }
 0x685   : > { %v5238_v2 = vadd.f32 %v5237_v17, %v5125_v48  ;;  %v5390_v53 = vpop.permute.xlu1 %5389  ;;  %v5499_v6 = vld [vmem:[#allocation5 + $0xa0] sm:$0xff] }
 0x686   : > { %5466 = vst.msk [vmem:[#allocation5 + $0x98] sm:$0xff] %vm1226_vm2, %v5390_v53 }
 0x687   : > { %v5281_v56 = vmax.f32 %v5238_v2, 0.0 }
 0x689   : > { %v5313_v52 = vmin.f32 %v5281_v56, 20.0 }
 0x68a   : > { %6156 = vmatmul.msk.f32.gmra.mxu0 %vm331_vm0, %v5492_v26 }
 0x68b   : > { %5403 = vrot.lane.b32.xlu2 %v5313_v52, %s6332_s23 }
 0x68d   : > { %v5498_v14 = vld [vmem:[#allocation5 + $0x98] sm:$0xff] }
 0x68e   : > { %v5676_v8 = vpop.f32.mrf.mxu0 }
 0x68f   : > { %v5677_v33 = vadd.f32 %v5676_v8, %v5523_v9 }
 0x690   : > { %v5127_v5 = vpop.f32.mrf.mxu2 }
 0x691   : > { %v5768_v30 = vadd.f32 %v9670_v42, %v5677_v33  ;;  %v5249_v33 = vpop.f32.mrf.mxu3 }
 0x692   : > { %6157 = vmatmul.msk.f32.gmra.mxu0 %vm331_vm0, %v5493_v50 }
 0x693   : > { %v5800_v28 = vmax.f32 %v5768_v30, 0.0 }
 0x695   : > { %v5832_v22 = vmin.f32 %v5800_v28, 20.0 }
 0x697   : > { %5864 = vst [vmem:[%s9687_s22 + $0x20] sm:$0xff] %v5832_v22  ;;  %v5014_v32 = vpop.f32.mrf.mxu1 }
 0x698   : > { %v5015_v61 = vadd.f32 %v9677_v24, %v5014_v32 }
 0x69a   : > { %v5128_v43 = vadd.f32 %v5127_v5, %v5015_v61  ;;  %6158 = vmatmul.msk.f32.gmra.mxu0 %vm331_vm0, %v5494_v59 }
 0x69c   : > { %v5241_v12 = vadd.f32 %v5240_v39, %v5128_v43  ;;  %v5252_v43 = vpop.f32.mrf.mxu3 }
 0x69e   : > { %v5282_v44 = vmax.f32 %v5241_v12, 0.0  ;;  %v5527_v12 = vld [vmem:[#allocation2 + $0x80] sm:$0xff] }
 0x6a0   : > { %v5314_v41 = vmin.f32 %v5282_v44, 20.0  ;;  %v5017_v20 = vpop.f32.mrf.mxu1 }
 0x6a1   : > { %v5018_v21 = vadd.f32 %v9677_v24, %v5017_v20 }
 0x6a2   : > { %5405 = vrot.lane.b32.xlu0 %v5314_v41, %s6332_s23  ;;  %6159 = vmatmul.msk.f32.gmra.mxu0 %vm331_vm0, %v5495_v54 }
 0x6a5   : > { %v5130_v38 = vpop.f32.mrf.mxu2  ;;  %v5394_v15 = vpop.permute.xlu0 %5393 }
 0x6a6   : > { %v5131_v55 = vadd.f32 %v5130_v38, %v5018_v21  ;;  %5468 = vst.msk [vmem:[#allocation5 + $0xa8] sm:$0xff] %vm1226_vm2, %v5394_v15 }
 0x6a8   : > { %v5679_v0 = vpop.f32.mrf.mxu0  ;;  %v5244_v10 = vadd.f32 %v5243_v25, %v5131_v55 }
 0x6a9   : > { %v5680_v35 = vadd.f32 %v5679_v0, %v5524_v11  ;;  %v5528_v11 = vld [vmem:[#allocation2 + $0x90] sm:$0xff] }
 0x6aa   : > { %v5283_v49 = vmax.f32 %v5244_v10, 0.0  ;;  %6160 = vmatmul.msk.f32.gmra.mxu0 %vm331_vm0, %v5496_v31 }
 0x6ab   : > { %v5769_v47 = vadd.f32 %v9670_v42, %v5680_v35 }
 0x6ac   : > { %v5315_v34 = vmin.f32 %v5283_v49, 20.0 }
 0x6ad   : > { %v5801_v1 = vmax.f32 %v5769_v47, 0.0  ;;  %v5398_v7 = vpop.permute.xlu2 %5397  ;;  %v5500_v17 = vld [vmem:[#allocation5 + $0xa8] sm:$0xff] }
 0x6ae   : > { %5470 = vst.msk [vmem:[#allocation5 + $0xb8] sm:$0xff] %vm1226_vm2, %v5398_v7  ;;  %5407 = vrot.lane.b32.xlu1 %v5315_v34, %s6332_s23  ;;  %v5529_v34 = vld [vmem:[#allocation2 + $0xa0] sm:$0xff] }
 0x6af   : > { %v5833_v3 = vmin.f32 %v5801_v1, 20.0 }
 0x6b0   : > { %v5682_v45 = vpop.f32.mrf.mxu0 }
 0x6b1   : > { %5865 = vst [vmem:[%s9687_s22 + $0x28] sm:$0xff] %v5833_v3  ;;  %v5683_v16 = vadd.f32 %v5682_v45, %v5525_v40 }
 0x6b2   : > { %6161 = vmatmul.msk.f32.gmra.mxu0 %vm331_vm0, %v5497_v60  ;;  %v5530_v60 = vld [vmem:[#allocation2 + $0xb0] sm:$0xff] }
 0x6b3   : > { %v5770_v37 = vadd.f32 %v9670_v42, %v5683_v16 }
 0x6b5   : > { %v5802_v58 = vmax.f32 %v5770_v37, 0.0  ;;  %v5396_v51 = vpop.permute.xlu1 %5395  ;;  %v5502_v32 = vld [vmem:[#allocation5 + $0xb8] sm:$0xff] }
 0x6b6   : > { %5469 = vst.msk [vmem:[#allocation5 + $0xb0] sm:$0xff] %vm1226_vm2, %v5396_v51 }
 0x6b7   : > { %v5834_v13 = vmin.f32 %v5802_v58, 20.0  ;;  %v5133_v23 = vpop.f32.mrf.mxu2 }
 0x6b8   : > { %v5020_v19 = vpop.f32.mrf.mxu1 }
 0x6b9   : > { %5866 = vst [vmem:[%s9687_s22 + $0x30] sm:$0xff] %v5834_v13  ;;  %v5021_v62 = vadd.f32 %v9677_v24, %v5020_v19 }
 0x6ba   : > { %6162 = vmatmul.msk.f32.gmra.mxu0 %vm331_vm0, %v5498_v14 }
 0x6bb   : > { %v5134_v46 = vadd.f32 %v5133_v23, %v5021_v62  ;;  %v5531_v62 = vld [vmem:[#allocation2 + $0xc0] sm:$0xff] }
 0x6bd   : > { %v5247_v57 = vadd.f32 %v5246_v4, %v5134_v46  ;;  %v5501_v9 = vld [vmem:[#allocation5 + $0xb0] sm:$0xff] }
 0x6bf   : > { %v5284_v18 = vmax.f32 %v5247_v57, 0.0 }
 0x6c1   : > { %v5316_v27 = vmin.f32 %v5284_v18, 20.0 }
 0x6c2   : > { %6163 = vmatmul.msk.f32.gmra.mxu0 %vm331_vm0, %v5499_v6  ;;  %v5532_v6 = vld [vmem:[#allocation2 + $0xd0] sm:$0xff] }
 0x6c3   : > { %5409 = vrot.lane.b32.xlu2 %v5316_v27, %s6332_s23 }
 0x6c6   : > { %v5685_v63 = vpop.f32.mrf.mxu0 }
 0x6c7   : > { %v5686_v36 = vadd.f32 %v5685_v63, %v5526_v29 }
 0x6c8   : > { %v5136_v26 = vpop.f32.mrf.mxu2 }
 0x6c9   : > { %v5771_v48 = vadd.f32 %v9670_v42, %v5686_v36 }
 0x6ca   : > { %6164 = vmatmul.msk.f32.gmra.mxu0 %vm331_vm0, %v5500_v17  ;;  %v5533_v17 = vld [vmem:[#allocation2 + $0xe0] sm:$0xff] }
 0x6cb   : > { %v5803_v2 = vmax.f32 %v5771_v48, 0.0 }
 0x6cd   : > { %v5835_v53 = vmin.f32 %v5803_v2, 20.0 }
 0x6cf   : > { %5867 = vst [vmem:[%s9687_s22 + $0x38] sm:$0xff] %v5835_v53  ;;  %v5023_v56 = vpop.f32.mrf.mxu1 }
 0x6d0   : > { %v5024_v52 = vadd.f32 %v9677_v24, %v5023_v56 }
 0x6d2   : > { %v5137_v8 = vadd.f32 %v5136_v26, %v5024_v52  ;;  %6165 = vmatmul.msk.f32.gmra.mxu0 %vm331_vm0, %v5501_v9 }
 0x6d4   : > { %v5250_v30 = vadd.f32 %v5249_v33, %v5137_v8  ;;  %v5534_v8 = vld [vmem:[#allocation2 + $0xf0] sm:$0xff] }
 0x6d6   : > { %v5285_v50 = vmax.f32 %v5250_v30, 0.0 }
 0x6d8   : > { %v5317_v28 = vmin.f32 %v5285_v50, 20.0  ;;  %v5026_v22 = vpop.f32.mrf.mxu1 }
 0x6d9   : > { %v5027_v61 = vadd.f32 %v9677_v24, %v5026_v22 }
 0x6da   : > { %5411 = vrot.lane.b32.xlu0 %v5317_v28, %s6332_s23  ;;  %6166 = vmatmul.msk.f32.gmra.mxu0 %vm331_vm0, %v5502_v32 }
 0x6dc   : > { %v5400_v5 = vpop.permute.xlu0 %5399 }
 0x6dd   : > { %5471 = vst.msk [vmem:[#allocation5 + $0xc0] sm:$0xff] %vm1226_vm2, %v5400_v5  ;;  %v5139_v59 = vpop.f32.mrf.mxu2  ;;  %v5535_v5 = vld [vmem:[#allocation2 + $0x100] sm:$0xff] }
 0x6de   : > { %v5140_v39 = vadd.f32 %v5139_v59, %v5027_v61 }
 0x6df   : > { %v5688_v44 = vpop.f32.mrf.mxu0 }
 0x6e0   : > { %v5253_v41 = vadd.f32 %v5252_v43, %v5140_v39  ;;  %v5689_v20 = vadd.f32 %v5688_v44, %v5527_v12 }
 0x6e2   : > { %v5286_v54 = vmax.f32 %v5253_v41, 0.0  ;;  %v5772_v21 = vadd.f32 %v9670_v42, %v5689_v20  ;;  %v5536_v20 = vld [vmem:[#allocation2 + $0x110] sm:$0xff] }
 0x6e4   : > { %v5318_v38 = vmin.f32 %v5286_v54, 20.0  ;;  %v5804_v15 = vmax.f32 %v5772_v21, 0.0  ;;  %v5503_v55 = vld [vmem:[#allocation5 + $0xc0] sm:$0xff] }
 0x6e5   : > { %v5404_v25 = vpop.permute.xlu2 %5403  ;;  %6167 = vmatmul.msk.f32.gmra.mxu0 %vm331_vm0, %v5503_v55 }
 0x6e6   : > { %v5836_v24 = vmin.f32 %v5804_v15, 20.0  ;;  %5473 = vst.msk [vmem:[#allocation5 + $0xd0] sm:$0xff] %vm1226_vm2, %v5404_v25  ;;  %5413 = vrot.lane.b32.xlu1 %v5318_v38, %s6332_s23  ;;  %s6183_s23 = sshll.u32 %s6398_s28, 8 }
 0x6e7   : > { %v5691_v0 = vpop.f32.mrf.mxu0  ;;  %s5905_s14 = scalar_lea.hbm %s9893_s7, %s6183_s23 }
 0x6e8   : > { %5868 = vst [vmem:[%s9687_s22 + $0x40] sm:$0xff] %v5836_v24  ;;  %v5692_v10 = vadd.f32 %v5691_v0, %v5528_v11  ;;  %v5402_v35 = vpop.permute.xlu1 %5401  ;;  %v5537_v24 = vld [vmem:[#allocation2 + $0x120] sm:$0xff]  ;;  %s5908_s16 = sshll.u32 %s5905_s14, 4  ;;  %s5909_s16 = int_to_ptr.hbm [resolvable:$true] %s5908_s16 }
 0x6e9   : > { %5472 = vst.msk [vmem:[#allocation5 + $0xc8] sm:$0xff] %vm1226_vm2, %v5402_v35  ;;  %s6281_s28 = sshra.s32 %s5909_s16, 4  ;;  %s6282_s28 = int_to_ptr.hbm [resolvable:$true] %s6281_s28 }
 0x6ea   : > { %v5773_v31 = vadd.f32 %v9670_v42, %v5692_v10  ;;  %s6283_s29 = scalar_lea.hbm %s6282_s28, 256  ;;  %p6288_p0 = scmp.lt.s32.totalorder %s6282_s28, %s9893_s7 }
 0x6eb   : > { %p6284_p11 = scmp.ne.s32.totalorder %s6282_s28, %s6283_s29  ;;  %p6289_p1 = scmp.lt.s32.totalorder %s6287_s18, %s6283_s29 }
 0x6ec   : > { %v5805_v49 = vmax.f32 %v5773_v31, 0.0 }
 0x6ed   : > { %v5505_v13 = vld [vmem:[#allocation5 + $0xd0] sm:$0xff]  ;;  %p6285_p12 = pnand %p6284_p11, %p6415_p5  ;;  %p6290_p2 = por %p6289_p1, %p6288_p0 }
 0x6ee   : > { %v5837_v47 = vmin.f32 %v5805_v49, 20.0 }
 0x6ef   : > { %v5694_v1 = vpop.f32.mrf.mxu0  ;;  %p6286_p13 = pneg %p6285_p12 }
 0x6f0   : > { %5869 = vst [vmem:[%s9687_s22 + $0x48] sm:$0xff] %v5837_v47  ;;  %v5695_v7 = vadd.f32 %v5694_v1, %v5529_v34  ;;  %v5504_v3 = vld [vmem:[#allocation5 + $0xc8] sm:$0xff]  ;;  %v5538_v47 = vld [vmem:[#allocation2 + $0x130] sm:$0xff] }
 0x6f1   : > { %6168 = vmatmul.msk.f32.gmra.mxu0 %vm331_vm0, %v5504_v3  ;;  %p6291_p3 = pnand %p6290_p2, %p6286_p13 }
 0x6f2   : > { %v5774_v40 = vadd.f32 %v9670_v42, %v5695_v7 }
 0x6f4   : > { %v5806_v45 = vmax.f32 %v5774_v40, 0.0 }
 0x6f6   : > { %v5838_v16 = vmin.f32 %v5806_v45, 20.0  ;;  %v5539_v45 = vld [vmem:[#allocation2 + $0x140] sm:$0xff] }
 0x6f7   : > { %v5697_v37 = vpop.f32.mrf.mxu0 }
 0x6f8   : > { %5870 = vst [vmem:[%s9687_s22 + $0x50] sm:$0xff] %v5838_v16  ;;  %v5698_v58 = vadd.f32 %v5697_v37, %v5530_v60 }
 0x6f9   : > { %6169 = vmatmul.msk.f32.gmra.mxu0 %vm331_vm0, %v5505_v13 }
 0x6fa   : > { %v5775_v51 = vadd.f32 %v9670_v42, %v5698_v58 }
 0x6fc   : > { %v5807_v19 = vmax.f32 %v5775_v51, 0.0  ;;  %v5540_v51 = vld [vmem:[#allocation2 + $0x150] sm:$0xff] }
 0x6fe   : > { %v5839_v14 = vmin.f32 %v5807_v19, 20.0 }
 0x6ff   : > { %v5700_v23 = vpop.f32.mrf.mxu0 }
 0x700   : > { %5871 = vst [vmem:[%s9687_s22 + $0x58] sm:$0xff] %v5839_v14  ;;  %v5701_v46 = vadd.f32 %v5700_v23, %v5531_v62 }
 0x702   : > { %v5776_v4 = vadd.f32 %v9670_v42, %v5701_v46 }
 0x704   : > { %v5808_v57 = vmax.f32 %v5776_v4, 0.0 }
 0x706   : > { %v5840_v18 = vmin.f32 %v5808_v57, 20.0  ;;  %v5541_v57 = vld [vmem:[#allocation2 + $0x160] sm:$0xff] }
 0x707   : > { %v5703_v27 = vpop.f32.mrf.mxu0 }
 0x708   : > { %5872 = vst [vmem:[%s9687_s22 + $0x60] sm:$0xff] %v5840_v18  ;;  %v5704_v29 = vadd.f32 %v5703_v27, %v5532_v6 }
 0x70a   : > { %v5777_v63 = vadd.f32 %v9670_v42, %v5704_v29 }
 0x70c   : > { %v5809_v36 = vmax.f32 %v5777_v63, 0.0 }
 0x70e   : > { %v5841_v48 = vmin.f32 %v5809_v36, 20.0 }
 0x70f   : > { %v5706_v2 = vpop.f32.mrf.mxu0 }
 0x710   : > { %5873 = vst [vmem:[%s9687_s22 + $0x68] sm:$0xff] %v5841_v48  ;;  %v5707_v53 = vadd.f32 %v5706_v2, %v5533_v17  ;;  %v5542_v48 = vld [vmem:[#allocation2 + $0x170] sm:$0xff] }
 0x712   : > { %v5778_v56 = vadd.f32 %v9670_v42, %v5707_v53 }
 0x714   : > { %v5810_v52 = vmax.f32 %v5778_v56, 0.0  ;;  %v5406_v26 = vpop.permute.xlu0 %5405 }
 0x715   : > { %5474 = vst.msk [vmem:[#allocation5 + $0xd8] sm:$0xff] %vm1226_vm2, %v5406_v26 }
 0x716   : > { %v5842_v9 = vmin.f32 %v5810_v52, 20.0 }
 0x717   : > { %v5709_v33 = vpop.f32.mrf.mxu0 }
 0x718   : > { %5874 = vst [vmem:[%s9687_s22 + $0x70] sm:$0xff] %v5842_v9  ;;  %v5710_v30 = vadd.f32 %v5709_v33, %v5534_v8  ;;  %v5543_v8 = vld [vmem:[#allocation2 + $0x180] sm:$0xff] }
 0x71a   : > { %v5779_v50 = vadd.f32 %v9670_v42, %v5710_v30 }
 0x71c   : > { %v5811_v28 = vmax.f32 %v5779_v50, 0.0  ;;  %v5506_v22 = vld [vmem:[#allocation5 + $0xd8] sm:$0xff] }
 0x71d   : > { %6170 = vmatmul.msk.f32.gmra.mxu0 %vm331_vm0, %v5506_v22  ;;  %v5410_v61 = vpop.permute.xlu2 %5409 }
 0x71e   : > { %v5843_v32 = vmin.f32 %v5811_v28, 20.0  ;;  %5476 = vst.msk [vmem:[#allocation5 + $0xe8] sm:$0xff] %vm1226_vm2, %v5410_v61 }
 0x71f   : > { %v5712_v59 = vpop.f32.mrf.mxu0 }
 0x720   : > { %5875 = vst [vmem:[%s9687_s22 + $0x78] sm:$0xff] %v5843_v32  ;;  %v5713_v43 = vadd.f32 %v5712_v59, %v5535_v5  ;;  %v5408_v39 = vpop.permute.xlu1 %5407  ;;  %v5544_v32 = vld [vmem:[#allocation2 + $0x190] sm:$0xff] }
 0x721   : > { %5475 = vst.msk [vmem:[#allocation5 + $0xe0] sm:$0xff] %vm1226_vm2, %v5408_v39 }
 0x722   : > { %v5780_v12 = vadd.f32 %v9670_v42, %v5713_v43 }
 0x724   : > { %v5812_v44 = vmax.f32 %v5780_v12, 0.0  ;;  %v5545_v12 = vld [vmem:[#allocation2 + $0x1a0] sm:$0xff] }
 0x725   : > { %v5508_v10 = vld [vmem:[#allocation5 + $0xe8] sm:$0xff] }
 0x726   : > { %v5844_v41 = vmin.f32 %v5812_v44, 20.0 }
 0x727   : > { %v5715_v54 = vpop.f32.mrf.mxu0 }
 0x728   : > { %5876 = vst [vmem:[%s9687_s22 + $0x80] sm:$0xff] %v5844_v41  ;;  %v5716_v21 = vadd.f32 %v5715_v54, %v5536_v20  ;;  %v5507_v38 = vld [vmem:[#allocation5 + $0xe0] sm:$0xff] }
 0x729   : > { %6171 = vmatmul.msk.f32.gmra.mxu0 %vm331_vm0, %v5507_v38  ;;  %v5546_v38 = vld [vmem:[#allocation2 + $0x1b0] sm:$0xff] }
 0x72a   : > { %v5781_v15 = vadd.f32 %v9670_v42, %v5716_v21 }
 0x72c   : > { %v5813_v55 = vmax.f32 %v5781_v15, 0.0 }
 0x72e   : > { %v5845_v25 = vmin.f32 %v5813_v55, 20.0 }
 0x72f   : > { %v5718_v11 = vpop.f32.mrf.mxu0 }
 0x730   : > { %5877 = vst [vmem:[%s9687_s22 + $0x88] sm:$0xff] %v5845_v25  ;;  %v5719_v0 = vadd.f32 %v5718_v11, %v5537_v24 }
 0x731   : > { %6172 = vmatmul.msk.f32.gmra.mxu0 %vm331_vm0, %v5508_v10 }
 0x732   : > { %v5782_v35 = vadd.f32 %v9670_v42, %v5719_v0  ;;  %v5547_v0 = vld [vmem:[#allocation2 + $0x1c0] sm:$0xff] }
 0x734   : > { %v5814_v31 = vmax.f32 %v5782_v35, 0.0 }
 0x736   : > { %v5846_v49 = vmin.f32 %v5814_v31, 20.0 }
 0x737   : > { %v5721_v34 = vpop.f32.mrf.mxu0 }
 0x738   : > { %5878 = vst [vmem:[%s9687_s22 + $0x90] sm:$0xff] %v5846_v49  ;;  %v5722_v1 = vadd.f32 %v5721_v34, %v5538_v47  ;;  %v5548_v34 = vld [vmem:[#allocation2 + $0x1d0] sm:$0xff] }
 0x73a   : > { %v5783_v7 = vadd.f32 %v9670_v42, %v5722_v1 }
 0x73c   : > { %v5815_v3 = vmax.f32 %v5783_v7, 0.0 }
 0x73e   : > { %v5847_v40 = vmin.f32 %v5815_v3, 20.0 }
 0x73f   : > { %v5724_v16 = vpop.f32.mrf.mxu0 }
 0x740   : > { %5879 = vst [vmem:[%s9687_s22 + $0x98] sm:$0xff] %v5847_v40  ;;  %v5725_v60 = vadd.f32 %v5724_v16, %v5539_v45  ;;  %v5549_v16 = vld [vmem:[#allocation2 + $0x1e0] sm:$0xff] }
 0x742   : > { %v5784_v37 = vadd.f32 %v9670_v42, %v5725_v60 }
 0x744   : > { %v5816_v58 = vmax.f32 %v5784_v37, 0.0 }
 0x746   : > { %v5848_v13 = vmin.f32 %v5816_v58, 20.0 }
 0x747   : > { %v5727_v19 = vpop.f32.mrf.mxu0 }
 0x748   : > { %5880 = vst [vmem:[%s9687_s22 + $0xa0] sm:$0xff] %v5848_v13  ;;  %v5728_v14 = vadd.f32 %v5727_v19, %v5540_v51  ;;  %v5550_v19 = vld [vmem:[#allocation2 + $0x1f0] sm:$0xff] }
 0x74a   : > { %v5785_v62 = vadd.f32 %v9670_v42, %v5728_v14 }
 0x74c   : > { %v5817_v23 = vmax.f32 %v5785_v62, 0.0  ;;  %v5412_v46 = vpop.permute.xlu0 %5411 }
 0x74d   : > { %5477 = vst.msk [vmem:[#allocation5 + $0xf0] sm:$0xff] %vm1226_vm2, %v5412_v46 }
 0x74e   : > { %v5849_v4 = vmin.f32 %v5817_v23, 20.0 }
 0x74f   : > { %v5730_v18 = vpop.f32.mrf.mxu0 }
 0x750   : > { %5881 = vst [vmem:[%s9687_s22 + $0xa8] sm:$0xff] %v5849_v4  ;;  %v5731_v6 = vadd.f32 %v5730_v18, %v5541_v57 }
 0x752   : > { %v5786_v27 = vadd.f32 %v9670_v42, %v5731_v6 }
 0x754   : > { %v5818_v29 = vmax.f32 %v5786_v27, 0.0  ;;  %v5509_v63 = vld [vmem:[#allocation5 + $0xf0] sm:$0xff] }
 0x755   : > { %6173 = vmatmul.msk.f32.gmra.mxu0 %vm331_vm0, %v5509_v63 }
 0x756   : > { %v5850_v36 = vmin.f32 %v5818_v29, 20.0 }
 0x757   : > { %v5733_v17 = vpop.f32.mrf.mxu0 }
 0x758   : > { %5882 = vst [vmem:[%s9687_s22 + $0xb0] sm:$0xff] %v5850_v36  ;;  %v5734_v2 = vadd.f32 %v5733_v17, %v5542_v48  ;;  %v5414_v53 = vpop.permute.xlu1 %5413 }
 0x759   : > { %5478 = vst.msk [vmem:[#allocation5 + $0xf8] sm:$0xff] %vm1226_vm2, %v5414_v53 }
 0x75a   : > { %v5787_v56 = vadd.f32 %v9670_v42, %v5734_v2 }
 0x75c   : > { %v5819_v52 = vmax.f32 %v5787_v56, 0.0 }
 0x75e   : > { %v5851_v26 = vmin.f32 %v5819_v52, 20.0 }
 0x760   : > { %5883 = vst [vmem:[%s9687_s22 + $0xb8] sm:$0xff] %v5851_v26  ;;  %v5510_v9 = vld [vmem:[#allocation5 + $0xf8] sm:$0xff] }
 0x761   : > { %6174 = vmatmul.msk.f32.gmra.mxu0 %vm331_vm0, %v5510_v9 }
 0x762   : > { %v5736_v33 = vpop.f32.mrf.mxu0 }
 0x763   : > { %v5737_v30 = vadd.f32 %v5736_v33, %v5543_v8 }
 0x765   : > { %v5788_v50 = vadd.f32 %v9670_v42, %v5737_v30 }
 0x767   : > { %v5820_v28 = vmax.f32 %v5788_v50, 0.0 }
 0x769   : > { %v5852_v22 = vmin.f32 %v5820_v28, 20.0 }
 0x76b   : > { %5884 = vst [vmem:[%s9687_s22 + $0xc0] sm:$0xff] %v5852_v22 }
 0x76e   : > { %v5739_v61 = vpop.f32.mrf.mxu0 }
 0x76f   : > { %v5740_v5 = vadd.f32 %v5739_v61, %v5544_v32 }
 0x771   : > { %v5789_v59 = vadd.f32 %v9670_v42, %v5740_v5 }
 0x773   : > { %v5821_v43 = vmax.f32 %v5789_v59, 0.0 }
 0x775   : > { %v5853_v39 = vmin.f32 %v5821_v43, 20.0 }
 0x776   : > { %v5742_v44 = vpop.f32.mrf.mxu0 }
 0x777   : > { %5885 = vst [vmem:[%s9687_s22 + $0xc8] sm:$0xff] %v5853_v39  ;;  %v5743_v41 = vadd.f32 %v5742_v44, %v5545_v12 }
 0x779   : > { %v5790_v20 = vadd.f32 %v9670_v42, %v5743_v41 }
 0x77b   : > { %v5822_v54 = vmax.f32 %v5790_v20, 0.0 }
 0x77d   : > { %v5854_v21 = vmin.f32 %v5822_v54, 20.0 }
 0x77f   : > { %5886 = vst [vmem:[%s9687_s22 + $0xd0] sm:$0xff] %v5854_v21 }
 0x79a   : > { %v5745_v15 = vpop.f32.mrf.mxu0 }
 0x79b   : > { %v5746_v55 = vadd.f32 %v5745_v15, %v5546_v38 }
 0x79d   : > { %v5791_v25 = vadd.f32 %v9670_v42, %v5746_v55 }
 0x79f   : > { %v5823_v24 = vmax.f32 %v5791_v25, 0.0 }
 0x7a1   : > { %v5855_v11 = vmin.f32 %v5823_v24, 20.0 }
 0x7a3   : > { %5887 = vst [vmem:[%s9687_s22 + $0xd8] sm:$0xff] %v5855_v11 }
 0x7a6   : > { %v5748_v10 = vpop.f32.mrf.mxu0 }
 0x7a7   : > { %v5749_v35 = vadd.f32 %v5748_v10, %v5547_v0 }
 0x7a9   : > { %v5792_v31 = vadd.f32 %v9670_v42, %v5749_v35 }
 0x7ab   : > { %v5824_v49 = vmax.f32 %v5792_v31, 0.0 }
 0x7ad   : > { %v5856_v47 = vmin.f32 %v5824_v49, 20.0 }
 0x7ae   : > { %v5751_v1 = vpop.f32.mrf.mxu0 }
 0x7af   : > { %5888 = vst [vmem:[%s9687_s22 + $0xe0] sm:$0xff] %v5856_v47  ;;  %v5752_v7 = vadd.f32 %v5751_v1, %v5548_v34 }
 0x7b1   : > { %v5793_v3 = vadd.f32 %v9670_v42, %v5752_v7 }
 0x7b3   : > { %v5825_v40 = vmax.f32 %v5793_v3, 0.0 }
 0x7b5   : > { %v5857_v45 = vmin.f32 %v5825_v40, 20.0 }
 0x7b7   : > { %5889 = vst [vmem:[%s9687_s22 + $0xe8] sm:$0xff] %v5857_v45 }
 0x7d2   : > { %v5754_v60 = vpop.f32.mrf.mxu0 }
 0x7d3   : > { %v5755_v37 = vadd.f32 %v5754_v60, %v5549_v16 }
 0x7d5   : > { %v5794_v58 = vadd.f32 %v9670_v42, %v5755_v37 }
 0x7d7   : > { %v5826_v13 = vmax.f32 %v5794_v58, 0.0 }
 0x7d9   : > { %v5858_v51 = vmin.f32 %v5826_v13, 20.0 }
 0x7db   : > { %5890 = vst [vmem:[%s9687_s22 + $0xf0] sm:$0xff] %v5858_v51 }
 0x7de   : > { %v5757_v14 = vpop.f32.mrf.mxu0 }
 0x7df   : > { %v5758_v62 = vadd.f32 %v5757_v14, %v5550_v19 }
 0x7e1   : > { %v5795_v23 = vadd.f32 %v9670_v42, %v5758_v62 }
 0x7e3   : > { %v5827_v46 = vmax.f32 %v5795_v23, 0.0 }
 0x7e5   : > { %v5859_v4 = vmin.f32 %v5827_v46, 20.0 }
 0x7e7   : > { %5891 = vst [vmem:[%s9687_s22 + $0xf8] sm:$0xff] %v5859_v4 }
 0x7e8   : > { %6294 = shalt.err (!%p6291_p3)
}
 0x7e9   : > { %s6335_s19 = smov 128   ;;  %s6336_s22 = smov 8  }
 0x7ea   : > { %6212 = dma.vmem_to_hbm [thread:$0]  (%p6415_p5), %s5907_s15, 4096, %s5909_s16, %s5893_s17, %s6335_s19, %s6335_s19, %s6336_s22  }
 0x7eb PF: > { %p6218_p4 = scmp.ge.s32.totalorder %s6329_s27, 2  ;;  %s5923_s9 = sand.u32 1, %s6317_s24  }
 0x7ec   : > { %s5924_s13 = scalar_lea.sflag [#allocation7], %s5923_s9 }
 0x7ed   : > { %p6215_p7 = pnand %p6218_p4, %p6419_p6 }
 0x7ef   : > { %p6216_p8 = pneg %p6215_p7 }
 0x7f1   : > { %6312 = dma.done.wait (%p6216_p8), %s5924_s13, 4096  }
 0x7f2   : > { %6314 = vsyncadd (%p6216_p8), %s5924_s13, 4294963200  ;;  %p17_p9 = scmp.ge.s32.totalorder %s6402_s30, 4   ;;  %s9912_s24 = smov %s6321_s25 }
 0x7f3   : > { %s9913_s25 = smov %s6325_s26  ;;  %s9914_s26 = smov %s6413_s10 }
 0x7f4   : > { %s9915_s27 = smov %s6402_s30  ;;  %19 = sbr.rel (!%p17_p9) target bundleno = 3 (0x3), region = 86 }
 0x7f9   :  { %5930 = vsyncpa [#allocation7], 1 }
 0x7fa   :  { %5932 = vsyncpa [#allocation7 + $0x1], 1 }

</bundles_post_ra>
